<compile_context>
chip_gen: v7x
topology: tpu7x:2x2x1
jax: 0.10.0
libtpu: 0.0.40
codegen_flags: <defaults>
</compile_context>

<pallas_src>
import jax
import jax.numpy as jnp
from jax import lax
from jax.experimental import pallas as pl
from jax.experimental.pallas import tpu as pltpu

# ----- Gray-Scott constants (defaults from the PyTorch module) -----
N = 63                        # grid_size (module default)
SP = 64                       # spatially padded size -> lane-friendly flat layouts
H = 1.0 / (N - 1)
INV_H2 = 1.0 / (H * H)
DA = 0.00025
DS = 0.0005
MU = 0.065
RHO = 0.04

K_IN = 4 * N * N              # original encoder input features (15876)
M_OUT = 2 * N * N             # original POD output features (7938)
K_PAD = 4 * SP * SP           # 16384 = 128*128 padded encoder input features
M_PAD = 2 * SP * SP           # 8192  = 64*128  padded POD output features
TK = 4096                     # K-chunk for the encoder reduction grid
KC = K_PAD // TK              # 4 chunks


# ------------------------------------------------------------------
# 3x3 Laplacian with replicate padding on a 2-D (N, N) field:
#   lap(x)[i,j] = (4*x[i,j] - x[i-1,j] - x[i+1,j] - x[i,j-1] - x[i,j+1]) / h^2
# Matches nn.Conv2d(1,1,3,padding=1,padding_mode='replicate') with the given kernel.
# NOTE: kept as concatenates (not pltpu.roll + edge masks) for exact, known-good
#       boundary behaviour; the stencil is a negligible fraction of runtime.
# ------------------------------------------------------------------
def _lap2d(x):
    up    = jnp.concatenate([x[:1, :],  x[:-1, :]], axis=0)   # x[i-1, j]
    down  = jnp.concatenate([x[1:, :],  x[-1:, :]], axis=0)   # x[i+1, j]
    left  = jnp.concatenate([x[:, :1],  x[:, :-1]], axis=1)   # x[i, j-1]
    right = jnp.concatenate([x[:, 1:],  x[:, -1:]], axis=1)   # x[i, j+1]
    return (4.0 * x - up - down - left - right) * INV_H2


def _stencil_cost(B, c_in, c_out):
    # Advisory hint only: tiny VPU kernel, bytes dominated by the in/out planes.
    return pl.CostEstimate(
        flops=B * N * N * 40,
        transcendentals=0,
        bytes_accessed=B * (c_in * N * N + c_out * SP * SP) * 4,
    )


# ------------------------------------------------------------------
# Kernel 1: GrayScott_Grad + pack (spatially padded) encoder input.
#   per-sample block: x (1,2,63,63) -> G (1,4,64,64) = [F_A, F_S, A, S], pad region = 0
# ------------------------------------------------------------------
def grad_pack_kernel(x_ref, g_ref):
    A = x_ref[0, 0]
    S = x_ref[0, 1]
    lap_A = _lap2d(A)
    lap_S = _lap2d(S)
    F_A = DA * lap_A - S * A * A + (MU + RHO) * A
    F_S = DS * lap_S + S * A * A - RHO * (1.0 - S)
    g_ref[...] = jnp.zeros_like(g_ref)          # zero the 64x64 pad region
    g_ref[0, 0, :N, :N] = F_A
    g_ref[0, 1, :N, :N] = F_S
    g_ref[0, 2, :N, :N] = A
    g_ref[0, 3, :N, :N] = S


def grad_pack(x):
    B = x.shape[0]
    return pl.pallas_call(
        grad_pack_kernel,
        out_shape=jax.ShapeDtypeStruct((B, 4, SP, SP), jnp.float32),
        grid=(B,),
        in_specs=[pl.BlockSpec((1, 2, N, N), lambda b: (b, 0, 0, 0))],
        out_specs=pl.BlockSpec((1, 4, SP, SP), lambda b: (b, 0, 0, 0)),
        compiler_params=pltpu.CompilerParams(dimension_semantics=("parallel",)),
        cost_estimate=_stencil_cost(B, 2, 4),
    )(x)


# ------------------------------------------------------------------
# Kernel 3: GrayScott_Hess_Delta + pack (spatially padded) encoder input.
#   G (1,4,64,64) [F_A,F_S,A,S], delta (1,2,64,64) -> R (1,4,64,64) [R_A,R_S,A,S]
# ------------------------------------------------------------------
def hess_pack_kernel(g_ref, d_ref, r_ref):
    F_A = g_ref[0, 0, :N, :N]
    F_S = g_ref[0, 1, :N, :N]
    A   = g_ref[0, 2, :N, :N]
    S   = g_ref[0, 3, :N, :N]
    dA  = d_ref[0, 0, :N, :N]
    dS  = d_ref[0, 1, :N, :N]

    lap_dA = _lap2d(dA)
    lap_dS = _lap2d(dS)
    J_AA_dA = DA * lap_dA - 2.0 * dA * S * A + (MU + RHO) * dA
    J_SS_dS = DS * lap_dS + (A * A + RHO) * dS
    J_AS_dS = -(A * A) * dS
    J_SA_dA = 2.0 * S * A * dA

    r_ref[...] = jnp.zeros_like(r_ref)
    r_ref[0, 0, :N, :N] = J_AA_dA + J_AS_dS + F_A
    r_ref[0, 1, :N, :N] = J_SA_dA + J_SS_dS + F_S
    r_ref[0, 2, :N, :N] = A
    r_ref[0, 3, :N, :N] = S


def hess_pack(G, delta):
    B = G.shape[0]
    return pl.pallas_call(
        hess_pack_kernel,
        out_shape=jax.ShapeDtypeStruct((B, 4, SP, SP), jnp.float32),
        grid=(B,),
        in_specs=[pl.BlockSpec((1, 4, SP, SP), lambda b: (b, 0, 0, 0)),
                  pl.BlockSpec((1, 2, SP, SP), lambda b: (b, 0, 0, 0))],
        out_specs=pl.BlockSpec((1, 4, SP, SP), lambda b: (b, 0, 0, 0)),
        compiler_params=pltpu.CompilerParams(dimension_semantics=("parallel",)),
        cost_estimate=_stencil_cost(B, 6, 4),
    )(G, delta)


# ------------------------------------------------------------------
# Kernels 2 & 4: Encoder (flatten -> Linear -> tanh) fused with the POD matmul.
#   K-chunked reduction grid over the 16384 input features; branch pre-activation
#   accumulated in an f32 VMEM scratch; weights streamed as bf16.
#   x (B, K_PAD) f32, w (P, K_PAD) bf16 [PyTorch (out,in) layout, padded], b (1, P) f32,
#   trunk (P, M_PAD) bf16 -> out (B, M_PAD) f32   [K4 additionally adds `prev`].
# ------------------------------------------------------------------
_NT_DIMS = (((1,), (1,)), ((), ()))   # contract lhs dim 1 with rhs dim 1 (x @ w.T)


def _encoder_pod_finish(acc_ref, b_ref, t_ref):
    branch = jnp.tanh(acc_ref[...] + b_ref[...])                   # (B, P) f32
    return jnp.dot(branch.astype(jnp.bfloat16), t_ref[...],
                   preferred_element_type=jnp.float32)              # (B, M_PAD) f32


def encoder_pod_kernel(x_ref, w_ref, b_ref, t_ref, o_ref, acc_ref):
    @pl.when(pl.program_id(0) == 0)
    def _():
        acc_ref[...] = jnp.zeros_like(acc_ref)

    acc_ref[...] += lax.dot_general(x_ref[...].astype(jnp.bfloat16), w_ref[...],
                                    _NT_DIMS, preferred_element_type=jnp.float32)

    @pl.when(pl.program_id(0) == pl.num_programs(0) - 1)
    def _():
        o_ref[...] = _encoder_pod_finish(acc_ref, b_ref, t_ref)


def encoder_pod_add_kernel(x_ref, w_ref, b_ref, t_ref, prev_ref, o_ref, acc_ref):
    @pl.when(pl.program_id(0) == 0)
    def _():
        acc_ref[...] = jnp.zeros_like(acc_ref)

    acc_ref[...] += lax.dot_general(x_ref[...].astype(jnp.bfloat16), w_ref[...],
                                    _NT_DIMS, preferred_element_type=jnp.float32)

    @pl.when(pl.program_id(0) == pl.num_programs(0) - 1)
    def _():
        o_ref[...] = prev_ref[...] + _encoder_pod_finish(acc_ref, b_ref, t_ref)


def _encoder_cost(B, P):
    flops = 2 * B * K_PAD * P + 2 * B * P * M_PAD
    bytes_accessed = (B * K_PAD * 4 + P * K_PAD * 2 + P * 4
                      + P * M_PAD * 2 + B * M_PAD * 4)
    return pl.CostEstimate(flops=flops, transcendentals=B * P,
                           bytes_accessed=bytes_accessed)


def _encoder_grid_spec(B, P, with_prev):
    in_specs = [pl.BlockSpec((B, TK), lambda k: (0, k)),        # x chunk
                pl.BlockSpec((P, TK), lambda k: (0, k)),        # w chunk (bf16)
                pl.BlockSpec((1, P), lambda k: (0, 0)),         # bias (resident)
                pl.BlockSpec((P, M_PAD), lambda k: (0, 0))]     # trunk (resident)
    if with_prev:
        in_specs.append(pl.BlockSpec((B, M_PAD), lambda k: (0, 0)))  # prev (resident)
    return pltpu.PrefetchScalarGridSpec(
        num_scalar_prefetch=0, grid=(KC,),
        in_specs=in_specs,
        out_specs=pl.BlockSpec((B, M_PAD), lambda k: (0, 0)),
        scratch_shapes=[pltpu.VMEM((B, P), jnp.float32)])


def encoder_pod(x_flat, w, b, trunk):
    B = x_flat.shape[0]
    P = w.shape[0]
    return pl.pallas_call(
        encoder_pod_kernel,
        out_shape=jax.ShapeDtypeStruct((B, M_PAD), jnp.float32),
        grid_spec=_encoder_grid_spec(B, P, with_prev=False),
        compiler_params=pltpu.CompilerParams(dimension_semantics=("arbitrary",)),
        cost_estimate=_encoder_cost(B, P),
    )(x_flat, w, b, trunk)


def encoder_pod_add(x_flat, w, b, trunk, prev):
    B = x_flat.shape[0]
    P = w.shape[0]
    return pl.pallas_call(
        encoder_pod_add_kernel,
        out_shape=jax.ShapeDtypeStruct((B, M_PAD), jnp.float32),
        grid_spec=_encoder_grid_spec(B, P, with_prev=True),
        compiler_params=pltpu.CompilerParams(dimension_semantics=("arbitrary",)),
        cost_estimate=_encoder_cost(B, P),
        input_output_aliases={4: 0},   # alias prev (d1) into the output buffer
    )(x_flat, w, b, trunk, prev)


# ------------------------------------------------------------------
# DeepONet_POD forward
# ------------------------------------------------------------------
def deeponet_pod_forward(x_branch, params):
    """x_branch: (B, 2, 63, 63) float32 (NCHW, channels = [A, S])."""
    B = x_branch.shape[0]

    # grad: G = [F_A, F_S, A, S] in the 64x64-padded layout (pad region exactly 0)
    G = grad_pack(x_branch)                                          # (B, 4, 64, 64)

    # encoder(.) @ trunk   (reshape (B,4,64,64)->(B,16384) is a free bitcast)
    d1 = encoder_pod(G.reshape(B, K_PAD),
                     params["w1"], params["b1"], params["trunk"])    # (B, 8192)
    delta = d1.reshape(B, 2, SP, SP)                                 # pad region == 0

    # hess_delta(A, S, delta_A, delta_S) packed as [R_A, R_S, A, S]
    R = hess_pack(G, delta)                                          # (B, 4, 64, 64)

    # encoder2(.) @ trunk + delta   (Newton add fused; d1 aliased into the output)
    out_flat = encoder_pod_add(R.reshape(B, K_PAD),
                               params["w2"], params["b2"],
                               params["trunk"], d1)                  # (B, 8192)

    return out_flat.reshape(B, 2, SP, SP)[:, :, :N, :N]              # (B, 2, 63, 63)


# ------------------------------------------------------------------
# Parameters: raw PyTorch-layout weights -> padded bf16 kernel layout (done once).
# ------------------------------------------------------------------
def make_params(branch_features=32):
    key = jax.random.PRNGKey(0)
    k1, k2, k3, k4, k5 = jax.random.split(key, 5)
    return {
        # PyTorch nn.Linear weight layout: (out_features, in_features)
        "w1": jax.random.normal(k1, (branch_features, K_IN), jnp.float32) * 0.01,
        "b1": jax.random.normal(k2, (1, branch_features), jnp.float32) * 0.01,
        "w2": jax.random.normal(k3, (branch_features, K_IN), jnp.float32) * 0.01,
        "b2": jax.random.normal(k4, (1, branch_features), jnp.float32) * 0.01,
        # POD basis: trunk = V[:branch_features].view(branch_features, -1)
        "trunk": jax.random.normal(k5, (branch_features, M_OUT), jnp.float32) * 0.1,
    }


def prepare_params(raw):
    """Re-lay weights into the 64x64 spatially-padded flat layout and cast to bf16."""
    P = raw["w1"].shape[0]

    def pad_nchw(w, c):
        w4 = w.reshape(P, c, N, N)
        w4 = jnp.pad(w4, ((0, 0), (0, 0), (0, SP - N), (0, SP - N)))
        return w4.reshape(P, c * SP * SP).astype(jnp.bfloat16)

    return {
        "w1": pad_nchw(raw["w1"], 4),
        "b1": raw["b1"].astype(jnp.float32),
        "w2": pad_nchw(raw["w2"], 4),
        "b2": raw["b2"].astype(jnp.float32),
        "trunk": pad_nchw(raw["trunk"], 2),
    }


if __name__ == "__main__":
    batch = 2
    branch_features = 32
    params = prepare_params(make_params(branch_features))

    key = jax.random.PRNGKey(0)
    # A, S concentrations in [0, 1]
    x_branch = jax.random.uniform(key, (batch, 2, N, N), dtype=jnp.float32)

    fwd = jax.jit(lambda x: deeponet_pod_forward(x, params))
    out = fwd(x_branch)
    jax.block_until_ready(out)
    assert out.shape == (batch, 2, N, N), out.shape
    assert bool(jnp.all(jnp.isfinite(out)))
    print("KERNEL_OK")
</pallas_src>

<mosaic_0001>
module attributes {stable_mosaic.version = 11 : i64} {
  func.func @grad_pack_kernel(%arg0: i32, %arg1: memref<1x2x63x63xf32, #tpu.memory_space<vmem>>, %arg2: memref<1x4x64x64xf32, #tpu.memory_space<vmem>>) attributes {dimension_semantics = [#tpu.dimension_semantics<parallel>], iteration_bounds = array<i64: 2>, scalar_prefetch = 0 : i64, scratch_operands = 0 : i64, tpu.core_type = #tpu.core_type<tc>, window_params = [{transform_indices = @transform_0, window_bounds = array<i64: 1, 2, 63, 63>}, {transform_indices = @transform_1, window_bounds = array<i64: 1, 4, 64, 64>}]} {
    %c0 = arith.constant 0 : index
    %c0_0 = arith.constant 0 : index
    %c0_1 = arith.constant 0 : index
    %c0_2 = arith.constant 0 : index
    %0 = vector.load %arg1[%c0, %c0_0, %c0_1, %c0_2] : memref<1x2x63x63xf32, #tpu.memory_space<vmem>>, vector<1x1x63x63xf32>
    %1 = vector.shape_cast %0 : vector<1x1x63x63xf32> to vector<63x63xf32>
    %c0_3 = arith.constant 0 : index
    %c1 = arith.constant 1 : index
    %c0_4 = arith.constant 0 : index
    %c0_5 = arith.constant 0 : index
    %2 = vector.load %arg1[%c0_3, %c1, %c0_4, %c0_5] : memref<1x2x63x63xf32, #tpu.memory_space<vmem>>, vector<1x1x63x63xf32>
    %3 = vector.shape_cast %2 : vector<1x1x63x63xf32> to vector<63x63xf32>
    %4 = vector.extract_strided_slice %1 {offsets = [0, 0], sizes = [1, 63], strides = [1, 1]} : vector<63x63xf32> to vector<1x63xf32>
    %5 = vector.extract_strided_slice %1 {offsets = [0, 0], sizes = [62, 63], strides = [1, 1]} : vector<63x63xf32> to vector<62x63xf32>
    %6 = tpu.concatenate %4, %5 in 0 : vector<1x63xf32>, vector<62x63xf32> -> vector<63x63xf32>
    %7 = vector.extract_strided_slice %1 {offsets = [1, 0], sizes = [62, 63], strides = [1, 1]} : vector<63x63xf32> to vector<62x63xf32>
    %8 = vector.extract_strided_slice %1 {offsets = [62, 0], sizes = [1, 63], strides = [1, 1]} : vector<63x63xf32> to vector<1x63xf32>
    %9 = tpu.concatenate %7, %8 in 0 : vector<62x63xf32>, vector<1x63xf32> -> vector<63x63xf32>
    %10 = vector.extract_strided_slice %1 {offsets = [0, 0], sizes = [63, 1], strides = [1, 1]} : vector<63x63xf32> to vector<63x1xf32>
    %11 = vector.extract_strided_slice %1 {offsets = [0, 0], sizes = [63, 62], strides = [1, 1]} : vector<63x63xf32> to vector<63x62xf32>
    %12 = tpu.concatenate %10, %11 in 1 : vector<63x1xf32>, vector<63x62xf32> -> vector<63x63xf32>
    %13 = vector.extract_strided_slice %1 {offsets = [0, 1], sizes = [63, 62], strides = [1, 1]} : vector<63x63xf32> to vector<63x62xf32>
    %14 = vector.extract_strided_slice %1 {offsets = [0, 62], sizes = [63, 1], strides = [1, 1]} : vector<63x63xf32> to vector<63x1xf32>
    %15 = tpu.concatenate %13, %14 in 1 : vector<63x62xf32>, vector<63x1xf32> -> vector<63x63xf32>
    %cst = arith.constant 4.000000e+00 : f32
    %16 = vector.broadcast %cst : f32 to vector<63x63xf32>
    %17 = arith.mulf %16, %1 : vector<63x63xf32>
    %18 = arith.subf %17, %6 : vector<63x63xf32>
    %19 = arith.subf %18, %9 : vector<63x63xf32>
    %20 = arith.subf %19, %12 : vector<63x63xf32>
    %21 = arith.subf %20, %15 : vector<63x63xf32>
    %cst_6 = arith.constant 3.844000e+03 : f32
    %22 = vector.broadcast %cst_6 : f32 to vector<63x63xf32>
    %23 = arith.mulf %21, %22 : vector<63x63xf32>
    %24 = vector.extract_strided_slice %3 {offsets = [0, 0], sizes = [1, 63], strides = [1, 1]} : vector<63x63xf32> to vector<1x63xf32>
    %25 = vector.extract_strided_slice %3 {offsets = [0, 0], sizes = [62, 63], strides = [1, 1]} : vector<63x63xf32> to vector<62x63xf32>
    %26 = tpu.concatenate %24, %25 in 0 : vector<1x63xf32>, vector<62x63xf32> -> vector<63x63xf32>
    %27 = vector.extract_strided_slice %3 {offsets = [1, 0], sizes = [62, 63], strides = [1, 1]} : vector<63x63xf32> to vector<62x63xf32>
    %28 = vector.extract_strided_slice %3 {offsets = [62, 0], sizes = [1, 63], strides = [1, 1]} : vector<63x63xf32> to vector<1x63xf32>
    %29 = tpu.concatenate %27, %28 in 0 : vector<62x63xf32>, vector<1x63xf32> -> vector<63x63xf32>
    %30 = vector.extract_strided_slice %3 {offsets = [0, 0], sizes = [63, 1], strides = [1, 1]} : vector<63x63xf32> to vector<63x1xf32>
    %31 = vector.extract_strided_slice %3 {offsets = [0, 0], sizes = [63, 62], strides = [1, 1]} : vector<63x63xf32> to vector<63x62xf32>
    %32 = tpu.concatenate %30, %31 in 1 : vector<63x1xf32>, vector<63x62xf32> -> vector<63x63xf32>
    %33 = vector.extract_strided_slice %3 {offsets = [0, 1], sizes = [63, 62], strides = [1, 1]} : vector<63x63xf32> to vector<63x62xf32>
    %34 = vector.extract_strided_slice %3 {offsets = [0, 62], sizes = [63, 1], strides = [1, 1]} : vector<63x63xf32> to vector<63x1xf32>
    %35 = tpu.concatenate %33, %34 in 1 : vector<63x62xf32>, vector<63x1xf32> -> vector<63x63xf32>
    %cst_7 = arith.constant 4.000000e+00 : f32
    %36 = vector.broadcast %cst_7 : f32 to vector<63x63xf32>
    %37 = arith.mulf %36, %3 : vector<63x63xf32>
    %38 = arith.subf %37, %26 : vector<63x63xf32>
    %39 = arith.subf %38, %29 : vector<63x63xf32>
    %40 = arith.subf %39, %32 : vector<63x63xf32>
    %41 = arith.subf %40, %35 : vector<63x63xf32>
    %cst_8 = arith.constant 3.844000e+03 : f32
    %42 = vector.broadcast %cst_8 : f32 to vector<63x63xf32>
    %43 = arith.mulf %41, %42 : vector<63x63xf32>
    %cst_9 = arith.constant 2.500000e-04 : f32
    %44 = vector.broadcast %cst_9 : f32 to vector<63x63xf32>
    %45 = arith.mulf %44, %23 : vector<63x63xf32>
    %46 = arith.mulf %3, %1 : vector<63x63xf32>
    %47 = arith.mulf %46, %1 : vector<63x63xf32>
    %48 = arith.subf %45, %47 : vector<63x63xf32>
    %cst_10 = arith.constant 1.050000e-01 : f32
    %49 = vector.broadcast %cst_10 : f32 to vector<63x63xf32>
    %50 = arith.mulf %49, %1 : vector<63x63xf32>
    %51 = arith.addf %48, %50 : vector<63x63xf32>
    %cst_11 = arith.constant 5.000000e-04 : f32
    %52 = vector.broadcast %cst_11 : f32 to vector<63x63xf32>
    %53 = arith.mulf %52, %43 : vector<63x63xf32>
    %54 = arith.mulf %3, %1 : vector<63x63xf32>
    %55 = arith.mulf %54, %1 : vector<63x63xf32>
    %56 = arith.addf %53, %55 : vector<63x63xf32>
    %cst_12 = arith.constant 1.000000e+00 : f32
    %57 = vector.broadcast %cst_12 : f32 to vector<63x63xf32>
    %58 = arith.subf %57, %3 : vector<63x63xf32>
    %cst_13 = arith.constant 4.000000e-02 : f32
    %59 = vector.broadcast %cst_13 : f32 to vector<63x63xf32>
    %60 = arith.mulf %59, %58 : vector<63x63xf32>
    %61 = arith.subf %56, %60 : vector<63x63xf32>
    %cst_14 = arith.constant 0.000000e+00 : f32
    %62 = vector.broadcast %cst_14 : f32 to vector<1x4x64x64xf32>
    %c0_15 = arith.constant 0 : index
    %c0_16 = arith.constant 0 : index
    %c0_17 = arith.constant 0 : index
    %c0_18 = arith.constant 0 : index
    %63 = vector.load %arg2[%c0_15, %c0_16, %c0_17, %c0_18] : memref<1x4x64x64xf32, #tpu.memory_space<vmem>>, vector<1x4x64x64xf32>
    tpu.vector_store %arg2[%c0_15, %c0_16, %c0_17, %c0_18], %62 {strides = array<i32>} : memref<1x4x64x64xf32, #tpu.memory_space<vmem>>, vector<1x4x64x64xf32>,
    %c0_19 = arith.constant 0 : index
    %c0_20 = arith.constant 0 : index
    %c0_21 = arith.constant 0 : index
    %c0_22 = arith.constant 0 : index
    %64 = vector.load %arg2[%c0_19, %c0_20, %c0_21, %c0_22] : memref<1x4x64x64xf32, #tpu.memory_space<vmem>>, vector<1x1x63x63xf32>
    %65 = vector.shape_cast %64 : vector<1x1x63x63xf32> to vector<63x63xf32>
    %66 = vector.shape_cast %51 : vector<63x63xf32> to vector<1x1x63x63xf32>
    tpu.vector_store %arg2[%c0_19, %c0_20, %c0_21, %c0_22], %66 {strides = array<i32>} : memref<1x4x64x64xf32, #tpu.memory_space<vmem>>, vector<1x1x63x63xf32>,
    %c0_23 = arith.constant 0 : index
    %c1_24 = arith.constant 1 : index
    %c0_25 = arith.constant 0 : index
    %c0_26 = arith.constant 0 : index
    %67 = vector.load %arg2[%c0_23, %c1_24, %c0_25, %c0_26] : memref<1x4x64x64xf32, #tpu.memory_space<vmem>>, vector<1x1x63x63xf32>
    %68 = vector.shape_cast %67 : vector<1x1x63x63xf32> to vector<63x63xf32>
    %69 = vector.shape_cast %61 : vector<63x63xf32> to vector<1x1x63x63xf32>
    tpu.vector_store %arg2[%c0_23, %c1_24, %c0_25, %c0_26], %69 {strides = array<i32>} : memref<1x4x64x64xf32, #tpu.memory_space<vmem>>, vector<1x1x63x63xf32>,
    %c0_27 = arith.constant 0 : index
    %c2 = arith.constant 2 : index
    %c0_28 = arith.constant 0 : index
    %c0_29 = arith.constant 0 : index
    %70 = vector.load %arg2[%c0_27, %c2, %c0_28, %c0_29] : memref<1x4x64x64xf32, #tpu.memory_space<vmem>>, vector<1x1x63x63xf32>
    %71 = vector.shape_cast %70 : vector<1x1x63x63xf32> to vector<63x63xf32>
    %72 = vector.shape_cast %1 : vector<63x63xf32> to vector<1x1x63x63xf32>
    tpu.vector_store %arg2[%c0_27, %c2, %c0_28, %c0_29], %72 {strides = array<i32>} : memref<1x4x64x64xf32, #tpu.memory_space<vmem>>, vector<1x1x63x63xf32>,
    %c0_30 = arith.constant 0 : index
    %c3 = arith.constant 3 : index
    %c0_31 = arith.constant 0 : index
    %c0_32 = arith.constant 0 : index
    %73 = vector.load %arg2[%c0_30, %c3, %c0_31, %c0_32] : memref<1x4x64x64xf32, #tpu.memory_space<vmem>>, vector<1x1x63x63xf32>
    %74 = vector.shape_cast %73 : vector<1x1x63x63xf32> to vector<63x63xf32>
    %75 = vector.shape_cast %3 : vector<63x63xf32> to vector<1x1x63x63xf32>
    tpu.vector_store %arg2[%c0_30, %c3, %c0_31, %c0_32], %75 {strides = array<i32>} : memref<1x4x64x64xf32, #tpu.memory_space<vmem>>, vector<1x1x63x63xf32>,
    return
  }
  func.func @transform_0(%arg0: i32) -> (i32, i32, i32, i32) {
    %c0_i32 = arith.constant 0 : i32
    %c0_i32_0 = arith.constant 0 : i32
    %c0_i32_1 = arith.constant 0 : i32
    %c0_i32_2 = arith.constant 0 : i32
    return %arg0, %c0_i32, %c0_i32_0, %c0_i32_1 : i32, i32, i32, i32
  }
  func.func @transform_1(%arg0: i32) -> (i32, i32, i32, i32) {
    %c0_i32 = arith.constant 0 : i32
    %c0_i32_0 = arith.constant 0 : i32
    %c0_i32_1 = arith.constant 0 : i32
    %c0_i32_2 = arith.constant 0 : i32
    return %arg0, %c0_i32, %c0_i32_0, %c0_i32_1 : i32, i32, i32, i32
  }
}

module attributes {stable_mosaic.version = 11 : i64} {
  func.func @encoder_pod_kernel(%arg0: i32, %arg1: memref<2x4096xf32, #tpu.memory_space<vmem>>, %arg2: memref<32x4096xbf16, #tpu.memory_space<vmem>>, %arg3: memref<1x32xf32, #tpu.memory_space<vmem>>, %arg4: memref<32x8192xbf16, #tpu.memory_space<vmem>>, %arg5: memref<2x8192xf32, #tpu.memory_space<vmem>>, %arg6: memref<2x32xf32, #tpu.memory_space<vmem>>) attributes {dimension_semantics = [#tpu.dimension_semantics<arbitrary>], iteration_bounds = array<i64: 4>, scalar_prefetch = 0 : i64, scratch_operands = 1 : i64, tpu.core_type = #tpu.core_type<tc>, window_params = [{transform_indices = @transform_0, window_bounds = array<i64: 2, 4096>}, {transform_indices = @transform_1, window_bounds = array<i64: 32, 4096>}, {pipeline_mode = #tpu.pipeline_mode<synchronous>, transform_indices = @transform_2, window_bounds = array<i64: 1, 32>}, {pipeline_mode = #tpu.pipeline_mode<synchronous>, transform_indices = @transform_3, window_bounds = array<i64: 32, 8192>}, {pipeline_mode = #tpu.pipeline_mode<synchronous>, transform_indices = @transform_4, window_bounds = array<i64: 2, 8192>}]} {
    %c0_i32 = arith.constant 0 : i32
    %0 = arith.cmpi eq, %arg0, %c0_i32 : i32
    %1 = arith.extui %0 : i1 to i32
    %c0_i32_0 = arith.constant 0 : i32
    %2 = arith.cmpi ne, %1, %c0_i32_0 : i32
    scf.if %2 {
      %cst_9 = arith.constant 0.000000e+00 : f32
      %13 = vector.broadcast %cst_9 : f32 to vector<2x32xf32>
      %c0_10 = arith.constant 0 : index
      %c0_11 = arith.constant 0 : index
      %14 = vector.load %arg6[%c0_10, %c0_11] : memref<2x32xf32, #tpu.memory_space<vmem>>, vector<2x32xf32>
      tpu.vector_store %arg6[%c0_10, %c0_11], %13 {strides = array<i32>} : memref<2x32xf32, #tpu.memory_space<vmem>>, vector<2x32xf32>,
    } else {
    }
    %c0 = arith.constant 0 : index
    %c0_1 = arith.constant 0 : index
    %3 = vector.load %arg6[%c0, %c0_1] : memref<2x32xf32, #tpu.memory_space<vmem>>, vector<2x32xf32>
    %c0_2 = arith.constant 0 : index
    %c0_3 = arith.constant 0 : index
    %4 = vector.load %arg1[%c0_2, %c0_3] : memref<2x4096xf32, #tpu.memory_space<vmem>>, vector<2x4096xf32>
    %5 = arith.truncf %4 : vector<2x4096xf32> to vector<2x4096xbf16>
    %c0_4 = arith.constant 0 : index
    %c0_5 = arith.constant 0 : index
    %6 = vector.load %arg2[%c0_4, %c0_5] : memref<32x4096xbf16, #tpu.memory_space<vmem>>, vector<32x4096xbf16>
    %cst = arith.constant dense<0.000000e+00> : vector<2x32xf32>
    %7 = tpu.matmul %5, %6, %cst {dimension_numbers = #tpu.dot_dimension_numbers<[1], [1], [0], [0], [0, 0, 1, 0], [], []>} : vector<2x4096xbf16>, vector<32x4096xbf16>, vector<2x32xf32> -> vector<2x32xf32>
    %8 = arith.addf %3, %7 : vector<2x32xf32>
    %c0_6 = arith.constant 0 : index
    %c0_7 = arith.constant 0 : index
    %9 = vector.load %arg6[%c0_6, %c0_7] : memref<2x32xf32, #tpu.memory_space<vmem>>, vector<2x32xf32>
    tpu.vector_store %arg6[%c0_6, %c0_7], %8 {strides = array<i32>} : memref<2x32xf32, #tpu.memory_space<vmem>>, vector<2x32xf32>,
    %c3_i32 = arith.constant 3 : i32
    %10 = arith.cmpi eq, %arg0, %c3_i32 : i32
    %11 = arith.extui %10 : i1 to i32
    %c0_i32_8 = arith.constant 0 : i32
    %12 = arith.cmpi ne, %11, %c0_i32_8 : i32
    scf.if %12 {
      %c0_9 = arith.constant 0 : index
      %c0_10 = arith.constant 0 : index
      %13 = vector.load %arg6[%c0_9, %c0_10] : memref<2x32xf32, #tpu.memory_space<vmem>>, vector<2x32xf32>
      %c0_11 = arith.constant 0 : index
      %c0_12 = arith.constant 0 : index
      %14 = vector.load %arg3[%c0_11, %c0_12] : memref<1x32xf32, #tpu.memory_space<vmem>>, vector<1x32xf32>
      %15 = vector.broadcast %14 : vector<1x32xf32> to vector<2x32xf32>
      %16 = arith.addf %13, %15 : vector<2x32xf32>
      %17 = math.tanh %16 : vector<2x32xf32>
      %18 = arith.truncf %17 : vector<2x32xf32> to vector<2x32xbf16>
      %c0_13 = arith.constant 0 : index
      %c0_14 = arith.constant 0 : index
      %19 = vector.load %arg4[%c0_13, %c0_14] : memref<32x8192xbf16, #tpu.memory_space<vmem>>, vector<32x8192xbf16>
      %cst_15 = arith.constant dense<0.000000e+00> : vector<2x8192xf32>
      %20 = tpu.matmul %18, %19, %cst_15 {dimension_numbers = #tpu.dot_dimension_numbers<[1], [0], [0], [1], [0, 0, 1, 1], [], []>} : vector<2x32xbf16>, vector<32x8192xbf16>, vector<2x8192xf32> -> vector<2x8192xf32>
      %c0_16 = arith.constant 0 : index
      %c0_17 = arith.constant 0 : index
      %21 = vector.load %arg5[%c0_16, %c0_17] : memref<2x8192xf32, #tpu.memory_space<vmem>>, vector<2x8192xf32>
      tpu.vector_store %arg5[%c0_16, %c0_17], %20 {strides = array<i32>} : memref<2x8192xf32, #tpu.memory_space<vmem>>, vector<2x8192xf32>,
    } else {
    }
    return
  }
  func.func @transform_0(%arg0: i32) -> (i32, i32) {
    %c0_i32 = arith.constant 0 : i32
    %c0_i32_0 = arith.constant 0 : i32
    return %c0_i32, %arg0 : i32, i32
  }
  func.func @transform_1(%arg0: i32) -> (i32, i32) {
    %c0_i32 = arith.constant 0 : i32
    %c0_i32_0 = arith.constant 0 : i32
    return %c0_i32, %arg0 : i32, i32
  }
  func.func @transform_2(%arg0: i32) -> (i32, i32) {
    %c0_i32 = arith.constant 0 : i32
    %c0_i32_0 = arith.constant 0 : i32
    %c0_i32_1 = arith.constant 0 : i32
    return %c0_i32, %c0_i32_0 : i32, i32
  }
  func.func @transform_3(%arg0: i32) -> (i32, i32) {
    %c0_i32 = arith.constant 0 : i32
    %c0_i32_0 = arith.constant 0 : i32
    %c0_i32_1 = arith.constant 0 : i32
    return %c0_i32, %c0_i32_0 : i32, i32
  }
  func.func @transform_4(%arg0: i32) -> (i32, i32) {
    %c0_i32 = arith.constant 0 : i32
    %c0_i32_0 = arith.constant 0 : i32
    %c0_i32_1 = arith.constant 0 : i32
    return %c0_i32, %c0_i32_0 : i32, i32
  }
}

module attributes {stable_mosaic.version = 11 : i64} {
  func.func @hess_pack_kernel(%arg0: i32, %arg1: memref<1x4x64x64xf32, #tpu.memory_space<vmem>>, %arg2: memref<1x2x64x64xf32, #tpu.memory_space<vmem>>, %arg3: memref<1x4x64x64xf32, #tpu.memory_space<vmem>>) attributes {dimension_semantics = [#tpu.dimension_semantics<parallel>], iteration_bounds = array<i64: 2>, scalar_prefetch = 0 : i64, scratch_operands = 0 : i64, tpu.core_type = #tpu.core_type<tc>, window_params = [{transform_indices = @transform_0, window_bounds = array<i64: 1, 4, 64, 64>}, {transform_indices = @transform_1, window_bounds = array<i64: 1, 2, 64, 64>}, {transform_indices = @transform_2, window_bounds = array<i64: 1, 4, 64, 64>}]} {
    %c0 = arith.constant 0 : index
    %c0_0 = arith.constant 0 : index
    %c0_1 = arith.constant 0 : index
    %c0_2 = arith.constant 0 : index
    %0 = vector.load %arg1[%c0, %c0_0, %c0_1, %c0_2] : memref<1x4x64x64xf32, #tpu.memory_space<vmem>>, vector<1x1x63x63xf32>
    %1 = vector.shape_cast %0 : vector<1x1x63x63xf32> to vector<63x63xf32>
    %c0_3 = arith.constant 0 : index
    %c1 = arith.constant 1 : index
    %c0_4 = arith.constant 0 : index
    %c0_5 = arith.constant 0 : index
    %2 = vector.load %arg1[%c0_3, %c1, %c0_4, %c0_5] : memref<1x4x64x64xf32, #tpu.memory_space<vmem>>, vector<1x1x63x63xf32>
    %3 = vector.shape_cast %2 : vector<1x1x63x63xf32> to vector<63x63xf32>
    %c0_6 = arith.constant 0 : index
    %c2 = arith.constant 2 : index
    %c0_7 = arith.constant 0 : index
    %c0_8 = arith.constant 0 : index
    %4 = vector.load %arg1[%c0_6, %c2, %c0_7, %c0_8] : memref<1x4x64x64xf32, #tpu.memory_space<vmem>>, vector<1x1x63x63xf32>
    %5 = vector.shape_cast %4 : vector<1x1x63x63xf32> to vector<63x63xf32>
    %c0_9 = arith.constant 0 : index
    %c3 = arith.constant 3 : index
    %c0_10 = arith.constant 0 : index
    %c0_11 = arith.constant 0 : index
    %6 = vector.load %arg1[%c0_9, %c3, %c0_10, %c0_11] : memref<1x4x64x64xf32, #tpu.memory_space<vmem>>, vector<1x1x63x63xf32>
    %7 = vector.shape_cast %6 : vector<1x1x63x63xf32> to vector<63x63xf32>
    %c0_12 = arith.constant 0 : index
    %c0_13 = arith.constant 0 : index
    %c0_14 = arith.constant 0 : index
    %c0_15 = arith.constant 0 : index
    %8 = vector.load %arg2[%c0_12, %c0_13, %c0_14, %c0_15] : memref<1x2x64x64xf32, #tpu.memory_space<vmem>>, vector<1x1x63x63xf32>
    %9 = vector.shape_cast %8 : vector<1x1x63x63xf32> to vector<63x63xf32>
    %c0_16 = arith.constant 0 : index
    %c1_17 = arith.constant 1 : index
    %c0_18 = arith.constant 0 : index
    %c0_19 = arith.constant 0 : index
    %10 = vector.load %arg2[%c0_16, %c1_17, %c0_18, %c0_19] : memref<1x2x64x64xf32, #tpu.memory_space<vmem>>, vector<1x1x63x63xf32>
    %11 = vector.shape_cast %10 : vector<1x1x63x63xf32> to vector<63x63xf32>
    %12 = vector.extract_strided_slice %9 {offsets = [0, 0], sizes = [1, 63], strides = [1, 1]} : vector<63x63xf32> to vector<1x63xf32>
    %13 = vector.extract_strided_slice %9 {offsets = [0, 0], sizes = [62, 63], strides = [1, 1]} : vector<63x63xf32> to vector<62x63xf32>
    %14 = tpu.concatenate %12, %13 in 0 : vector<1x63xf32>, vector<62x63xf32> -> vector<63x63xf32>
    %15 = vector.extract_strided_slice %9 {offsets = [1, 0], sizes = [62, 63], strides = [1, 1]} : vector<63x63xf32> to vector<62x63xf32>
    %16 = vector.extract_strided_slice %9 {offsets = [62, 0], sizes = [1, 63], strides = [1, 1]} : vector<63x63xf32> to vector<1x63xf32>
    %17 = tpu.concatenate %15, %16 in 0 : vector<62x63xf32>, vector<1x63xf32> -> vector<63x63xf32>
    %18 = vector.extract_strided_slice %9 {offsets = [0, 0], sizes = [63, 1], strides = [1, 1]} : vector<63x63xf32> to vector<63x1xf32>
    %19 = vector.extract_strided_slice %9 {offsets = [0, 0], sizes = [63, 62], strides = [1, 1]} : vector<63x63xf32> to vector<63x62xf32>
    %20 = tpu.concatenate %18, %19 in 1 : vector<63x1xf32>, vector<63x62xf32> -> vector<63x63xf32>
    %21 = vector.extract_strided_slice %9 {offsets = [0, 1], sizes = [63, 62], strides = [1, 1]} : vector<63x63xf32> to vector<63x62xf32>
    %22 = vector.extract_strided_slice %9 {offsets = [0, 62], sizes = [63, 1], strides = [1, 1]} : vector<63x63xf32> to vector<63x1xf32>
    %23 = tpu.concatenate %21, %22 in 1 : vector<63x62xf32>, vector<63x1xf32> -> vector<63x63xf32>
    %cst = arith.constant 4.000000e+00 : f32
    %24 = vector.broadcast %cst : f32 to vector<63x63xf32>
    %25 = arith.mulf %24, %9 : vector<63x63xf32>
    %26 = arith.subf %25, %14 : vector<63x63xf32>
    %27 = arith.subf %26, %17 : vector<63x63xf32>
    %28 = arith.subf %27, %20 : vector<63x63xf32>
    %29 = arith.subf %28, %23 : vector<63x63xf32>
    %cst_20 = arith.constant 3.844000e+03 : f32
    %30 = vector.broadcast %cst_20 : f32 to vector<63x63xf32>
    %31 = arith.mulf %29, %30 : vector<63x63xf32>
    %32 = vector.extract_strided_slice %11 {offsets = [0, 0], sizes = [1, 63], strides = [1, 1]} : vector<63x63xf32> to vector<1x63xf32>
    %33 = vector.extract_strided_slice %11 {offsets = [0, 0], sizes = [62, 63], strides = [1, 1]} : vector<63x63xf32> to vector<62x63xf32>
    %34 = tpu.concatenate %32, %33 in 0 : vector<1x63xf32>, vector<62x63xf32> -> vector<63x63xf32>
    %35 = vector.extract_strided_slice %11 {offsets = [1, 0], sizes = [62, 63], strides = [1, 1]} : vector<63x63xf32> to vector<62x63xf32>
    %36 = vector.extract_strided_slice %11 {offsets = [62, 0], sizes = [1, 63], strides = [1, 1]} : vector<63x63xf32> to vector<1x63xf32>
    %37 = tpu.concatenate %35, %36 in 0 : vector<62x63xf32>, vector<1x63xf32> -> vector<63x63xf32>
    %38 = vector.extract_strided_slice %11 {offsets = [0, 0], sizes = [63, 1], strides = [1, 1]} : vector<63x63xf32> to vector<63x1xf32>
    %39 = vector.extract_strided_slice %11 {offsets = [0, 0], sizes = [63, 62], strides = [1, 1]} : vector<63x63xf32> to vector<63x62xf32>
    %40 = tpu.concatenate %38, %39 in 1 : vector<63x1xf32>, vector<63x62xf32> -> vector<63x63xf32>
    %41 = vector.extract_strided_slice %11 {offsets = [0, 1], sizes = [63, 62], strides = [1, 1]} : vector<63x63xf32> to vector<63x62xf32>
    %42 = vector.extract_strided_slice %11 {offsets = [0, 62], sizes = [63, 1], strides = [1, 1]} : vector<63x63xf32> to vector<63x1xf32>
    %43 = tpu.concatenate %41, %42 in 1 : vector<63x62xf32>, vector<63x1xf32> -> vector<63x63xf32>
    %cst_21 = arith.constant 4.000000e+00 : f32
    %44 = vector.broadcast %cst_21 : f32 to vector<63x63xf32>
    %45 = arith.mulf %44, %11 : vector<63x63xf32>
    %46 = arith.subf %45, %34 : vector<63x63xf32>
    %47 = arith.subf %46, %37 : vector<63x63xf32>
    %48 = arith.subf %47, %40 : vector<63x63xf32>
    %49 = arith.subf %48, %43 : vector<63x63xf32>
    %cst_22 = arith.constant 3.844000e+03 : f32
    %50 = vector.broadcast %cst_22 : f32 to vector<63x63xf32>
    %51 = arith.mulf %49, %50 : vector<63x63xf32>
    %cst_23 = arith.constant 2.500000e-04 : f32
    %52 = vector.broadcast %cst_23 : f32 to vector<63x63xf32>
    %53 = arith.mulf %52, %31 : vector<63x63xf32>
    %cst_24 = arith.constant 2.000000e+00 : f32
    %54 = vector.broadcast %cst_24 : f32 to vector<63x63xf32>
    %55 = arith.mulf %54, %9 : vector<63x63xf32>
    %56 = arith.mulf %55, %7 : vector<63x63xf32>
    %57 = arith.mulf %56, %5 : vector<63x63xf32>
    %58 = arith.subf %53, %57 : vector<63x63xf32>
    %cst_25 = arith.constant 1.050000e-01 : f32
    %59 = vector.broadcast %cst_25 : f32 to vector<63x63xf32>
    %60 = arith.mulf %59, %9 : vector<63x63xf32>
    %61 = arith.addf %58, %60 : vector<63x63xf32>
    %cst_26 = arith.constant 5.000000e-04 : f32
    %62 = vector.broadcast %cst_26 : f32 to vector<63x63xf32>
    %63 = arith.mulf %62, %51 : vector<63x63xf32>
    %64 = arith.mulf %5, %5 : vector<63x63xf32>
    %cst_27 = arith.constant 4.000000e-02 : f32
    %65 = vector.broadcast %cst_27 : f32 to vector<63x63xf32>
    %66 = arith.addf %64, %65 : vector<63x63xf32>
    %67 = arith.mulf %66, %11 : vector<63x63xf32>
    %68 = arith.addf %63, %67 : vector<63x63xf32>
    %69 = arith.mulf %5, %5 : vector<63x63xf32>
    %cst_28 = arith.constant 0.000000e+00 : f32
    %70 = vector.broadcast %cst_28 : f32 to vector<63x63xf32>
    %71 = arith.subf %70, %69 : vector<63x63xf32>
    %72 = arith.mulf %71, %11 : vector<63x63xf32>
    %cst_29 = arith.constant 2.000000e+00 : f32
    %73 = vector.broadcast %cst_29 : f32 to vector<63x63xf32>
    %74 = arith.mulf %73, %7 : vector<63x63xf32>
    %75 = arith.mulf %74, %5 : vector<63x63xf32>
    %76 = arith.mulf %75, %9 : vector<63x63xf32>
    %cst_30 = arith.constant 0.000000e+00 : f32
    %77 = vector.broadcast %cst_30 : f32 to vector<1x4x64x64xf32>
    %c0_31 = arith.constant 0 : index
    %c0_32 = arith.constant 0 : index
    %c0_33 = arith.constant 0 : index
    %c0_34 = arith.constant 0 : index
    %78 = vector.load %arg3[%c0_31, %c0_32, %c0_33, %c0_34] : memref<1x4x64x64xf32, #tpu.memory_space<vmem>>, vector<1x4x64x64xf32>
    tpu.vector_store %arg3[%c0_31, %c0_32, %c0_33, %c0_34], %77 {strides = array<i32>} : memref<1x4x64x64xf32, #tpu.memory_space<vmem>>, vector<1x4x64x64xf32>,
    %79 = arith.addf %61, %72 : vector<63x63xf32>
    %80 = arith.addf %79, %1 : vector<63x63xf32>
    %c0_35 = arith.constant 0 : index
    %c0_36 = arith.constant 0 : index
    %c0_37 = arith.constant 0 : index
    %c0_38 = arith.constant 0 : index
    %81 = vector.load %arg3[%c0_35, %c0_36, %c0_37, %c0_38] : memref<1x4x64x64xf32, #tpu.memory_space<vmem>>, vector<1x1x63x63xf32>
    %82 = vector.shape_cast %81 : vector<1x1x63x63xf32> to vector<63x63xf32>
    %83 = vector.shape_cast %80 : vector<63x63xf32> to vector<1x1x63x63xf32>
    tpu.vector_store %arg3[%c0_35, %c0_36, %c0_37, %c0_38], %83 {strides = array<i32>} : memref<1x4x64x64xf32, #tpu.memory_space<vmem>>, vector<1x1x63x63xf32>,
    %84 = arith.addf %76, %68 : vector<63x63xf32>
    %85 = arith.addf %84, %3 : vector<63x63xf32>
    %c0_39 = arith.constant 0 : index
    %c1_40 = arith.constant 1 : index
    %c0_41 = arith.constant 0 : index
    %c0_42 = arith.constant 0 : index
    %86 = vector.load %arg3[%c0_39, %c1_40, %c0_41, %c0_42] : memref<1x4x64x64xf32, #tpu.memory_space<vmem>>, vector<1x1x63x63xf32>
    %87 = vector.shape_cast %86 : vector<1x1x63x63xf32> to vector<63x63xf32>
    %88 = vector.shape_cast %85 : vector<63x63xf32> to vector<1x1x63x63xf32>
    tpu.vector_store %arg3[%c0_39, %c1_40, %c0_41, %c0_42], %88 {strides = array<i32>} : memref<1x4x64x64xf32, #tpu.memory_space<vmem>>, vector<1x1x63x63xf32>,
    %c0_43 = arith.constant 0 : index
    %c2_44 = arith.constant 2 : index
    %c0_45 = arith.constant 0 : index
    %c0_46 = arith.constant 0 : index
    %89 = vector.load %arg3[%c0_43, %c2_44, %c0_45, %c0_46] : memref<1x4x64x64xf32, #tpu.memory_space<vmem>>, vector<1x1x63x63xf32>
    %90 = vector.shape_cast %89 : vector<1x1x63x63xf32> to vector<63x63xf32>
    %91 = vector.shape_cast %5 : vector<63x63xf32> to vector<1x1x63x63xf32>
    tpu.vector_store %arg3[%c0_43, %c2_44, %c0_45, %c0_46], %91 {strides = array<i32>} : memref<1x4x64x64xf32, #tpu.memory_space<vmem>>, vector<1x1x63x63xf32>,
    %c0_47 = arith.constant 0 : index
    %c3_48 = arith.constant 3 : index
    %c0_49 = arith.constant 0 : index
    %c0_50 = arith.constant 0 : index
    %92 = vector.load %arg3[%c0_47, %c3_48, %c0_49, %c0_50] : memref<1x4x64x64xf32, #tpu.memory_space<vmem>>, vector<1x1x63x63xf32>
    %93 = vector.shape_cast %92 : vector<1x1x63x63xf32> to vector<63x63xf32>
    %94 = vector.shape_cast %7 : vector<63x63xf32> to vector<1x1x63x63xf32>
    tpu.vector_store %arg3[%c0_47, %c3_48, %c0_49, %c0_50], %94 {strides = array<i32>} : memref<1x4x64x64xf32, #tpu.memory_space<vmem>>, vector<1x1x63x63xf32>,
    return
  }
  func.func @transform_0(%arg0: i32) -> (i32, i32, i32, i32) {
    %c0_i32 = arith.constant 0 : i32
    %c0_i32_0 = arith.constant 0 : i32
    %c0_i32_1 = arith.constant 0 : i32
    %c0_i32_2 = arith.constant 0 : i32
    return %arg0, %c0_i32, %c0_i32_0, %c0_i32_1 : i32, i32, i32, i32
  }
  func.func @transform_1(%arg0: i32) -> (i32, i32, i32, i32) {
    %c0_i32 = arith.constant 0 : i32
    %c0_i32_0 = arith.constant 0 : i32
    %c0_i32_1 = arith.constant 0 : i32
    %c0_i32_2 = arith.constant 0 : i32
    return %arg0, %c0_i32, %c0_i32_0, %c0_i32_1 : i32, i32, i32, i32
  }
  func.func @transform_2(%arg0: i32) -> (i32, i32, i32, i32) {
    %c0_i32 = arith.constant 0 : i32
    %c0_i32_0 = arith.constant 0 : i32
    %c0_i32_1 = arith.constant 0 : i32
    %c0_i32_2 = arith.constant 0 : i32
    return %arg0, %c0_i32, %c0_i32_0, %c0_i32_1 : i32, i32, i32, i32
  }
}

module attributes {stable_mosaic.version = 11 : i64} {
  func.func @encoder_pod_add_kernel(%arg0: i32, %arg1: memref<2x4096xf32, #tpu.memory_space<vmem>>, %arg2: memref<32x4096xbf16, #tpu.memory_space<vmem>>, %arg3: memref<1x32xf32, #tpu.memory_space<vmem>>, %arg4: memref<32x8192xbf16, #tpu.memory_space<vmem>>, %arg5: memref<2x8192xf32, #tpu.memory_space<vmem>>, %arg6: memref<2x8192xf32, #tpu.memory_space<vmem>>, %arg7: memref<2x32xf32, #tpu.memory_space<vmem>>) attributes {dimension_semantics = [#tpu.dimension_semantics<arbitrary>], iteration_bounds = array<i64: 4>, scalar_prefetch = 0 : i64, scratch_operands = 1 : i64, tpu.core_type = #tpu.core_type<tc>, window_params = [{transform_indices = @transform_0, window_bounds = array<i64: 2, 4096>}, {transform_indices = @transform_1, window_bounds = array<i64: 32, 4096>}, {pipeline_mode = #tpu.pipeline_mode<synchronous>, transform_indices = @transform_2, window_bounds = array<i64: 1, 32>}, {pipeline_mode = #tpu.pipeline_mode<synchronous>, transform_indices = @transform_3, window_bounds = array<i64: 32, 8192>}, {pipeline_mode = #tpu.pipeline_mode<synchronous>, transform_indices = @transform_4, window_bounds = array<i64: 2, 8192>}, {pipeline_mode = #tpu.pipeline_mode<synchronous>, transform_indices = @transform_5, window_bounds = array<i64: 2, 8192>}]} {
    %c0_i32 = arith.constant 0 : i32
    %0 = arith.cmpi eq, %arg0, %c0_i32 : i32
    %1 = arith.extui %0 : i1 to i32
    %c0_i32_0 = arith.constant 0 : i32
    %2 = arith.cmpi ne, %1, %c0_i32_0 : i32
    scf.if %2 {
      %cst_9 = arith.constant 0.000000e+00 : f32
      %13 = vector.broadcast %cst_9 : f32 to vector<2x32xf32>
      %c0_10 = arith.constant 0 : index
      %c0_11 = arith.constant 0 : index
      %14 = vector.load %arg7[%c0_10, %c0_11] : memref<2x32xf32, #tpu.memory_space<vmem>>, vector<2x32xf32>
      tpu.vector_store %arg7[%c0_10, %c0_11], %13 {strides = array<i32>} : memref<2x32xf32, #tpu.memory_space<vmem>>, vector<2x32xf32>,
    } else {
    }
    %c0 = arith.constant 0 : index
    %c0_1 = arith.constant 0 : index
    %3 = vector.load %arg7[%c0, %c0_1] : memref<2x32xf32, #tpu.memory_space<vmem>>, vector<2x32xf32>
    %c0_2 = arith.constant 0 : index
    %c0_3 = arith.constant 0 : index
    %4 = vector.load %arg1[%c0_2, %c0_3] : memref<2x4096xf32, #tpu.memory_space<vmem>>, vector<2x4096xf32>
    %5 = arith.truncf %4 : vector<2x4096xf32> to vector<2x4096xbf16>
    %c0_4 = arith.constant 0 : index
    %c0_5 = arith.constant 0 : index
    %6 = vector.load %arg2[%c0_4, %c0_5] : memref<32x4096xbf16, #tpu.memory_space<vmem>>, vector<32x4096xbf16>
    %cst = arith.constant dense<0.000000e+00> : vector<2x32xf32>
    %7 = tpu.matmul %5, %6, %cst {dimension_numbers = #tpu.dot_dimension_numbers<[1], [1], [0], [0], [0, 0, 1, 0], [], []>} : vector<2x4096xbf16>, vector<32x4096xbf16>, vector<2x32xf32> -> vector<2x32xf32>
    %8 = arith.addf %3, %7 : vector<2x32xf32>
    %c0_6 = arith.constant 0 : index
    %c0_7 = arith.constant 0 : index
    %9 = vector.load %arg7[%c0_6, %c0_7] : memref<2x32xf32, #tpu.memory_space<vmem>>, vector<2x32xf32>
    tpu.vector_store %arg7[%c0_6, %c0_7], %8 {strides = array<i32>} : memref<2x32xf32, #tpu.memory_space<vmem>>, vector<2x32xf32>,
    %c3_i32 = arith.constant 3 : i32
    %10 = arith.cmpi eq, %arg0, %c3_i32 : i32
    %11 = arith.extui %10 : i1 to i32
    %c0_i32_8 = arith.constant 0 : i32
    %12 = arith.cmpi ne, %11, %c0_i32_8 : i32
    scf.if %12 {
      %c0_9 = arith.constant 0 : index
      %c0_10 = arith.constant 0 : index
      %13 = vector.load %arg5[%c0_9, %c0_10] : memref<2x8192xf32, #tpu.memory_space<vmem>>, vector<2x8192xf32>
      %c0_11 = arith.constant 0 : index
      %c0_12 = arith.constant 0 : index
      %14 = vector.load %arg7[%c0_11, %c0_12] : memref<2x32xf32, #tpu.memory_space<vmem>>, vector<2x32xf32>
      %c0_13 = arith.constant 0 : index
      %c0_14 = arith.constant 0 : index
      %15 = vector.load %arg3[%c0_13, %c0_14] : memref<1x32xf32, #tpu.memory_space<vmem>>, vector<1x32xf32>
      %16 = vector.broadcast %15 : vector<1x32xf32> to vector<2x32xf32>
      %17 = arith.addf %14, %16 : vector<2x32xf32>
      %18 = math.tanh %17 : vector<2x32xf32>
      %19 = arith.truncf %18 : vector<2x32xf32> to vector<2x32xbf16>
      %c0_15 = arith.constant 0 : index
      %c0_16 = arith.constant 0 : index
      %20 = vector.load %arg4[%c0_15, %c0_16] : memref<32x8192xbf16, #tpu.memory_space<vmem>>, vector<32x8192xbf16>
      %cst_17 = arith.constant dense<0.000000e+00> : vector<2x8192xf32>
      %21 = tpu.matmul %19, %20, %cst_17 {dimension_numbers = #tpu.dot_dimension_numbers<[1], [0], [0], [1], [0, 0, 1, 1], [], []>} : vector<2x32xbf16>, vector<32x8192xbf16>, vector<2x8192xf32> -> vector<2x8192xf32>
      %22 = arith.addf %13, %21 : vector<2x8192xf32>
      %c0_18 = arith.constant 0 : index
      %c0_19 = arith.constant 0 : index
      %23 = vector.load %arg6[%c0_18, %c0_19] : memref<2x8192xf32, #tpu.memory_space<vmem>>, vector<2x8192xf32>
      tpu.vector_store %arg6[%c0_18, %c0_19], %22 {strides = array<i32>} : memref<2x8192xf32, #tpu.memory_space<vmem>>, vector<2x8192xf32>,
    } else {
    }
    return
  }
  func.func @transform_0(%arg0: i32) -> (i32, i32) {
    %c0_i32 = arith.constant 0 : i32
    %c0_i32_0 = arith.constant 0 : i32
    return %c0_i32, %arg0 : i32, i32
  }
  func.func @transform_1(%arg0: i32) -> (i32, i32) {
    %c0_i32 = arith.constant 0 : i32
    %c0_i32_0 = arith.constant 0 : i32
    return %c0_i32, %arg0 : i32, i32
  }
  func.func @transform_2(%arg0: i32) -> (i32, i32) {
    %c0_i32 = arith.constant 0 : i32
    %c0_i32_0 = arith.constant 0 : i32
    %c0_i32_1 = arith.constant 0 : i32
    return %c0_i32, %c0_i32_0 : i32, i32
  }
  func.func @transform_3(%arg0: i32) -> (i32, i32) {
    %c0_i32 = arith.constant 0 : i32
    %c0_i32_0 = arith.constant 0 : i32
    %c0_i32_1 = arith.constant 0 : i32
    return %c0_i32, %c0_i32_0 : i32, i32
  }
  func.func @transform_4(%arg0: i32) -> (i32, i32) {
    %c0_i32 = arith.constant 0 : i32
    %c0_i32_0 = arith.constant 0 : i32
    %c0_i32_1 = arith.constant 0 : i32
    return %c0_i32, %c0_i32_0 : i32, i32
  }
  func.func @transform_5(%arg0: i32) -> (i32, i32) {
    %c0_i32 = arith.constant 0 : i32
    %c0_i32_0 = arith.constant 0 : i32
    %c0_i32_1 = arith.constant 0 : i32
    return %c0_i32, %c0_i32_0 : i32, i32
  }
}

</mosaic_0001>

<bundles_post_ra>
// kernel: _lambda_.4
= control target key start
LH: loop header
LB: loop body
LE: loop exit
PB: predicated region body
PF: predicated region fallthrough
CT: control target
= control target key end

     0   :  { %s765_s6 = smov 0   ;;  %s1384_s0 = inlined_call_operand.vmem [shape: f32[2,2,63,63], index: 0, kind: input, shape index: {}]   ;;  %s1385_s1 = inlined_call_operand.vmem [shape: f32[2,4,64,64], index: 1, kind: output, shape index: {}]  }
   0x1 LB: > { %s688_s7 = sadd.s32 4294967295, %s750_s6   ;;  %p692_p0 = scmp.ge.s32.totalorder %s750_s6, 1  ;;  %s750_s6 = sphi %s765_s6, %s11_s6  }
   0x2   : > { %p87_p1 = scmp.lt.s32.totalorder %s750_s6, 3 }
   0x4   : > { %p88_p2 = pnand %p692_p0, %p87_p1 }
   0x6   : > { %91 = sbr.rel (%p88_p2) target bundleno = 209 (0xd1), region = 24 }
   0xd   : > { %p107_p3 = scmp.lt.s32.totalorder %s688_s7, 1  ;;  %vm563_vm0 = vcmask 523264   ;;  %v752_v1 = vmov 0.0   ;;  %vm596_vm1 = vcmask 515072   ;;  %s753_s16 = smov 1   ;;  %vm604_vm2 = vcmask 514048  }
   0xe   : > { %s754_s17 = smov 127   ;;  %vm142_vm3 = vcmask 1040384   ;;  %vm167_vm4 = vcmask 1046528   ;;  %vm191_vm5 = vcmask 1045504   ;;  %vm217_vm6 = vcmask 7168  }
   0xf   : > { %s1421_s7 = smov (!%p107_p3, %s688_s7), 1  ;;  %vm250_vm7 = vcmask 506880  }
  0x10   : > { %s731_s8 = sshll.u32 %s1421_s7, 7  ;;  %s732_s9 = sshll.u32 %s1421_s7, 8 }
  0x11   : > { %s776_s12 = scalar_lea.vmem %s1384_s0, %s731_s8  ;;  %s781_s15 = scalar_lea.vmem %s1385_s1, %s732_s9 }
  0x12   : > { %v784_v0 = vld [vmem:[%s776_s12 + $0x10] sm:$0xff]  ;;  %582 = vst.msk [vmem:[%s781_s15 + $0x90] sm:$0xff] %vm563_vm0, %v752_v1  ;;  %564 = vst.msk [vmem:[%s781_s15] sm:$0xff] %vm563_vm0, %v752_v1  ;;  %v851_v2 = vld [vmem:[%s776_s12] sm:$0xff] }
  0x13   : > { %565 = vst.msk [vmem:[%s781_s15 + $0x8] sm:$0xff] %vm563_vm0, %v752_v1  ;;  %566 = vst.msk [vmem:[%s781_s15 + $0x10] sm:$0xff] %vm563_vm0, %v752_v1  ;;  %v854_v3 = vld [vmem:[%s776_s12 + $0x18] sm:$0xff]  ;;  %197 = vrot.lane.b32.xlu1 %v784_v0, %s753_s16  ;;  %v146_v18 = vrot.slane %v784_v0, 7  ;;  %v143_v19 = vrot.slane %v851_v2, 7  ;;  %v171_v21 = vrot.slane %v784_v0, 1 }
  0x14   : > { %567 = vst.msk [vmem:[%s781_s15 + $0x18] sm:$0xff] %vm563_vm0, %v752_v1  ;;  %568 = vst.msk [vmem:[%s781_s15 + $0x20] sm:$0xff] %vm563_vm0, %v752_v1  ;;  %193 = vrot.lane.b32.xlu0 %v851_v2, %s753_s16  ;;  %v870_v4 = vld [vmem:[%s776_s12 + $0x8] sm:$0xff]  ;;  %v173_v20 = vrot.slane %v854_v3, 1  ;;  %v261_v22 = vmul.f32 4.0, %v784_v0  ;;  %v168_v25 = vrot.slane %v851_v2, 1 }
  0x15   : > { %569 = vst.msk [vmem:[%s781_s15 + $0x28] sm:$0xff] %vm563_vm0, %v752_v1  ;;  %570 = vst.msk [vmem:[%s781_s15 + $0x30] sm:$0xff] %vm563_vm0, %v752_v1  ;;  %v873_v5 = vld [vmem:[%s776_s12 + $0x28] sm:$0xff]  ;;  %v882_v6 = vld [vmem:[%s776_s12 + $0x20] sm:$0xff]  ;;  %v144_v17 = vrot.slane %v870_v4, 7  ;;  %v169_v24 = vrot.slane %v870_v4, 1  ;;  %v166_v28 = vsel %vm142_vm3, %v851_v2, %v143_v19 }
  0x16   : > { %571 = vst.msk [vmem:[%s781_s15 + $0x38] sm:$0xff] %vm563_vm0, %v752_v1  ;;  %572 = vst.msk [vmem:[%s781_s15 + $0x40] sm:$0xff] %vm563_vm0, %v752_v1  ;;  %v885_v7 = vld [vmem:[%s776_s12 + $0x30] sm:$0xff]  ;;  %v894_v8 = vld [vmem:[%s776_s12 + $0x48] sm:$0xff]  ;;  %v148_v26 = vrot.slane %v854_v3, 7  ;;  %v259_v27 = vmul.f32 4.0, %v851_v2  ;;  %v174_v32 = vsel %vm167_vm4, %v171_v21, %v173_v20 }
  0x17   : > { %573 = vst.msk [vmem:[%s781_s15 + $0x48] sm:$0xff] %vm563_vm0, %v752_v1  ;;  %574 = vst.msk [vmem:[%s781_s15 + $0x50] sm:$0xff] %vm563_vm0, %v752_v1  ;;  %v897_v9 = vld [vmem:[%s776_s12 + $0x40] sm:$0xff]  ;;  %v900_v10 = vld [vmem:[%s776_s12 + $0x58] sm:$0xff]  ;;  %v147_v23 = vsel %vm142_vm3, %v144_v17, %v146_v18  ;;  %v150_v29 = vrot.slane %v882_v6, 7  ;;  %v152_v30 = vrot.slane %v873_v5, 7  ;;  %v170_v37 = vsel %vm167_vm4, %v168_v25, %v169_v24 }
  0x18   : > { %575 = vst.msk [vmem:[%s781_s15 + $0x58] sm:$0xff] %vm563_vm0, %v752_v1  ;;  %576 = vst.msk [vmem:[%s781_s15 + $0x60] sm:$0xff] %vm563_vm0, %v752_v1  ;;  %v912_v11 = vld [vmem:[%s776_s12 + $0x50] sm:$0xff]  ;;  %v915_v12 = vld [vmem:[%s776_s12 + $0x68] sm:$0xff]  ;;  %v269_v33 = vsub.f32 %v261_v22, %v147_v23  ;;  %v175_v35 = vrot.slane %v882_v6, 1  ;;  %v262_v36 = vmul.f32 4.0, %v854_v3  ;;  %v149_v38 = vsel %vm142_vm3, %v146_v18, %v148_v26 }
  0x19   : > { %577 = vst.msk [vmem:[%s781_s15 + $0x68] sm:$0xff] %vm563_vm0, %v752_v1  ;;  %578 = vst.msk [vmem:[%s781_s15 + $0x70] sm:$0xff] %vm563_vm0, %v752_v1  ;;  %v918_v13 = vld [vmem:[%s776_s12 + $0x60] sm:$0xff]  ;;  %199 = vrot.lane.b32.xlu1 %v854_v3, %s753_s16  ;;  %v154_v39 = vrot.slane %v885_v7, 7  ;;  %v267_v41 = vsub.f32 %v259_v27, %v166_v28  ;;  %v260_v42 = vmul.f32 4.0, %v870_v4  ;;  %v145_v43 = vsel %vm142_vm3, %v143_v19, %v144_v17 }
  0x1a   : > { %579 = vst.msk [vmem:[%s781_s15 + $0x78] sm:$0xff] %vm563_vm0, %v752_v1  ;;  %580 = vst.msk [vmem:[%s781_s15 + $0x80] sm:$0xff] %vm563_vm0, %v752_v1  ;;  %195 = vrot.lane.b32.xlu0 %v870_v4, %s753_s16  ;;  %v934_v14 = vld [vmem:[%s776_s12 + $0x70] sm:$0xff]  ;;  %v264_v44 = vmul.f32 4.0, %v873_v5  ;;  %v153_v45 = vsel %vm142_vm3, %v150_v29, %v152_v30  ;;  %v177_v46 = vrot.slane %v873_v5, 1  ;;  %v179_v47 = vrot.slane %v885_v7, 1 }
  0x1b   : > { %581 = vst.msk [vmem:[%s781_s15 + $0x88] sm:$0xff] %vm563_vm0, %v752_v1  ;;  %583 = vst.msk [vmem:[%s781_s15 + $0x98] sm:$0xff] %vm563_vm0, %v752_v1  ;;  %v944_v15 = vld [vmem:[%s776_s12 + $0x38] sm:$0x7f]  ;;  %v263_v48 = vmul.f32 4.0, %v882_v6  ;;  %v270_v50 = vsub.f32 %v262_v36, %v149_v38  ;;  %v151_v52 = vsel %vm142_vm3, %v148_v26, %v150_v29  ;;  %v176_v54 = vsel %vm167_vm4, %v173_v20, %v175_v35 }
  0x1c   : > { %584 = vst.msk [vmem:[%s781_s15 + $0xa0] sm:$0xff] %vm563_vm0, %v752_v1  ;;  %585 = vst.msk [vmem:[%s781_s15 + $0xa8] sm:$0xff] %vm563_vm0, %v752_v1  ;;  %v963_v16 = vld [vmem:[%s776_s12 + $0x78] sm:$0x7f]  ;;  %v156_v40 = vrot.slane %v944_v15, 7  ;;  %v266_v53 = vmul.f32 4.0, %v944_v15  ;;  %v172_v55 = vsel %vm167_vm4, %v169_v24, %v171_v21  ;;  %v1034_v58 = vsub.f32 %v269_v33, %v174_v32 }
  0x1d   : > { %586 = vst.msk [vmem:[%s781_s15 + $0xb0] sm:$0xff] %vm563_vm0, %v752_v1  ;;  %587 = vst.msk [vmem:[%s781_s15 + $0xb8] sm:$0xff] %vm563_vm0, %v752_v1  ;;  %203 = vrot.lane.b32.xlu1 %v873_v5, %s753_s16  ;;  %v181_v57 = vrot.slane %v944_v15, 1  ;;  %v1036_v59 = vsub.f32 %v267_v41, %v170_v37  ;;  %v268_v60 = vsub.f32 %v260_v42, %v145_v43  ;;  %v316_v17 = vrot.slane %v894_v8, 7 }
  0x1e   : > { %588 = vst.msk [vmem:[%s781_s15 + $0xc0] sm:$0xff] %vm563_vm0, %v752_v1  ;;  %589 = vst.msk [vmem:[%s781_s15 + $0xc8] sm:$0xff] %vm563_vm0, %v752_v1  ;;  %201 = vrot.lane.b32.xlu0 %v882_v6, %s753_s16  ;;  %v157_v56 = vsel %vm142_vm3, %v154_v39, %v156_v40  ;;  %v272_v61 = vsub.f32 %v264_v44, %v153_v45  ;;  %v180_v62 = vsel %vm167_vm4, %v177_v46, %v179_v47 }
  0x1f   : > { %590 = vst.msk [vmem:[%s781_s15 + $0xd0] sm:$0xff] %vm563_vm0, %v752_v1  ;;  %591 = vst.msk [vmem:[%s781_s15 + $0xd8] sm:$0xff] %vm563_vm0, %v752_v1  ;;  %v271_v63 = vsub.f32 %v263_v48, %v151_v52  ;;  %v1041_v18 = vsub.f32 %v270_v50, %v176_v54  ;;  %v178_v20 = vsel %vm167_vm4, %v175_v35, %v177_v46  ;;  %v265_v23 = vmul.f32 4.0, %v885_v7 }
  0x20   : > { %592 = vst.msk [vmem:[%s781_s15 + $0xe0] sm:$0xff] %vm563_vm0, %v752_v1  ;;  %593 = vst.msk [vmem:[%s781_s15 + $0xe8] sm:$0xff] %vm563_vm0, %v752_v1  ;;  %v274_v22 = vsub.f32 %v266_v53, %v157_v56  ;;  %v192_v24 = vsel %vm191_vm5, %v181_v57, %v944_v15  ;;  %v155_v25 = vsel %vm142_vm3, %v152_v30, %v154_v39  ;;  %v340_v26 = vrot.slane %v894_v8, 1 }
  0x21   : > { %594 = vst.msk [vmem:[%s781_s15 + $0xf0] sm:$0xff] %vm563_vm0, %v752_v1  ;;  %595 = vst.msk [vmem:[%s781_s15 + $0xf8] sm:$0xff] %vm563_vm0, %v752_v1  ;;  %207 = vrot.lane.b32.xlu1 %v944_v15, %s753_s16  ;;  %v315_v1 = vrot.slane %v897_v9, 7  ;;  %v342_v27 = vrot.slane %v912_v11, 1  ;;  %v1054_v28 = vsub.f32 %v268_v60, %v172_v55  ;;  %v1056_v29 = vsub.f32 %v272_v61, %v180_v62 }
  0x22   : > { %715 = vst.msk [vmem:[%s781_s15 + $0x90] sm:$0xff] %vm596_vm1, %v784_v0  ;;  %713 = vst.msk [vmem:[%s781_s15 + $0x80] sm:$0xff] %vm596_vm1, %v851_v2  ;;  %205 = vrot.lane.b32.xlu0 %v885_v7, %s753_s16  ;;  %v428_v32 = vmul.f32 4.0, %v894_v8  ;;  %v339_v33 = vrot.slane %v897_v9, 1  ;;  %v1060_v35 = vsub.f32 %v271_v63, %v178_v20  ;;  %v318_v37 = vrot.slane %v912_v11, 7 }
  0x23   : > { %716 = vst.msk [vmem:[%s781_s15 + $0x98] sm:$0xff] %vm596_vm1, %v854_v3  ;;  %714 = vst.msk [vmem:[%s781_s15 + $0x88] sm:$0xff] %vm596_vm1, %v870_v4  ;;  %v317_v36 = vsel %vm142_vm3, %v315_v1, %v316_v17  ;;  %v320_v30 = vrot.slane %v900_v10, 7  ;;  %v1065_v38 = vsub.f32 %v274_v22, %v192_v24  ;;  %v182_v40 = vsel %vm167_vm4, %v179_v47, %v181_v57 }
  0x24   : > { %718 = vst.msk [vmem:[%s781_s15 + $0xa8] sm:$0xff] %vm596_vm1, %v873_v5  ;;  %717 = vst.msk [vmem:[%s781_s15 + $0xa0] sm:$0xff] %vm596_vm1, %v882_v6  ;;  %v273_v41 = vsub.f32 %v265_v23, %v155_v25  ;;  %v427_v43 = vmul.f32 4.0, %v897_v9  ;;  %v343_v44 = vsel %vm167_vm4, %v340_v26, %v342_v27  ;;  %v338_v45 = vsel %vm142_vm3, %v897_v9, %v315_v1 }
  0x25   : > { %719 = vst.msk [vmem:[%s781_s15 + $0xb0] sm:$0xff] %vm596_vm1, %v885_v7  ;;  %722 = vst.msk [vmem:[%s781_s15 + $0xc8] sm:$0xff] %vm596_vm1, %v894_v8  ;;  %365 = vrot.lane.b32.xlu1 %v894_v8, %s753_s16  ;;  %v322_v46 = vrot.slane %v918_v13, 7  ;;  %v324_v48 = vrot.slane %v915_v12, 7  ;;  %v436_v50 = vsub.f32 %v428_v32, %v317_v36  ;;  %v341_v52 = vsel %vm167_vm4, %v339_v33, %v340_v26 }
  0x26   : > { %721 = vst.msk [vmem:[%s781_s15 + $0xc0] sm:$0xff] %vm596_vm1, %v897_v9  ;;  %724 = vst.msk [vmem:[%s781_s15 + $0xd8] sm:$0xff] %vm596_vm1, %v900_v10  ;;  %363 = vrot.lane.b32.xlu0 %v897_v9, %s753_s16  ;;  %v344_v53 = vrot.slane %v900_v10, 1  ;;  %v430_v47 = vmul.f32 4.0, %v900_v10  ;;  %v321_v54 = vsel %vm142_vm3, %v318_v37, %v320_v30  ;;  %v346_v55 = vrot.slane %v918_v13, 1 }
  0x27   : > { %723 = vst.msk [vmem:[%s781_s15 + $0xd0] sm:$0xff] %vm596_vm1, %v912_v11  ;;  %726 = vst.msk [vmem:[%s781_s15 + $0xe8] sm:$0xff] %vm596_vm1, %v915_v12  ;;  %v326_v56 = vrot.slane %v934_v14, 7  ;;  %v328_v57 = vrot.slane %v963_v16, 7  ;;  %v435_v61 = vsub.f32 %v427_v43, %v338_v45  ;;  %v319_v63 = vsel %vm142_vm3, %v316_v17, %v318_v37 }
  0x28   : > { %725 = vst.msk [vmem:[%s781_s15 + $0xe0] sm:$0xff] %vm596_vm1, %v918_v13  ;;  %1390 = vst [vmem:[#allocation2_spill] sm:$0xff] %v934_v14  ;;  %v429_v1 = vmul.f32 4.0, %v912_v11  ;;  %v432_v20 = vmul.f32 4.0, %v915_v12  ;;  %v325_v22 = vsel %vm142_vm3, %v322_v46, %v324_v48  ;;  %v348_v23 = vrot.slane %v915_v12, 1 }
  0x29   : > { %727 = vst.msk [vmem:[%s781_s15 + $0xf0] sm:$0xff] %vm596_vm1, %v934_v14  ;;  %369 = vrot.lane.b32.xlu1 %v900_v10, %s753_s16  ;;  %1391 = vst [vmem:[#allocation3_spill] sm:$0xff] %v963_v16  ;;  %v350_v24 = vrot.slane %v934_v14, 1  ;;  %v431_v25 = vmul.f32 4.0, %v918_v13  ;;  %v438_v26 = vsub.f32 %v430_v47, %v321_v54  ;;  %v323_v32 = vsel %vm142_vm3, %v320_v30, %v322_v46 }
  0x2a   : > { %367 = vrot.lane.b32.xlu0 %v912_v11, %s753_s16  ;;  %720 = vst.msk [vmem:[%s781_s15 + $0xb8] sm:$0x7f] %vm604_vm2, %v944_v15  ;;  %728 = vst.msk [vmem:[%s781_s15 + $0xf8] sm:$0x7f] %vm604_vm2, %v963_v16  ;;  %v434_v33 = vmul.f32 4.0, %v963_v16  ;;  %v433_v17 = vmul.f32 4.0, %v934_v14  ;;  %v347_v36 = vsel %vm167_vm4, %v344_v53, %v346_v55  ;;  %v329_v37 = vsel %vm142_vm3, %v326_v56, %v328_v57 }
  0x2b   : > { %1392 = vst [vmem:[#allocation4_spill] sm:$0xff] %v1056_v29  ;;  %1393 = vst [vmem:[#allocation5_spill] sm:$0xff] %v1060_v35  ;;  %v352_v43 = vrot.slane %v963_v16, 1  ;;  %v327_v45 = vsel %vm142_vm3, %v324_v48, %v326_v56  ;;  %v437_v47 = vsub.f32 %v429_v1, %v319_v63  ;;  %v440_v46 = vsub.f32 %v432_v20, %v325_v22 }
  0x2c   : > { %1394 = vst [vmem:[#allocation6_spill] sm:$0xff] %v1065_v38  ;;  %v1111_v54 = vsub.f32 %v435_v61, %v341_v52  ;;  %v345_v35 = vsel %vm167_vm4, %v342_v27, %v344_v53  ;;  %v351_v57 = vsel %vm167_vm4, %v348_v23, %v350_v24  ;;  %v439_v29 = vsub.f32 %v431_v25, %v323_v32 }
  0x2d   : > { %373 = vrot.lane.b32.xlu1 %v915_v12, %s753_s16  ;;  %v362_v48 = vsel %vm191_vm5, %v352_v43, %v963_v16  ;;  %v484_v52 = vmul.f32 %v894_v8, %v870_v4  ;;  %v483_v27 = vmul.f32 %v897_v9, %v851_v2  ;;  %v1125_v53 = vsub.f32 %v437_v47, %v345_v35 }
  0x2e   : > { %371 = vrot.lane.b32.xlu0 %v918_v13, %s753_s16  ;;  %v1127_v56 = vsub.f32 %v440_v46, %v351_v57  ;;  %v486_v63 = vmul.f32 %v900_v10, %v854_v3  ;;  %v485_v1 = vmul.f32 %v912_v11, %v784_v0  ;;  %v1140_v22 = vmul.f32 0.105, %v870_v4 }
  0x2f   : > { %v488_v35 = vmul.f32 %v915_v12, %v873_v5  ;;  %v1149_v25 = vmul.f32 0.105, %v851_v2  ;;  %v1157_v32 = vmul.f32 %v483_v27, %v851_v2  ;;  %v1177_v46 = vmul.f32 0.105, %v784_v0 }
  0x30   : > { %1398 = vst [vmem:[#allocation10_spill] sm:$0xff] %v1127_v56  ;;  %v1174_v47 = vmul.f32 %v485_v1, %v784_v0  ;;  %v541_v1 = vsub.f32 1.0, %v912_v11 }
  0x31   : > { %377 = vrot.lane.b32.xlu1 %v963_v16, %s753_s16 }
  0x32   : > { %375 = vrot.lane.b32.xlu0 %v934_v14, %s753_s16  ;;  %v1231_v56 = vmul.f32 0.04, %v541_v1 }
  0x35   : > { %228 = vrot.lane.b32.xlu1 %v870_v4, %s754_s17 }
  0x36   : > { %226 = vrot.lane.b32.xlu0 %v851_v2, %s754_s17 }
  0x39   : > { %232 = vrot.lane.b32.xlu1 %v854_v3, %s754_s17 }
  0x3a   : > { %230 = vrot.lane.b32.xlu0 %v784_v0, %s754_s17 }
  0x3d   : > { %236 = vrot.lane.b32.xlu1 %v873_v5, %s754_s17 }
  0x3e   : > { %234 = vrot.lane.b32.xlu0 %v882_v6, %s754_s17 }
  0x41   : > { %240 = vrot.lane.b32.xlu1 %v944_v15, %s754_s17 }
  0x42   : > { %238 = vrot.lane.b32.xlu0 %v885_v7, %s754_s17 }
  0x45   : > { %397 = vrot.lane.b32.xlu1 %v894_v8, %s754_s17 }
  0x46   : > { %395 = vrot.lane.b32.xlu0 %v897_v9, %s754_s17 }
  0x49   : > { %401 = vrot.lane.b32.xlu1 %v900_v10, %s754_s17 }
  0x4a   : > { %399 = vrot.lane.b32.xlu0 %v912_v11, %s754_s17 }
  0x4d   : > { %405 = vrot.lane.b32.xlu1 %v915_v12, %s754_s17 }
  0x4e   : > { %403 = vrot.lane.b32.xlu0 %v918_v13, %s754_s17 }
  0x51   : > { %409 = vrot.lane.b32.xlu1 %v963_v16, %s754_s17 }
  0x52   : > { %407 = vrot.lane.b32.xlu0 %v934_v14, %s754_s17 }
  0x85   : > { %v1006_v31 = vpop.permute.xlu1 %197 }
  0x86   : > { %v1009_v34 = vpop.permute.xlu0 %193 }
  0x87   : > { %v218_v57 = vsel %vm217_vm6, %v851_v2, %v1009_v34  ;;  %v539_v34 = vsub.f32 1.0, %v897_v9 }
  0x8b   : > { %v1024_v49 = vpop.permute.xlu1 %199 }
  0x8c   : > { %v1026_v51 = vpop.permute.xlu0 %195 }
  0x8f   : > { %v1043_v19 = vpop.permute.xlu1 %203 }
  0x90   : > { %v1046_v21 = vpop.permute.xlu0 %201 }
  0x93   : > { %v1067_v39 = vpop.permute.xlu1 %207 }
  0x94   : > { %v1070_v42 = vpop.permute.xlu0 %205 }
  0x95   : > { %1395 = vst [vmem:[#allocation7_spill] sm:$0xff] %v1070_v42  ;;  %v1115_v42 = vsub.f32 %v438_v26, %v347_v36  ;;  %v487_v26 = vmul.f32 %v918_v13, %v882_v6 }
  0x97   : > { %v1085_v60 = vpop.permute.xlu1 %365 }
  0x98   : > { %1396 = vst [vmem:[#allocation8_spill] sm:$0xff] %v1085_v60  ;;  %v1087_v62 = vpop.permute.xlu0 %363  ;;  %v1105_v60 = vsub.f32 %v436_v50, %v343_v44  ;;  %v441_v44 = vsub.f32 %v433_v17, %v327_v45  ;;  %v353_v50 = vsel %vm167_vm4, %v350_v24, %v352_v43  ;;  %v489_v17 = vmul.f32 %v934_v14, %v885_v7 }
  0x99   : > { %1397 = vst [vmem:[#allocation9_spill] sm:$0xff] %v1087_v62  ;;  %v1103_v62 = vsub.f32 %v273_v41, %v182_v40  ;;  %v349_v40 = vsel %vm167_vm4, %v346_v55, %v348_v23  ;;  %v442_v41 = vsub.f32 %v434_v33, %v329_v37  ;;  %v490_v33 = vmul.f32 %v963_v16, %v944_v15 }
  0x9a   : > { %v1137_v20 = vsub.f32 %v439_v29, %v349_v40  ;;  %v1146_v24 = vsub.f32 %v441_v44, %v353_v50  ;;  %v1154_v29 = vmul.f32 %v484_v52, %v870_v4  ;;  %v1168_v43 = vmul.f32 %v486_v63, %v854_v3 }
  0x9b   : > { %v1107_v38 = vpop.permute.xlu1 %369  ;;  %v1144_v23 = vsub.f32 %v442_v41, %v362_v48  ;;  %v1171_v45 = vmul.f32 0.105, %v854_v3  ;;  %v219_v40 = vsel %vm217_vm6, %v870_v4, %v1026_v51  ;;  %v1186_v41 = vmul.f32 %v488_v35, %v873_v5 }
  0x9c   : > { %v1109_v30 = vpop.permute.xlu0 %367  ;;  %1399 = vst [vmem:[#allocation11_spill] sm:$0xff] %v1137_v20  ;;  %1401 = vst [vmem:[#allocation13_spill] sm:$0xff] %v1146_v24  ;;  %v1189_v44 = vmul.f32 0.105, %v873_v5  ;;  %v1192_v48 = vmul.f32 %v487_v26, %v882_v6  ;;  %v1195_v50 = vmul.f32 0.105, %v882_v6  ;;  %v1200_v27 = vmul.f32 %v490_v33, %v944_v15 }
  0x9d   : > { %1400 = vst [vmem:[#allocation12_spill] sm:$0xff] %v1144_v23  ;;  %v540_v52 = vsub.f32 1.0, %v894_v8  ;;  %v1203_v51 = vmul.f32 %v489_v17, %v885_v7  ;;  %v542_v63 = vsub.f32 1.0, %v900_v10  ;;  %v283_v35 = vsub.f32 %v1036_v59, %v218_v57 }
  0x9e   : > { %v284_v26 = vsub.f32 %v1054_v28, %v219_v40  ;;  %v1210_v14 = vmul.f32 0.105, %v944_v15  ;;  %v220_v33 = vsel %vm217_vm6, %v784_v0, %v1006_v31  ;;  %v221_v17 = vsel %vm217_vm6, %v854_v3, %v1024_v49 }
  0x9f   : > { %v1129_v61 = vpop.permute.xlu1 %373  ;;  %v1225_v16 = vmul.f32 0.04, %v540_v52  ;;  %v1229_v20 = vmul.f32 0.04, %v542_v63  ;;  %v544_v31 = vsub.f32 1.0, %v915_v12  ;;  %v543_v49 = vsub.f32 1.0, %v918_v13 }
  0xa0   : > { %v1131_v55 = vpop.permute.xlu0 %371  ;;  %v223_v52 = vsel %vm217_vm6, %v873_v5, %v1043_v19 }
  0xa3   : > { %v1163_v36 = vpop.permute.xlu1 %377 }
  0xa4   : > { %1402 = vst [vmem:[#allocation14_spill] sm:$0xff] %v1163_v36  ;;  %v1165_v37 = vpop.permute.xlu0 %375  ;;  %v1227_v36 = vmul.f32 0.04, %v539_v34  ;;  %v222_v34 = vsel %vm217_vm6, %v882_v6, %v1046_v21  ;;  %v1255_v21 = vmul.f32 0.04, %v543_v49 }
  0xa5   : > { %1403 = vst [vmem:[#allocation15_spill] sm:$0xff] %v1165_v37  ;;  %v1213_v37 = vmul.f32 0.105, %v885_v7 }
  0xa7   : > { %v229_v24 = vpop.permute.xlu1 %228  ;;  %1404 = vst [vmem:[#allocation16_spill] sm:$0xff] %v1213_v37  ;;  %v285_v37 = vsub.f32 %v1034_v58, %v220_v33 }
  0xa8   : > { %v227_v23 = vpop.permute.xlu0 %226  ;;  %v252_v59 = vsel %vm250_vm7, %v229_v24, %v870_v4  ;;  %v286_v4 = vsub.f32 %v1041_v18, %v221_v17  ;;  %v225_v17 = vsel %vm217_vm6, %v944_v15, %v1067_v39 }
  0xa9   : > { %v251_v28 = vsel %vm250_vm7, %v227_v23, %v851_v2  ;;  %v292_v57 = vsub.f32 %v284_v26, %v252_v59  ;;  %v1405_v59 = vld [vmem:[#allocation7_spill] sm:$0xff] }
  0xaa   : > { %v291_v40 = vsub.f32 %v283_v35, %v251_v28  ;;  %v224_v19 = vsel %vm217_vm6, %v885_v7, %v1405_v59  ;;  %v1253_v28 = vmul.f32 0.04, %v544_v31 }
  0xab   : > { %v300_v24 = vmul.f32 3844.0, %v292_v57  ;;  %v233_v23 = vpop.permute.xlu1 %232 }
  0xac   : > { %v299_v2 = vmul.f32 3844.0, %v291_v40  ;;  %v231_v35 = vpop.permute.xlu0 %230  ;;  %v254_v63 = vsel %vm250_vm7, %v233_v23, %v854_v3 }
  0xad   : > { %v253_v58 = vsel %vm250_vm7, %v231_v35, %v784_v0  ;;  %v476_v1 = vmul.f32 0.00025, %v300_v24  ;;  %v294_v26 = vsub.f32 %v286_v4, %v254_v63  ;;  %v1406_v24 = vld [vmem:[#allocation4_spill] sm:$0xff] }
  0xae   : > { %v475_v18 = vmul.f32 0.00025, %v299_v2  ;;  %v293_v33 = vsub.f32 %v285_v37, %v253_v58  ;;  %v288_v39 = vsub.f32 %v1406_v24, %v223_v52  ;;  %v1407_v2 = vld [vmem:[#allocation5_spill] sm:$0xff]  ;;  %v1409_v24 = vld [vmem:[#allocation8_spill] sm:$0xff] }
  0xaf   : > { %v500_v3 = vsub.f32 %v476_v1, %v1154_v29  ;;  %v302_v57 = vmul.f32 3844.0, %v294_v26  ;;  %v237_v4 = vpop.permute.xlu1 %236  ;;  %v287_v23 = vsub.f32 %v1407_v2, %v222_v34  ;;  %v388_v34 = vsel %vm217_vm6, %v894_v8, %v1409_v24 }
  0xb0   : > { %v499_v0 = vsub.f32 %v475_v18, %v1157_v32  ;;  %v301_v40 = vmul.f32 3844.0, %v293_v33  ;;  %v235_v37 = vpop.permute.xlu0 %234  ;;  %v256_v31 = vsel %vm250_vm7, %v237_v4, %v873_v5  ;;  %v1408_v18 = vld [vmem:[#allocation6_spill] sm:$0xff]  ;;  %v289_v33 = vsub.f32 %v1103_v62, %v224_v19  ;;  %v1410_v5 = vld [vmem:[#allocation9_spill] sm:$0xff] }
  0xb1   : > { %v255_v49 = vsel %vm250_vm7, %v235_v37, %v882_v6  ;;  %v516_v35 = vadd.f32 %v1140_v22, %v500_v3  ;;  %v478_v58 = vmul.f32 0.00025, %v302_v57  ;;  %v290_v26 = vsub.f32 %v1408_v18, %v225_v17 }
  0xb2   : > { %v515_v63 = vadd.f32 %v1149_v25, %v499_v0  ;;  %v477_v1 = vmul.f32 0.00025, %v301_v40  ;;  %v296_v59 = vsub.f32 %v288_v39, %v256_v31  ;;  %v295_v52 = vsub.f32 %v287_v23, %v255_v49 }
  0xb3   : > { %v387_v6 = vsel %vm217_vm6, %v897_v9, %v1410_v5  ;;  %598 = vst.msk [vmem:[%s781_s15 + $0x8] sm:$0xff] %vm596_vm1, %v516_v35  ;;  %v502_v22 = vsub.f32 %v478_v58, %v1168_v43  ;;  %v241_v17 = vpop.permute.xlu1 %240  ;;  %v452_v2 = vsub.f32 %v1105_v60, %v388_v34  ;;  %v390_v35 = vsel %vm217_vm6, %v900_v10, %v1107_v38 }
  0xb4   : > { %597 = vst.msk [vmem:[%s781_s15] sm:$0xff] %vm596_vm1, %v515_v63  ;;  %v501_v25 = vsub.f32 %v477_v1, %v1174_v47  ;;  %v239_v62 = vpop.permute.xlu0 %238  ;;  %v304_v19 = vmul.f32 3844.0, %v296_v59  ;;  %v303_v3 = vmul.f32 3844.0, %v295_v52  ;;  %v258_v0 = vsel %vm250_vm7, %v241_v17, %v944_v15  ;;  %v1411_v17 = vld [vmem:[#allocation16_spill] sm:$0xff] }
  0xb5   : > { %v257_v57 = vsel %vm250_vm7, %v239_v62, %v885_v7  ;;  %v518_v40 = vadd.f32 %v1171_v45, %v502_v22  ;;  %v298_v37 = vsub.f32 %v290_v26, %v258_v0  ;;  %v451_v23 = vsub.f32 %v1111_v54, %v387_v6 }
  0xb6   : > { %v517_v4 = vadd.f32 %v1177_v46, %v501_v25  ;;  %v297_v39 = vsub.f32 %v289_v33, %v257_v57  ;;  %v480_v31 = vmul.f32 0.00025, %v304_v19  ;;  %v479_v49 = vmul.f32 0.00025, %v303_v3  ;;  %v1412_v3 = vld [vmem:[#allocation10_spill] sm:$0xff] }
  0xb7   : > { %v389_v7 = vsel %vm217_vm6, %v912_v11, %v1109_v30  ;;  %600 = vst.msk [vmem:[%s781_s15 + $0x18] sm:$0xff] %vm596_vm1, %v518_v40  ;;  %v306_v15 = vmul.f32 3844.0, %v298_v37  ;;  %v398_v46 = vpop.permute.xlu1 %397  ;;  %v392_v33 = vsel %vm217_vm6, %v915_v12, %v1129_v61  ;;  %v391_v59 = vsel %vm217_vm6, %v918_v13, %v1131_v55  ;;  %v1414_v37 = vld [vmem:[#allocation14_spill] sm:$0xff] }
  0xb8   : > { %599 = vst.msk [vmem:[%s781_s15 + $0x10] sm:$0xff] %vm596_vm1, %v517_v4  ;;  %v305_v45 = vmul.f32 3844.0, %v297_v39  ;;  %v396_v60 = vpop.permute.xlu0 %395  ;;  %v504_v54 = vsub.f32 %v480_v31, %v1186_v41  ;;  %v503_v63 = vsub.f32 %v479_v49, %v1192_v48  ;;  %v420_v58 = vsel %vm250_vm7, %v398_v46, %v894_v8  ;;  %v1415_v39 = vld [vmem:[#allocation3_spill] sm:$0xff] }
  0xb9   : > { %v419_v38 = vsel %vm250_vm7, %v396_v60, %v897_v9  ;;  %v482_v1 = vmul.f32 0.00025, %v306_v15  ;;  %v460_v18 = vsub.f32 %v452_v2, %v420_v58  ;;  %v454_v25 = vsub.f32 %v1115_v42, %v390_v35 }
  0xba   : > { %v481_v30 = vmul.f32 0.00025, %v305_v45  ;;  %v459_v26 = vsub.f32 %v451_v23, %v419_v38  ;;  %v520_v52 = vadd.f32 %v1189_v44, %v504_v54  ;;  %v519_v8 = vadd.f32 %v1195_v50, %v503_v63  ;;  %v1417_v23 = vld [vmem:[#allocation2_spill] sm:$0xff] }
  0xbb   : > { %v506_v9 = vsub.f32 %v482_v1, %v1200_v27  ;;  %v468_v34 = vmul.f32 3844.0, %v460_v18  ;;  %v402_v6 = vpop.permute.xlu1 %401  ;;  %v453_v61 = vsub.f32 %v1125_v53, %v389_v7  ;;  %v456_v0 = vsub.f32 %v1412_v3, %v392_v33  ;;  %v1413_v53 = vld [vmem:[#allocation11_spill] sm:$0xff] }
  0xbc   : > { %v505_v24 = vsub.f32 %v481_v30, %v1203_v51  ;;  %v467_v5 = vmul.f32 3844.0, %v459_v26  ;;  %v400_v22 = vpop.permute.xlu0 %399  ;;  %602 = vst.msk [vmem:[%s781_s15 + $0x28] sm:$0xff] %vm596_vm1, %v520_v52  ;;  %601 = vst.msk [vmem:[%s781_s15 + $0x20] sm:$0xff] %vm596_vm1, %v519_v8  ;;  %v422_v55 = vsel %vm250_vm7, %v402_v6, %v900_v10  ;;  %v455_v57 = vsub.f32 %v1413_v53, %v391_v59  ;;  %v1416_v10 = vld [vmem:[#allocation15_spill] sm:$0xff]  ;;  %v1418_v30 = vld [vmem:[#allocation12_spill] sm:$0xff] }
  0xbd   : > { %v421_v44 = vsel %vm250_vm7, %v400_v22, %v912_v11  ;;  %v522_v50 = vadd.f32 %v1210_v14, %v506_v9  ;;  %v524_v19 = vmul.f32 0.0005, %v468_v34  ;;  %v462_v40 = vsub.f32 %v454_v25, %v422_v55  ;;  %v1419_v26 = vld [vmem:[#allocation13_spill] sm:$0xff] }
  0xbe   : > { %v521_v62 = vadd.f32 %v1411_v17, %v505_v24  ;;  %v523_v42 = vmul.f32 0.0005, %v467_v5  ;;  %v461_v4 = vsub.f32 %v453_v61, %v421_v44  ;;  %v394_v2 = vsel %vm217_vm6, %v1415_v39, %v1414_v37 }
  0xbf   : > { %v393_v11 = vsel %vm217_vm6, %v1417_v23, %v1416_v10  ;;  %605 = vst.msk [vmem:[%s781_s15 + $0x38] sm:$0x7f] %vm604_vm2, %v522_v50  ;;  %v532_v14 = vadd.f32 %v524_v19, %v1154_v29  ;;  %v406_v49 = vpop.permute.xlu1 %405  ;;  %v470_v7 = vmul.f32 3844.0, %v462_v40  ;;  %v546_v38 = vsub.f32 1.0, %v1415_v39 }
  0xc0   : > { %603 = vst.msk [vmem:[%s781_s15 + $0x30] sm:$0xff] %vm596_vm1, %v521_v62  ;;  %v531_v31 = vadd.f32 %v523_v42, %v1157_v32  ;;  %v404_v35 = vpop.permute.xlu0 %403  ;;  %v469_v15 = vmul.f32 3844.0, %v461_v4  ;;  %v424_v45 = vsel %vm250_vm7, %v406_v49, %v915_v12  ;;  %v545_v1 = vsub.f32 1.0, %v1417_v23 }
  0xc1   : > { %v423_v46 = vsel %vm250_vm7, %v404_v35, %v918_v13  ;;  %v556_v60 = vsub.f32 %v532_v14, %v1225_v16  ;;  %v464_v63 = vsub.f32 %v456_v0, %v424_v45  ;;  %v526_v58 = vmul.f32 0.0005, %v470_v7 }
  0xc2   : > { %v555_v54 = vsub.f32 %v531_v31, %v1227_v36  ;;  %v463_v29 = vsub.f32 %v455_v57, %v423_v46  ;;  %v525_v32 = vmul.f32 0.0005, %v469_v15  ;;  %v458_v18 = vsub.f32 %v1418_v30, %v394_v2 }
  0xc3   : > { %v457_v33 = vsub.f32 %v1419_v26, %v393_v11  ;;  %706 = vst.msk [vmem:[%s781_s15 + $0x48] sm:$0xff] %vm596_vm1, %v556_v60  ;;  %v472_v12 = vmul.f32 3844.0, %v464_v63  ;;  %v410_v16 = vpop.permute.xlu1 %409  ;;  %v534_v59 = vadd.f32 %v526_v58, %v1168_v43  ;;  %v554_v44 = vmul.f32 0.04, %v546_v38 }
  0xc4   : > { %705 = vst.msk [vmem:[%s781_s15 + $0x40] sm:$0xff] %vm596_vm1, %v555_v54  ;;  %v471_v13 = vmul.f32 3844.0, %v463_v29  ;;  %v408_v36 = vpop.permute.xlu0 %407  ;;  %v533_v52 = vadd.f32 %v525_v32, %v1174_v47  ;;  %v426_v8 = vsel %vm250_vm7, %v410_v16, %v1415_v39  ;;  %v553_v50 = vmul.f32 0.04, %v545_v1 }
  0xc5   : > { %v425_v9 = vsel %vm250_vm7, %v408_v36, %v1417_v23  ;;  %v528_v24 = vmul.f32 0.0005, %v472_v12  ;;  %v466_v5 = vsub.f32 %v458_v18, %v426_v8  ;;  %v558_v22 = vsub.f32 %v534_v59, %v1229_v20 }
  0xc6   : > { %v527_v34 = vmul.f32 0.0005, %v471_v13  ;;  %v465_v6 = vsub.f32 %v457_v33, %v425_v9  ;;  %v557_v25 = vsub.f32 %v533_v52, %v1231_v56 }
  0xc7   : > { %v536_v43 = vadd.f32 %v528_v24, %v1186_v41  ;;  %v474_v61 = vmul.f32 3844.0, %v466_v5  ;;  %708 = vst.msk [vmem:[%s781_s15 + $0x58] sm:$0xff] %vm596_vm1, %v558_v22 }
  0xc8   : > { %v535_v47 = vadd.f32 %v527_v34, %v1192_v48  ;;  %v473_v55 = vmul.f32 3844.0, %v465_v6  ;;  %707 = vst.msk [vmem:[%s781_s15 + $0x50] sm:$0xff] %vm596_vm1, %v557_v25 }
  0xc9   : > { %v560_v17 = vsub.f32 %v536_v43, %v1253_v28  ;;  %v530_v62 = vmul.f32 0.0005, %v474_v61 }
  0xca   : > { %v559_v20 = vsub.f32 %v535_v47, %v1255_v21  ;;  %v529_v56 = vmul.f32 0.0005, %v473_v55 }
  0xcb   : > { %710 = vst.msk [vmem:[%s781_s15 + $0x68] sm:$0xff] %vm596_vm1, %v560_v17  ;;  %v538_v41 = vadd.f32 %v530_v62, %v1200_v27 }
  0xcc   : > { %709 = vst.msk [vmem:[%s781_s15 + $0x60] sm:$0xff] %vm596_vm1, %v559_v20  ;;  %v537_v48 = vadd.f32 %v529_v56, %v1203_v51 }
  0xcd   : > { %v562_v19 = vsub.f32 %v538_v41, %v554_v44 }
  0xce   : > { %v561_v42 = vsub.f32 %v537_v48, %v553_v50 }
  0xcf   : > { %712 = vst.msk [vmem:[%s781_s15 + $0x78] sm:$0x7f] %vm604_vm2, %v562_v19 }
  0xd0   : > { %711 = vst.msk [vmem:[%s781_s15 + $0x70] sm:$0xff] %vm596_vm1, %v561_v42 }
  0xd1 PF: > { %s11_s6 = sadd.s32 1, %s750_s6  }
  0xd2   : > { %p8_p4 = scmp.ge.s32.totalorder %s11_s6, 4  }
  0xd4   :  { %10 = sbr.rel (!%p8_p4) target bundleno = 1 (0x1), region = 58 }

// kernel: _lambda_.6
= control target key start
LH: loop header
LB: loop body
LE: loop exit
PB: predicated region body
PF: predicated region fallthrough
CT: control target
= control target key end

     0   :  { %s973_s9 = smov 0   ;;  %s1800_s0 = inlined_call_operand.vmem [shape: f32[2,4,64,64], index: 0, kind: input, shape index: {}]   ;;  %s1801_s1 = inlined_call_operand.vmem [shape: f32[2,2,64,64], index: 1, kind: input, shape index: {}]   ;;  %s1802_s2 = inlined_call_operand.vmem [shape: f32[2,4,64,64], index: 2, kind: output, shape index: {}]  }
   0x1 LB: > { %s862_s10 = sadd.s32 4294967295, %s953_s9   ;;  %p866_p0 = scmp.ge.s32.totalorder %s953_s9, 1  ;;  %s953_s9 = sphi %s973_s9, %s12_s9  }
   0x2   : > { %p122_p1 = scmp.lt.s32.totalorder %s953_s9, 3 }
   0x4   : > { %p123_p2 = pnand %p866_p0, %p122_p1 }
   0x6   : > { %126 = sbr.rel (%p123_p2) target bundleno = 210 (0xd2), region = 28 }
   0xd   : > { %p149_p3 = scmp.lt.s32.totalorder %s862_s10, 1  ;;  %s955_s15 = smov 1   ;;  %vm693_vm0 = vcmask 523264   ;;  %vm742_vm1 = vcmask 515072   ;;  %v956_v17 = vmov 0.0   ;;  %vm750_vm2 = vcmask 514048  }
   0xe   : > { %s957_s23 = smov 127   ;;  %vm224_vm3 = vcmask 1040384   ;;  %vm249_vm4 = vcmask 1046528   ;;  %vm273_vm5 = vcmask 1045504   ;;  %vm299_vm6 = vcmask 7168  }
   0xf   : > { %s1878_s10 = smov (!%p149_p3, %s862_s10), 1  ;;  %vm332_vm7 = vcmask 506880  }
  0x10   : > { %s932_s11 = sshll.u32 %s1878_s10, 7  ;;  %s931_s16 = sshll.u32 %s1878_s10, 8 }
  0x11   : > { %s984_s14 = scalar_lea.vmem %s1801_s1, %s932_s11  ;;  %s1019_s19 = scalar_lea.vmem %s1800_s0, %s931_s16 }
  0x12   : > { %v987_v0 = vld [vmem:[%s984_s14 + $0x10] sm:$0xff]  ;;  %v990_v1 = vld [vmem:[%s984_s14] sm:$0xff]  ;;  %v997_v2 = vld [vmem:[%s984_s14 + $0x18] sm:$0xff]  ;;  %s1030_s22 = scalar_lea.vmem %s1802_s2, %s931_s16 }
  0x13   : > { %279 = vrot.lane.b32.xlu1 %v987_v0, %s955_s15  ;;  %275 = vrot.lane.b32.xlu0 %v990_v1, %s955_s15  ;;  %v1000_v3 = vld [vmem:[%s984_s14 + $0x8] sm:$0xff]  ;;  %v1010_v5 = vld [vmem:[%s984_s14 + $0x20] sm:$0xff]  ;;  %v565_v21 = vmul.f32 2.0, %v990_v1  ;;  %v568_v24 = vmul.f32 2.0, %v997_v2  ;;  %v567_v26 = vmul.f32 2.0, %v987_v0 }
  0x14   : > { %v1007_v4 = vld [vmem:[%s984_s14 + $0x28] sm:$0xff]  ;;  %v1022_v6 = vld [vmem:[%s984_s14 + $0x38] sm:$0x7f]  ;;  %v1025_v7 = vld [vmem:[%s984_s14 + $0x30] sm:$0xff]  ;;  %v566_v16 = vmul.f32 2.0, %v1000_v3  ;;  %695 = vst.msk [vmem:[%s1030_s22 + $0x8] sm:$0xff] %vm693_vm0, %v956_v17 }
  0x15   : > { %v1037_v8 = vld [vmem:[%s1019_s19 + $0xc8] sm:$0xff]  ;;  %v1043_v10 = vld [vmem:[%s1019_s19 + $0x80] sm:$0xff]  ;;  %v1049_v12 = vld [vmem:[%s1019_s19 + $0xd8] sm:$0xff]  ;;  %711 = vst.msk [vmem:[%s1030_s22 + $0x88] sm:$0xff] %vm693_vm0, %v956_v17  ;;  %v570_v34 = vmul.f32 2.0, %v1007_v4  ;;  %v569_v36 = vmul.f32 2.0, %v1010_v5 }
  0x16   : > { %v1040_v9 = vld [vmem:[%s1019_s19 + $0x88] sm:$0xff]  ;;  %v1046_v11 = vld [vmem:[%s1019_s19 + $0xc0] sm:$0xff]  ;;  %v1052_v13 = vld [vmem:[%s1019_s19 + $0x98] sm:$0xff]  ;;  %719 = vst.msk [vmem:[%s1030_s22 + $0xc8] sm:$0xff] %vm693_vm0, %v956_v17  ;;  %v574_v23 = vmul.f32 %v1037_v8, %v566_v16  ;;  %v576_v29 = vmul.f32 %v1049_v12, %v568_v24  ;;  %v572_v40 = vmul.f32 2.0, %v1022_v6  ;;  %v571_v45 = vmul.f32 2.0, %v1025_v7 }
  0x17   : > { %281 = vrot.lane.b32.xlu1 %v997_v2, %s955_s15  ;;  %277 = vrot.lane.b32.xlu0 %v1000_v3, %s955_s15  ;;  %v1055_v14 = vld [vmem:[%s1019_s19 + $0x90] sm:$0xff]  ;;  %694 = vst.msk [vmem:[%s1030_s22] sm:$0xff] %vm693_vm0, %v956_v17  ;;  %v573_v25 = vmul.f32 %v1046_v11, %v565_v21  ;;  %v670_v57 = vmul.f32 2.0, %v1037_v8  ;;  %v669_v58 = vmul.f32 2.0, %v1046_v11  ;;  %v672_v59 = vmul.f32 2.0, %v1049_v12 }
  0x18   : > { %v1058_v15 = vld [vmem:[%s1019_s19 + $0xd0] sm:$0xff]  ;;  %696 = vst.msk [vmem:[%s1030_s22 + $0x10] sm:$0xff] %vm693_vm0, %v956_v17  ;;  %697 = vst.msk [vmem:[%s1030_s22 + $0x18] sm:$0xff] %vm693_vm0, %v956_v17  ;;  %v1126_v18 = vld [vmem:[%s1019_s19 + $0xa8] sm:$0xff]  ;;  %v1186_v28 = vmul.f32 %v1040_v9, %v574_v23  ;;  %v1204_v33 = vmul.f32 %v1052_v13, %v576_v29  ;;  %v226_v23 = vrot.slane %v1000_v3, 7  ;;  %v228_v24 = vrot.slane %v987_v0, 7 }
  0x19   : > { %698 = vst.msk [vmem:[%s1030_s22 + $0x20] sm:$0xff] %vm693_vm0, %v956_v17  ;;  %699 = vst.msk [vmem:[%s1030_s22 + $0x28] sm:$0xff] %vm693_vm0, %v956_v17  ;;  %v1129_v19 = vld [vmem:[%s1019_s19 + $0xe8] sm:$0xff]  ;;  %v1132_v20 = vld [vmem:[%s1019_s19 + $0xe0] sm:$0xff]  ;;  %v1197_v30 = vmul.f32 %v1043_v10, %v573_v25  ;;  %v575_v31 = vmul.f32 %v1058_v15, %v567_v26  ;;  %v1292_v60 = vmul.f32 %v1040_v9, %v670_v57  ;;  %v671_v63 = vmul.f32 2.0, %v1058_v15 }
  0x1a   : > { %700 = vst.msk [vmem:[%s1030_s22 + $0x30] sm:$0xff] %vm693_vm0, %v956_v17  ;;  %701 = vst.msk [vmem:[%s1030_s22 + $0x38] sm:$0xff] %vm693_vm0, %v956_v17  ;;  %v1170_v22 = vld [vmem:[%s1019_s19 + $0xa0] sm:$0xff]  ;;  %v1183_v27 = vld [vmem:[%s1019_s19 + $0xf0] sm:$0xff]  ;;  %v578_v37 = vmul.f32 %v1129_v19, %v570_v34  ;;  %v577_v39 = vmul.f32 %v1132_v20, %v569_v36  ;;  %v1295_v61 = vmul.f32 %v1043_v10, %v669_v58  ;;  %v225_v25 = vrot.slane %v990_v1, 7 }
  0x1b   : > { %285 = vrot.lane.b32.xlu1 %v1007_v4, %s955_s15  ;;  %283 = vrot.lane.b32.xlu0 %v1010_v5, %s955_s15  ;;  %702 = vst.msk [vmem:[%s1030_s22 + $0x40] sm:$0xff] %vm693_vm0, %v956_v17  ;;  %703 = vst.msk [vmem:[%s1030_s22 + $0x48] sm:$0xff] %vm693_vm0, %v956_v17  ;;  %v1211_v35 = vmul.f32 %v1055_v14, %v575_v31  ;;  %v579_v47 = vmul.f32 %v1183_v27, %v571_v45  ;;  %v255_v26 = vrot.slane %v997_v2, 1 }
  0x1c   : > { %704 = vst.msk [vmem:[%s1030_s22 + $0x50] sm:$0xff] %vm693_vm0, %v956_v17  ;;  %705 = vst.msk [vmem:[%s1030_s22 + $0x58] sm:$0xff] %vm693_vm0, %v956_v17  ;;  %v1201_v32 = vld [vmem:[%s1019_s19 + $0xb0] sm:$0xff]  ;;  %v896_v38 = vld [vmem:[%s1019_s19 + $0xf8] sm:$0x7f]  ;;  %v1223_v41 = vmul.f32 %v1126_v18, %v578_v37  ;;  %v1229_v43 = vmul.f32 %v1170_v22, %v577_v39  ;;  %v1298_v62 = vmul.f32 %v1052_v13, %v672_v59  ;;  %v343_v29 = vmul.f32 4.0, %v987_v0 }
  0x1d   : > { %706 = vst.msk [vmem:[%s1030_s22 + $0x60] sm:$0xff] %vm693_vm0, %v956_v17  ;;  %707 = vst.msk [vmem:[%s1030_s22 + $0x68] sm:$0xff] %vm693_vm0, %v956_v17  ;;  %v1226_v42 = vld [vmem:[%s1019_s19 + $0xb8] sm:$0x7f]  ;;  %v580_v44 = vmul.f32 %v896_v38, %v572_v40  ;;  %v1246_v48 = vld [vmem:[%s984_s14 + $0x48] sm:$0xff]  ;;  %v1252_v50 = vmul.f32 %v1201_v32, %v579_v47  ;;  %v251_v31 = vrot.slane %v1000_v3, 1  ;;  %v229_v34 = vsel %vm224_vm3, %v226_v23, %v228_v24 }
  0x1e   : > { %708 = vst.msk [vmem:[%s1030_s22 + $0x70] sm:$0xff] %vm693_vm0, %v956_v17  ;;  %709 = vst.msk [vmem:[%s1030_s22 + $0x78] sm:$0xff] %vm693_vm0, %v956_v17  ;;  %v1249_v49 = vld [vmem:[%s984_s14 + $0x40] sm:$0xff]  ;;  %v1259_v51 = vld [vmem:[%s984_s14 + $0x58] sm:$0xff]  ;;  %v250_v36 = vrot.slane %v990_v1, 1  ;;  %v341_v37 = vmul.f32 4.0, %v990_v1  ;;  %v248_v39 = vsel %vm224_vm3, %v990_v1, %v225_v25  ;;  %v351_v57 = vsub.f32 %v343_v29, %v229_v34 }
  0x1f   : > { %289 = vrot.lane.b32.xlu1 %v1022_v6, %s955_s15  ;;  %287 = vrot.lane.b32.xlu0 %v1025_v7, %s955_s15  ;;  %710 = vst.msk [vmem:[%s1030_s22 + $0x80] sm:$0xff] %vm693_vm0, %v956_v17  ;;  %712 = vst.msk [vmem:[%s1030_s22 + $0x90] sm:$0xff] %vm693_vm0, %v956_v17  ;;  %v1237_v46 = vmul.f32 %v1226_v42, %v580_v44  ;;  %v257_v44 = vrot.slane %v1010_v5, 1  ;;  %v232_v45 = vrot.slane %v1010_v5, 7  ;;  %v234_v47 = vrot.slane %v1007_v4, 7 }
  0x20   : > { %713 = vst.msk [vmem:[%s1030_s22 + $0x98] sm:$0xff] %vm693_vm0, %v956_v17  ;;  %714 = vst.msk [vmem:[%s1030_s22 + $0xa0] sm:$0xff] %vm693_vm0, %v956_v17  ;;  %v1262_v52 = vld [vmem:[%s984_s14 + $0x50] sm:$0xff]  ;;  %v1269_v53 = vld [vmem:[%s984_s14 + $0x68] sm:$0xff]  ;;  %v344_v58 = vmul.f32 4.0, %v997_v2  ;;  %v236_v59 = vrot.slane %v1025_v7, 7 }
  0x21   : > { %715 = vst.msk [vmem:[%s1030_s22 + $0xa8] sm:$0xff] %vm693_vm0, %v956_v17  ;;  %716 = vst.msk [vmem:[%s1030_s22 + $0xb0] sm:$0xff] %vm693_vm0, %v956_v17  ;;  %v1272_v54 = vld [vmem:[%s984_s14 + $0x60] sm:$0xff]  ;;  %v1279_v55 = vld [vmem:[%s984_s14 + $0x78] sm:$0x7f]  ;;  %v345_v29 = vmul.f32 4.0, %v1010_v5  ;;  %v235_v34 = vsel %vm224_vm3, %v232_v45, %v234_v47 }
  0x22   : > { %717 = vst.msk [vmem:[%s1030_s22 + $0xb8] sm:$0xff] %vm693_vm0, %v956_v17  ;;  %718 = vst.msk [vmem:[%s1030_s22 + $0xc0] sm:$0xff] %vm693_vm0, %v956_v17  ;;  %v1282_v56 = vld [vmem:[%s984_s14 + $0x70] sm:$0xff] }
  0x23   : > { %720 = vst.msk [vmem:[%s1030_s22 + $0xd0] sm:$0xff] %vm693_vm0, %v956_v17  ;;  %721 = vst.msk [vmem:[%s1030_s22 + $0xd8] sm:$0xff] %vm693_vm0, %v956_v17  ;;  %310 = vrot.lane.b32.xlu1 %v1000_v3, %s957_s23  ;;  %308 = vrot.lane.b32.xlu0 %v990_v1, %s957_s23 }
  0x24   : > { %722 = vst.msk [vmem:[%s1030_s22 + $0xe0] sm:$0xff] %vm693_vm0, %v956_v17  ;;  %723 = vst.msk [vmem:[%s1030_s22 + $0xe8] sm:$0xff] %vm693_vm0, %v956_v17 }
  0x25   : > { %724 = vst.msk [vmem:[%s1030_s22 + $0xf0] sm:$0xff] %vm693_vm0, %v956_v17  ;;  %725 = vst.msk [vmem:[%s1030_s22 + $0xf8] sm:$0xff] %vm693_vm0, %v956_v17 }
  0x26   : > { %914 = vst.msk [vmem:[%s1030_s22 + $0x88] sm:$0xff] %vm742_vm1, %v1040_v9  ;;  %922 = vst.msk [vmem:[%s1030_s22 + $0xc8] sm:$0xff] %vm742_vm1, %v1037_v8  ;;  %v674_v8 = vmul.f32 2.0, %v1129_v19 }
  0x27   : > { %913 = vst.msk [vmem:[%s1030_s22 + $0x80] sm:$0xff] %vm742_vm1, %v1043_v10  ;;  %921 = vst.msk [vmem:[%s1030_s22 + $0xc0] sm:$0xff] %vm742_vm1, %v1046_v11  ;;  %314 = vrot.lane.b32.xlu1 %v997_v2, %s957_s23  ;;  %312 = vrot.lane.b32.xlu0 %v987_v0, %s957_s23  ;;  %v1307_v11 = vmul.f32 %v1055_v14, %v671_v63  ;;  %v238_v63 = vrot.slane %v1022_v6, 7 }
  0x28   : > { %916 = vst.msk [vmem:[%s1030_s22 + $0x98] sm:$0xff] %vm742_vm1, %v1052_v13  ;;  %924 = vst.msk [vmem:[%s1030_s22 + $0xd8] sm:$0xff] %vm742_vm1, %v1049_v12  ;;  %v673_v12 = vmul.f32 2.0, %v1132_v20  ;;  %v1311_v16 = vmul.f32 %v1126_v18, %v674_v8  ;;  %v252_v8 = vsel %vm249_vm4, %v250_v36, %v251_v31  ;;  %v348_v36 = vmul.f32 4.0, %v1022_v6 }
  0x29   : > { %915 = vst.msk [vmem:[%s1030_s22 + $0x90] sm:$0xff] %vm742_vm1, %v1055_v14  ;;  %923 = vst.msk [vmem:[%s1030_s22 + $0xd0] sm:$0xff] %vm742_vm1, %v1058_v15  ;;  %v676_v15 = vmul.f32 2.0, %v896_v38 }
  0x2a   : > { %918 = vst.msk [vmem:[%s1030_s22 + $0xa8] sm:$0xff] %vm742_vm1, %v1126_v18  ;;  %926 = vst.msk [vmem:[%s1030_s22 + $0xe8] sm:$0xff] %vm742_vm1, %v1129_v19  ;;  %v1314_v17 = vmul.f32 %v1170_v22, %v673_v12  ;;  %v675_v19 = vmul.f32 2.0, %v1183_v27  ;;  %v349_v12 = vsub.f32 %v341_v37, %v248_v39  ;;  %v239_v37 = vsel %vm224_vm3, %v236_v59, %v238_v63 }
  0x2b   : > { %925 = vst.msk [vmem:[%s1030_s22 + $0xe0] sm:$0xff] %vm742_vm1, %v1132_v20  ;;  %917 = vst.msk [vmem:[%s1030_s22 + $0xa0] sm:$0xff] %vm742_vm1, %v1170_v22  ;;  %318 = vrot.lane.b32.xlu1 %v1007_v4, %s957_s23  ;;  %316 = vrot.lane.b32.xlu0 %v1010_v5, %s957_s23  ;;  %v1322_v21 = vmul.f32 %v1226_v42, %v676_v15 }
  0x2c   : > { %927 = vst.msk [vmem:[%s1030_s22 + $0xf0] sm:$0xff] %vm742_vm1, %v1183_v27  ;;  %919 = vst.msk [vmem:[%s1030_s22 + $0xb0] sm:$0xff] %vm742_vm1, %v1201_v32  ;;  %v1325_v20 = vmul.f32 %v1201_v32, %v675_v19  ;;  %v253_v27 = vrot.slane %v987_v0, 1  ;;  %v342_v19 = vmul.f32 4.0, %v1000_v3 }
  0x2d   : > { %1815 = vst [vmem:[#allocation2_spill] sm:$0xff] %v1223_v41  ;;  %1816 = vst [vmem:[#allocation3_spill] sm:$0xff] %v1229_v43  ;;  %v356_v41 = vsub.f32 %v348_v36, %v239_v37 }
  0x2e   : > { %1817 = vst [vmem:[#allocation4_spill] sm:$0xff] %v1237_v46  ;;  %920 = vst.msk [vmem:[%s1030_s22 + $0xb8] sm:$0x7f] %vm750_vm2, %v1226_v42  ;;  %v256_v40 = vsel %vm249_vm4, %v253_v27, %v255_v26 }
  0x2f   : > { %322 = vrot.lane.b32.xlu1 %v1022_v6, %s957_s23  ;;  %320 = vrot.lane.b32.xlu0 %v1025_v7, %s957_s23  ;;  %928 = vst.msk [vmem:[%s1030_s22 + $0xf8] sm:$0x7f] %vm750_vm2, %v896_v38  ;;  %1818 = vst [vmem:[#allocation5_spill] sm:$0xff] %v1246_v48  ;;  %v230_v38 = vrot.slane %v997_v2, 7 }
  0x30   : > { %1819 = vst [vmem:[#allocation6_spill] sm:$0xff] %v1249_v49  ;;  %1820 = vst [vmem:[#allocation7_spill] sm:$0xff] %v1252_v50 }
  0x31   : > { %1821 = vst [vmem:[#allocation8_spill] sm:$0xff] %v1292_v60  ;;  %1822 = vst [vmem:[#allocation9_spill] sm:$0xff] %v1295_v61  ;;  %v231_v15 = vsel %vm224_vm3, %v228_v24, %v230_v38  ;;  %v258_v24 = vsel %vm249_vm4, %v255_v26, %v257_v44  ;;  %v237_v60 = vsel %vm224_vm3, %v234_v47, %v236_v59  ;;  %v398_v59 = vrot.slane %v1246_v48, 7 }
  0x32   : > { %1823 = vst [vmem:[#allocation10_spill] sm:$0xff] %v1298_v62  ;;  %1824 = vst [vmem:[#allocation11_spill] sm:$0xff] %v1307_v11  ;;  %v233_v11 = vsel %vm224_vm3, %v230_v38, %v232_v45  ;;  %v352_v39 = vsub.f32 %v344_v58, %v231_v15  ;;  %v254_v62 = vsel %vm249_vm4, %v251_v31, %v253_v27 }
  0x33   : > { %447 = vrot.lane.b32.xlu1 %v1246_v48, %s955_s15  ;;  %445 = vrot.lane.b32.xlu0 %v1249_v49, %s955_s15  ;;  %1825 = vst [vmem:[#allocation12_spill] sm:$0xff] %v1311_v16  ;;  %1826 = vst [vmem:[#allocation13_spill] sm:$0xff] %v1314_v17  ;;  %v346_v17 = vmul.f32 4.0, %v1007_v4  ;;  %v261_v16 = vrot.slane %v1025_v7, 1  ;;  %v353_v38 = vsub.f32 %v345_v29, %v233_v11 }
  0x34   : > { %1827 = vst [vmem:[#allocation14_spill] sm:$0xff] %v1322_v21  ;;  %1828 = vst [vmem:[#allocation15_spill] sm:$0xff] %v1325_v20  ;;  %v227_v20 = vsel %vm224_vm3, %v225_v25, %v226_v23  ;;  %v259_v21 = vrot.slane %v1007_v4, 1  ;;  %v263_v23 = vrot.slane %v1022_v6, 1  ;;  %v347_v25 = vmul.f32 4.0, %v1025_v7 }
  0x35   : > { %v350_v61 = vsub.f32 %v342_v19, %v227_v20  ;;  %v354_v50 = vsub.f32 %v346_v17, %v235_v34  ;;  %v1375_v45 = vmul.f32 %v1040_v9, %v1040_v9  ;;  %v1382_v27 = vmul.f32 %v1043_v10, %v1043_v10 }
  0x36   : > { %v260_v46 = vsel %vm249_vm4, %v257_v44, %v259_v21  ;;  %v262_v43 = vsel %vm249_vm4, %v259_v21, %v261_v16  ;;  %v1386_v17 = vmul.f32 %v1052_v13, %v1052_v13  ;;  %v1388_v20 = vsub.f32 %v351_v57, %v256_v40 }
  0x37   : > { %451 = vrot.lane.b32.xlu1 %v1259_v51, %s955_s15  ;;  %449 = vrot.lane.b32.xlu0 %v1262_v52, %s955_s15  ;;  %1829 = vst [vmem:[#allocation16_spill] sm:$0xff] %v1375_v45  ;;  %1830 = vst [vmem:[#allocation17_spill] sm:$0xff] %v1382_v27  ;;  %v1390_v11 = vsub.f32 %v349_v12, %v252_v8  ;;  %v274_v9 = vsel %vm273_vm5, %v263_v23, %v1022_v6  ;;  %v654_v57 = vsub.f32 0.0, %v1375_v45 }
  0x38   : > { %1831 = vst [vmem:[#allocation18_spill] sm:$0xff] %v1386_v17  ;;  %v355_v31 = vsub.f32 %v347_v25, %v237_v60  ;;  %v1394_v44 = vsub.f32 %v352_v39, %v258_v24  ;;  %v1396_v21 = vsub.f32 %v350_v61, %v254_v62  ;;  %v264_v10 = vsel %vm249_vm4, %v261_v16, %v263_v23 }
  0x39   : > { %v1401_v47 = vmul.f32 %v1055_v14, %v1055_v14  ;;  %v1403_v13 = vsub.f32 %v354_v50, %v262_v43  ;;  %v1405_v40 = vsub.f32 %v353_v38, %v260_v46  ;;  %v1410_v60 = vmul.f32 %v1126_v18, %v1126_v18 }
  0x3a   : > { %v1414_v62 = vsub.f32 %v356_v41, %v274_v9  ;;  %v1417_v16 = vmul.f32 0.105, %v1000_v3  ;;  %v653_v14 = vsub.f32 0.0, %v1382_v27  ;;  %v656_v43 = vsub.f32 0.0, %v1386_v17 }
  0x3b   : > { %455 = vrot.lane.b32.xlu1 %v1269_v53, %s955_s15  ;;  %453 = vrot.lane.b32.xlu0 %v1272_v54, %s955_s15  ;;  %1832 = vst [vmem:[#allocation19_spill] sm:$0xff] %v1401_v47  ;;  %1833 = vst [vmem:[#allocation20_spill] sm:$0xff] %v1410_v60  ;;  %v1421_v46 = vsub.f32 %v355_v31, %v264_v10  ;;  %v1425_v50 = vmul.f32 %v1170_v22, %v1170_v22  ;;  %v397_v18 = vrot.slane %v1249_v49, 7 }
  0x3c   : > { %v1430_v41 = vmul.f32 0.105, %v990_v1  ;;  %v1433_v8 = vmul.f32 0.105, %v997_v2  ;;  %v655_v12 = vsub.f32 0.0, %v1401_v47  ;;  %v1438_v15 = vmul.f32 %v1226_v42, %v1226_v42 }
  0x3d   : > { %1834 = vst [vmem:[#allocation21_spill] sm:$0xff] %v1425_v50  ;;  %v1441_v22 = vmul.f32 %v1246_v48, %v654_v57  ;;  %v1444_v19 = vmul.f32 0.105, %v987_v0  ;;  %v658_v29 = vsub.f32 0.0, %v1410_v60  ;;  %v1449_v34 = vmul.f32 %v1201_v32, %v1201_v32 }
  0x3e   : > { %1835 = vst [vmem:[#allocation22_spill] sm:$0xff] %v1438_v15  ;;  %v1452_v37 = vmul.f32 %v1249_v49, %v653_v14  ;;  %v1455_v42 = vmul.f32 %v1259_v51, %v656_v43  ;;  %v1458_v23 = vmul.f32 0.105, %v1007_v4  ;;  %v510_v25 = vmul.f32 4.0, %v1246_v48 }
  0x3f   : > { %459 = vrot.lane.b32.xlu1 %v1279_v55, %s955_s15  ;;  %457 = vrot.lane.b32.xlu0 %v1282_v56, %s955_s15  ;;  %1836 = vst [vmem:[#allocation23_spill] sm:$0xff] %v1449_v34  ;;  %v657_v39 = vsub.f32 0.0, %v1425_v50  ;;  %v399_v38 = vsel %vm224_vm3, %v397_v18, %v398_v59  ;;  %v422_v32 = vrot.slane %v1246_v48, 1  ;;  %v424_v9 = vrot.slane %v1262_v52, 1 }
  0x40   : > { %v1466_v31 = vmul.f32 %v1262_v52, %v655_v12  ;;  %v1469_v10 = vmul.f32 0.105, %v1010_v5  ;;  %v1472_v57 = vmul.f32 0.105, %v1022_v6  ;;  %v660_v14 = vsub.f32 0.0, %v1438_v15 }
  0x41   : > { %v1476_v43 = vmul.f32 %v1269_v53, %v658_v29  ;;  %v659_v50 = vsub.f32 0.0, %v1449_v34  ;;  %v421_v60 = vrot.slane %v1249_v49, 1  ;;  %v518_v17 = vsub.f32 %v510_v25, %v399_v38 }
  0x42   : > { %1837 = vst [vmem:[#allocation24_spill] sm:$0xff] %v1469_v10  ;;  %1838 = vst [vmem:[#allocation25_spill] sm:$0xff] %v1472_v57  ;;  %v1485_v27 = vsel %vm224_vm3, %v1249_v49, %v397_v18  ;;  %v400_v45 = vrot.slane %v1262_v52, 7  ;;  %v1494_v57 = vmul.f32 %v1272_v54, %v657_v39  ;;  %v1498_v25 = vmul.f32 %v1279_v55, %v660_v14 }
  0x43   : > { %479 = vrot.lane.b32.xlu1 %v1246_v48, %s957_s23  ;;  %477 = vrot.lane.b32.xlu0 %v1249_v49, %s957_s23  ;;  %1839 = vst [vmem:[#allocation26_spill] sm:$0xff] %v1476_v43  ;;  %v1481_v48 = vmul.f32 4.0, %v1249_v49  ;;  %v425_v43 = vsel %vm249_vm4, %v422_v32, %v424_v9  ;;  %v1501_v18 = vmul.f32 0.105, %v1025_v7  ;;  %v426_v38 = vrot.slane %v1259_v51, 1 }
  0x44   : > { %1840 = vst [vmem:[#allocation27_spill] sm:$0xff] %v1494_v57  ;;  %1841 = vst [vmem:[#allocation28_spill] sm:$0xff] %v1498_v25  ;;  %v1514_v49 = vmul.f32 4.0, %v1259_v51  ;;  %v1518_v10 = vsub.f32 %v518_v17, %v425_v43  ;;  %v1844_v43 = vrot.slane %v1272_v54, 1 }
  0x45   : > { %1842 = vst [vmem:[#allocation29_spill] sm:$0xff] %v1501_v18 }
  0x47   : > { %483 = vrot.lane.b32.xlu1 %v1259_v51, %s957_s23  ;;  %481 = vrot.lane.b32.xlu0 %v1262_v52, %s957_s23 }
  0x4b   : > { %487 = vrot.lane.b32.xlu1 %v1269_v53, %s957_s23  ;;  %485 = vrot.lane.b32.xlu0 %v1272_v54, %s957_s23 }
  0x4f   : > { %491 = vrot.lane.b32.xlu1 %v1279_v55, %s957_s23  ;;  %489 = vrot.lane.b32.xlu0 %v1282_v56, %s957_s23 }
  0x85   : > { %v1377_v26 = vpop.permute.xlu1 %279  ;;  %v276_v63 = vpop.permute.xlu0 %275 }
  0x86   : > { %v300_v29 = vsel %vm299_vm6, %v990_v1, %v276_v63  ;;  %v1506_v63 = vmul.f32 %v1282_v56, %v659_v50  ;;  %v1843_v50 = vrot.slane %v1259_v51, 7 }
  0x87   : > { %v365_v14 = vsub.f32 %v1390_v11, %v300_v29  ;;  %v1538_v29 = vsel %vm249_vm4, %v426_v38, %v1844_v43 }
  0x88   : > { %v1523_v15 = vsel %vm224_vm3, %v400_v45, %v1843_v50  ;;  %v1541_v50 = vsel %vm224_vm3, %v398_v59, %v400_v45 }
  0x89   : > { %v1412_v58 = vpop.permute.xlu1 %281  ;;  %v278_v61 = vpop.permute.xlu0 %277 }
  0x8a   : > { %v301_v34 = vsel %vm299_vm6, %v1000_v3, %v278_v61  ;;  %v1509_v61 = vsel %vm249_vm4, %v421_v60, %v422_v32  ;;  %v302_v60 = vsel %vm299_vm6, %v987_v0, %v1377_v26  ;;  %v303_v32 = vsel %vm299_vm6, %v997_v2, %v1412_v58 }
  0x8b   : > { %v366_v25 = vsub.f32 %v1396_v21, %v301_v34  ;;  %v1546_v58 = vsel %vm249_vm4, %v424_v9, %v426_v38 }
  0x8d   : > { %v286_v36 = vpop.permute.xlu1 %285  ;;  %v284_v24 = vpop.permute.xlu0 %283 }
  0x8e   : > { %v305_v59 = vsel %vm299_vm6, %v1007_v4, %v286_v36  ;;  %v304_v9 = vsel %vm299_vm6, %v1010_v5, %v284_v24  ;;  %v406_v36 = vrot.slane %v1269_v53, 7  ;;  %v430_v24 = vrot.slane %v1269_v53, 1 }
  0x91   : > { %v290_v12 = vpop.permute.xlu1 %289  ;;  %v288_v47 = vpop.permute.xlu0 %287 }
  0x95   : > { %v311_v18 = vpop.permute.xlu1 %310  ;;  %v309_v57 = vpop.permute.xlu0 %308 }
  0x96   : > { %v334_v11 = vsel %vm332_vm7, %v311_v18, %v1000_v3  ;;  %v333_v17 = vsel %vm332_vm7, %v309_v57, %v990_v1  ;;  %v1549_v18 = vmul.f32 4.0, %v1262_v52  ;;  %v404_v57 = vrot.slane %v1272_v54, 7 }
  0x97   : > { %v374_v21 = vsub.f32 %v366_v25, %v334_v11  ;;  %v373_v34 = vsub.f32 %v365_v14, %v333_v17  ;;  %v367_v25 = vsub.f32 %v1388_v20, %v302_v60  ;;  %v368_v14 = vsub.f32 %v1394_v44, %v303_v32 }
  0x98   : > { %v307_v32 = vsel %vm299_vm6, %v1022_v6, %v290_v12  ;;  %v369_v12 = vsub.f32 %v1405_v40, %v304_v9 }
  0x99   : > { %v382_v11 = vmul.f32 3844.0, %v374_v21  ;;  %v381_v17 = vmul.f32 3844.0, %v373_v34  ;;  %v315_v43 = vpop.permute.xlu1 %314  ;;  %v313_v45 = vpop.permute.xlu0 %312  ;;  %v306_v21 = vsel %vm299_vm6, %v1025_v7, %v288_v47 }
  0x9a   : > { %v336_v38 = vsel %vm332_vm7, %v315_v43, %v997_v2  ;;  %v335_v26 = vsel %vm332_vm7, %v313_v45, %v987_v0 }
  0x9b   : > { %v558_v39 = vmul.f32 0.00025, %v382_v11  ;;  %v557_v20 = vmul.f32 0.00025, %v381_v17  ;;  %v376_v60 = vsub.f32 %v368_v14, %v336_v38  ;;  %v375_v44 = vsub.f32 %v367_v25, %v335_v26 }
  0x9c   : > { %v370_v25 = vsub.f32 %v1403_v13, %v305_v59  ;;  %v164_v13 = vld [vmem:[%s1019_s19] sm:$0xff] }
  0x9d   : > { %v590_v34 = vsub.f32 %v558_v39, %v1186_v28  ;;  %v589_v43 = vsub.f32 %v557_v20, %v1197_v30  ;;  %v384_v11 = vmul.f32 3844.0, %v376_v60  ;;  %v383_v17 = vmul.f32 3844.0, %v375_v44  ;;  %v319_v14 = vpop.permute.xlu1 %318  ;;  %v317_v26 = vpop.permute.xlu0 %316  ;;  %v165_v44 = vld [vmem:[%s1019_s19 + $0x8] sm:$0xff] }
  0x9e   : > { %v338_v47 = vsel %vm332_vm7, %v319_v14, %v1007_v4  ;;  %v337_v45 = vsel %vm332_vm7, %v317_v26, %v1010_v5  ;;  %v372_v20 = vsub.f32 %v1414_v62, %v307_v32  ;;  %v371_v60 = vsub.f32 %v1421_v46, %v306_v21 }
  0x9f   : > { %v606_v28 = vadd.f32 %v1417_v16, %v590_v34  ;;  %v605_v39 = vadd.f32 %v1430_v41, %v589_v43  ;;  %v560_v30 = vmul.f32 0.00025, %v384_v11  ;;  %v559_v38 = vmul.f32 0.00025, %v383_v17  ;;  %v167_v17 = vld [vmem:[%s1019_s19 + $0x18] sm:$0xff] }
  0xa0   : > { %v378_v59 = vsub.f32 %v370_v25, %v338_v47  ;;  %v377_v40 = vsub.f32 %v369_v12, %v337_v45 }
  0xa1   : > { %v727_v9 = vadd.f32 %v1441_v22, %v606_v28  ;;  %v726_v14 = vadd.f32 %v1452_v37, %v605_v39  ;;  %v592_v16 = vsub.f32 %v560_v30, %v1204_v33  ;;  %v591_v41 = vsub.f32 %v559_v38, %v1211_v35  ;;  %v323_v34 = vpop.permute.xlu1 %322  ;;  %v321_v43 = vpop.permute.xlu0 %320  ;;  %v166_v35 = vld [vmem:[%s1019_s19 + $0x10] sm:$0xff]  ;;  %v1845_v39 = vld [vmem:[#allocation2_spill] sm:$0xff]  ;;  %v1846_v38 = vld [vmem:[#allocation3_spill] sm:$0xff] }
  0xa2   : > { %v386_v62 = vmul.f32 3844.0, %v378_v59  ;;  %v385_v46 = vmul.f32 3844.0, %v377_v40  ;;  %v340_v32 = vsel %vm332_vm7, %v323_v34, %v1022_v6  ;;  %v339_v21 = vsel %vm332_vm7, %v321_v43, %v1025_v7  ;;  %v169_v34 = vld [vmem:[%s1019_s19 + $0x28] sm:$0xff]  ;;  %v168_v43 = vld [vmem:[%s1019_s19 + $0x20] sm:$0xff] }
  0xa3   : > { %v735_v11 = vadd.f32 %v727_v9, %v165_v44  ;;  %v734_v22 = vadd.f32 %v726_v14, %v164_v13  ;;  %v608_v37 = vadd.f32 %v1433_v8, %v592_v16  ;;  %v607_v33 = vadd.f32 %v1444_v19, %v591_v41  ;;  %v1847_v9 = vld [vmem:[#allocation24_spill] sm:$0xff] }
  0xa4   : > { %v562_v26 = vmul.f32 0.00025, %v386_v62  ;;  %v561_v25 = vmul.f32 0.00025, %v385_v46  ;;  %v380_v12 = vsub.f32 %v372_v20, %v340_v32  ;;  %v379_v47 = vsub.f32 %v371_v60, %v339_v21 }
  0xa5   : > { %744 = vst.msk [vmem:[%s1030_s22 + $0x8] sm:$0xff] %vm742_vm1, %v735_v11  ;;  %743 = vst.msk [vmem:[%s1030_s22] sm:$0xff] %vm742_vm1, %v734_v22  ;;  %v729_v6 = vadd.f32 %v1455_v42, %v608_v37  ;;  %v728_v7 = vadd.f32 %v1466_v31, %v607_v33  ;;  %v1600_v45 = vpop.permute.xlu1 %447  ;;  %v1602_v8 = vpop.permute.xlu0 %445  ;;  %v432_v19 = vrot.slane %v1282_v56, 1  ;;  %v1606_v28 = vmul.f32 4.0, %v1269_v53  ;;  %v1849_v37 = vld [vmem:[#allocation26_spill] sm:$0xff] }
  0xa6   : > { %v594_v30 = vsub.f32 %v562_v26, %v1845_v39  ;;  %v593_v20 = vsub.f32 %v561_v25, %v1846_v38  ;;  %v388_v42 = vmul.f32 3844.0, %v380_v12  ;;  %v387_v60 = vmul.f32 3844.0, %v379_v47  ;;  %v1851_v26 = vld [vmem:[#allocation4_spill] sm:$0xff]  ;;  %v1852_v12 = vld [vmem:[#allocation7_spill] sm:$0xff] }
  0xa7   : > { %v737_v31 = vadd.f32 %v729_v6, %v167_v17  ;;  %v736_v44 = vadd.f32 %v728_v7, %v166_v35  ;;  %v408_v13 = vrot.slane %v1282_v56, 7  ;;  %v410_v59 = vrot.slane %v1279_v55, 7  ;;  %v1850_v17 = vld [vmem:[#allocation27_spill] sm:$0xff] }
  0xa8   : > { %v610_v40 = vadd.f32 %v1458_v23, %v594_v30  ;;  %v609_v14 = vadd.f32 %v1847_v9, %v593_v20  ;;  %v564_v16 = vmul.f32 0.00025, %v388_v42  ;;  %v563_v41 = vmul.f32 0.00025, %v387_v60  ;;  %v1853_v20 = vld [vmem:[#allocation25_spill] sm:$0xff] }
  0xa9   : > { %746 = vst.msk [vmem:[%s1030_s22 + $0x18] sm:$0xff] %vm742_vm1, %v737_v31  ;;  %745 = vst.msk [vmem:[%s1030_s22 + $0x10] sm:$0xff] %vm742_vm1, %v736_v44  ;;  %v1620_v62 = vpop.permute.xlu1 %451  ;;  %v1622_v46 = vpop.permute.xlu0 %449  ;;  %v407_v23 = vsel %vm224_vm3, %v404_v57, %v406_v36  ;;  %v1848_v32 = vrot.slane %v1259_v51, 7  ;;  %v513_v11 = vmul.f32 4.0, %v1272_v54  ;;  %v434_v22 = vrot.slane %v1279_v55, 1  ;;  %v1854_v60 = vld [vmem:[#allocation29_spill] sm:$0xff] }
  0xaa   : > { %v731_v33 = vadd.f32 %v1849_v37, %v610_v40  ;;  %v730_v35 = vadd.f32 %v1850_v17, %v609_v14  ;;  %v596_v25 = vsub.f32 %v564_v16, %v1851_v26  ;;  %v595_v47 = vsub.f32 %v563_v41, %v1852_v12  ;;  %v171_v44 = vld [vmem:[%s1019_s19 + $0x38] sm:$0x7f]  ;;  %v170_v40 = vld [vmem:[%s1019_s19 + $0x30] sm:$0xff]  ;;  %v1859_v12 = vld [vmem:[#allocation18_spill] sm:$0xff] }
  0xab   : > { %v405_v21 = vsel %vm224_vm3, %v1848_v32, %v404_v57  ;;  %v411_v6 = vsel %vm224_vm3, %v408_v13, %v410_v59  ;;  %v516_v7 = vmul.f32 4.0, %v1279_v55  ;;  %v409_v57 = vsel %vm224_vm3, %v406_v36, %v408_v13  ;;  %v1857_v32 = vld [vmem:[#allocation16_spill] sm:$0xff]  ;;  %v1858_v26 = vld [vmem:[#allocation17_spill] sm:$0xff] }
  0xac   : > { %v515_v39 = vmul.f32 4.0, %v1282_v56  ;;  %v739_v30 = vadd.f32 %v731_v33, %v169_v34  ;;  %v738_v38 = vadd.f32 %v730_v35, %v168_v43  ;;  %v612_v42 = vadd.f32 %v1853_v20, %v596_v25  ;;  %v1856_v34 = vld [vmem:[#allocation28_spill] sm:$0xff] }
  0xad   : > { %v611_v31 = vadd.f32 %v1854_v60, %v595_v47  ;;  %v519_v59 = vsub.f32 %v1549_v18, %v1541_v50  ;;  %v433_v9 = vsel %vm249_vm4, %v430_v24, %v432_v19  ;;  %v522_v14 = vsub.f32 %v1606_v28, %v407_v23  ;;  %v456_v36 = vpop.permute.xlu1 %455  ;;  %v454_v41 = vpop.permute.xlu0 %453  ;;  %v1865_v20 = vld [vmem:[#allocation20_spill] sm:$0xff] }
  0xae   : > { %v1855_v13 = vrot.slane %v1272_v54, 1  ;;  %748 = vst.msk [vmem:[%s1030_s22 + $0x28] sm:$0xff] %vm742_vm1, %v739_v30  ;;  %747 = vst.msk [vmem:[%s1030_s22 + $0x20] sm:$0xff] %vm742_vm1, %v738_v38  ;;  %v733_v50 = vadd.f32 %v1856_v34, %v612_v42  ;;  %v521_v43 = vsub.f32 %v513_v11, %v405_v21  ;;  %v630_v28 = vadd.f32 0.04, %v1857_v32  ;;  %v1866_v60 = vld [vmem:[#allocation8_spill] sm:$0xff] }
  0xaf   : > { %v732_v18 = vadd.f32 %v1506_v63, %v611_v31  ;;  %v444_v23 = vsel %vm273_vm5, %v434_v22, %v1279_v55  ;;  %v524_v37 = vsub.f32 %v516_v7, %v411_v6  ;;  %v523_v33 = vsub.f32 %v515_v39, %v409_v57  ;;  %v1862_v7 = vld [vmem:[#allocation19_spill] sm:$0xff]  ;;  %v1863_v39 = vld [vmem:[#allocation5_spill] sm:$0xff] }
  0xb0   : > { %v431_v16 = vsel %vm249_vm4, %v1855_v13, %v430_v24  ;;  %v435_v24 = vsel %vm249_vm4, %v432_v19, %v434_v22  ;;  %v741_v17 = vadd.f32 %v733_v50, %v171_v44  ;;  %v629_v25 = vadd.f32 0.04, %v1858_v26 }
  0xb1   : > { %v740_v35 = vadd.f32 %v732_v18, %v170_v40  ;;  %v632_v47 = vadd.f32 0.04, %v1859_v12  ;;  %v1860_v63 = vsub.f32 %v1481_v48, %v1485_v27  ;;  %v1861_v11 = vsub.f32 %v1514_v49, %v1523_v15  ;;  %v460_v19 = vpop.permute.xlu1 %459  ;;  %v458_v22 = vpop.permute.xlu0 %457  ;;  %v1864_v27 = vld [vmem:[#allocation6_spill] sm:$0xff] }
  0xb2   : > { %v527_v6 = vsub.f32 %v519_v59, %v1546_v58  ;;  %v631_v57 = vadd.f32 0.04, %v1862_v7  ;;  %751 = vst.msk [vmem:[%s1030_s22 + $0x38] sm:$0x7f] %vm750_vm2, %v741_v17  ;;  %v470_v48 = vsel %vm299_vm6, %v1863_v39, %v1600_v45  ;;  %v1693_v49 = vsub.f32 %v522_v14, %v433_v9 }
  0xb3   : > { %v525_v21 = vsub.f32 %v1860_v63, %v1509_v61  ;;  %v528_v30 = vsub.f32 %v1861_v11, %v1538_v29  ;;  %749 = vst.msk [vmem:[%s1030_s22 + $0x30] sm:$0xff] %vm742_vm1, %v740_v35  ;;  %v469_v61 = vsel %vm299_vm6, %v1864_v27, %v1602_v8  ;;  %v1695_v15 = vsub.f32 %v521_v43, %v431_v16  ;;  %v1867_v8 = vld [vmem:[#allocation21_spill] sm:$0xff]  ;;  %v1872_v35 = vld [vmem:[#allocation22_spill] sm:$0xff] }
  0xb4   : > { %v1697_v29 = vsub.f32 %v524_v37, %v444_v23  ;;  %v1699_v58 = vsub.f32 %v523_v33, %v435_v24  ;;  %v638_v38 = vmul.f32 %v1863_v39, %v630_v28  ;;  %v634_v42 = vadd.f32 0.04, %v1865_v20  ;;  %v1868_v16 = vld [vmem:[#allocation9_spill] sm:$0xff]  ;;  %v1871_v33 = vld [vmem:[#allocation12_spill] sm:$0xff] }
  0xb5   : > { %v686_v31 = vmul.f32 %v1866_v60, %v1000_v3  ;;  %v637_v45 = vmul.f32 %v1864_v27, %v629_v25  ;;  %v640_v44 = vmul.f32 %v1259_v51, %v632_v47  ;;  %v633_v40 = vadd.f32 0.04, %v1867_v8  ;;  %v480_v14 = vpop.permute.xlu1 %479  ;;  %v478_v13 = vpop.permute.xlu0 %477 }
  0xb6   : > { %v534_v59 = vsub.f32 %v1518_v10, %v470_v48  ;;  %v533_v9 = vsub.f32 %v525_v21, %v469_v61  ;;  %v685_v34 = vmul.f32 %v1868_v16, %v990_v1  ;;  %v639_v50 = vmul.f32 %v1262_v52, %v631_v57  ;;  %v1869_v1 = vld [vmem:[#allocation10_spill] sm:$0xff]  ;;  %v1874_v61 = vld [vmem:[#allocation23_spill] sm:$0xff] }
  0xb7   : > { %v472_v3 = vsel %vm299_vm6, %v1259_v51, %v1620_v62  ;;  %v471_v18 = vsel %vm299_vm6, %v1262_v52, %v1622_v46  ;;  %v502_v43 = vsel %vm332_vm7, %v480_v14, %v1863_v39  ;;  %v501_v10 = vsel %vm332_vm7, %v478_v13, %v1864_v27  ;;  %v1870_v62 = vld [vmem:[#allocation11_spill] sm:$0xff] }
  0xb8   : > { %v542_v32 = vsub.f32 %v534_v59, %v502_v43  ;;  %v541_v28 = vsub.f32 %v533_v9, %v501_v10  ;;  %v688_v23 = vmul.f32 %v1869_v1, %v997_v2  ;;  %v1725_v37 = vmul.f32 %v1269_v53, %v634_v42  ;;  %v874_v14 = vld [vmem:[%s1019_s19 + $0x48] sm:$0xff] }
  0xb9   : > { %v687_v24 = vmul.f32 %v1870_v62, %v987_v0  ;;  %v1731_v46 = vmul.f32 %v1871_v33, %v1007_v4  ;;  %v1734_v17 = vmul.f32 %v1272_v54, %v633_v40  ;;  %v636_v26 = vadd.f32 0.04, %v1872_v35  ;;  %v484_v2 = vpop.permute.xlu1 %483  ;;  %v482_v21 = vpop.permute.xlu0 %481  ;;  %v875_v62 = vld [vmem:[%s1019_s19 + $0x50] sm:$0xff] }
  0xba   : > { %v536_v25 = vsub.f32 %v528_v30, %v472_v3  ;;  %v535_v12 = vsub.f32 %v527_v6, %v471_v18  ;;  %v550_v47 = vmul.f32 3844.0, %v542_v32  ;;  %v549_v63 = vmul.f32 3844.0, %v541_v28 }
  0xbb   : > { %v474_v11 = vsel %vm299_vm6, %v1269_v53, %v456_v36  ;;  %v473_v0 = vsel %vm299_vm6, %v1272_v54, %v454_v41  ;;  %v504_v4 = vsel %vm332_vm7, %v484_v2, %v1259_v51  ;;  %v503_v7 = vsel %vm332_vm7, %v482_v21, %v1262_v52  ;;  %v1873_v41 = vld [vmem:[#allocation13_spill] sm:$0xff] }
  0xbc   : > { %v614_v57 = vmul.f32 0.0005, %v550_v47  ;;  %v613_v30 = vmul.f32 0.0005, %v549_v63  ;;  %v544_v6 = vsub.f32 %v536_v25, %v504_v4  ;;  %v543_v39 = vsub.f32 %v535_v12, %v503_v7  ;;  %v877_v7 = vld [vmem:[%s1019_s19 + $0x60] sm:$0xff] }
  0xbd   : > { %v476_v48 = vsel %vm299_vm6, %v1279_v55, %v460_v19  ;;  %v475_v36 = vsel %vm299_vm6, %v1282_v56, %v458_v22  ;;  %v689_v27 = vmul.f32 %v1873_v41, %v1010_v5  ;;  %v635_v51 = vadd.f32 0.04, %v1874_v61  ;;  %v488_v8 = vpop.permute.xlu1 %487  ;;  %v486_v40 = vpop.permute.xlu0 %485  ;;  %v873_v19 = vld [vmem:[%s1019_s19 + $0x40] sm:$0xff] }
  0xbe   : > { %v646_v20 = vadd.f32 %v638_v38, %v614_v57  ;;  %v645_v42 = vadd.f32 %v637_v45, %v613_v30  ;;  %v552_v52 = vmul.f32 3844.0, %v544_v6  ;;  %v551_v60 = vmul.f32 3844.0, %v543_v39  ;;  %v946_v6 = vld [vmem:[%s984_s14 + $0x30] sm:$0xff]  ;;  %v1876_v39 = vld [vmem:[#allocation15_spill] sm:$0xff] }
  0xbf   : > { %v538_v59 = vsub.f32 %v1693_v49, %v474_v11  ;;  %v537_v9 = vsub.f32 %v1695_v15, %v473_v0  ;;  %v506_v22 = vsel %vm332_vm7, %v488_v8, %v1269_v53  ;;  %v505_v5 = vsel %vm332_vm7, %v486_v40, %v1272_v54  ;;  %v876_v54 = vld [vmem:[%s1019_s19 + $0x58] sm:$0xff] }
  0xc0   : > { %v753_v38 = vadd.f32 %v686_v31, %v646_v20  ;;  %v752_v45 = vadd.f32 %v685_v34, %v645_v42  ;;  %v616_v13 = vmul.f32 0.0005, %v552_v52  ;;  %v615_v16 = vmul.f32 0.0005, %v551_v60  ;;  %v880_v20 = vld [vmem:[%s1019_s19 + $0x78] sm:$0x7f] }
  0xc1   : > { %v540_v3 = vsub.f32 %v1697_v29, %v476_v48  ;;  %v539_v49 = vsub.f32 %v1699_v58, %v475_v36  ;;  %v546_v15 = vsub.f32 %v538_v59, %v506_v22  ;;  %v545_v18 = vsub.f32 %v537_v9, %v505_v5  ;;  %v492_v28 = vpop.permute.xlu1 %491  ;;  %v490_v1 = vpop.permute.xlu0 %489  ;;  %v879_v42 = vld [vmem:[%s1019_s19 + $0x70] sm:$0xff] }
  0xc2   : > { %v761_v43 = vadd.f32 %v874_v14, %v753_v38  ;;  %v760_v10 = vadd.f32 %v873_v19, %v752_v45  ;;  %v648_v53 = vadd.f32 %v640_v44, %v616_v13  ;;  %v647_v32 = vadd.f32 %v639_v50, %v615_v16 }
  0xc3   : > { %v554_v31 = vmul.f32 3844.0, %v546_v15  ;;  %v553_v34 = vmul.f32 3844.0, %v545_v18  ;;  %v508_v33 = vsel %vm332_vm7, %v492_v28, %v1279_v55  ;;  %v507_v29 = vsel %vm332_vm7, %v490_v1, %v1282_v56 }
  0xc4   : > { %906 = vst.msk [vmem:[%s1030_s22 + $0x48] sm:$0xff] %vm742_vm1, %v761_v43  ;;  %905 = vst.msk [vmem:[%s1030_s22 + $0x40] sm:$0xff] %vm742_vm1, %v760_v10  ;;  %v755_v58 = vadd.f32 %v688_v23, %v648_v53  ;;  %v754_v44 = vadd.f32 %v687_v24, %v647_v32  ;;  %v548_v50 = vsub.f32 %v540_v3, %v508_v33  ;;  %v878_v24 = vld [vmem:[%s1019_s19 + $0x68] sm:$0xff] }
  0xc5   : > { %v547_v35 = vsub.f32 %v539_v49, %v507_v29  ;;  %v618_v25 = vmul.f32 0.0005, %v554_v31  ;;  %v617_v12 = vmul.f32 0.0005, %v553_v34  ;;  %v644_v47 = vmul.f32 %v1279_v55, %v636_v26  ;;  %v945_v26 = vld [vmem:[%s984_s14 + $0x38] sm:$0x7f] }
  0xc6   : > { %v643_v63 = vmul.f32 %v1282_v56, %v635_v51  ;;  %v763_v2 = vadd.f32 %v876_v54, %v755_v58  ;;  %v762_v21 = vadd.f32 %v875_v62, %v754_v44  ;;  %v556_v11 = vmul.f32 3844.0, %v548_v50  ;;  %v1875_v56 = vld [vmem:[#allocation14_spill] sm:$0xff] }
  0xc7   : > { %v555_v0 = vmul.f32 3844.0, %v547_v35  ;;  %v650_v4 = vadd.f32 %v1725_v37, %v618_v25  ;;  %v649_v23 = vadd.f32 %v1734_v17, %v617_v12  ;;  %v692_v57 = vmul.f32 %v945_v26, %v1875_v56 }
  0xc8   : > { %908 = vst.msk [vmem:[%s1030_s22 + $0x58] sm:$0xff] %vm742_vm1, %v763_v2  ;;  %907 = vst.msk [vmem:[%s1030_s22 + $0x50] sm:$0xff] %vm742_vm1, %v762_v21  ;;  %v620_v55 = vmul.f32 0.0005, %v556_v11  ;;  %v691_v37 = vmul.f32 %v946_v6, %v1876_v39 }
  0xc9   : > { %v619_v30 = vmul.f32 0.0005, %v555_v0  ;;  %v757_v17 = vadd.f32 %v1731_v46, %v650_v4  ;;  %v756_v48 = vadd.f32 %v689_v27, %v649_v23 }
  0xca   : > { %v652_v36 = vadd.f32 %v644_v47, %v620_v55 }
  0xcb   : > { %v651_v41 = vadd.f32 %v643_v63, %v619_v30  ;;  %v765_v61 = vadd.f32 %v878_v24, %v757_v17  ;;  %v764_v51 = vadd.f32 %v877_v7, %v756_v48 }
  0xcc   : > { %v759_v52 = vadd.f32 %v692_v57, %v652_v36 }
  0xcd   : > { %v758_v60 = vadd.f32 %v691_v37, %v651_v41  ;;  %910 = vst.msk [vmem:[%s1030_s22 + $0x68] sm:$0xff] %vm742_vm1, %v765_v61  ;;  %909 = vst.msk [vmem:[%s1030_s22 + $0x60] sm:$0xff] %vm742_vm1, %v764_v51 }
  0xce   : > { %v767_v8 = vadd.f32 %v880_v20, %v759_v52 }
  0xcf   : > { %v766_v40 = vadd.f32 %v879_v42, %v758_v60 }
  0xd0   : > { %912 = vst.msk [vmem:[%s1030_s22 + $0x78] sm:$0x7f] %vm750_vm2, %v767_v8 }
  0xd1   : > { %911 = vst.msk [vmem:[%s1030_s22 + $0x70] sm:$0xff] %vm742_vm1, %v766_v40 }
  0xd2 PF: > { %s12_s9 = sadd.s32 1, %s953_s9  }
  0xd3   : > { %p9_p4 = scmp.ge.s32.totalorder %s12_s9, 4  }
  0xd5   :  { %11 = sbr.rel (!%p9_p4) target bundleno = 1 (0x1), region = 68 }

// kernel: _lambda_.5
= control target key start
LH: loop header
LB: loop body
LE: loop exit
PB: predicated region body
PF: predicated region fallthrough
CT: control target
= control target key end

     0   :  { %s4445_s15 = smov 0   ;;  %s4447_s16 = smov 0   ;;  %s5291_s0 = inlined_call_operand.vmem [shape: f32[2,16384], index: 0, kind: input, shape index: {}]   ;;  %s5292_s1 = inlined_call_operand.vmem [shape: bf16[32,16384], index: 1, kind: input, shape index: {}]   ;;  %s5293_s2 = inlined_call_operand.vmem [shape: f32[1,32], index: 2, kind: input, shape index: {}]   ;;  %s5294_s3 = inlined_call_operand.vmem [shape: bf16[32,8192], index: 3, kind: input, shape index: {}]   ;;  %s5295_s4 = inlined_call_operand.vmem [shape: f32[2,8192], index: 4, kind: output, shape index: {}]  }
   0x1   :  { %s4449_s17 = smov 0  }
   0x2 LB: > { %s4461_s18 = sadd.s32 4294967295, %s4415_s17   ;;  %s4464_s19 = sadd.s32 1, %s4415_s17   ;;  %s4415_s17 = sphi %s4449_s17, %s5298_s17   ;;  %s4411_s16 = sphi %s4447_s16, %s5297_s16   ;;  %s4407_s15 = sphi %s4445_s15, %s5296_s15  }
   0x3   : > { %s44_s20 = ssub.s32 %s4415_s17, %s4464_s19  ;;  %s47_s21 = sadd.s32 1, %s4411_s16 }
   0x4   : > { %p45_p0 = scmp.eq.s32.totalorder %s44_s20, 0  ;;  %p54_p1 = scmp.ne.s32.totalorder %s4411_s16, %s4407_s15 }
   0x5   : > { %p55_p2 = scmp.eq.s32.totalorder %s4415_s17, 0  ;;  %p4118_p4 = scmp.ge.s32.totalorder %s4415_s17, 4 }
   0x6   : > { %s4473_s22 = scalar_select %p45_p0, %s4411_s16, %s47_s21  }
   0x7   : > { %p56_p3 = por %p55_p2, %p54_p1  ;;  %149 = sbr.rel (%p4118_p4) target bundleno = 50 (0x32), region = 24 }
   0xe   : > { %161 = sbr.rel (!%p56_p3) target bundleno = 50 (0x32), region = 32  ;;  %s163_s23 = sand.u32 (%p56_p3), 1, %s4411_s16  }
   0xf   : > { %s4355_s24 = sshll.u32 (%p56_p3), %s4415_s17, 7  ;;  %s4119_s25 = sshll.u32 (%p56_p3), %s163_s23, 9 }
  0x10   : > { %s4481_s28 = scalar_lea.vmem (%p56_p3), %s5292_s1, %s4355_s24  ;;  %s4486_s29 = scalar_lea.vmem (%p56_p3), [#allocation3], %s4119_s25 }
  0x11   : > { %v181_v0 = vld [vmem:[%s4481_s28] sm:$0xff] (%p56_p3)  ;;  %v183_v1 = vld [vmem:[%s4481_s28 + $0x8] sm:$0xff] (%p56_p3)  ;;  %v185_v2 = vld [vmem:[%s4481_s28 + $0x10] sm:$0xff] (%p56_p3) }
  0x12   : > { %182 = vst [vmem:[%s4486_s29] sm:$0xff] (%p56_p3), %v181_v0  ;;  %184 = vst [vmem:[%s4486_s29 + $0x8] sm:$0xff] (%p56_p3), %v183_v1  ;;  %v187_v3 = vld [vmem:[%s4481_s28 + $0x18] sm:$0xff] (%p56_p3)  ;;  %v189_v4 = vld [vmem:[%s4481_s28 + $0x20] sm:$0xff] (%p56_p3) }
  0x13   : > { %186 = vst [vmem:[%s4486_s29 + $0x10] sm:$0xff] (%p56_p3), %v185_v2  ;;  %v191_v5 = vld [vmem:[%s4481_s28 + $0x28] sm:$0xff] (%p56_p3)  ;;  %188 = vst [vmem:[%s4486_s29 + $0x18] sm:$0xff] (%p56_p3), %v187_v3  ;;  %v193_v6 = vld [vmem:[%s4481_s28 + $0x30] sm:$0xff] (%p56_p3) }
  0x14   : > { %190 = vst [vmem:[%s4486_s29 + $0x20] sm:$0xff] (%p56_p3), %v189_v4  ;;  %192 = vst [vmem:[%s4486_s29 + $0x28] sm:$0xff] (%p56_p3), %v191_v5  ;;  %v195_v7 = vld [vmem:[%s4481_s28 + $0x38] sm:$0xff] (%p56_p3)  ;;  %v197_v8 = vld [vmem:[%s4481_s28 + $0x40] sm:$0xff] (%p56_p3) }
  0x15   : > { %194 = vst [vmem:[%s4486_s29 + $0x30] sm:$0xff] %v193_v6  ;;  %196 = vst [vmem:[%s4486_s29 + $0x38] sm:$0xff] %v195_v7  ;;  %v199_v9 = vld [vmem:[%s4481_s28 + $0x48] sm:$0xff]  ;;  %v201_v10 = vld [vmem:[%s4481_s28 + $0x50] sm:$0xff] }
  0x16   : > { %198 = vst [vmem:[%s4486_s29 + $0x40] sm:$0xff] %v197_v8  ;;  %v203_v11 = vld [vmem:[%s4481_s28 + $0x58] sm:$0xff]  ;;  %200 = vst [vmem:[%s4486_s29 + $0x48] sm:$0xff] %v199_v9  ;;  %v205_v12 = vld [vmem:[%s4481_s28 + $0x60] sm:$0xff] }
  0x17   : > { %202 = vst [vmem:[%s4486_s29 + $0x50] sm:$0xff] %v201_v10  ;;  %204 = vst [vmem:[%s4486_s29 + $0x58] sm:$0xff] %v203_v11  ;;  %v207_v13 = vld [vmem:[%s4481_s28 + $0x68] sm:$0xff]  ;;  %v209_v14 = vld [vmem:[%s4481_s28 + $0x70] sm:$0xff] }
  0x18   : > { %206 = vst [vmem:[%s4486_s29 + $0x60] sm:$0xff] %v205_v12  ;;  %208 = vst [vmem:[%s4486_s29 + $0x68] sm:$0xff] %v207_v13  ;;  %v211_v15 = vld [vmem:[%s4481_s28 + $0x78] sm:$0xff]  ;;  %v213_v16 = vld [vmem:[%s4481_s28 + $0x200] sm:$0xff] }
  0x19   : > { %210 = vst [vmem:[%s4486_s29 + $0x70] sm:$0xff] %v209_v14  ;;  %v215_v17 = vld [vmem:[%s4481_s28 + $0x208] sm:$0xff]  ;;  %212 = vst [vmem:[%s4486_s29 + $0x78] sm:$0xff] %v211_v15  ;;  %v217_v18 = vld [vmem:[%s4481_s28 + $0x210] sm:$0xff] }
  0x1a   : > { %214 = vst [vmem:[%s4486_s29 + $0x80] sm:$0xff] %v213_v16  ;;  %216 = vst [vmem:[%s4486_s29 + $0x88] sm:$0xff] %v215_v17  ;;  %v219_v19 = vld [vmem:[%s4481_s28 + $0x218] sm:$0xff]  ;;  %v221_v20 = vld [vmem:[%s4481_s28 + $0x220] sm:$0xff] }
  0x1b   : > { %218 = vst [vmem:[%s4486_s29 + $0x90] sm:$0xff] %v217_v18  ;;  %220 = vst [vmem:[%s4486_s29 + $0x98] sm:$0xff] %v219_v19  ;;  %v223_v21 = vld [vmem:[%s4481_s28 + $0x228] sm:$0xff]  ;;  %v225_v22 = vld [vmem:[%s4481_s28 + $0x230] sm:$0xff] }
  0x1c   : > { %222 = vst [vmem:[%s4486_s29 + $0xa0] sm:$0xff] %v221_v20  ;;  %v227_v23 = vld [vmem:[%s4481_s28 + $0x238] sm:$0xff]  ;;  %224 = vst [vmem:[%s4486_s29 + $0xa8] sm:$0xff] %v223_v21  ;;  %v229_v24 = vld [vmem:[%s4481_s28 + $0x240] sm:$0xff] }
  0x1d   : > { %226 = vst [vmem:[%s4486_s29 + $0xb0] sm:$0xff] %v225_v22  ;;  %228 = vst [vmem:[%s4486_s29 + $0xb8] sm:$0xff] %v227_v23  ;;  %v231_v25 = vld [vmem:[%s4481_s28 + $0x248] sm:$0xff]  ;;  %v233_v26 = vld [vmem:[%s4481_s28 + $0x250] sm:$0xff] }
  0x1e   : > { %230 = vst [vmem:[%s4486_s29 + $0xc0] sm:$0xff] %v229_v24  ;;  %232 = vst [vmem:[%s4486_s29 + $0xc8] sm:$0xff] %v231_v25  ;;  %v235_v27 = vld [vmem:[%s4481_s28 + $0x258] sm:$0xff]  ;;  %v237_v28 = vld [vmem:[%s4481_s28 + $0x260] sm:$0xff] }
  0x1f   : > { %234 = vst [vmem:[%s4486_s29 + $0xd0] sm:$0xff] %v233_v26  ;;  %v239_v29 = vld [vmem:[%s4481_s28 + $0x268] sm:$0xff]  ;;  %236 = vst [vmem:[%s4486_s29 + $0xd8] sm:$0xff] %v235_v27  ;;  %v241_v30 = vld [vmem:[%s4481_s28 + $0x270] sm:$0xff] }
  0x20   : > { %238 = vst [vmem:[%s4486_s29 + $0xe0] sm:$0xff] %v237_v28  ;;  %240 = vst [vmem:[%s4486_s29 + $0xe8] sm:$0xff] %v239_v29  ;;  %v243_v31 = vld [vmem:[%s4481_s28 + $0x278] sm:$0xff]  ;;  %v245_v32 = vld [vmem:[%s4481_s28 + $0x400] sm:$0xff] }
  0x21   : > { %242 = vst [vmem:[%s4486_s29 + $0xf0] sm:$0xff] %v241_v30  ;;  %244 = vst [vmem:[%s4486_s29 + $0xf8] sm:$0xff] %v243_v31  ;;  %v247_v33 = vld [vmem:[%s4481_s28 + $0x408] sm:$0xff]  ;;  %v249_v34 = vld [vmem:[%s4481_s28 + $0x410] sm:$0xff] }
  0x22   : > { %246 = vst [vmem:[%s4486_s29 + $0x100] sm:$0xff] %v245_v32  ;;  %v251_v35 = vld [vmem:[%s4481_s28 + $0x418] sm:$0xff]  ;;  %248 = vst [vmem:[%s4486_s29 + $0x108] sm:$0xff] %v247_v33  ;;  %v253_v36 = vld [vmem:[%s4481_s28 + $0x420] sm:$0xff] }
  0x23   : > { %250 = vst [vmem:[%s4486_s29 + $0x110] sm:$0xff] %v249_v34  ;;  %252 = vst [vmem:[%s4486_s29 + $0x118] sm:$0xff] %v251_v35  ;;  %v255_v37 = vld [vmem:[%s4481_s28 + $0x428] sm:$0xff]  ;;  %v257_v38 = vld [vmem:[%s4481_s28 + $0x430] sm:$0xff] }
  0x24   : > { %254 = vst [vmem:[%s4486_s29 + $0x120] sm:$0xff] %v253_v36  ;;  %256 = vst [vmem:[%s4486_s29 + $0x128] sm:$0xff] %v255_v37  ;;  %v259_v39 = vld [vmem:[%s4481_s28 + $0x438] sm:$0xff]  ;;  %v261_v40 = vld [vmem:[%s4481_s28 + $0x440] sm:$0xff] }
  0x25   : > { %258 = vst [vmem:[%s4486_s29 + $0x130] sm:$0xff] %v257_v38  ;;  %v263_v41 = vld [vmem:[%s4481_s28 + $0x448] sm:$0xff]  ;;  %260 = vst [vmem:[%s4486_s29 + $0x138] sm:$0xff] %v259_v39  ;;  %v265_v42 = vld [vmem:[%s4481_s28 + $0x450] sm:$0xff] }
  0x26   : > { %262 = vst [vmem:[%s4486_s29 + $0x140] sm:$0xff] %v261_v40  ;;  %264 = vst [vmem:[%s4486_s29 + $0x148] sm:$0xff] %v263_v41  ;;  %v267_v43 = vld [vmem:[%s4481_s28 + $0x458] sm:$0xff]  ;;  %v269_v44 = vld [vmem:[%s4481_s28 + $0x460] sm:$0xff] }
  0x27   : > { %266 = vst [vmem:[%s4486_s29 + $0x150] sm:$0xff] %v265_v42  ;;  %268 = vst [vmem:[%s4486_s29 + $0x158] sm:$0xff] %v267_v43  ;;  %v271_v45 = vld [vmem:[%s4481_s28 + $0x468] sm:$0xff]  ;;  %v273_v46 = vld [vmem:[%s4481_s28 + $0x470] sm:$0xff] }
  0x28   : > { %270 = vst [vmem:[%s4486_s29 + $0x160] sm:$0xff] %v269_v44  ;;  %v275_v47 = vld [vmem:[%s4481_s28 + $0x478] sm:$0xff]  ;;  %272 = vst [vmem:[%s4486_s29 + $0x168] sm:$0xff] %v271_v45  ;;  %v277_v48 = vld [vmem:[%s4481_s28 + $0x600] sm:$0xff] }
  0x29   : > { %274 = vst [vmem:[%s4486_s29 + $0x170] sm:$0xff] %v273_v46  ;;  %276 = vst [vmem:[%s4486_s29 + $0x178] sm:$0xff] %v275_v47  ;;  %v279_v49 = vld [vmem:[%s4481_s28 + $0x608] sm:$0xff]  ;;  %v281_v50 = vld [vmem:[%s4481_s28 + $0x610] sm:$0xff] }
  0x2a   : > { %278 = vst [vmem:[%s4486_s29 + $0x180] sm:$0xff] %v277_v48  ;;  %280 = vst [vmem:[%s4486_s29 + $0x188] sm:$0xff] %v279_v49  ;;  %v283_v51 = vld [vmem:[%s4481_s28 + $0x618] sm:$0xff]  ;;  %v285_v52 = vld [vmem:[%s4481_s28 + $0x620] sm:$0xff] }
  0x2b   : > { %282 = vst [vmem:[%s4486_s29 + $0x190] sm:$0xff] %v281_v50  ;;  %v287_v53 = vld [vmem:[%s4481_s28 + $0x628] sm:$0xff]  ;;  %284 = vst [vmem:[%s4486_s29 + $0x198] sm:$0xff] %v283_v51  ;;  %v289_v54 = vld [vmem:[%s4481_s28 + $0x630] sm:$0xff] }
  0x2c   : > { %286 = vst [vmem:[%s4486_s29 + $0x1a0] sm:$0xff] %v285_v52  ;;  %288 = vst [vmem:[%s4486_s29 + $0x1a8] sm:$0xff] %v287_v53  ;;  %v291_v55 = vld [vmem:[%s4481_s28 + $0x638] sm:$0xff]  ;;  %v293_v56 = vld [vmem:[%s4481_s28 + $0x640] sm:$0xff] }
  0x2d   : > { %290 = vst [vmem:[%s4486_s29 + $0x1b0] sm:$0xff] %v289_v54  ;;  %292 = vst [vmem:[%s4486_s29 + $0x1b8] sm:$0xff] %v291_v55  ;;  %v295_v57 = vld [vmem:[%s4481_s28 + $0x648] sm:$0xff]  ;;  %v297_v58 = vld [vmem:[%s4481_s28 + $0x650] sm:$0xff] }
  0x2e   : > { %294 = vst [vmem:[%s4486_s29 + $0x1c0] sm:$0xff] %v293_v56  ;;  %v299_v59 = vld [vmem:[%s4481_s28 + $0x658] sm:$0xff]  ;;  %296 = vst [vmem:[%s4486_s29 + $0x1c8] sm:$0xff] %v295_v57  ;;  %v301_v60 = vld [vmem:[%s4481_s28 + $0x660] sm:$0xff] }
  0x2f   : > { %298 = vst [vmem:[%s4486_s29 + $0x1d0] sm:$0xff] %v297_v58  ;;  %300 = vst [vmem:[%s4486_s29 + $0x1d8] sm:$0xff] %v299_v59  ;;  %v303_v61 = vld [vmem:[%s4481_s28 + $0x668] sm:$0xff]  ;;  %v305_v62 = vld [vmem:[%s4481_s28 + $0x670] sm:$0xff] }
  0x30   : > { %302 = vst [vmem:[%s4486_s29 + $0x1e0] sm:$0xff] %v301_v60  ;;  %304 = vst [vmem:[%s4486_s29 + $0x1e8] sm:$0xff] %v303_v61  ;;  %v307_v63 = vld [vmem:[%s4481_s28 + $0x678] sm:$0xff] }
  0x31   : > { %306 = vst [vmem:[%s4486_s29 + $0x1f0] sm:$0xff] %v305_v62  ;;  %308 = vst [vmem:[%s4486_s29 + $0x1f8] sm:$0xff] %v307_v63 }
  0x32 PF: > { %p4122_p5 = scmp.ge.s32.totalorder %s4415_s17, 1  ;;  %p313_p6 = scmp.lt.s32.totalorder %s4415_s17, 5 }
  0x34   : > { %p314_p7 = pnand %p4122_p5, %p313_p6 }
  0x35   : > { %s320_s30 = sand.u32 (!%p314_p7), 1, %s4407_s15   ;;  %s4124_s5 = sshll.u32 (!%p314_p7), %s4461_s18, 5 }
  0x36   : > { %317 = sbr.rel (%p314_p7) target bundleno = 781 (0x30d), region = 55  ;;  %s4123_s6 = sshll.u32 (!%p314_p7), %s320_s30, 9 }
  0x37   : > { %p346_p8 = scmp.lt.s32.totalorder (!%p314_p7), %s4124_s5, 127  ;;  %s4622_s11 = scalar_lea.vmem (!%p314_p7), [#allocation3], %s4123_s6 }
  0x38   : > { %p4126_p9 = scmp.ne.s32.totalorder (!%p314_p7), %s4461_s18, 0 }
  0x3d   : > { %s5300_s5 = smov (!%p346_p8, %s4124_s5), 127  ;;  %356 = sbr.rel (%p4126_p9) target bundleno = 68 (0x44), region = 63 }
  0x3e   : > { %s4125_s7 = sshll.u32 %s5300_s5, 1  ;;  %vm357_vm0 = vcmask (!%p4126_p9), 254976   ;;  %v4417_v0 = vmov (!%p4126_p9), 0.0  }
  0x3f   : > { %s4620_s10 = scalar_lea.vmem %s5291_s0, %s4125_s7  ;;  %358 = vst.msk [vmem:[#allocation2] sm:$0x3] (!%p4126_p9), %vm357_vm0, %v4417_v0 }
  0x44 PF: > { %v576_v1 = vld [vmem:[%s4622_s11] sm:$0xff]  ;;  %v577_v3 = vld [vmem:[%s4622_s11 + $0x8] sm:$0xff]  ;;  %v380_v4 = vlaneseq  ;;  %v4418_v10 = vmov 1983009808   ;;  %v578_v26 = vld [vmem:[%s4622_s11 + $0x10] sm:$0xff]  ;;  %vm1601_vm1 = vcmask 254976  }
  0x45   : > { %v592_v2 = vld [vmem:[%s4622_s11 + $0x80] sm:$0xff]  ;;  %v593_v6 = vld [vmem:[%s4622_s11 + $0x88] sm:$0xff]  ;;  %v378_v11 = vunpack.c.l.s4 %v4418_v10  ;;  %v594_v27 = vld [vmem:[%s4622_s11 + $0x90] sm:$0xff]  ;;  %p4191_p10 = scmp.ne.s32.totalorder %s4461_s18, 3 }
  0x46   : > { %v4128_v5 = vcombine.high %v576_v1, %v592_v2  ;;  %v4127_v7 = vcombine.low %v576_v1, %v592_v2  ;;  %v608_v8 = vld [vmem:[%s4622_s11 + $0x100] sm:$0xff]  ;;  %v4130_v12 = vcombine.high %v577_v3, %v593_v6  ;;  %v4129_v13 = vcombine.low %v577_v3, %v593_v6  ;;  %v609_v15 = vld [vmem:[%s4622_s11 + $0x108] sm:$0xff]  ;;  %v579_v30 = vld [vmem:[%s4622_s11 + $0x18] sm:$0xff] }
  0x47   : > { %v624_v9 = vld [vmem:[%s4622_s11 + $0x180] sm:$0xff]  ;;  %v625_v16 = vld [vmem:[%s4622_s11 + $0x188] sm:$0xff]  ;;  %v379_v19 = vunpack.c.0.s8 %v378_v11  ;;  %v381_v20 = vshrl.u32 %v380_v4, 7  ;;  %v595_v31 = vld [vmem:[%s4622_s11 + $0x98] sm:$0xff]  ;;  %v4132_v35 = vcombine.high %v578_v26, %v594_v27  ;;  %v4131_v49 = vcombine.low %v578_v26, %v594_v27 }
  0x48   : > { %v4160_v14 = vcombine.high %v608_v8, %v624_v9  ;;  %v360_v17 = vld [vmem:[%s4620_s10] sm:$0xff]  ;;  %960 = vmatprep.subr.bf16.mxu0 %v4128_v5  ;;  %v4162_v18 = vcombine.high %v609_v15, %v625_v16  ;;  %1000 = vmatprep.subr.bf16.mxu1 %v4130_v12  ;;  %v361_v23 = vld [vmem:[%s4620_s10 + $0x8] sm:$0xff]  ;;  %v4159_v29 = vcombine.low %v608_v8, %v624_v9  ;;  %v610_v41 = vld [vmem:[%s4622_s11 + $0x110] sm:$0xff]  ;;  %vm2386_vm2 = vcmask (!%p4191_p10), 261120  }
  0x49   : > { %961 = vmatpush1.bf16.xpose.msra.mxu0 %v4127_v7  ;;  %v376_v21 = vcombine.high %v360_v17, %v360_v17  ;;  %1001 = vmatpush1.bf16.xpose.msra.mxu1 %v4129_v13  ;;  %v4634_v22 = vsub.s32 %v379_v19, %v381_v20  ;;  %v393_v28 = vcombine.high %v361_v23, %v361_v23  ;;  %v626_v42 = vld [vmem:[%s4622_s11 + $0x190] sm:$0xff]  ;;  %v611_v45 = vld [vmem:[%s4622_s11 + $0x118] sm:$0xff]  ;;  %v580_v56 = vld [vmem:[%s4622_s11 + $0x20] sm:$0xff] }
  0x4a   : > { %962 = vmatprep.subr.bf16.mxu0 %v4160_v14  ;;  %1002 = vmatprep.subr.bf16.mxu1 %v4162_v18  ;;  %v4161_v32 = vcombine.low %v609_v15, %v625_v16  ;;  %v4134_v39 = vcombine.high %v579_v30, %v595_v31  ;;  %v627_v46 = vld [vmem:[%s4622_s11 + $0x198] sm:$0xff]  ;;  %v4133_v50 = vcombine.low %v579_v30, %v595_v31  ;;  %v362_v55 = vld [vmem:[%s4620_s10 + $0x10] sm:$0xff]  ;;  %v596_v57 = vld [vmem:[%s4622_s11 + $0xa0] sm:$0xff] }
  0x4b   : > { %v383_v24 = vrot.slane %v360_v17, %v4634_v22  ;;  %v390_v25 = vrot.slane %v376_v21, %v4634_v22  ;;  %v400_v36 = vrot.slane %v361_v23, %v4634_v22  ;;  %v407_v40 = vrot.slane %v393_v28, %v4634_v22  ;;  %v581_v58 = vld [vmem:[%s4622_s11 + $0x28] sm:$0xff]  ;;  %v612_v3 = vld [vmem:[%s4622_s11 + $0x120] sm:$0xff]  ;;  %v363_v17 = vld [vmem:[%s4620_s10 + $0x18] sm:$0xff] }
  0x4c   : > { %v4164_v51 = vcombine.high %v610_v41, %v626_v42  ;;  %v4166_v52 = vcombine.high %v611_v45, %v627_v46  ;;  %v597_v59 = vld [vmem:[%s4622_s11 + $0xa8] sm:$0xff]  ;;  %v410_v60 = vcombine.high %v362_v55, %v362_v55  ;;  %v4163_v61 = vcombine.low %v610_v41, %v626_v42  ;;  %v628_v4 = vld [vmem:[%s4622_s11 + $0x1a0] sm:$0xff]  ;;  %v582_v18 = vld [vmem:[%s4622_s11 + $0x30] sm:$0xff] }
  0x4d   : > { %v391_v33 = vcombine.high %v383_v24, %v383_v24  ;;  %v392_v34 = vcombine.high %v390_v25, %v390_v25  ;;  %v408_v43 = vcombine.high %v400_v36, %v400_v36  ;;  %v544_v44 = vpack.c.bf16 %v383_v24, %v383_v24  ;;  %v613_v7 = vld [vmem:[%s4622_s11 + $0x128] sm:$0xff]  ;;  %v598_v19 = vld [vmem:[%s4622_s11 + $0xb0] sm:$0xff]  ;;  %v583_v20 = vld [vmem:[%s4622_s11 + $0x38] sm:$0xff] }
  0x4e   : > { %v409_v47 = vcombine.high %v407_v40, %v407_v40  ;;  %v546_v48 = vpack.c.bf16 %v390_v25, %v390_v25  ;;  %v4165_v62 = vcombine.low %v611_v45, %v627_v46  ;;  %v4136_v63 = vcombine.high %v580_v56, %v596_v57  ;;  %v629_v8 = vld [vmem:[%s4622_s11 + $0x1a8] sm:$0xff]  ;;  %v599_v21 = vld [vmem:[%s4622_s11 + $0xb8] sm:$0xff]  ;;  %v614_v30 = vld [vmem:[%s4622_s11 + $0x130] sm:$0xff] }
  0x4f   : > { %v545_v37 = vpack.c.bf16 %v391_v33, %v391_v33  ;;  %v547_v38 = vpack.c.bf16 %v392_v34, %v392_v34  ;;  %v549_v53 = vpack.c.bf16 %v408_v43, %v408_v43  ;;  %v4138_v0 = vcombine.high %v581_v58, %v597_v59  ;;  %v630_v31 = vld [vmem:[%s4622_s11 + $0x1b0] sm:$0xff]  ;;  %v615_v34 = vld [vmem:[%s4622_s11 + $0x138] sm:$0xff]  ;;  %v584_v45 = vld [vmem:[%s4622_s11 + $0x40] sm:$0xff] }
  0x50   : > { %v551_v54 = vpack.c.bf16 %v409_v47, %v409_v47  ;;  %v417_v1 = vrot.slane %v362_v55, %v4634_v22  ;;  %v424_v2 = vrot.slane %v410_v60, %v4634_v22  ;;  %v548_v6 = vpack.c.bf16 %v400_v36, %v400_v36  ;;  %v600_v46 = vld [vmem:[%s4622_s11 + $0xc0] sm:$0xff]  ;;  %v585_v47 = vld [vmem:[%s4622_s11 + $0x48] sm:$0xff] }
  0x51   : > { %963 = vmatpush1.bf16.xpose.msra.mxu0 %v4159_v29  ;;  %1003 = vmatpush1.bf16.xpose.msra.mxu1 %v4161_v32  ;;  %v550_v10 = vpack.c.bf16 %v407_v40, %v407_v40  ;;  %v4135_v11 = vcombine.low %v580_v56, %v596_v57  ;;  %v4137_v12 = vcombine.low %v581_v58, %v597_v59  ;;  %v616_v56 = vld [vmem:[%s4622_s11 + $0x140] sm:$0xff]  ;;  %v617_v60 = vld [vmem:[%s4622_s11 + $0x148] sm:$0xff] }
  0x52   : > { %992 = vmatprep.mubr.bf16.mxu0 %v545_v37  ;;  %1032 = vmatprep.mubr.bf16.mxu1 %v547_v38  ;;  %v425_v5 = vcombine.high %v417_v1, %v417_v1  ;;  %v426_v9 = vcombine.high %v424_v2, %v424_v2  ;;  %v4168_v13 = vcombine.high %v612_v3, %v628_v4  ;;  %v632_v57 = vld [vmem:[%s4622_s11 + $0x1c0] sm:$0xff] }
  0x53   : > { %1040 = vmatprep.subr.bf16.mxu0 %v4132_v35  ;;  %1080 = vmatprep.subr.bf16.mxu1 %v4134_v39  ;;  %v4170_v14 = vcombine.high %v613_v7, %v629_v8  ;;  %v427_v23 = vcombine.high %v363_v17, %v363_v17  ;;  %v4167_v24 = vcombine.low %v612_v3, %v628_v4  ;;  %v631_v35 = vld [vmem:[%s4622_s11 + $0x1b8] sm:$0xff] }
  0x54   : > { %v553_v15 = vpack.c.bf16 %v425_v5, %v425_v5  ;;  %v555_v16 = vpack.c.bf16 %v426_v9, %v426_v9  ;;  %v4169_v25 = vcombine.low %v613_v7, %v629_v8  ;;  %v4140_v26 = vcombine.high %v582_v18, %v598_v19  ;;  %v586_v7 = vld [vmem:[%s4622_s11 + $0x50] sm:$0xff]  ;;  %v587_v9 = vld [vmem:[%s4622_s11 + $0x58] sm:$0xff] }
  0x55   : > { %v4142_v27 = vcombine.high %v583_v20, %v599_v21  ;;  %v434_v28 = vrot.slane %v363_v17, %v4634_v22  ;;  %v441_v29 = vrot.slane %v427_v23, %v4634_v22  ;;  %v552_v33 = vpack.c.bf16 %v417_v1, %v417_v1  ;;  %v602_v8 = vld [vmem:[%s4622_s11 + $0xd0] sm:$0xff]  ;;  %v619_v23 = vld [vmem:[%s4622_s11 + $0x158] sm:$0xff] }
  0x56   : > { %v554_v37 = vpack.c.bf16 %v424_v2, %v424_v2  ;;  %v4139_v38 = vcombine.low %v582_v18, %v598_v19  ;;  %v4141_v39 = vcombine.low %v583_v20, %v599_v21  ;;  %v4172_v40 = vcombine.high %v614_v30, %v630_v31  ;;  %v618_v18 = vld [vmem:[%s4622_s11 + $0x150] sm:$0xff] }
  0x57   : > { %v442_v32 = vcombine.high %v434_v28, %v434_v28  ;;  %v443_v36 = vcombine.high %v441_v29, %v441_v29  ;;  %v4174_v41 = vcombine.high %v615_v34, %v631_v35  ;;  %v556_v59 = vpack.c.bf16 %v434_v28, %v434_v28  ;;  %v634_v19 = vld [vmem:[%s4622_s11 + $0x1d0] sm:$0xff] }
  0x58   : > { %993 = vmatmul.mubr.bf16.vlgmr.msra.gmra.mrb[0].mxu0 %v544_v44  ;;  %1033 = vmatmul.mubr.bf16.vlgmr.msra.gmra.mrb[0].mxu1 %v546_v48  ;;  %v364_v44 = vld [vmem:[%s4620_s10 + $0x20] sm:$0xff]  ;;  %v601_v48 = vld [vmem:[%s4622_s11 + $0xc8] sm:$0xff]  ;;  %v4176_v2 = vcombine.high %v616_v56, %v632_v57 }
  0x59   : > { %1041 = vmatpush1.bf16.xpose.msra.mxu0 %v4131_v49  ;;  %1081 = vmatpush1.bf16.xpose.msra.mxu1 %v4133_v50  ;;  %v557_v42 = vpack.c.bf16 %v442_v32, %v442_v32  ;;  %v559_v43 = vpack.c.bf16 %v443_v36, %v443_v36  ;;  %v444_v49 = vcombine.high %v364_v44, %v364_v44  ;;  %v589_v36 = vld [vmem:[%s4622_s11 + $0x68] sm:$0xff] }
  0x5a   : > { %1042 = vmatprep.subr.bf16.mxu0 %v4164_v51  ;;  %1082 = vmatprep.subr.bf16.mxu1 %v4166_v52  ;;  %v4171_v50 = vcombine.low %v614_v30, %v630_v31  ;;  %v4173_v51 = vcombine.low %v615_v34, %v631_v35  ;;  %v4144_v52 = vcombine.high %v584_v45, %v600_v46  ;;  %v588_v34 = vld [vmem:[%s4622_s11 + $0x60] sm:$0xff] }
  0x5b   : > { %1072 = vmatprep.mubr.bf16.mxu0 %v549_v53  ;;  %1112 = vmatprep.mubr.bf16.mxu1 %v551_v54  ;;  %v4146_v53 = vcombine.high %v585_v47, %v601_v48  ;;  %v451_v54 = vrot.slane %v364_v44, %v4634_v22  ;;  %v458_v55 = vrot.slane %v444_v49, %v4634_v22  ;;  %v604_v35 = vld [vmem:[%s4622_s11 + $0xe0] sm:$0xff]  ;;  %v621_v49 = vld [vmem:[%s4622_s11 + $0x168] sm:$0xff] }
  0x5c   : > { %v4145_v1 = vcombine.low %v585_v47, %v601_v48 }
  0x5d   : > { %v459_v58 = vcombine.high %v451_v54, %v451_v54  ;;  %v560_v21 = vpack.c.bf16 %v451_v54, %v451_v54 }
  0x5f   : > { %v561_v4 = vpack.c.bf16 %v459_v58, %v459_v58 }
  0x61   : > { %1043 = vmatpush1.bf16.xpose.msra.mxu0 %v4163_v61  ;;  %1083 = vmatpush1.bf16.xpose.msra.mxu1 %v4165_v62  ;;  %v633_v61 = vld [vmem:[%s4622_s11 + $0x1c8] sm:$0xff]  ;;  %v460_v62 = vcombine.high %v458_v55, %v458_v55 }
  0x62   : > { %1120 = vmatprep.subr.bf16.mxu0 %v4136_v63  ;;  %1160 = vmatprep.subr.bf16.mxu1 %v4138_v0  ;;  %v558_v63 = vpack.c.bf16 %v441_v29, %v441_v29  ;;  %v4143_v0 = vcombine.low %v584_v45, %v600_v46  ;;  %v4178_v3 = vcombine.high %v617_v60, %v633_v61  ;;  %v620_v45 = vld [vmem:[%s4622_s11 + $0x160] sm:$0xff] }
  0x63   : > { %v563_v5 = vpack.c.bf16 %v460_v62, %v460_v62  ;;  %v4180_v29 = vcombine.high %v618_v18, %v634_v19  ;;  %v636_v46 = vld [vmem:[%s4622_s11 + $0x1e0] sm:$0xff]  ;;  %v591_v62 = vld [vmem:[%s4622_s11 + $0x78] sm:$0xff] }
  0x68   : > { %1073 = vmatmul.mubr.bf16.vlgmr.msra.gmra.mrb[4].mxu0 %v548_v6  ;;  %1113 = vmatmul.mubr.bf16.vlgmr.msra.gmra.mrb[4].mxu1 %v550_v10  ;;  %v365_v6 = vld [vmem:[%s4620_s10 + $0x28] sm:$0xff]  ;;  %v603_v10 = vld [vmem:[%s4622_s11 + $0xd8] sm:$0xff] }
  0x69   : > { %1121 = vmatpush1.bf16.xpose.msra.mxu0 %v4135_v11  ;;  %1161 = vmatpush1.bf16.xpose.msra.mxu1 %v4137_v12  ;;  %v461_v11 = vcombine.high %v365_v6, %v365_v6  ;;  %v4175_v12 = vcombine.low %v616_v56, %v632_v57  ;;  %v4149_v28 = vcombine.low %v587_v9, %v603_v10 }
  0x6a   : > { %1122 = vmatprep.subr.bf16.mxu0 %v4168_v13  ;;  %1162 = vmatprep.subr.bf16.mxu1 %v4170_v14  ;;  %v4177_v13 = vcombine.low %v617_v60, %v633_v61  ;;  %v4148_v14 = vcombine.high %v586_v7, %v602_v8  ;;  %v590_v60 = vld [vmem:[%s4622_s11 + $0x70] sm:$0xff] }
  0x6b   : > { %1152 = vmatprep.mubr.bf16.mxu0 %v553_v15  ;;  %1192 = vmatprep.mubr.bf16.mxu1 %v555_v16  ;;  %v4150_v15 = vcombine.high %v587_v9, %v603_v10  ;;  %v468_v16 = vrot.slane %v365_v6, %v4634_v22  ;;  %v475_v17 = vrot.slane %v461_v11, %v4634_v22  ;;  %v606_v61 = vld [vmem:[%s4622_s11 + $0xf0] sm:$0xff]  ;;  %v623_v11 = vld [vmem:[%s4622_s11 + $0x178] sm:$0xff] }
  0x6d   : > { %v476_v20 = vcombine.high %v468_v16, %v468_v16  ;;  %v564_v48 = vpack.c.bf16 %v468_v16, %v468_v16 }
  0x6f   : > { %v565_v31 = vpack.c.bf16 %v476_v20, %v476_v20 }
  0x71   : > { %1123 = vmatpush1.bf16.xpose.msra.mxu0 %v4167_v24  ;;  %1163 = vmatpush1.bf16.xpose.msra.mxu1 %v4169_v25  ;;  %v635_v24 = vld [vmem:[%s4622_s11 + $0x1d8] sm:$0xff]  ;;  %v477_v25 = vcombine.high %v475_v17, %v475_v17 }
  0x72   : > { %1200 = vmatprep.subr.bf16.mxu0 %v4140_v26  ;;  %1240 = vmatprep.subr.bf16.mxu1 %v4142_v27  ;;  %v562_v26 = vpack.c.bf16 %v458_v55, %v458_v55  ;;  %v4147_v27 = vcombine.low %v586_v7, %v602_v8  ;;  %v4182_v30 = vcombine.high %v619_v23, %v635_v24  ;;  %v622_v7 = vld [vmem:[%s4622_s11 + $0x170] sm:$0xff] }
  0x73   : > { %v567_v32 = vpack.c.bf16 %v477_v25, %v477_v25  ;;  %v4184_v55 = vcombine.high %v620_v45, %v636_v46  ;;  %v638_v8 = vld [vmem:[%s4622_s11 + $0x1f0] sm:$0xff] }
  0x78   : > { %1153 = vmatmul.mubr.bf16.vlgmr.msra.gmra.mrb[8].mxu0 %v552_v33  ;;  %1193 = vmatmul.mubr.bf16.vlgmr.msra.gmra.mrb[8].mxu1 %v554_v37  ;;  %v366_v33 = vld [vmem:[%s4620_s10 + $0x30] sm:$0xff] }
  0x79   : > { %1201 = vmatpush1.bf16.xpose.msra.mxu0 %v4139_v38  ;;  %1241 = vmatpush1.bf16.xpose.msra.mxu1 %v4141_v39  ;;  %v605_v37 = vld [vmem:[%s4622_s11 + $0xe8] sm:$0xff]  ;;  %v478_v38 = vcombine.high %v366_v33, %v366_v33  ;;  %v4179_v39 = vcombine.low %v618_v18, %v634_v19 }
  0x7a   : > { %1202 = vmatprep.subr.bf16.mxu0 %v4172_v40  ;;  %1242 = vmatprep.subr.bf16.mxu1 %v4174_v41  ;;  %v4181_v40 = vcombine.low %v619_v23, %v635_v24  ;;  %v4152_v41 = vcombine.high %v588_v34, %v604_v35  ;;  %v4153_v54 = vcombine.low %v589_v36, %v605_v37 }
  0x7b   : > { %1232 = vmatprep.mubr.bf16.mxu0 %v557_v42  ;;  %1272 = vmatprep.mubr.bf16.mxu1 %v559_v43  ;;  %v4154_v42 = vcombine.high %v589_v36, %v605_v37  ;;  %v485_v43 = vrot.slane %v366_v33, %v4634_v22  ;;  %v492_v44 = vrot.slane %v478_v38, %v4634_v22 }
  0x7d   : > { %v493_v47 = vcombine.high %v485_v43, %v485_v43  ;;  %v568_v10 = vpack.c.bf16 %v485_v43, %v485_v43 }
  0x7f   : > { %v569_v57 = vpack.c.bf16 %v493_v47, %v493_v47 }
  0x81   : > { %1203 = vmatpush1.bf16.xpose.msra.mxu0 %v4171_v50  ;;  %1243 = vmatpush1.bf16.xpose.msra.mxu1 %v4173_v51  ;;  %v637_v50 = vld [vmem:[%s4622_s11 + $0x1e8] sm:$0xff]  ;;  %v494_v51 = vcombine.high %v492_v44, %v492_v44 }
  0x82   : > { %1280 = vmatprep.subr.bf16.mxu0 %v4144_v52  ;;  %1320 = vmatprep.subr.bf16.mxu1 %v4146_v53  ;;  %v566_v52 = vpack.c.bf16 %v475_v17, %v475_v17  ;;  %v4151_v53 = vcombine.low %v588_v34, %v604_v35  ;;  %v4186_v56 = vcombine.high %v621_v49, %v637_v50 }
  0x83   : > { %v571_v58 = vpack.c.bf16 %v494_v51, %v494_v51  ;;  %v4188_v17 = vcombine.high %v622_v7, %v638_v8 }
  0x88   : > { %1233 = vmatmul.mubr.bf16.vlgmr.msra.gmra.mrb[12].mxu0 %v556_v59  ;;  %1273 = vmatmul.mubr.bf16.vlgmr.msra.gmra.mrb[12].mxu1 %v558_v63  ;;  %v367_v59 = vld [vmem:[%s4620_s10 + $0x38] sm:$0xff] }
  0x89   : > { %1281 = vmatpush1.bf16.xpose.msra.mxu0 %v4143_v0  ;;  %1321 = vmatpush1.bf16.xpose.msra.mxu1 %v4145_v1  ;;  %v607_v63 = vld [vmem:[%s4622_s11 + $0xf8] sm:$0xff]  ;;  %v495_v0 = vcombine.high %v367_v59, %v367_v59  ;;  %v4183_v1 = vcombine.low %v620_v45, %v636_v46 }
  0x8a   : > { %1282 = vmatprep.subr.bf16.mxu0 %v4176_v2  ;;  %1322 = vmatprep.subr.bf16.mxu1 %v4178_v3  ;;  %v4185_v2 = vcombine.low %v621_v49, %v637_v50  ;;  %v4156_v3 = vcombine.high %v590_v60, %v606_v61  ;;  %v4157_v16 = vcombine.low %v591_v62, %v607_v63 }
  0x8b   : > { %1312 = vmatprep.mubr.bf16.mxu0 %v561_v4  ;;  %1352 = vmatprep.mubr.bf16.mxu1 %v563_v5  ;;  %v4158_v4 = vcombine.high %v591_v62, %v607_v63  ;;  %v502_v5 = vrot.slane %v367_v59, %v4634_v22  ;;  %v509_v6 = vrot.slane %v495_v0, %v4634_v22 }
  0x8d   : > { %v510_v9 = vcombine.high %v502_v5, %v502_v5  ;;  %v572_v24 = vpack.c.bf16 %v502_v5, %v502_v5  ;;  %v574_v25 = vpack.c.bf16 %v509_v6, %v509_v6 }
  0x8f   : > { %v573_v19 = vpack.c.bf16 %v510_v9, %v510_v9 }
  0x91   : > { %1283 = vmatpush1.bf16.xpose.msra.mxu0 %v4175_v12  ;;  %1323 = vmatpush1.bf16.xpose.msra.mxu1 %v4177_v13  ;;  %v639_v12 = vld [vmem:[%s4622_s11 + $0x1f8] sm:$0xff]  ;;  %v511_v13 = vcombine.high %v509_v6, %v509_v6 }
  0x92   : > { %1360 = vmatprep.subr.bf16.mxu0 %v4148_v14  ;;  %1400 = vmatprep.subr.bf16.mxu1 %v4150_v15  ;;  %v570_v14 = vpack.c.bf16 %v492_v44, %v492_v44  ;;  %v4155_v15 = vcombine.low %v590_v60, %v606_v61  ;;  %v4190_v18 = vcombine.high %v623_v11, %v639_v12 }
  0x93   : > { %v575_v20 = vpack.c.bf16 %v511_v13, %v511_v13  ;;  %v4189_v23 = vcombine.low %v623_v11, %v639_v12 }
  0x98   : > { %1313 = vmatmul.mubr.bf16.vlgmr.msra.gmra.mrb[16].mxu0 %v560_v21  ;;  %1353 = vmatmul.mubr.bf16.vlgmr.msra.gmra.mrb[16].mxu1 %v562_v26  ;;  %v4187_v21 = vcombine.low %v622_v7, %v638_v8 }
  0x99   : > { %1361 = vmatpush1.bf16.xpose.msra.mxu0 %v4147_v27  ;;  %1401 = vmatpush1.bf16.xpose.msra.mxu1 %v4149_v28 }
  0x9a   : > { %1362 = vmatprep.subr.bf16.mxu0 %v4180_v29  ;;  %1402 = vmatprep.subr.bf16.mxu1 %v4182_v30 }
  0x9b   : > { %1392 = vmatprep.mubr.bf16.mxu0 %v565_v31  ;;  %1432 = vmatprep.mubr.bf16.mxu1 %v567_v32 }
  0xa1   : > { %1363 = vmatpush1.bf16.xpose.msra.mxu0 %v4179_v39  ;;  %1403 = vmatpush1.bf16.xpose.msra.mxu1 %v4181_v40 }
  0xa2   : > { %1440 = vmatprep.subr.bf16.mxu0 %v4152_v41  ;;  %1480 = vmatprep.subr.bf16.mxu1 %v4154_v42 }
  0xa8   : > { %1393 = vmatmul.mubr.bf16.vlgmr.msra.gmra.mrb[20].mxu0 %v564_v48  ;;  %1433 = vmatmul.mubr.bf16.vlgmr.msra.gmra.mrb[20].mxu1 %v566_v52 }
  0xa9   : > { %1441 = vmatpush1.bf16.xpose.msra.mxu0 %v4151_v53  ;;  %1481 = vmatpush1.bf16.xpose.msra.mxu1 %v4153_v54 }
  0xaa   : > { %1442 = vmatprep.subr.bf16.mxu0 %v4184_v55  ;;  %1482 = vmatprep.subr.bf16.mxu1 %v4186_v56 }
  0xab   : > { %1472 = vmatprep.mubr.bf16.mxu0 %v569_v57  ;;  %1512 = vmatprep.mubr.bf16.mxu1 %v571_v58 }
  0xb1   : > { %1443 = vmatpush1.bf16.xpose.msra.mxu0 %v4183_v1  ;;  %1483 = vmatpush1.bf16.xpose.msra.mxu1 %v4185_v2 }
  0xb2   : > { %1520 = vmatprep.subr.bf16.mxu0 %v4156_v3  ;;  %1560 = vmatprep.subr.bf16.mxu1 %v4158_v4 }
  0xb8   : > { %1473 = vmatmul.mubr.bf16.vlgmr.msra.gmra.mrb[24].mxu0 %v568_v10  ;;  %1513 = vmatmul.mubr.bf16.vlgmr.msra.gmra.mrb[24].mxu1 %v570_v14 }
  0xb9   : > { %1521 = vmatpush1.bf16.xpose.msra.mxu0 %v4155_v15  ;;  %1561 = vmatpush1.bf16.xpose.msra.mxu1 %v4157_v16 }
  0xba   : > { %1522 = vmatprep.subr.bf16.mxu0 %v4188_v17  ;;  %1562 = vmatprep.subr.bf16.mxu1 %v4190_v18 }
  0xbb   : > { %1552 = vmatprep.mubr.bf16.mxu0 %v573_v19  ;;  %1592 = vmatprep.mubr.bf16.mxu1 %v575_v20 }
  0xc1   : > { %1523 = vmatpush1.bf16.xpose.msra.mxu0 %v4187_v21  ;;  %1563 = vmatpush1.bf16.xpose.msra.mxu1 %v4189_v23 }
  0xc8   : > { %1553 = vmatmul.mubr.bf16.vlgmr.msra.gmra.mrb[28].mxu0 %v572_v24  ;;  %1593 = vmatmul.mubr.bf16.vlgmr.msra.gmra.mrb[28].mxu1 %v574_v25 }
 0x12b   : > { %v994_v26 = vpop.f32.mrb[0].mxu0  ;;  %v1034_v27 = vpop.f32.mrb[0].mxu1 }
 0x12c   : > { %v996_v28 = vpop.f32.mrb[1].mxu0  ;;  %v1035_v29 = vadd.f32 %v1034_v27, %v994_v26  ;;  %v1036_v30 = vpop.f32.mrb[1].mxu1 }
 0x12d   : > { %v997_v31 = vpop.f32.mrb[2].mxu0  ;;  %v1037_v32 = vpop.f32.mrb[2].mxu1 }
 0x12e   : > { %v998_v33 = vpop.f32.mrb[3].mxu0  ;;  %v1038_v34 = vpop.f32.mrb[3].mxu1 }
 0x13b   : > { %v1074_v35 = vpop.f32.mrb[4].mxu0  ;;  %v1114_v37 = vpop.f32.mrb[4].mxu1 }
 0x13c   : > { %v1075_v36 = vadd.f32 %v1074_v35, %v1035_v29  ;;  %v1076_v38 = vpop.f32.mrb[5].mxu0  ;;  %v1116_v39 = vpop.f32.mrb[5].mxu1 }
 0x13d   : > { %v1077_v40 = vpop.f32.mrb[6].mxu0  ;;  %v1117_v42 = vpop.f32.mrb[6].mxu1 }
 0x13e   : > { %v1115_v41 = vadd.f32 %v1114_v37, %v1075_v36  ;;  %v1078_v43 = vpop.f32.mrb[7].mxu0  ;;  %v1118_v44 = vpop.f32.mrb[7].mxu1  ;;  %v359_v36 = vld [vmem:[#allocation2] sm:$0x3] }
 0x13f   : > { %v1618_v44 = vld [vmem:[%s5294_s3] sm:$0xff] (!%p4191_p10) }
 0x14b   : > { %v1154_v45 = vpop.f32.mrb[8].mxu0  ;;  %v1194_v47 = vpop.f32.mrb[8].mxu1 }
 0x14c   : > { %v1155_v46 = vadd.f32 %v1154_v45, %v1115_v41  ;;  %v1156_v48 = vpop.f32.mrb[9].mxu0  ;;  %v1196_v49 = vpop.f32.mrb[9].mxu1  ;;  %v1650_v45 = vld [vmem:[%s5294_s3 + $0x100] sm:$0xff] (!%p4191_p10) }
 0x14d   : > { %v1157_v50 = vpop.f32.mrb[10].mxu0  ;;  %v1197_v52 = vpop.f32.mrb[10].mxu1  ;;  %v1651_v48 = vld [vmem:[%s5294_s3 + $0x108] sm:$0xff] (!%p4191_p10)  ;;  %v4193_v49 = vcombine.low (!%p4191_p10), %v1618_v44, %v1650_v45 }
 0x14e   : > { %v1195_v51 = vadd.f32 %v1194_v47, %v1155_v46  ;;  %v1158_v53 = vpop.f32.mrb[11].mxu0  ;;  %v1198_v54 = vpop.f32.mrb[11].mxu1  ;;  %v1619_v46 = vld [vmem:[%s5294_s3 + $0x8] sm:$0xff] (!%p4191_p10)  ;;  %v4194_v47 = vcombine.high (!%p4191_p10), %v1618_v44, %v1650_v45  ;;  %v1682_v50 = vld [vmem:[%s5294_s3 + $0x200] sm:$0xff] (!%p4191_p10)  ;;  %v4419_v52 = vmov (!%p4191_p10), 0   ;;  %v1721_v44 = vld [vmem:[%s5294_s3 + $0x338] sm:$0xff] (!%p4191_p10) }
 0x14f   : > { %2422 = vmatprep.mubr.bf16.mxu0 (!%p4191_p10), %v4419_v52  ;;  %2463 = vmatprep.mubr.bf16.mxu1 (!%p4191_p10), %v4419_v52  ;;  %v4196_v53 = vcombine.high (!%p4191_p10), %v1619_v46, %v1651_v48  ;;  %v4195_v54 = vcombine.low (!%p4191_p10), %v1619_v46, %v1651_v48 }
 0x150   : > { %2390 = vmatprep.subr.bf16.mxu0 (!%p4191_p10), %v4194_v47 }
 0x151   : > { %2431 = vmatprep.subr.bf16.mxu1 (!%p4191_p10), %v4196_v53  ;;  %2391 = vmatpush1.bf16.msra.mxu0 (!%p4191_p10), %v4193_v49  ;;  %v1626_v49 = vld [vmem:[%s5294_s3 + $0x40] sm:$0xff] (!%p4191_p10)  ;;  %v1659_v53 = vld [vmem:[%s5294_s3 + $0x148] sm:$0xff] (!%p4191_p10) }
 0x152   : > { %2432 = vmatpush1.bf16.msra.mxu1 (!%p4191_p10), %v4195_v54 }
 0x15b   : > { %v1234_v55 = vpop.f32.mrb[12].mxu0  ;;  %v1274_v57 = vpop.f32.mrb[12].mxu1 }
 0x15c   : > { %v1235_v56 = vadd.f32 %v1234_v55, %v1195_v51  ;;  %v1236_v58 = vpop.f32.mrb[13].mxu0  ;;  %v1276_v59 = vpop.f32.mrb[13].mxu1  ;;  %v1714_v51 = vld [vmem:[%s5294_s3 + $0x300] sm:$0xff] (!%p4191_p10) }
 0x15d   : > { %v1237_v60 = vpop.f32.mrb[14].mxu0  ;;  %v1277_v62 = vpop.f32.mrb[14].mxu1  ;;  %v4258_v55 = vcombine.high (!%p4191_p10), %v1682_v50, %v1714_v51  ;;  %v1620_v58 = vld [vmem:[%s5294_s3 + $0x10] sm:$0xff] (!%p4191_p10) }
 0x15e   : > { %v1275_v61 = vadd.f32 %v1274_v57, %v1235_v56  ;;  %v1238_v63 = vpop.f32.mrb[15].mxu0  ;;  %v1278_v0 = vpop.f32.mrb[15].mxu1  ;;  %v1683_v56 = vld [vmem:[%s5294_s3 + $0x208] sm:$0xff] (!%p4191_p10)  ;;  %v1652_v60 = vld [vmem:[%s5294_s3 + $0x110] sm:$0xff] (!%p4191_p10)  ;;  %v1653_v62 = vld [vmem:[%s5294_s3 + $0x118] sm:$0xff] (!%p4191_p10) }
 0x15f   : > { %v1715_v57 = vld [vmem:[%s5294_s3 + $0x308] sm:$0xff] (!%p4191_p10)  ;;  %v4257_v63 = vcombine.low (!%p4191_p10), %v1682_v50, %v1714_v51  ;;  %2392 = vmatprep.subr.bf16.mxu0 (!%p4191_p10), %v4258_v55  ;;  %v1658_v50 = vld [vmem:[%s5294_s3 + $0x140] sm:$0xff] (!%p4191_p10) }
 0x160   : > { %v4260_v59 = vcombine.high (!%p4191_p10), %v1683_v56, %v1715_v57  ;;  %v1627_v51 = vld [vmem:[%s5294_s3 + $0x48] sm:$0xff] (!%p4191_p10) }
 0x161   : > { %2393 = vmatpush1.bf16.msra.mxu0 (!%p4191_p10), %v4257_v63  ;;  %v4211_v63 = vcombine.low (!%p4191_p10), %v1627_v51, %v1659_v53 }
 0x162   : > { %2433 = vmatprep.subr.bf16.mxu1 (!%p4191_p10), %v4260_v59  ;;  %v1722_v59 = vld [vmem:[%s5294_s3 + $0x340] sm:$0xff] (!%p4191_p10) }
 0x16b   : > { %v1314_v1 = vpop.f32.mrb[16].mxu0  ;;  %v1354_v3 = vpop.f32.mrb[16].mxu1 }
 0x16c   : > { %v1315_v2 = vadd.f32 %v1314_v1, %v1275_v61  ;;  %v1316_v4 = vpop.f32.mrb[17].mxu0  ;;  %v1356_v5 = vpop.f32.mrb[17].mxu1  ;;  %v1621_v61 = vld [vmem:[%s5294_s3 + $0x18] sm:$0xff] (!%p4191_p10)  ;;  %v4192_v1 = vld [vmem:[%s5293_s2] ss:$0 sm:$0xff] (!%p4191_p10) }
 0x16d   : > { %v1317_v6 = vpop.f32.mrb[18].mxu0  ;;  %v1357_v8 = vpop.f32.mrb[18].mxu1  ;;  %v4200_v5 = vcombine.high (!%p4191_p10), %v1621_v61, %v1653_v62 }
 0x16e   : > { %v1355_v7 = vadd.f32 %v1354_v3, %v1315_v2  ;;  %v1318_v9 = vpop.f32.mrb[19].mxu0  ;;  %v1358_v10 = vpop.f32.mrb[19].mxu1  ;;  %v4259_v2 = vcombine.low (!%p4191_p10), %v1683_v56, %v1715_v57  ;;  %v4198_v3 = vcombine.high (!%p4191_p10), %v1620_v58, %v1652_v60  ;;  %v1684_v6 = vld [vmem:[%s5294_s3 + $0x210] sm:$0xff] (!%p4191_p10)  ;;  %v1685_v8 = vld [vmem:[%s5294_s3 + $0x218] sm:$0xff] (!%p4191_p10)  ;;  %v4210_v56 = vcombine.high (!%p4191_p10), %v1626_v49, %v1658_v50 }
 0x16f   : > { %v1717_v9 = vld [vmem:[%s5294_s3 + $0x318] sm:$0xff] (!%p4191_p10)  ;;  %v4212_v57 = vcombine.high (!%p4191_p10), %v1627_v51, %v1659_v53  ;;  %v1634_v53 = vld [vmem:[%s5294_s3 + $0x80] sm:$0xff] (!%p4191_p10) }
 0x170   : > { %2434 = vmatpush1.bf16.msra.mxu1 (!%p4191_p10), %v4259_v2  ;;  %2472 = vmatprep.subr.bf16.mxu0 (!%p4191_p10), %v4198_v3  ;;  %v1628_v2 = vld [vmem:[%s5294_s3 + $0x50] sm:$0xff] (!%p4191_p10) }
 0x171   : > { %2513 = vmatprep.subr.bf16.mxu1 (!%p4191_p10), %v4200_v5  ;;  %v1660_v3 = vld [vmem:[%s5294_s3 + $0x150] sm:$0xff] (!%p4191_p10)  ;;  %v1661_v5 = vld [vmem:[%s5294_s3 + $0x158] sm:$0xff] (!%p4191_p10) }
 0x17b   : > { %v1394_v11 = vpop.f32.mrb[20].mxu0  ;;  %v1434_v13 = vpop.f32.mrb[20].mxu1 }
 0x17c   : > { %v1395_v12 = vadd.f32 %v1394_v11, %v1355_v7  ;;  %v1396_v14 = vpop.f32.mrb[21].mxu0  ;;  %v1436_v15 = vpop.f32.mrb[21].mxu1  ;;  %v1716_v7 = vld [vmem:[%s5294_s3 + $0x310] sm:$0xff] (!%p4191_p10)  ;;  %v4197_v11 = vcombine.low (!%p4191_p10), %v1620_v58, %v1652_v60  ;;  %v1690_v58 = vld [vmem:[%s5294_s3 + $0x240] sm:$0xff] (!%p4191_p10)  ;;  %v1691_v60 = vld [vmem:[%s5294_s3 + $0x248] sm:$0xff] (!%p4191_p10) }
 0x17d   : > { %v1397_v16 = vpop.f32.mrb[22].mxu0  ;;  %v1437_v18 = vpop.f32.mrb[22].mxu1  ;;  %v4262_v14 = vcombine.high (!%p4191_p10), %v1684_v6, %v1716_v7  ;;  %v4264_v15 = vcombine.high (!%p4191_p10), %v1685_v8, %v1717_v9 }
 0x17e   : > { %v1435_v17 = vadd.f32 %v1434_v13, %v1395_v12  ;;  %v1398_v19 = vpop.f32.mrb[23].mxu0  ;;  %v1438_v20 = vpop.f32.mrb[23].mxu1  ;;  %v4199_v12 = vcombine.low (!%p4191_p10), %v1621_v61, %v1653_v62  ;;  %v1622_v16 = vld [vmem:[%s5294_s3 + $0x20] sm:$0xff] (!%p4191_p10)  ;;  %v1623_v18 = vld [vmem:[%s5294_s3 + $0x28] sm:$0xff] (!%p4191_p10)  ;;  %v4209_v62 = vcombine.low (!%p4191_p10), %v1626_v49, %v1658_v50 }
 0x17f   : > { %v1655_v19 = vld [vmem:[%s5294_s3 + $0x128] sm:$0xff] (!%p4191_p10)  ;;  %v4261_v20 = vcombine.low (!%p4191_p10), %v1684_v6, %v1716_v7  ;;  %v4273_v6 = vcombine.low (!%p4191_p10), %v1690_v58, %v1722_v59 }
 0x180   : > { %v1723_v61 = vld [vmem:[%s5294_s3 + $0x348] sm:$0xff] (!%p4191_p10) }
 0x181   : > { %v4275_v7 = vcombine.low (!%p4191_p10), %v1691_v60, %v1723_v61 }
 0x18b   : > { %v1474_v21 = vpop.f32.mrb[24].mxu0  ;;  %v1514_v24 = vpop.f32.mrb[24].mxu1 }
 0x18c   : > { %v1475_v23 = vadd.f32 %v1474_v21, %v1435_v17  ;;  %v1476_v25 = vpop.f32.mrb[25].mxu0  ;;  %v1516_v26 = vpop.f32.mrb[25].mxu1  ;;  %v1654_v17 = vld [vmem:[%s5294_s3 + $0x120] sm:$0xff] (!%p4191_p10)  ;;  %v4263_v21 = vcombine.low (!%p4191_p10), %v1685_v8, %v1717_v9  ;;  %v4214_v8 = vcombine.high (!%p4191_p10), %v1628_v2, %v1660_v3 }
 0x18d   : > { %v1477_v27 = vpop.f32.mrb[26].mxu0  ;;  %v1517_v29 = vpop.f32.mrb[26].mxu1  ;;  %v1686_v25 = vld [vmem:[%s5294_s3 + $0x220] sm:$0xff] (!%p4191_p10) }
 0x18e   : > { %v1515_v28 = vadd.f32 %v1514_v24, %v1475_v23  ;;  %v1478_v30 = vpop.f32.mrb[27].mxu0  ;;  %v1518_v31 = vpop.f32.mrb[27].mxu1  ;;  %v4202_v23 = vcombine.high (!%p4191_p10), %v1622_v16, %v1654_v17  ;;  %v4204_v24 = vcombine.high (!%p4191_p10), %v1623_v18, %v1655_v19  ;;  %v1718_v26 = vld [vmem:[%s5294_s3 + $0x320] sm:$0xff] (!%p4191_p10)  ;;  %v1687_v27 = vld [vmem:[%s5294_s3 + $0x228] sm:$0xff] (!%p4191_p10)  ;;  %v4201_v29 = vcombine.low (!%p4191_p10), %v1622_v16, %v1654_v17 }
 0x18f   : > { %v4203_v30 = vcombine.low (!%p4191_p10), %v1623_v18, %v1655_v19  ;;  %v4266_v31 = vcombine.high (!%p4191_p10), %v1686_v25, %v1718_v26  ;;  %v1630_v19 = vld [vmem:[%s5294_s3 + $0x60] sm:$0xff] (!%p4191_p10) }
 0x19b   : > { %v1554_v32 = vpop.f32.mrb[28].mxu0  ;;  %v1594_v34 = vpop.f32.mrb[28].mxu1 }
 0x19c   : > { %v1555_v33 = vadd.f32 %v1554_v32, %v1515_v28  ;;  %v1556_v35 = vpop.f32.mrb[29].mxu0  ;;  %v1596_v37 = vpop.f32.mrb[29].mxu1  ;;  %1606 = sbr.rel (%p4191_p10) target bundleno = 781 (0x30d), region = 67  ;;  %v1719_v28 = vld [vmem:[%s5294_s3 + $0x328] sm:$0xff] (!%p4191_p10) }
 0x19d   : > { %v1557_v38 = vpop.f32.mrb[30].mxu0  ;;  %v1597_v40 = vpop.f32.mrb[30].mxu1  ;;  %v4268_v32 = vcombine.high (!%p4191_p10), %v1687_v27, %v1719_v28  ;;  %v1625_v35 = vld [vmem:[%s5294_s3 + $0x38] sm:$0xff] (!%p4191_p10)  ;;  %v4265_v37 = vcombine.low (!%p4191_p10), %v1686_v25, %v1718_v26 }
 0x19e   : > { %v1595_v39 = vadd.f32 %v1594_v34, %v1555_v33  ;;  %v1558_v41 = vpop.f32.mrb[31].mxu0  ;;  %v1598_v42 = vpop.f32.mrb[31].mxu1  ;;  %v1624_v33 = vld [vmem:[%s5294_s3 + $0x30] sm:$0xff] (!%p4191_p10)  ;;  %v4267_v38 = vcombine.low (!%p4191_p10), %v1687_v27, %v1719_v28  ;;  %v1694_v28 = vld [vmem:[%s5294_s3 + $0x260] sm:$0xff] (!%p4191_p10) }
 0x19f   : > { %v1656_v34 = vld [vmem:[%s5294_s3 + $0x130] sm:$0xff] (!%p4191_p10) }
 0x1a0   : > { %v1600_v43 = vadd.f32 %v1595_v39, %v359_v36  ;;  %v1657_v36 = vld [vmem:[%s5294_s3 + $0x138] sm:$0xff] (!%p4191_p10)  ;;  %v4206_v39 = vcombine.high (!%p4191_p10), %v1624_v33, %v1656_v34  ;;  %v1688_v41 = vld [vmem:[%s5294_s3 + $0x230] sm:$0xff] (!%p4191_p10)  ;;  %v4205_v45 = vcombine.low (!%p4191_p10), %v1624_v33, %v1656_v34 }
 0x1a1   : > { %v4208_v40 = vcombine.high (!%p4191_p10), %v1625_v35, %v1657_v36  ;;  %v1720_v42 = vld [vmem:[%s5294_s3 + $0x330] sm:$0xff] (!%p4191_p10)  ;;  %v4207_v46 = vcombine.low (!%p4191_p10), %v1625_v35, %v1657_v36 }
 0x1a2   : > { %1602 = vst.msk [vmem:[#allocation2] sm:$0x3] %vm1601_vm1, %v1600_v43  ;;  %v1689_v43 = vld [vmem:[%s5294_s3 + $0x238] sm:$0xff] (!%p4191_p10)  ;;  %v4270_v47 = vcombine.high (!%p4191_p10), %v1688_v41, %v1720_v42  ;;  %v4269_v54 = vcombine.low (!%p4191_p10), %v1688_v41, %v1720_v42  ;;  %v1632_v36 = vld [vmem:[%s5294_s3 + $0x70] sm:$0xff] (!%p4191_p10) }
 0x1a3   : > { %v4272_v48 = vcombine.high %v1689_v43, %v1721_v44  ;;  %v4271_v55 = vcombine.low %v1689_v43, %v1721_v44  ;;  %v1696_v44 = vld [vmem:[%s5294_s3 + $0x270] sm:$0xff] }
 0x1a9   : > { %v1607_v0 = vld [vmem:[#allocation2] sm:$0x3] }
 0x1aa   : > { %v1615_v4 = vadd.f32 %v4192_v1, %v1607_v0  ;;  %v4274_v0 = vcombine.high %v1690_v58, %v1722_v59  ;;  %v4276_v1 = vcombine.high %v1691_v60, %v1723_v61  ;;  %v1698_v61 = vld [vmem:[%s5294_s3 + $0x280] sm:$0xff] }
 0x1ac   : > { %4391 = vtanh.f32 %v1615_v4  ;;  %v1629_v4 = vld [vmem:[%s5294_s3 + $0x58] sm:$0xff] }
 0x1ad   : > { %v4216_v9 = vcombine.high %v1629_v4, %v1661_v5  ;;  %v4215_v16 = vcombine.low %v1629_v4, %v1661_v5  ;;  %v1636_v5 = vld [vmem:[%s5294_s3 + $0x90] sm:$0xff] }
 0x1b6   : > { %v4392_v10 = vpop.eup %4391 }
 0x1b7   : > { %v4769_v13 = vpack.c.bf16 %v4392_v10, %v4392_v10  ;;  %v1692_v10 = vld [vmem:[%s5294_s3 + $0x250] sm:$0xff] }
 0x1b9   : > { %4321 = vmatmul.mubr.msk.bf16.vlgmr.msra.gmra.mrb[0].mxu0 %vm2386_vm2, %v4769_v13  ;;  %4322 = vmatmul.mubr.msk.bf16.vlgmr.msra.gmra.mrb[0].mxu1 %vm2386_vm2, %v4769_v13 }
 0x1ba   : > { %2473 = vmatpush1.bf16.msra.mxu0 %v4197_v11  ;;  %2514 = vmatpush1.bf16.msra.mxu1 %v4199_v12  ;;  %v1724_v11 = vld [vmem:[%s5294_s3 + $0x350] sm:$0xff]  ;;  %v1693_v12 = vld [vmem:[%s5294_s3 + $0x258] sm:$0xff] }
 0x1bb   : > { %2474 = vmatprep.subr.bf16.mxu0 %v4262_v14  ;;  %2515 = vmatprep.subr.bf16.mxu1 %v4264_v15  ;;  %v1725_v14 = vld [vmem:[%s5294_s3 + $0x358] sm:$0xff]  ;;  %v4213_v15 = vcombine.low %v1628_v2, %v1660_v3  ;;  %v4278_v17 = vcombine.high %v1692_v10, %v1724_v11 }
 0x1bc   : > { %2504 = vmatprep.mubr.bf16.mxu0 %v4419_v52  ;;  %2545 = vmatprep.mubr.bf16.mxu1 %v4419_v52  ;;  %v4280_v18 = vcombine.high %v1693_v12, %v1725_v14  ;;  %v4279_v25 = vcombine.low %v1693_v12, %v1725_v14  ;;  %v1700_v14 = vld [vmem:[%s5294_s3 + $0x290] sm:$0xff] }
 0x1be   : > { %2475 = vmatpush1.bf16.msra.mxu0 %v4261_v20  ;;  %2516 = vmatpush1.bf16.msra.mxu1 %v4263_v21  ;;  %v1662_v20 = vld [vmem:[%s5294_s3 + $0x160] sm:$0xff]  ;;  %v1631_v21 = vld [vmem:[%s5294_s3 + $0x68] sm:$0xff] }
 0x1bf   : > { %2554 = vmatprep.subr.bf16.mxu0 %v4202_v23  ;;  %2595 = vmatprep.subr.bf16.mxu1 %v4204_v24  ;;  %v1663_v23 = vld [vmem:[%s5294_s3 + $0x168] sm:$0xff]  ;;  %v4277_v24 = vcombine.low %v1692_v10, %v1724_v11  ;;  %v4218_v26 = vcombine.high %v1630_v19, %v1662_v20 }
 0x1c0   : > { %v4220_v27 = vcombine.high %v1631_v21, %v1663_v23  ;;  %v4219_v33 = vcombine.low %v1631_v21, %v1663_v23  ;;  %v1638_v23 = vld [vmem:[%s5294_s3 + $0xa0] sm:$0xff] }
 0x1c1   : > { %4323 = vmatmul.mubr.msk.bf16.vlgmr.msra.gmra.mrb[4].mxu0 %vm2386_vm2, %v4769_v13  ;;  %4324 = vmatmul.mubr.msk.bf16.vlgmr.msra.gmra.mrb[4].mxu1 %vm2386_vm2, %v4769_v13 }
 0x1c2   : > { %2555 = vmatpush1.bf16.msra.mxu0 %v4201_v29  ;;  %2596 = vmatpush1.bf16.msra.mxu1 %v4203_v30  ;;  %v1726_v29 = vld [vmem:[%s5294_s3 + $0x360] sm:$0xff]  ;;  %v1695_v30 = vld [vmem:[%s5294_s3 + $0x268] sm:$0xff] }
 0x1c3   : > { %2556 = vmatprep.subr.bf16.mxu0 %v4266_v31  ;;  %2597 = vmatprep.subr.bf16.mxu1 %v4268_v32  ;;  %v1727_v31 = vld [vmem:[%s5294_s3 + $0x368] sm:$0xff]  ;;  %v4217_v32 = vcombine.low %v1630_v19, %v1662_v20  ;;  %v4282_v34 = vcombine.high %v1694_v28, %v1726_v29 }
 0x1c4   : > { %2586 = vmatprep.mubr.bf16.mxu0 %v4419_v52  ;;  %2627 = vmatprep.mubr.bf16.mxu1 %v4419_v52  ;;  %v4284_v35 = vcombine.high %v1695_v30, %v1727_v31  ;;  %v4283_v41 = vcombine.low %v1695_v30, %v1727_v31  ;;  %v1702_v31 = vld [vmem:[%s5294_s3 + $0x2a0] sm:$0xff] }
 0x1c6   : > { %2557 = vmatpush1.bf16.msra.mxu0 %v4265_v37  ;;  %2598 = vmatpush1.bf16.msra.mxu1 %v4267_v38  ;;  %v1664_v37 = vld [vmem:[%s5294_s3 + $0x170] sm:$0xff]  ;;  %v1633_v38 = vld [vmem:[%s5294_s3 + $0x78] sm:$0xff] }
 0x1c7   : > { %2636 = vmatprep.subr.bf16.mxu0 %v4206_v39  ;;  %2677 = vmatprep.subr.bf16.mxu1 %v4208_v40  ;;  %v1665_v39 = vld [vmem:[%s5294_s3 + $0x178] sm:$0xff]  ;;  %v4281_v40 = vcombine.low %v1694_v28, %v1726_v29  ;;  %v4222_v42 = vcombine.high %v1632_v36, %v1664_v37 }
 0x1c8   : > { %v4224_v43 = vcombine.high %v1633_v38, %v1665_v39  ;;  %v4223_v49 = vcombine.low %v1633_v38, %v1665_v39  ;;  %v1640_v39 = vld [vmem:[%s5294_s3 + $0xb0] sm:$0xff] }
 0x1c9   : > { %4325 = vmatmul.mubr.msk.bf16.vlgmr.msra.gmra.mrb[8].mxu0 %vm2386_vm2, %v4769_v13  ;;  %4326 = vmatmul.mubr.msk.bf16.vlgmr.msra.gmra.mrb[8].mxu1 %vm2386_vm2, %v4769_v13 }
 0x1ca   : > { %2637 = vmatpush1.bf16.msra.mxu0 %v4205_v45  ;;  %2678 = vmatpush1.bf16.msra.mxu1 %v4207_v46  ;;  %v1728_v45 = vld [vmem:[%s5294_s3 + $0x370] sm:$0xff]  ;;  %v1697_v46 = vld [vmem:[%s5294_s3 + $0x278] sm:$0xff] }
 0x1cb   : > { %2638 = vmatprep.subr.bf16.mxu0 %v4270_v47  ;;  %2679 = vmatprep.subr.bf16.mxu1 %v4272_v48  ;;  %v1729_v47 = vld [vmem:[%s5294_s3 + $0x378] sm:$0xff]  ;;  %v4221_v48 = vcombine.low %v1632_v36, %v1664_v37  ;;  %v4286_v50 = vcombine.high %v1696_v44, %v1728_v45 }
 0x1cc   : > { %2668 = vmatprep.mubr.bf16.mxu0 %v4419_v52  ;;  %2709 = vmatprep.mubr.bf16.mxu1 %v4419_v52  ;;  %v4288_v51 = vcombine.high %v1697_v46, %v1729_v47  ;;  %v4287_v58 = vcombine.low %v1697_v46, %v1729_v47  ;;  %v1704_v47 = vld [vmem:[%s5294_s3 + $0x2b0] sm:$0xff] }
 0x1ce   : > { %2639 = vmatpush1.bf16.msra.mxu0 %v4269_v54  ;;  %2680 = vmatpush1.bf16.msra.mxu1 %v4271_v55  ;;  %v1666_v54 = vld [vmem:[%s5294_s3 + $0x180] sm:$0xff]  ;;  %v1635_v55 = vld [vmem:[%s5294_s3 + $0x88] sm:$0xff] }
 0x1cf   : > { %2718 = vmatprep.subr.bf16.mxu0 %v4210_v56  ;;  %2759 = vmatprep.subr.bf16.mxu1 %v4212_v57  ;;  %v1667_v56 = vld [vmem:[%s5294_s3 + $0x188] sm:$0xff]  ;;  %v4285_v57 = vcombine.low %v1696_v44, %v1728_v45  ;;  %v4226_v59 = vcombine.high %v1634_v53, %v1666_v54 }
 0x1d0   : > { %v4228_v60 = vcombine.high %v1635_v55, %v1667_v56  ;;  %v4227_v2 = vcombine.low %v1635_v55, %v1667_v56  ;;  %v1642_v56 = vld [vmem:[%s5294_s3 + $0xc0] sm:$0xff] }
 0x1d1   : > { %4327 = vmatmul.mubr.msk.bf16.vlgmr.msra.gmra.mrb[12].mxu0 %vm2386_vm2, %v4769_v13  ;;  %4328 = vmatmul.mubr.msk.bf16.vlgmr.msra.gmra.mrb[12].mxu1 %vm2386_vm2, %v4769_v13 }
 0x1d2   : > { %2719 = vmatpush1.bf16.msra.mxu0 %v4209_v62  ;;  %2760 = vmatpush1.bf16.msra.mxu1 %v4211_v63  ;;  %v1730_v62 = vld [vmem:[%s5294_s3 + $0x380] sm:$0xff]  ;;  %v1699_v63 = vld [vmem:[%s5294_s3 + $0x288] sm:$0xff] }
 0x1d3   : > { %2720 = vmatprep.subr.bf16.mxu0 %v4274_v0  ;;  %2761 = vmatprep.subr.bf16.mxu1 %v4276_v1  ;;  %v1731_v0 = vld [vmem:[%s5294_s3 + $0x388] sm:$0xff]  ;;  %v4225_v1 = vcombine.low %v1634_v53, %v1666_v54  ;;  %v4290_v3 = vcombine.high %v1698_v61, %v1730_v62 }
 0x1d4   : > { %2750 = vmatprep.mubr.bf16.mxu0 %v4419_v52  ;;  %2791 = vmatprep.mubr.bf16.mxu1 %v4419_v52  ;;  %v4292_v4 = vcombine.high %v1699_v63, %v1731_v0  ;;  %v4291_v10 = vcombine.low %v1699_v63, %v1731_v0  ;;  %v1706_v0 = vld [vmem:[%s5294_s3 + $0x2c0] sm:$0xff] }
 0x1d6   : > { %2721 = vmatpush1.bf16.msra.mxu0 %v4273_v6  ;;  %2762 = vmatpush1.bf16.msra.mxu1 %v4275_v7  ;;  %v1668_v6 = vld [vmem:[%s5294_s3 + $0x190] sm:$0xff]  ;;  %v1637_v7 = vld [vmem:[%s5294_s3 + $0x98] sm:$0xff] }
 0x1d7   : > { %2800 = vmatprep.subr.bf16.mxu0 %v4214_v8  ;;  %2841 = vmatprep.subr.bf16.mxu1 %v4216_v9  ;;  %v1669_v8 = vld [vmem:[%s5294_s3 + $0x198] sm:$0xff]  ;;  %v4289_v9 = vcombine.low %v1698_v61, %v1730_v62  ;;  %v4230_v11 = vcombine.high %v1636_v5, %v1668_v6 }
 0x1d8   : > { %v4232_v12 = vcombine.high %v1637_v7, %v1669_v8  ;;  %v4231_v19 = vcombine.low %v1637_v7, %v1669_v8  ;;  %v1644_v8 = vld [vmem:[%s5294_s3 + $0xd0] sm:$0xff] }
 0x1d9   : > { %4329 = vmatmul.mubr.msk.bf16.vlgmr.msra.gmra.mrb[16].mxu0 %vm2386_vm2, %v4769_v13  ;;  %4330 = vmatmul.mubr.msk.bf16.vlgmr.msra.gmra.mrb[16].mxu1 %vm2386_vm2, %v4769_v13 }
 0x1da   : > { %2801 = vmatpush1.bf16.msra.mxu0 %v4213_v15  ;;  %2842 = vmatpush1.bf16.msra.mxu1 %v4215_v16  ;;  %v1732_v15 = vld [vmem:[%s5294_s3 + $0x390] sm:$0xff]  ;;  %v1701_v16 = vld [vmem:[%s5294_s3 + $0x298] sm:$0xff] }
 0x1db   : > { %2802 = vmatprep.subr.bf16.mxu0 %v4278_v17  ;;  %2843 = vmatprep.subr.bf16.mxu1 %v4280_v18  ;;  %v1733_v17 = vld [vmem:[%s5294_s3 + $0x398] sm:$0xff]  ;;  %v4229_v18 = vcombine.low %v1636_v5, %v1668_v6  ;;  %v4294_v20 = vcombine.high %v1700_v14, %v1732_v15 }
 0x1dc   : > { %2832 = vmatprep.mubr.bf16.mxu0 %v4419_v52  ;;  %2873 = vmatprep.mubr.bf16.mxu1 %v4419_v52  ;;  %v4296_v21 = vcombine.high %v1701_v16, %v1733_v17  ;;  %v4295_v28 = vcombine.low %v1701_v16, %v1733_v17  ;;  %v1708_v17 = vld [vmem:[%s5294_s3 + $0x2d0] sm:$0xff] }
 0x1de   : > { %2803 = vmatpush1.bf16.msra.mxu0 %v4277_v24  ;;  %2844 = vmatpush1.bf16.msra.mxu1 %v4279_v25  ;;  %v1670_v24 = vld [vmem:[%s5294_s3 + $0x1a0] sm:$0xff]  ;;  %v1639_v25 = vld [vmem:[%s5294_s3 + $0xa8] sm:$0xff] }
 0x1df   : > { %2882 = vmatprep.subr.bf16.mxu0 %v4218_v26  ;;  %2923 = vmatprep.subr.bf16.mxu1 %v4220_v27  ;;  %v1671_v26 = vld [vmem:[%s5294_s3 + $0x1a8] sm:$0xff]  ;;  %v4293_v27 = vcombine.low %v1700_v14, %v1732_v15  ;;  %v4234_v29 = vcombine.high %v1638_v23, %v1670_v24 }
 0x1e0   : > { %v4236_v30 = vcombine.high %v1639_v25, %v1671_v26  ;;  %v4235_v36 = vcombine.low %v1639_v25, %v1671_v26  ;;  %v1646_v26 = vld [vmem:[%s5294_s3 + $0xe0] sm:$0xff] }
 0x1e1   : > { %4331 = vmatmul.mubr.msk.bf16.vlgmr.msra.gmra.mrb[20].mxu0 %vm2386_vm2, %v4769_v13  ;;  %4332 = vmatmul.mubr.msk.bf16.vlgmr.msra.gmra.mrb[20].mxu1 %vm2386_vm2, %v4769_v13 }
 0x1e2   : > { %2883 = vmatpush1.bf16.msra.mxu0 %v4217_v32  ;;  %2924 = vmatpush1.bf16.msra.mxu1 %v4219_v33  ;;  %v1734_v32 = vld [vmem:[%s5294_s3 + $0x3a0] sm:$0xff]  ;;  %v1703_v33 = vld [vmem:[%s5294_s3 + $0x2a8] sm:$0xff] }
 0x1e3   : > { %2884 = vmatprep.subr.bf16.mxu0 %v4282_v34  ;;  %2925 = vmatprep.subr.bf16.mxu1 %v4284_v35  ;;  %v1735_v34 = vld [vmem:[%s5294_s3 + $0x3a8] sm:$0xff]  ;;  %v4233_v35 = vcombine.low %v1638_v23, %v1670_v24  ;;  %v4298_v37 = vcombine.high %v1702_v31, %v1734_v32 }
 0x1e4   : > { %2914 = vmatprep.mubr.bf16.mxu0 %v4419_v52  ;;  %2955 = vmatprep.mubr.bf16.mxu1 %v4419_v52  ;;  %v4300_v38 = vcombine.high %v1703_v33, %v1735_v34  ;;  %v4299_v44 = vcombine.low %v1703_v33, %v1735_v34  ;;  %v1710_v34 = vld [vmem:[%s5294_s3 + $0x2e0] sm:$0xff] }
 0x1e6   : > { %2885 = vmatpush1.bf16.msra.mxu0 %v4281_v40  ;;  %2926 = vmatpush1.bf16.msra.mxu1 %v4283_v41  ;;  %v1672_v40 = vld [vmem:[%s5294_s3 + $0x1b0] sm:$0xff]  ;;  %v1641_v41 = vld [vmem:[%s5294_s3 + $0xb8] sm:$0xff] }
 0x1e7   : > { %2964 = vmatprep.subr.bf16.mxu0 %v4222_v42  ;;  %3005 = vmatprep.subr.bf16.mxu1 %v4224_v43  ;;  %v1673_v42 = vld [vmem:[%s5294_s3 + $0x1b8] sm:$0xff]  ;;  %v4297_v43 = vcombine.low %v1702_v31, %v1734_v32  ;;  %v4238_v45 = vcombine.high %v1640_v39, %v1672_v40 }
 0x1e8   : > { %v4240_v46 = vcombine.high %v1641_v41, %v1673_v42  ;;  %v4239_v53 = vcombine.low %v1641_v41, %v1673_v42  ;;  %v1648_v42 = vld [vmem:[%s5294_s3 + $0xf0] sm:$0xff] }
 0x1e9   : > { %4333 = vmatmul.mubr.msk.bf16.vlgmr.msra.gmra.mrb[24].mxu0 %vm2386_vm2, %v4769_v13  ;;  %4334 = vmatmul.mubr.msk.bf16.vlgmr.msra.gmra.mrb[24].mxu1 %vm2386_vm2, %v4769_v13 }
 0x1ea   : > { %2965 = vmatpush1.bf16.msra.mxu0 %v4221_v48  ;;  %3006 = vmatpush1.bf16.msra.mxu1 %v4223_v49  ;;  %v1736_v48 = vld [vmem:[%s5294_s3 + $0x3b0] sm:$0xff]  ;;  %v1705_v49 = vld [vmem:[%s5294_s3 + $0x2b8] sm:$0xff] }
 0x1eb   : > { %2966 = vmatprep.subr.bf16.mxu0 %v4286_v50  ;;  %3007 = vmatprep.subr.bf16.mxu1 %v4288_v51  ;;  %v1737_v50 = vld [vmem:[%s5294_s3 + $0x3b8] sm:$0xff]  ;;  %v4237_v51 = vcombine.low %v1640_v39, %v1672_v40  ;;  %v4302_v54 = vcombine.high %v1704_v47, %v1736_v48 }
 0x1ec   : > { %2996 = vmatprep.mubr.bf16.mxu0 %v4419_v52  ;;  %3037 = vmatprep.mubr.bf16.mxu1 %v4419_v52  ;;  %v4304_v55 = vcombine.high %v1705_v49, %v1737_v50  ;;  %v4303_v61 = vcombine.low %v1705_v49, %v1737_v50  ;;  %v1712_v50 = vld [vmem:[%s5294_s3 + $0x2f0] sm:$0xff] }
 0x1ee   : > { %2967 = vmatpush1.bf16.msra.mxu0 %v4285_v57  ;;  %3008 = vmatpush1.bf16.msra.mxu1 %v4287_v58  ;;  %v1674_v57 = vld [vmem:[%s5294_s3 + $0x1c0] sm:$0xff]  ;;  %v1643_v58 = vld [vmem:[%s5294_s3 + $0xc8] sm:$0xff] }
 0x1ef   : > { %3046 = vmatprep.subr.bf16.mxu0 %v4226_v59  ;;  %3087 = vmatprep.subr.bf16.mxu1 %v4228_v60  ;;  %v1675_v59 = vld [vmem:[%s5294_s3 + $0x1c8] sm:$0xff]  ;;  %v4301_v60 = vcombine.low %v1704_v47, %v1736_v48  ;;  %v4242_v62 = vcombine.high %v1642_v56, %v1674_v57 }
 0x1f0   : > { %v4244_v63 = vcombine.high %v1643_v58, %v1675_v59  ;;  %v4243_v5 = vcombine.low %v1643_v58, %v1675_v59 }
 0x1f1   : > { %4335 = vmatmul.mubr.msk.bf16.vlgmr.msra.gmra.mrb[28].mxu0 %vm2386_vm2, %v4769_v13  ;;  %4336 = vmatmul.mubr.msk.bf16.vlgmr.msra.gmra.mrb[28].mxu1 %vm2386_vm2, %v4769_v13 }
 0x1f2   : > { %3047 = vmatpush1.bf16.msra.mxu0 %v4225_v1  ;;  %3088 = vmatpush1.bf16.msra.mxu1 %v4227_v2  ;;  %v1738_v1 = vld [vmem:[%s5294_s3 + $0x3c0] sm:$0xff]  ;;  %v1707_v2 = vld [vmem:[%s5294_s3 + $0x2c8] sm:$0xff] }
 0x1f3   : > { %3048 = vmatprep.subr.bf16.mxu0 %v4290_v3  ;;  %3089 = vmatprep.subr.bf16.mxu1 %v4292_v4  ;;  %v1739_v3 = vld [vmem:[%s5294_s3 + $0x3c8] sm:$0xff]  ;;  %v4241_v4 = vcombine.low %v1642_v56, %v1674_v57  ;;  %v4306_v6 = vcombine.high %v1706_v0, %v1738_v1 }
 0x1f4   : > { %3078 = vmatprep.mubr.bf16.mxu0 %v4419_v52  ;;  %3119 = vmatprep.mubr.bf16.mxu1 %v4419_v52  ;;  %v4308_v7 = vcombine.high %v1707_v2, %v1739_v3  ;;  %v4307_v14 = vcombine.low %v1707_v2, %v1739_v3 }
 0x1f6   : > { %3049 = vmatpush1.bf16.msra.mxu0 %v4289_v9  ;;  %3090 = vmatpush1.bf16.msra.mxu1 %v4291_v10  ;;  %v1676_v9 = vld [vmem:[%s5294_s3 + $0x1d0] sm:$0xff]  ;;  %v1645_v10 = vld [vmem:[%s5294_s3 + $0xd8] sm:$0xff] }
 0x1f7   : > { %3128 = vmatprep.subr.bf16.mxu0 %v4230_v11  ;;  %3169 = vmatprep.subr.bf16.mxu1 %v4232_v12  ;;  %v1677_v11 = vld [vmem:[%s5294_s3 + $0x1d8] sm:$0xff]  ;;  %v4305_v12 = vcombine.low %v1706_v0, %v1738_v1  ;;  %v4246_v15 = vcombine.high %v1644_v8, %v1676_v9 }
 0x1f8   : > { %v4248_v16 = vcombine.high %v1645_v10, %v1677_v11  ;;  %v4247_v23 = vcombine.low %v1645_v10, %v1677_v11 }
 0x1f9   : > { %4337 = vmatmul.mubr.msk.bf16.vlgmr.msra.gmra.mrb[32].mxu0 %vm2386_vm2, %v4769_v13  ;;  %4338 = vmatmul.mubr.msk.bf16.vlgmr.msra.gmra.mrb[32].mxu1 %vm2386_vm2, %v4769_v13 }
 0x1fa   : > { %3129 = vmatpush1.bf16.msra.mxu0 %v4229_v18  ;;  %3170 = vmatpush1.bf16.msra.mxu1 %v4231_v19  ;;  %v1740_v18 = vld [vmem:[%s5294_s3 + $0x3d0] sm:$0xff]  ;;  %v1709_v19 = vld [vmem:[%s5294_s3 + $0x2d8] sm:$0xff] }
 0x1fb   : > { %3130 = vmatprep.subr.bf16.mxu0 %v4294_v20  ;;  %3171 = vmatprep.subr.bf16.mxu1 %v4296_v21  ;;  %v1741_v20 = vld [vmem:[%s5294_s3 + $0x3d8] sm:$0xff]  ;;  %v4245_v21 = vcombine.low %v1644_v8, %v1676_v9  ;;  %v4310_v24 = vcombine.high %v1708_v17, %v1740_v18 }
 0x1fc   : > { %3160 = vmatprep.mubr.bf16.mxu0 %v4419_v52  ;;  %3201 = vmatprep.mubr.bf16.mxu1 %v4419_v52  ;;  %v4312_v25 = vcombine.high %v1709_v19, %v1741_v20  ;;  %v4311_v31 = vcombine.low %v1709_v19, %v1741_v20 }
 0x1fe   : > { %3131 = vmatpush1.bf16.msra.mxu0 %v4293_v27  ;;  %3172 = vmatpush1.bf16.msra.mxu1 %v4295_v28  ;;  %v1678_v27 = vld [vmem:[%s5294_s3 + $0x1e0] sm:$0xff]  ;;  %v1647_v28 = vld [vmem:[%s5294_s3 + $0xe8] sm:$0xff] }
 0x1ff   : > { %3210 = vmatprep.subr.bf16.mxu0 %v4234_v29  ;;  %3251 = vmatprep.subr.bf16.mxu1 %v4236_v30  ;;  %v1679_v29 = vld [vmem:[%s5294_s3 + $0x1e8] sm:$0xff]  ;;  %v4309_v30 = vcombine.low %v1708_v17, %v1740_v18  ;;  %v4250_v32 = vcombine.high %v1646_v26, %v1678_v27 }
 0x200   : > { %v4252_v33 = vcombine.high %v1647_v28, %v1679_v29  ;;  %v4251_v39 = vcombine.low %v1647_v28, %v1679_v29 }
 0x201   : > { %4339 = vmatmul.mubr.msk.bf16.vlgmr.msra.gmra.mrb[36].mxu0 %vm2386_vm2, %v4769_v13  ;;  %4340 = vmatmul.mubr.msk.bf16.vlgmr.msra.gmra.mrb[36].mxu1 %vm2386_vm2, %v4769_v13 }
 0x202   : > { %3211 = vmatpush1.bf16.msra.mxu0 %v4233_v35  ;;  %3252 = vmatpush1.bf16.msra.mxu1 %v4235_v36  ;;  %v1742_v35 = vld [vmem:[%s5294_s3 + $0x3e0] sm:$0xff]  ;;  %v1711_v36 = vld [vmem:[%s5294_s3 + $0x2e8] sm:$0xff] }
 0x203   : > { %3212 = vmatprep.subr.bf16.mxu0 %v4298_v37  ;;  %3253 = vmatprep.subr.bf16.mxu1 %v4300_v38  ;;  %v1743_v37 = vld [vmem:[%s5294_s3 + $0x3e8] sm:$0xff]  ;;  %v4249_v38 = vcombine.low %v1646_v26, %v1678_v27  ;;  %v4314_v40 = vcombine.high %v1710_v34, %v1742_v35 }
 0x204   : > { %3242 = vmatprep.mubr.bf16.mxu0 %v4419_v52  ;;  %3283 = vmatprep.mubr.bf16.mxu1 %v4419_v52  ;;  %v4316_v41 = vcombine.high %v1711_v36, %v1743_v37  ;;  %v4315_v47 = vcombine.low %v1711_v36, %v1743_v37 }
 0x206   : > { %3213 = vmatpush1.bf16.msra.mxu0 %v4297_v43  ;;  %3254 = vmatpush1.bf16.msra.mxu1 %v4299_v44  ;;  %v1680_v43 = vld [vmem:[%s5294_s3 + $0x1f0] sm:$0xff]  ;;  %v1649_v44 = vld [vmem:[%s5294_s3 + $0xf8] sm:$0xff] }
 0x207   : > { %3292 = vmatprep.subr.bf16.mxu0 %v4238_v45  ;;  %3333 = vmatprep.subr.bf16.mxu1 %v4240_v46  ;;  %v1681_v45 = vld [vmem:[%s5294_s3 + $0x1f8] sm:$0xff]  ;;  %v4313_v46 = vcombine.low %v1710_v34, %v1742_v35  ;;  %v4254_v48 = vcombine.high %v1648_v42, %v1680_v43 }
 0x208   : > { %v4256_v49 = vcombine.high %v1649_v44, %v1681_v45  ;;  %v4255_v56 = vcombine.low %v1649_v44, %v1681_v45 }
 0x209   : > { %4341 = vmatmul.mubr.msk.bf16.vlgmr.msra.gmra.mrb[40].mxu0 %vm2386_vm2, %v4769_v13  ;;  %4342 = vmatmul.mubr.msk.bf16.vlgmr.msra.gmra.mrb[40].mxu1 %vm2386_vm2, %v4769_v13 }
 0x20a   : > { %3293 = vmatpush1.bf16.msra.mxu0 %v4237_v51  ;;  %3334 = vmatpush1.bf16.msra.mxu1 %v4239_v53  ;;  %v1744_v51 = vld [vmem:[%s5294_s3 + $0x3f0] sm:$0xff]  ;;  %v1713_v53 = vld [vmem:[%s5294_s3 + $0x2f8] sm:$0xff] }
 0x20b   : > { %3294 = vmatprep.subr.bf16.mxu0 %v4302_v54  ;;  %3335 = vmatprep.subr.bf16.mxu1 %v4304_v55  ;;  %v1745_v54 = vld [vmem:[%s5294_s3 + $0x3f8] sm:$0xff]  ;;  %v4253_v55 = vcombine.low %v1648_v42, %v1680_v43  ;;  %v4318_v57 = vcombine.high %v1712_v50, %v1744_v51  ;;  %v4317_v59 = vcombine.low %v1712_v50, %v1744_v51 }
 0x20c   : > { %3324 = vmatprep.mubr.bf16.mxu0 %v4419_v52  ;;  %3365 = vmatprep.mubr.bf16.mxu1 %v4419_v52  ;;  %v4320_v58 = vcombine.high %v1713_v53, %v1745_v54 }
 0x20e   : > { %3295 = vmatpush1.bf16.msra.mxu0 %v4301_v60  ;;  %3336 = vmatpush1.bf16.msra.mxu1 %v4303_v61  ;;  %v4319_v60 = vcombine.low %v1713_v53, %v1745_v54 }
 0x20f   : > { %3374 = vmatprep.subr.bf16.mxu0 %v4242_v62  ;;  %3415 = vmatprep.subr.bf16.mxu1 %v4244_v63 }
 0x211   : > { %4343 = vmatmul.mubr.msk.bf16.vlgmr.msra.gmra.mrb[44].mxu0 %vm2386_vm2, %v4769_v13  ;;  %4344 = vmatmul.mubr.msk.bf16.vlgmr.msra.gmra.mrb[44].mxu1 %vm2386_vm2, %v4769_v13 }
 0x212   : > { %3375 = vmatpush1.bf16.msra.mxu0 %v4241_v4  ;;  %3416 = vmatpush1.bf16.msra.mxu1 %v4243_v5 }
 0x213   : > { %3376 = vmatprep.subr.bf16.mxu0 %v4306_v6  ;;  %3417 = vmatprep.subr.bf16.mxu1 %v4308_v7 }
 0x214   : > { %3406 = vmatprep.mubr.bf16.mxu0 %v4419_v52  ;;  %3447 = vmatprep.mubr.bf16.mxu1 %v4419_v52 }
 0x216   : > { %3377 = vmatpush1.bf16.msra.mxu0 %v4305_v12  ;;  %3418 = vmatpush1.bf16.msra.mxu1 %v4307_v14 }
 0x217   : > { %3456 = vmatprep.subr.bf16.mxu0 %v4246_v15  ;;  %3497 = vmatprep.subr.bf16.mxu1 %v4248_v16 }
 0x219   : > { %4345 = vmatmul.mubr.msk.bf16.vlgmr.msra.gmra.mrb[48].mxu0 %vm2386_vm2, %v4769_v13  ;;  %4346 = vmatmul.mubr.msk.bf16.vlgmr.msra.gmra.mrb[48].mxu1 %vm2386_vm2, %v4769_v13 }
 0x21a   : > { %3457 = vmatpush1.bf16.msra.mxu0 %v4245_v21  ;;  %3498 = vmatpush1.bf16.msra.mxu1 %v4247_v23 }
 0x21b   : > { %3458 = vmatprep.subr.bf16.mxu0 %v4310_v24  ;;  %3499 = vmatprep.subr.bf16.mxu1 %v4312_v25 }
 0x21c   : > { %3488 = vmatprep.mubr.bf16.mxu0 %v4419_v52  ;;  %3529 = vmatprep.mubr.bf16.mxu1 %v4419_v52 }
 0x21e   : > { %3459 = vmatpush1.bf16.msra.mxu0 %v4309_v30  ;;  %3500 = vmatpush1.bf16.msra.mxu1 %v4311_v31 }
 0x21f   : > { %3538 = vmatprep.subr.bf16.mxu0 %v4250_v32  ;;  %3579 = vmatprep.subr.bf16.mxu1 %v4252_v33 }
 0x221   : > { %4347 = vmatmul.mubr.msk.bf16.vlgmr.msra.gmra.mrb[52].mxu0 %vm2386_vm2, %v4769_v13  ;;  %4348 = vmatmul.mubr.msk.bf16.vlgmr.msra.gmra.mrb[52].mxu1 %vm2386_vm2, %v4769_v13 }
 0x222   : > { %3539 = vmatpush1.bf16.msra.mxu0 %v4249_v38  ;;  %3580 = vmatpush1.bf16.msra.mxu1 %v4251_v39 }
 0x223   : > { %3540 = vmatprep.subr.bf16.mxu0 %v4314_v40  ;;  %3581 = vmatprep.subr.bf16.mxu1 %v4316_v41 }
 0x224   : > { %3570 = vmatprep.mubr.bf16.mxu0 %v4419_v52  ;;  %3611 = vmatprep.mubr.bf16.mxu1 %v4419_v52 }
 0x226   : > { %3541 = vmatpush1.bf16.msra.mxu0 %v4313_v46  ;;  %3582 = vmatpush1.bf16.msra.mxu1 %v4315_v47 }
 0x227   : > { %3620 = vmatprep.subr.bf16.mxu0 %v4254_v48  ;;  %3661 = vmatprep.subr.bf16.mxu1 %v4256_v49 }
 0x229   : > { %4349 = vmatmul.mubr.msk.bf16.vlgmr.msra.gmra.mrb[56].mxu0 %vm2386_vm2, %v4769_v13  ;;  %4350 = vmatmul.mubr.msk.bf16.vlgmr.msra.gmra.mrb[56].mxu1 %vm2386_vm2, %v4769_v13 }
 0x22a   : > { %3621 = vmatpush1.bf16.msra.mxu0 %v4253_v55  ;;  %3662 = vmatpush1.bf16.msra.mxu1 %v4255_v56 }
 0x22b   : > { %3622 = vmatprep.subr.bf16.mxu0 %v4318_v57  ;;  %3663 = vmatprep.subr.bf16.mxu1 %v4320_v58 }
 0x22c   : > { %3652 = vmatprep.mubr.bf16.mxu0 %v4419_v52  ;;  %3693 = vmatprep.mubr.bf16.mxu1 %v4419_v52 }
 0x22e   : > { %3623 = vmatpush1.bf16.msra.mxu0 %v4317_v59  ;;  %3664 = vmatpush1.bf16.msra.mxu1 %v4319_v60 }
 0x231   : > { %4351 = vmatmul.mubr.msk.bf16.vlgmr.msra.gmra.mrb[60].mxu0 %vm2386_vm2, %v4769_v13  ;;  %4352 = vmatmul.mubr.msk.bf16.vlgmr.msra.gmra.mrb[60].mxu1 %vm2386_vm2, %v4769_v13 }
 0x28c   : > { %v2424_v61 = vpop.f32.mrb[0].mxu0  ;;  %v2465_v62 = vpop.f32.mrb[0].mxu1 }
 0x28d   : > { %v2426_v63 = vpop.f32.mrb[1].mxu0  ;;  %v2467_v0 = vpop.f32.mrb[1].mxu1 }
 0x28e   : > { %v3766_v1 = vcombine.low %v2424_v61, %v2426_v63  ;;  %v3767_v2 = vcombine.low %v2465_v62, %v2467_v0  ;;  %v2428_v3 = vpop.f32.mrb[2].mxu0  ;;  %v2469_v4 = vpop.f32.mrb[2].mxu1 }
 0x28f   : > { %v2429_v5 = vpop.f32.mrb[3].mxu0  ;;  %v2470_v6 = vpop.f32.mrb[3].mxu1 }
 0x290   : > { %v3774_v52 = vrot.slane %v3766_v1, %v4634_v22  ;;  %v3781_v7 = vrot.slane %v3767_v2, %v4634_v22 }
 0x292   : > { %v3782_v8 = vcombine.low %v3774_v52, %v3781_v7 }
 0x294   : > { %4054 = vst [vmem:[%s5295_s4] sm:$0xff] %v3782_v8  ;;  %v2506_v13 = vpop.f32.mrb[4].mxu0  ;;  %v2547_v9 = vpop.f32.mrb[4].mxu1 }
 0x295   : > { %v2508_v10 = vpop.f32.mrb[5].mxu0  ;;  %v2549_v11 = vpop.f32.mrb[5].mxu1 }
 0x296   : > { %v3783_v12 = vcombine.low %v2506_v13, %v2508_v10  ;;  %v3784_v14 = vcombine.low %v2547_v9, %v2549_v11  ;;  %v2510_v15 = vpop.f32.mrb[6].mxu0  ;;  %v2551_v16 = vpop.f32.mrb[6].mxu1 }
 0x297   : > { %v2511_v17 = vpop.f32.mrb[7].mxu0  ;;  %v2552_v18 = vpop.f32.mrb[7].mxu1 }
 0x298   : > { %v3791_v19 = vrot.slane %v3783_v12, %v4634_v22  ;;  %v3798_v20 = vrot.slane %v3784_v14, %v4634_v22 }
 0x29a   : > { %v3799_v21 = vcombine.low %v3791_v19, %v3798_v20 }
 0x29c   : > { %4055 = vst [vmem:[%s5295_s4 + $0x8] sm:$0xff] %v3799_v21  ;;  %v2588_v23 = vpop.f32.mrb[8].mxu0  ;;  %v2629_v24 = vpop.f32.mrb[8].mxu1 }
 0x29d   : > { %v2590_v25 = vpop.f32.mrb[9].mxu0  ;;  %v2631_v26 = vpop.f32.mrb[9].mxu1 }
 0x29e   : > { %v3800_v27 = vcombine.low %v2588_v23, %v2590_v25  ;;  %v3801_v28 = vcombine.low %v2629_v24, %v2631_v26  ;;  %v2592_v29 = vpop.f32.mrb[10].mxu0  ;;  %v2633_v30 = vpop.f32.mrb[10].mxu1 }
 0x29f   : > { %v2593_v31 = vpop.f32.mrb[11].mxu0  ;;  %v2634_v32 = vpop.f32.mrb[11].mxu1 }
 0x2a0   : > { %v3808_v33 = vrot.slane %v3800_v27, %v4634_v22  ;;  %v3815_v34 = vrot.slane %v3801_v28, %v4634_v22 }
 0x2a2   : > { %v3816_v35 = vcombine.low %v3808_v33, %v3815_v34 }
 0x2a4   : > { %4056 = vst [vmem:[%s5295_s4 + $0x10] sm:$0xff] %v3816_v35  ;;  %v2670_v36 = vpop.f32.mrb[12].mxu0  ;;  %v2711_v37 = vpop.f32.mrb[12].mxu1 }
 0x2a5   : > { %v2672_v38 = vpop.f32.mrb[13].mxu0  ;;  %v2713_v39 = vpop.f32.mrb[13].mxu1 }
 0x2a6   : > { %v3817_v40 = vcombine.low %v2670_v36, %v2672_v38  ;;  %v3818_v41 = vcombine.low %v2711_v37, %v2713_v39  ;;  %v2674_v42 = vpop.f32.mrb[14].mxu0  ;;  %v2715_v43 = vpop.f32.mrb[14].mxu1 }
 0x2a7   : > { %v2675_v44 = vpop.f32.mrb[15].mxu0  ;;  %v2716_v45 = vpop.f32.mrb[15].mxu1 }
 0x2a8   : > { %v3825_v46 = vrot.slane %v3817_v40, %v4634_v22  ;;  %v3832_v47 = vrot.slane %v3818_v41, %v4634_v22 }
 0x2aa   : > { %v3833_v48 = vcombine.low %v3825_v46, %v3832_v47 }
 0x2ac   : > { %4057 = vst [vmem:[%s5295_s4 + $0x18] sm:$0xff] %v3833_v48  ;;  %v2752_v49 = vpop.f32.mrb[16].mxu0  ;;  %v2793_v50 = vpop.f32.mrb[16].mxu1 }
 0x2ad   : > { %v2754_v51 = vpop.f32.mrb[17].mxu0  ;;  %v2795_v53 = vpop.f32.mrb[17].mxu1 }
 0x2ae   : > { %v3834_v54 = vcombine.low %v2752_v49, %v2754_v51  ;;  %v3835_v55 = vcombine.low %v2793_v50, %v2795_v53  ;;  %v2756_v56 = vpop.f32.mrb[18].mxu0  ;;  %v2797_v57 = vpop.f32.mrb[18].mxu1 }
 0x2af   : > { %v2757_v58 = vpop.f32.mrb[19].mxu0  ;;  %v2798_v59 = vpop.f32.mrb[19].mxu1 }
 0x2b0   : > { %v3842_v60 = vrot.slane %v3834_v54, %v4634_v22  ;;  %v3849_v61 = vrot.slane %v3835_v55, %v4634_v22 }
 0x2b2   : > { %v3850_v62 = vcombine.low %v3842_v60, %v3849_v61 }
 0x2b4   : > { %4058 = vst [vmem:[%s5295_s4 + $0x20] sm:$0xff] %v3850_v62  ;;  %v2834_v63 = vpop.f32.mrb[20].mxu0  ;;  %v2875_v0 = vpop.f32.mrb[20].mxu1 }
 0x2b5   : > { %v2836_v1 = vpop.f32.mrb[21].mxu0  ;;  %v2877_v2 = vpop.f32.mrb[21].mxu1 }
 0x2b6   : > { %v3851_v3 = vcombine.low %v2834_v63, %v2836_v1  ;;  %v3852_v4 = vcombine.low %v2875_v0, %v2877_v2  ;;  %v2838_v5 = vpop.f32.mrb[22].mxu0  ;;  %v2879_v6 = vpop.f32.mrb[22].mxu1 }
 0x2b7   : > { %v2839_v52 = vpop.f32.mrb[23].mxu0  ;;  %v2880_v7 = vpop.f32.mrb[23].mxu1 }
 0x2b8   : > { %v3859_v8 = vrot.slane %v3851_v3, %v4634_v22  ;;  %v3866_v13 = vrot.slane %v3852_v4, %v4634_v22 }
 0x2ba   : > { %v3867_v9 = vcombine.low %v3859_v8, %v3866_v13 }
 0x2bc   : > { %4059 = vst [vmem:[%s5295_s4 + $0x28] sm:$0xff] %v3867_v9  ;;  %v2916_v10 = vpop.f32.mrb[24].mxu0  ;;  %v2957_v11 = vpop.f32.mrb[24].mxu1 }
 0x2bd   : > { %v2918_v12 = vpop.f32.mrb[25].mxu0  ;;  %v2959_v14 = vpop.f32.mrb[25].mxu1 }
 0x2be   : > { %v3868_v15 = vcombine.low %v2916_v10, %v2918_v12  ;;  %v3869_v16 = vcombine.low %v2957_v11, %v2959_v14  ;;  %v2920_v17 = vpop.f32.mrb[26].mxu0  ;;  %v2961_v18 = vpop.f32.mrb[26].mxu1 }
 0x2bf   : > { %v2921_v19 = vpop.f32.mrb[27].mxu0  ;;  %v2962_v20 = vpop.f32.mrb[27].mxu1 }
 0x2c0   : > { %v3876_v21 = vrot.slane %v3868_v15, %v4634_v22  ;;  %v3883_v23 = vrot.slane %v3869_v16, %v4634_v22 }
 0x2c2   : > { %v3884_v24 = vcombine.low %v3876_v21, %v3883_v23 }
 0x2c4   : > { %4060 = vst [vmem:[%s5295_s4 + $0x30] sm:$0xff] %v3884_v24  ;;  %v2998_v25 = vpop.f32.mrb[28].mxu0  ;;  %v3039_v26 = vpop.f32.mrb[28].mxu1 }
 0x2c5   : > { %v3000_v27 = vpop.f32.mrb[29].mxu0  ;;  %v3041_v28 = vpop.f32.mrb[29].mxu1 }
 0x2c6   : > { %v3885_v29 = vcombine.low %v2998_v25, %v3000_v27  ;;  %v3886_v30 = vcombine.low %v3039_v26, %v3041_v28  ;;  %v3002_v31 = vpop.f32.mrb[30].mxu0  ;;  %v3043_v32 = vpop.f32.mrb[30].mxu1 }
 0x2c7   : > { %v3003_v33 = vpop.f32.mrb[31].mxu0  ;;  %v3044_v34 = vpop.f32.mrb[31].mxu1 }
 0x2c8   : > { %v3893_v35 = vrot.slane %v3885_v29, %v4634_v22  ;;  %v3900_v36 = vrot.slane %v3886_v30, %v4634_v22 }
 0x2ca   : > { %v3901_v37 = vcombine.low %v3893_v35, %v3900_v36 }
 0x2cc   : > { %4061 = vst [vmem:[%s5295_s4 + $0x38] sm:$0xff] %v3901_v37  ;;  %v3080_v38 = vpop.f32.mrb[32].mxu0  ;;  %v3121_v39 = vpop.f32.mrb[32].mxu1 }
 0x2cd   : > { %v3082_v40 = vpop.f32.mrb[33].mxu0  ;;  %v3123_v41 = vpop.f32.mrb[33].mxu1 }
 0x2ce   : > { %v3902_v42 = vcombine.low %v3080_v38, %v3082_v40  ;;  %v3903_v43 = vcombine.low %v3121_v39, %v3123_v41  ;;  %v3084_v44 = vpop.f32.mrb[34].mxu0  ;;  %v3125_v45 = vpop.f32.mrb[34].mxu1 }
 0x2cf   : > { %v3085_v46 = vpop.f32.mrb[35].mxu0  ;;  %v3126_v47 = vpop.f32.mrb[35].mxu1 }
 0x2d0   : > { %v3910_v48 = vrot.slane %v3902_v42, %v4634_v22  ;;  %v3917_v49 = vrot.slane %v3903_v43, %v4634_v22 }
 0x2d2   : > { %v3918_v50 = vcombine.low %v3910_v48, %v3917_v49 }
 0x2d4   : > { %4062 = vst [vmem:[%s5295_s4 + $0x40] sm:$0xff] %v3918_v50  ;;  %v3162_v51 = vpop.f32.mrb[36].mxu0  ;;  %v3203_v53 = vpop.f32.mrb[36].mxu1 }
 0x2d5   : > { %v3164_v54 = vpop.f32.mrb[37].mxu0  ;;  %v3205_v55 = vpop.f32.mrb[37].mxu1 }
 0x2d6   : > { %v3919_v56 = vcombine.low %v3162_v51, %v3164_v54  ;;  %v3920_v57 = vcombine.low %v3203_v53, %v3205_v55  ;;  %v3166_v58 = vpop.f32.mrb[38].mxu0  ;;  %v3207_v59 = vpop.f32.mrb[38].mxu1 }
 0x2d7   : > { %v3167_v60 = vpop.f32.mrb[39].mxu0  ;;  %v3208_v61 = vpop.f32.mrb[39].mxu1 }
 0x2d8   : > { %v3927_v62 = vrot.slane %v3919_v56, %v4634_v22  ;;  %v3934_v63 = vrot.slane %v3920_v57, %v4634_v22 }
 0x2da   : > { %v3935_v0 = vcombine.low %v3927_v62, %v3934_v63 }
 0x2dc   : > { %4063 = vst [vmem:[%s5295_s4 + $0x48] sm:$0xff] %v3935_v0  ;;  %v3244_v1 = vpop.f32.mrb[40].mxu0  ;;  %v3285_v2 = vpop.f32.mrb[40].mxu1 }
 0x2dd   : > { %v3246_v3 = vpop.f32.mrb[41].mxu0  ;;  %v3287_v4 = vpop.f32.mrb[41].mxu1 }
 0x2de   : > { %v3936_v5 = vcombine.low %v3244_v1, %v3246_v3  ;;  %v3937_v6 = vcombine.low %v3285_v2, %v3287_v4  ;;  %v3248_v52 = vpop.f32.mrb[42].mxu0  ;;  %v3289_v7 = vpop.f32.mrb[42].mxu1 }
 0x2df   : > { %v3249_v8 = vpop.f32.mrb[43].mxu0  ;;  %v3290_v13 = vpop.f32.mrb[43].mxu1 }
 0x2e0   : > { %v3944_v9 = vrot.slane %v3936_v5, %v4634_v22  ;;  %v3951_v10 = vrot.slane %v3937_v6, %v4634_v22 }
 0x2e2   : > { %v3952_v11 = vcombine.low %v3944_v9, %v3951_v10 }
 0x2e4   : > { %4064 = vst [vmem:[%s5295_s4 + $0x50] sm:$0xff] %v3952_v11  ;;  %v3326_v12 = vpop.f32.mrb[44].mxu0  ;;  %v3367_v14 = vpop.f32.mrb[44].mxu1 }
 0x2e5   : > { %v3328_v15 = vpop.f32.mrb[45].mxu0  ;;  %v3369_v16 = vpop.f32.mrb[45].mxu1 }
 0x2e6   : > { %v3953_v17 = vcombine.low %v3326_v12, %v3328_v15  ;;  %v3954_v18 = vcombine.low %v3367_v14, %v3369_v16  ;;  %v3330_v19 = vpop.f32.mrb[46].mxu0  ;;  %v3371_v20 = vpop.f32.mrb[46].mxu1 }
 0x2e7   : > { %v3331_v21 = vpop.f32.mrb[47].mxu0  ;;  %v3372_v23 = vpop.f32.mrb[47].mxu1 }
 0x2e8   : > { %v3961_v24 = vrot.slane %v3953_v17, %v4634_v22  ;;  %v3968_v25 = vrot.slane %v3954_v18, %v4634_v22 }
 0x2ea   : > { %v3969_v26 = vcombine.low %v3961_v24, %v3968_v25 }
 0x2ec   : > { %4065 = vst [vmem:[%s5295_s4 + $0x58] sm:$0xff] %v3969_v26  ;;  %v3408_v27 = vpop.f32.mrb[48].mxu0  ;;  %v3449_v28 = vpop.f32.mrb[48].mxu1 }
 0x2ed   : > { %v3410_v29 = vpop.f32.mrb[49].mxu0  ;;  %v3451_v30 = vpop.f32.mrb[49].mxu1 }
 0x2ee   : > { %v3970_v31 = vcombine.low %v3408_v27, %v3410_v29  ;;  %v3971_v32 = vcombine.low %v3449_v28, %v3451_v30  ;;  %v3412_v33 = vpop.f32.mrb[50].mxu0  ;;  %v3453_v34 = vpop.f32.mrb[50].mxu1 }
 0x2ef   : > { %v3413_v35 = vpop.f32.mrb[51].mxu0  ;;  %v3454_v36 = vpop.f32.mrb[51].mxu1 }
 0x2f0   : > { %v3978_v37 = vrot.slane %v3970_v31, %v4634_v22  ;;  %v3985_v38 = vrot.slane %v3971_v32, %v4634_v22 }
 0x2f2   : > { %v3986_v39 = vcombine.low %v3978_v37, %v3985_v38 }
 0x2f4   : > { %4066 = vst [vmem:[%s5295_s4 + $0x60] sm:$0xff] %v3986_v39  ;;  %v3490_v40 = vpop.f32.mrb[52].mxu0  ;;  %v3531_v41 = vpop.f32.mrb[52].mxu1 }
 0x2f5   : > { %v3492_v42 = vpop.f32.mrb[53].mxu0  ;;  %v3533_v43 = vpop.f32.mrb[53].mxu1 }
 0x2f6   : > { %v3987_v44 = vcombine.low %v3490_v40, %v3492_v42  ;;  %v3988_v45 = vcombine.low %v3531_v41, %v3533_v43  ;;  %v3494_v46 = vpop.f32.mrb[54].mxu0  ;;  %v3535_v47 = vpop.f32.mrb[54].mxu1 }
 0x2f7   : > { %v3495_v48 = vpop.f32.mrb[55].mxu0  ;;  %v3536_v49 = vpop.f32.mrb[55].mxu1 }
 0x2f8   : > { %v3995_v50 = vrot.slane %v3987_v44, %v4634_v22  ;;  %v4002_v51 = vrot.slane %v3988_v45, %v4634_v22 }
 0x2fa   : > { %v4003_v53 = vcombine.low %v3995_v50, %v4002_v51 }
 0x2fc   : > { %4067 = vst [vmem:[%s5295_s4 + $0x68] sm:$0xff] %v4003_v53  ;;  %v3572_v54 = vpop.f32.mrb[56].mxu0  ;;  %v3613_v55 = vpop.f32.mrb[56].mxu1 }
 0x2fd   : > { %v3574_v56 = vpop.f32.mrb[57].mxu0  ;;  %v3615_v57 = vpop.f32.mrb[57].mxu1 }
 0x2fe   : > { %v4004_v58 = vcombine.low %v3572_v54, %v3574_v56  ;;  %v4005_v59 = vcombine.low %v3613_v55, %v3615_v57  ;;  %v3576_v60 = vpop.f32.mrb[58].mxu0  ;;  %v3617_v61 = vpop.f32.mrb[58].mxu1 }
 0x2ff   : > { %v3577_v62 = vpop.f32.mrb[59].mxu0  ;;  %v3618_v63 = vpop.f32.mrb[59].mxu1 }
 0x300   : > { %v4012_v0 = vrot.slane %v4004_v58, %v4634_v22  ;;  %v4019_v1 = vrot.slane %v4005_v59, %v4634_v22 }
 0x302   : > { %v4020_v2 = vcombine.low %v4012_v0, %v4019_v1 }
 0x304   : > { %4068 = vst [vmem:[%s5295_s4 + $0x70] sm:$0xff] %v4020_v2  ;;  %v3654_v3 = vpop.f32.mrb[60].mxu0  ;;  %v3695_v4 = vpop.f32.mrb[60].mxu1 }
 0x305   : > { %v3656_v5 = vpop.f32.mrb[61].mxu0  ;;  %v3697_v6 = vpop.f32.mrb[61].mxu1 }
 0x306   : > { %v4021_v52 = vcombine.low %v3654_v3, %v3656_v5  ;;  %v4022_v7 = vcombine.low %v3695_v4, %v3697_v6  ;;  %v3658_v8 = vpop.f32.mrb[62].mxu0  ;;  %v3699_v13 = vpop.f32.mrb[62].mxu1 }
 0x307   : > { %v3659_v9 = vpop.f32.mrb[63].mxu0  ;;  %v3700_v10 = vpop.f32.mrb[63].mxu1 }
 0x308   : > { %v4029_v11 = vrot.slane %v4021_v52, %v4634_v22  ;;  %v4036_v12 = vrot.slane %v4022_v7, %v4634_v22 }
 0x30a   : > { %v4037_v14 = vcombine.low %v4029_v11, %v4036_v12 }
 0x30c   : > { %4069 = vst [vmem:[%s5295_s4 + $0x78] sm:$0xff] %v4037_v14 }
 0x30d PF: > { %p11_p11 = scmp.ge.s32.totalorder %s4464_s19, 6   ;;  %s5296_s15 = smov %s4411_s16 }
 0x30e   : > { %s5297_s16 = smov %s4473_s22  ;;  %s5298_s17 = smov %s4464_s19 }
 0x30f   :  { %13 = sbr.rel (!%p11_p11) target bundleno = 2 (0x2), region = 101 }

// kernel: _lambda_.7
= control target key start
LH: loop header
LB: loop body
LE: loop exit
PB: predicated region body
PF: predicated region fallthrough
CT: control target
= control target key end

     0   :  { %s4509_s18 = smov 0   ;;  %s4511_s19 = smov 0   ;;  %s5403_s0 = inlined_call_operand.vmem [shape: f32[2,16384], index: 0, kind: input, shape index: {}]   ;;  %s5404_s1 = inlined_call_operand.vmem [shape: bf16[32,16384], index: 1, kind: input, shape index: {}]   ;;  %s5405_s2 = inlined_call_operand.vmem [shape: f32[1,32], index: 2, kind: input, shape index: {}]   ;;  %s5406_s3 = inlined_call_operand.vmem [shape: bf16[32,8192], index: 3, kind: input, shape index: {}]   ;;  %s5407_s4 = inlined_call_operand.vmem [shape: f32[2,8192], index: 4, kind: input, shape index: {}, may-alias: {4,5}]   ;;  %s5408_s5 = inlined_call_operand.vmem [shape: f32[2,8192], index: 5, kind: output, shape index: {}, may-alias: {4,5}]  }
   0x1   :  { %s4513_s20 = smov 0  }
   0x2 LB: > { %s4525_s21 = sadd.s32 4294967295, %s4474_s20   ;;  %s4528_s22 = sadd.s32 1, %s4474_s20   ;;  %s4474_s20 = sphi %s4513_s20, %s5411_s20   ;;  %s4470_s19 = sphi %s4511_s19, %s5410_s19   ;;  %s4466_s18 = sphi %s4509_s18, %s5409_s18  }
   0x3   : > { %s45_s23 = ssub.s32 %s4474_s20, %s4528_s22  ;;  %s48_s24 = sadd.s32 1, %s4470_s19 }
   0x4   : > { %p46_p0 = scmp.eq.s32.totalorder %s45_s23, 0  ;;  %p55_p1 = scmp.ne.s32.totalorder %s4470_s19, %s4466_s18 }
   0x5   : > { %p56_p2 = scmp.eq.s32.totalorder %s4474_s20, 0  ;;  %p4177_p4 = scmp.ge.s32.totalorder %s4474_s20, 4 }
   0x6   : > { %s4537_s25 = scalar_select %p46_p0, %s4470_s19, %s48_s24  }
   0x7   : > { %p57_p3 = por %p56_p2, %p55_p1  ;;  %174 = sbr.rel (%p4177_p4) target bundleno = 50 (0x32), region = 28 }
   0xe   : > { %186 = sbr.rel (!%p57_p3) target bundleno = 50 (0x32), region = 36  ;;  %s188_s26 = sand.u32 (%p57_p3), 1, %s4470_s19  }
   0xf   : > { %s4414_s27 = sshll.u32 (%p57_p3), %s4474_s20, 7  ;;  %s4178_s28 = sshll.u32 (%p57_p3), %s188_s26, 9 }
  0x10   : > { %s4545_s6 = scalar_lea.vmem (%p57_p3), %s5404_s1, %s4414_s27  ;;  %s4550_s7 = scalar_lea.vmem (%p57_p3), [#allocation3], %s4178_s28 }
  0x11   : > { %v206_v0 = vld [vmem:[%s4545_s6] sm:$0xff] (%p57_p3)  ;;  %v208_v1 = vld [vmem:[%s4545_s6 + $0x8] sm:$0xff] (%p57_p3)  ;;  %v210_v2 = vld [vmem:[%s4545_s6 + $0x10] sm:$0xff] (%p57_p3) }
  0x12   : > { %207 = vst [vmem:[%s4550_s7] sm:$0xff] (%p57_p3), %v206_v0  ;;  %209 = vst [vmem:[%s4550_s7 + $0x8] sm:$0xff] (%p57_p3), %v208_v1  ;;  %v212_v3 = vld [vmem:[%s4545_s6 + $0x18] sm:$0xff] (%p57_p3)  ;;  %v214_v4 = vld [vmem:[%s4545_s6 + $0x20] sm:$0xff] (%p57_p3) }
  0x13   : > { %211 = vst [vmem:[%s4550_s7 + $0x10] sm:$0xff] (%p57_p3), %v210_v2  ;;  %v216_v5 = vld [vmem:[%s4545_s6 + $0x28] sm:$0xff] (%p57_p3)  ;;  %213 = vst [vmem:[%s4550_s7 + $0x18] sm:$0xff] (%p57_p3), %v212_v3  ;;  %v218_v6 = vld [vmem:[%s4545_s6 + $0x30] sm:$0xff] (%p57_p3) }
  0x14   : > { %215 = vst [vmem:[%s4550_s7 + $0x20] sm:$0xff] (%p57_p3), %v214_v4  ;;  %217 = vst [vmem:[%s4550_s7 + $0x28] sm:$0xff] (%p57_p3), %v216_v5  ;;  %v220_v7 = vld [vmem:[%s4545_s6 + $0x38] sm:$0xff] (%p57_p3)  ;;  %v222_v8 = vld [vmem:[%s4545_s6 + $0x40] sm:$0xff] (%p57_p3) }
  0x15   : > { %219 = vst [vmem:[%s4550_s7 + $0x30] sm:$0xff] %v218_v6  ;;  %221 = vst [vmem:[%s4550_s7 + $0x38] sm:$0xff] %v220_v7  ;;  %v224_v9 = vld [vmem:[%s4545_s6 + $0x48] sm:$0xff]  ;;  %v226_v10 = vld [vmem:[%s4545_s6 + $0x50] sm:$0xff] }
  0x16   : > { %223 = vst [vmem:[%s4550_s7 + $0x40] sm:$0xff] %v222_v8  ;;  %v228_v11 = vld [vmem:[%s4545_s6 + $0x58] sm:$0xff]  ;;  %225 = vst [vmem:[%s4550_s7 + $0x48] sm:$0xff] %v224_v9  ;;  %v230_v12 = vld [vmem:[%s4545_s6 + $0x60] sm:$0xff] }
  0x17   : > { %227 = vst [vmem:[%s4550_s7 + $0x50] sm:$0xff] %v226_v10  ;;  %229 = vst [vmem:[%s4550_s7 + $0x58] sm:$0xff] %v228_v11  ;;  %v232_v13 = vld [vmem:[%s4545_s6 + $0x68] sm:$0xff]  ;;  %v234_v14 = vld [vmem:[%s4545_s6 + $0x70] sm:$0xff] }
  0x18   : > { %231 = vst [vmem:[%s4550_s7 + $0x60] sm:$0xff] %v230_v12  ;;  %233 = vst [vmem:[%s4550_s7 + $0x68] sm:$0xff] %v232_v13  ;;  %v236_v15 = vld [vmem:[%s4545_s6 + $0x78] sm:$0xff]  ;;  %v238_v16 = vld [vmem:[%s4545_s6 + $0x200] sm:$0xff] }
  0x19   : > { %235 = vst [vmem:[%s4550_s7 + $0x70] sm:$0xff] %v234_v14  ;;  %v240_v17 = vld [vmem:[%s4545_s6 + $0x208] sm:$0xff]  ;;  %237 = vst [vmem:[%s4550_s7 + $0x78] sm:$0xff] %v236_v15  ;;  %v242_v18 = vld [vmem:[%s4545_s6 + $0x210] sm:$0xff] }
  0x1a   : > { %239 = vst [vmem:[%s4550_s7 + $0x80] sm:$0xff] %v238_v16  ;;  %241 = vst [vmem:[%s4550_s7 + $0x88] sm:$0xff] %v240_v17  ;;  %v244_v19 = vld [vmem:[%s4545_s6 + $0x218] sm:$0xff]  ;;  %v246_v20 = vld [vmem:[%s4545_s6 + $0x220] sm:$0xff] }
  0x1b   : > { %243 = vst [vmem:[%s4550_s7 + $0x90] sm:$0xff] %v242_v18  ;;  %245 = vst [vmem:[%s4550_s7 + $0x98] sm:$0xff] %v244_v19  ;;  %v248_v21 = vld [vmem:[%s4545_s6 + $0x228] sm:$0xff]  ;;  %v250_v22 = vld [vmem:[%s4545_s6 + $0x230] sm:$0xff] }
  0x1c   : > { %247 = vst [vmem:[%s4550_s7 + $0xa0] sm:$0xff] %v246_v20  ;;  %v252_v23 = vld [vmem:[%s4545_s6 + $0x238] sm:$0xff]  ;;  %249 = vst [vmem:[%s4550_s7 + $0xa8] sm:$0xff] %v248_v21  ;;  %v254_v24 = vld [vmem:[%s4545_s6 + $0x240] sm:$0xff] }
  0x1d   : > { %251 = vst [vmem:[%s4550_s7 + $0xb0] sm:$0xff] %v250_v22  ;;  %253 = vst [vmem:[%s4550_s7 + $0xb8] sm:$0xff] %v252_v23  ;;  %v256_v25 = vld [vmem:[%s4545_s6 + $0x248] sm:$0xff]  ;;  %v258_v26 = vld [vmem:[%s4545_s6 + $0x250] sm:$0xff] }
  0x1e   : > { %255 = vst [vmem:[%s4550_s7 + $0xc0] sm:$0xff] %v254_v24  ;;  %257 = vst [vmem:[%s4550_s7 + $0xc8] sm:$0xff] %v256_v25  ;;  %v260_v27 = vld [vmem:[%s4545_s6 + $0x258] sm:$0xff]  ;;  %v262_v28 = vld [vmem:[%s4545_s6 + $0x260] sm:$0xff] }
  0x1f   : > { %259 = vst [vmem:[%s4550_s7 + $0xd0] sm:$0xff] %v258_v26  ;;  %v264_v29 = vld [vmem:[%s4545_s6 + $0x268] sm:$0xff]  ;;  %261 = vst [vmem:[%s4550_s7 + $0xd8] sm:$0xff] %v260_v27  ;;  %v266_v30 = vld [vmem:[%s4545_s6 + $0x270] sm:$0xff] }
  0x20   : > { %263 = vst [vmem:[%s4550_s7 + $0xe0] sm:$0xff] %v262_v28  ;;  %265 = vst [vmem:[%s4550_s7 + $0xe8] sm:$0xff] %v264_v29  ;;  %v268_v31 = vld [vmem:[%s4545_s6 + $0x278] sm:$0xff]  ;;  %v270_v32 = vld [vmem:[%s4545_s6 + $0x400] sm:$0xff] }
  0x21   : > { %267 = vst [vmem:[%s4550_s7 + $0xf0] sm:$0xff] %v266_v30  ;;  %269 = vst [vmem:[%s4550_s7 + $0xf8] sm:$0xff] %v268_v31  ;;  %v272_v33 = vld [vmem:[%s4545_s6 + $0x408] sm:$0xff]  ;;  %v274_v34 = vld [vmem:[%s4545_s6 + $0x410] sm:$0xff] }
  0x22   : > { %271 = vst [vmem:[%s4550_s7 + $0x100] sm:$0xff] %v270_v32  ;;  %v276_v35 = vld [vmem:[%s4545_s6 + $0x418] sm:$0xff]  ;;  %273 = vst [vmem:[%s4550_s7 + $0x108] sm:$0xff] %v272_v33  ;;  %v278_v36 = vld [vmem:[%s4545_s6 + $0x420] sm:$0xff] }
  0x23   : > { %275 = vst [vmem:[%s4550_s7 + $0x110] sm:$0xff] %v274_v34  ;;  %277 = vst [vmem:[%s4550_s7 + $0x118] sm:$0xff] %v276_v35  ;;  %v280_v37 = vld [vmem:[%s4545_s6 + $0x428] sm:$0xff]  ;;  %v282_v38 = vld [vmem:[%s4545_s6 + $0x430] sm:$0xff] }
  0x24   : > { %279 = vst [vmem:[%s4550_s7 + $0x120] sm:$0xff] %v278_v36  ;;  %281 = vst [vmem:[%s4550_s7 + $0x128] sm:$0xff] %v280_v37  ;;  %v284_v39 = vld [vmem:[%s4545_s6 + $0x438] sm:$0xff]  ;;  %v286_v40 = vld [vmem:[%s4545_s6 + $0x440] sm:$0xff] }
  0x25   : > { %283 = vst [vmem:[%s4550_s7 + $0x130] sm:$0xff] %v282_v38  ;;  %v288_v41 = vld [vmem:[%s4545_s6 + $0x448] sm:$0xff]  ;;  %285 = vst [vmem:[%s4550_s7 + $0x138] sm:$0xff] %v284_v39  ;;  %v290_v42 = vld [vmem:[%s4545_s6 + $0x450] sm:$0xff] }
  0x26   : > { %287 = vst [vmem:[%s4550_s7 + $0x140] sm:$0xff] %v286_v40  ;;  %289 = vst [vmem:[%s4550_s7 + $0x148] sm:$0xff] %v288_v41  ;;  %v292_v43 = vld [vmem:[%s4545_s6 + $0x458] sm:$0xff]  ;;  %v294_v44 = vld [vmem:[%s4545_s6 + $0x460] sm:$0xff] }
  0x27   : > { %291 = vst [vmem:[%s4550_s7 + $0x150] sm:$0xff] %v290_v42  ;;  %293 = vst [vmem:[%s4550_s7 + $0x158] sm:$0xff] %v292_v43  ;;  %v296_v45 = vld [vmem:[%s4545_s6 + $0x468] sm:$0xff]  ;;  %v298_v46 = vld [vmem:[%s4545_s6 + $0x470] sm:$0xff] }
  0x28   : > { %295 = vst [vmem:[%s4550_s7 + $0x160] sm:$0xff] %v294_v44  ;;  %v300_v47 = vld [vmem:[%s4545_s6 + $0x478] sm:$0xff]  ;;  %297 = vst [vmem:[%s4550_s7 + $0x168] sm:$0xff] %v296_v45  ;;  %v302_v48 = vld [vmem:[%s4545_s6 + $0x600] sm:$0xff] }
  0x29   : > { %299 = vst [vmem:[%s4550_s7 + $0x170] sm:$0xff] %v298_v46  ;;  %301 = vst [vmem:[%s4550_s7 + $0x178] sm:$0xff] %v300_v47  ;;  %v304_v49 = vld [vmem:[%s4545_s6 + $0x608] sm:$0xff]  ;;  %v306_v50 = vld [vmem:[%s4545_s6 + $0x610] sm:$0xff] }
  0x2a   : > { %303 = vst [vmem:[%s4550_s7 + $0x180] sm:$0xff] %v302_v48  ;;  %305 = vst [vmem:[%s4550_s7 + $0x188] sm:$0xff] %v304_v49  ;;  %v308_v51 = vld [vmem:[%s4545_s6 + $0x618] sm:$0xff]  ;;  %v310_v52 = vld [vmem:[%s4545_s6 + $0x620] sm:$0xff] }
  0x2b   : > { %307 = vst [vmem:[%s4550_s7 + $0x190] sm:$0xff] %v306_v50  ;;  %v312_v53 = vld [vmem:[%s4545_s6 + $0x628] sm:$0xff]  ;;  %309 = vst [vmem:[%s4550_s7 + $0x198] sm:$0xff] %v308_v51  ;;  %v314_v54 = vld [vmem:[%s4545_s6 + $0x630] sm:$0xff] }
  0x2c   : > { %311 = vst [vmem:[%s4550_s7 + $0x1a0] sm:$0xff] %v310_v52  ;;  %313 = vst [vmem:[%s4550_s7 + $0x1a8] sm:$0xff] %v312_v53  ;;  %v316_v55 = vld [vmem:[%s4545_s6 + $0x638] sm:$0xff]  ;;  %v318_v56 = vld [vmem:[%s4545_s6 + $0x640] sm:$0xff] }
  0x2d   : > { %315 = vst [vmem:[%s4550_s7 + $0x1b0] sm:$0xff] %v314_v54  ;;  %317 = vst [vmem:[%s4550_s7 + $0x1b8] sm:$0xff] %v316_v55  ;;  %v320_v57 = vld [vmem:[%s4545_s6 + $0x648] sm:$0xff]  ;;  %v322_v58 = vld [vmem:[%s4545_s6 + $0x650] sm:$0xff] }
  0x2e   : > { %319 = vst [vmem:[%s4550_s7 + $0x1c0] sm:$0xff] %v318_v56  ;;  %v324_v59 = vld [vmem:[%s4545_s6 + $0x658] sm:$0xff]  ;;  %321 = vst [vmem:[%s4550_s7 + $0x1c8] sm:$0xff] %v320_v57  ;;  %v326_v60 = vld [vmem:[%s4545_s6 + $0x660] sm:$0xff] }
  0x2f   : > { %323 = vst [vmem:[%s4550_s7 + $0x1d0] sm:$0xff] %v322_v58  ;;  %325 = vst [vmem:[%s4550_s7 + $0x1d8] sm:$0xff] %v324_v59  ;;  %v328_v61 = vld [vmem:[%s4545_s6 + $0x668] sm:$0xff]  ;;  %v330_v62 = vld [vmem:[%s4545_s6 + $0x670] sm:$0xff] }
  0x30   : > { %327 = vst [vmem:[%s4550_s7 + $0x1e0] sm:$0xff] %v326_v60  ;;  %329 = vst [vmem:[%s4550_s7 + $0x1e8] sm:$0xff] %v328_v61  ;;  %v332_v63 = vld [vmem:[%s4545_s6 + $0x678] sm:$0xff] }
  0x31   : > { %331 = vst [vmem:[%s4550_s7 + $0x1f0] sm:$0xff] %v330_v62  ;;  %333 = vst [vmem:[%s4550_s7 + $0x1f8] sm:$0xff] %v332_v63 }
  0x32 PF: > { %p4181_p5 = scmp.ge.s32.totalorder %s4474_s20, 1  ;;  %p338_p6 = scmp.lt.s32.totalorder %s4474_s20, 5 }
  0x34   : > { %p339_p7 = pnand %p4181_p5, %p338_p6 }
  0x35   : > { %s345_s8 = sand.u32 (!%p339_p7), 1, %s4466_s18   ;;  %s4183_s9 = sshll.u32 (!%p339_p7), %s4525_s21, 5 }
  0x36   : > { %342 = sbr.rel (%p339_p7) target bundleno = 813 (0x32d), region = 59  ;;  %s4182_s10 = sshll.u32 (!%p339_p7), %s345_s8, 9 }
  0x37   : > { %p373_p8 = scmp.lt.s32.totalorder (!%p339_p7), %s4183_s9, 127  ;;  %s4686_s15 = scalar_lea.vmem (!%p339_p7), [#allocation3], %s4182_s10 }
  0x38   : > { %p4185_p9 = scmp.ne.s32.totalorder (!%p339_p7), %s4525_s21, 0 }
  0x3d   : > { %s5413_s9 = smov (!%p373_p8, %s4183_s9), 127  ;;  %383 = sbr.rel (%p4185_p9) target bundleno = 68 (0x44), region = 67 }
  0x3e   : > { %s4184_s11 = sshll.u32 %s5413_s9, 1  ;;  %vm384_vm0 = vcmask (!%p4185_p9), 254976   ;;  %v4476_v0 = vmov (!%p4185_p9), 0.0  }
  0x3f   : > { %s4684_s14 = scalar_lea.vmem %s5403_s0, %s4184_s11  ;;  %385 = vst.msk [vmem:[#allocation2] sm:$0x3] (!%p4185_p9), %vm384_vm0, %v4476_v0 }
  0x44 PF: > { %v603_v1 = vld [vmem:[%s4686_s15] sm:$0xff]  ;;  %v604_v3 = vld [vmem:[%s4686_s15 + $0x8] sm:$0xff]  ;;  %v407_v4 = vlaneseq  ;;  %v4477_v10 = vmov 1983009808   ;;  %v605_v26 = vld [vmem:[%s4686_s15 + $0x10] sm:$0xff]  ;;  %vm1628_vm1 = vcmask 254976  }
  0x45   : > { %v619_v2 = vld [vmem:[%s4686_s15 + $0x80] sm:$0xff]  ;;  %v620_v6 = vld [vmem:[%s4686_s15 + $0x88] sm:$0xff]  ;;  %v405_v11 = vunpack.c.l.s4 %v4477_v10  ;;  %v621_v27 = vld [vmem:[%s4686_s15 + $0x90] sm:$0xff]  ;;  %p4250_p10 = scmp.ne.s32.totalorder %s4525_s21, 3 }
  0x46   : > { %v4187_v5 = vcombine.high %v603_v1, %v619_v2  ;;  %v4186_v7 = vcombine.low %v603_v1, %v619_v2  ;;  %v635_v8 = vld [vmem:[%s4686_s15 + $0x100] sm:$0xff]  ;;  %v4189_v12 = vcombine.high %v604_v3, %v620_v6  ;;  %v4188_v13 = vcombine.low %v604_v3, %v620_v6  ;;  %v636_v15 = vld [vmem:[%s4686_s15 + $0x108] sm:$0xff]  ;;  %v606_v30 = vld [vmem:[%s4686_s15 + $0x18] sm:$0xff] }
  0x47   : > { %v651_v9 = vld [vmem:[%s4686_s15 + $0x180] sm:$0xff]  ;;  %v652_v16 = vld [vmem:[%s4686_s15 + $0x188] sm:$0xff]  ;;  %v406_v19 = vunpack.c.0.s8 %v405_v11  ;;  %v408_v20 = vshrl.u32 %v407_v4, 7  ;;  %v622_v31 = vld [vmem:[%s4686_s15 + $0x98] sm:$0xff]  ;;  %v4191_v35 = vcombine.high %v605_v26, %v621_v27  ;;  %v4190_v49 = vcombine.low %v605_v26, %v621_v27 }
  0x48   : > { %v4219_v14 = vcombine.high %v635_v8, %v651_v9  ;;  %v387_v17 = vld [vmem:[%s4684_s14] sm:$0xff]  ;;  %987 = vmatprep.subr.bf16.mxu0 %v4187_v5  ;;  %v4221_v18 = vcombine.high %v636_v15, %v652_v16  ;;  %1027 = vmatprep.subr.bf16.mxu1 %v4189_v12  ;;  %v388_v23 = vld [vmem:[%s4684_s14 + $0x8] sm:$0xff]  ;;  %v4218_v29 = vcombine.low %v635_v8, %v651_v9  ;;  %v637_v41 = vld [vmem:[%s4686_s15 + $0x110] sm:$0xff]  ;;  %vm2429_vm2 = vcmask (!%p4250_p10), 261120  }
  0x49   : > { %988 = vmatpush1.bf16.xpose.msra.mxu0 %v4186_v7  ;;  %v403_v21 = vcombine.high %v387_v17, %v387_v17  ;;  %1028 = vmatpush1.bf16.xpose.msra.mxu1 %v4188_v13  ;;  %v4698_v22 = vsub.s32 %v406_v19, %v408_v20  ;;  %v420_v28 = vcombine.high %v388_v23, %v388_v23  ;;  %v653_v42 = vld [vmem:[%s4686_s15 + $0x190] sm:$0xff]  ;;  %v638_v45 = vld [vmem:[%s4686_s15 + $0x118] sm:$0xff]  ;;  %v607_v56 = vld [vmem:[%s4686_s15 + $0x20] sm:$0xff] }
  0x4a   : > { %989 = vmatprep.subr.bf16.mxu0 %v4219_v14  ;;  %1029 = vmatprep.subr.bf16.mxu1 %v4221_v18  ;;  %v4220_v32 = vcombine.low %v636_v15, %v652_v16  ;;  %v4193_v39 = vcombine.high %v606_v30, %v622_v31  ;;  %v654_v46 = vld [vmem:[%s4686_s15 + $0x198] sm:$0xff]  ;;  %v4192_v50 = vcombine.low %v606_v30, %v622_v31  ;;  %v389_v55 = vld [vmem:[%s4684_s14 + $0x10] sm:$0xff]  ;;  %v623_v57 = vld [vmem:[%s4686_s15 + $0xa0] sm:$0xff] }
  0x4b   : > { %v410_v24 = vrot.slane %v387_v17, %v4698_v22  ;;  %v417_v25 = vrot.slane %v403_v21, %v4698_v22  ;;  %v427_v36 = vrot.slane %v388_v23, %v4698_v22  ;;  %v434_v40 = vrot.slane %v420_v28, %v4698_v22  ;;  %v608_v58 = vld [vmem:[%s4686_s15 + $0x28] sm:$0xff]  ;;  %v639_v3 = vld [vmem:[%s4686_s15 + $0x120] sm:$0xff]  ;;  %v390_v17 = vld [vmem:[%s4684_s14 + $0x18] sm:$0xff] }
  0x4c   : > { %v4223_v51 = vcombine.high %v637_v41, %v653_v42  ;;  %v4225_v52 = vcombine.high %v638_v45, %v654_v46  ;;  %v624_v59 = vld [vmem:[%s4686_s15 + $0xa8] sm:$0xff]  ;;  %v437_v60 = vcombine.high %v389_v55, %v389_v55  ;;  %v4222_v61 = vcombine.low %v637_v41, %v653_v42  ;;  %v655_v4 = vld [vmem:[%s4686_s15 + $0x1a0] sm:$0xff]  ;;  %v609_v18 = vld [vmem:[%s4686_s15 + $0x30] sm:$0xff] }
  0x4d   : > { %v418_v33 = vcombine.high %v410_v24, %v410_v24  ;;  %v419_v34 = vcombine.high %v417_v25, %v417_v25  ;;  %v435_v43 = vcombine.high %v427_v36, %v427_v36  ;;  %v571_v44 = vpack.c.bf16 %v410_v24, %v410_v24  ;;  %v640_v7 = vld [vmem:[%s4686_s15 + $0x128] sm:$0xff]  ;;  %v625_v19 = vld [vmem:[%s4686_s15 + $0xb0] sm:$0xff]  ;;  %v610_v20 = vld [vmem:[%s4686_s15 + $0x38] sm:$0xff] }
  0x4e   : > { %v436_v47 = vcombine.high %v434_v40, %v434_v40  ;;  %v573_v48 = vpack.c.bf16 %v417_v25, %v417_v25  ;;  %v4224_v62 = vcombine.low %v638_v45, %v654_v46  ;;  %v4195_v63 = vcombine.high %v607_v56, %v623_v57  ;;  %v656_v8 = vld [vmem:[%s4686_s15 + $0x1a8] sm:$0xff]  ;;  %v626_v21 = vld [vmem:[%s4686_s15 + $0xb8] sm:$0xff]  ;;  %v641_v30 = vld [vmem:[%s4686_s15 + $0x130] sm:$0xff] }
  0x4f   : > { %v572_v37 = vpack.c.bf16 %v418_v33, %v418_v33  ;;  %v574_v38 = vpack.c.bf16 %v419_v34, %v419_v34  ;;  %v576_v53 = vpack.c.bf16 %v435_v43, %v435_v43  ;;  %v4197_v0 = vcombine.high %v608_v58, %v624_v59  ;;  %v657_v31 = vld [vmem:[%s4686_s15 + $0x1b0] sm:$0xff]  ;;  %v642_v34 = vld [vmem:[%s4686_s15 + $0x138] sm:$0xff]  ;;  %v611_v45 = vld [vmem:[%s4686_s15 + $0x40] sm:$0xff] }
  0x50   : > { %v578_v54 = vpack.c.bf16 %v436_v47, %v436_v47  ;;  %v444_v1 = vrot.slane %v389_v55, %v4698_v22  ;;  %v451_v2 = vrot.slane %v437_v60, %v4698_v22  ;;  %v575_v6 = vpack.c.bf16 %v427_v36, %v427_v36  ;;  %v627_v46 = vld [vmem:[%s4686_s15 + $0xc0] sm:$0xff]  ;;  %v612_v47 = vld [vmem:[%s4686_s15 + $0x48] sm:$0xff] }
  0x51   : > { %990 = vmatpush1.bf16.xpose.msra.mxu0 %v4218_v29  ;;  %1030 = vmatpush1.bf16.xpose.msra.mxu1 %v4220_v32  ;;  %v577_v10 = vpack.c.bf16 %v434_v40, %v434_v40  ;;  %v4194_v11 = vcombine.low %v607_v56, %v623_v57  ;;  %v4196_v12 = vcombine.low %v608_v58, %v624_v59  ;;  %v643_v56 = vld [vmem:[%s4686_s15 + $0x140] sm:$0xff]  ;;  %v644_v60 = vld [vmem:[%s4686_s15 + $0x148] sm:$0xff] }
  0x52   : > { %1019 = vmatprep.mubr.bf16.mxu0 %v572_v37  ;;  %1059 = vmatprep.mubr.bf16.mxu1 %v574_v38  ;;  %v452_v5 = vcombine.high %v444_v1, %v444_v1  ;;  %v453_v9 = vcombine.high %v451_v2, %v451_v2  ;;  %v4227_v13 = vcombine.high %v639_v3, %v655_v4  ;;  %v659_v57 = vld [vmem:[%s4686_s15 + $0x1c0] sm:$0xff] }
  0x53   : > { %1067 = vmatprep.subr.bf16.mxu0 %v4191_v35  ;;  %1107 = vmatprep.subr.bf16.mxu1 %v4193_v39  ;;  %v4229_v14 = vcombine.high %v640_v7, %v656_v8  ;;  %v454_v23 = vcombine.high %v390_v17, %v390_v17  ;;  %v4226_v24 = vcombine.low %v639_v3, %v655_v4  ;;  %v658_v35 = vld [vmem:[%s4686_s15 + $0x1b8] sm:$0xff] }
  0x54   : > { %v580_v15 = vpack.c.bf16 %v452_v5, %v452_v5  ;;  %v582_v16 = vpack.c.bf16 %v453_v9, %v453_v9  ;;  %v4228_v25 = vcombine.low %v640_v7, %v656_v8  ;;  %v4199_v26 = vcombine.high %v609_v18, %v625_v19  ;;  %v613_v7 = vld [vmem:[%s4686_s15 + $0x50] sm:$0xff]  ;;  %v614_v9 = vld [vmem:[%s4686_s15 + $0x58] sm:$0xff] }
  0x55   : > { %v4201_v27 = vcombine.high %v610_v20, %v626_v21  ;;  %v461_v28 = vrot.slane %v390_v17, %v4698_v22  ;;  %v468_v29 = vrot.slane %v454_v23, %v4698_v22  ;;  %v579_v33 = vpack.c.bf16 %v444_v1, %v444_v1  ;;  %v629_v8 = vld [vmem:[%s4686_s15 + $0xd0] sm:$0xff]  ;;  %v646_v23 = vld [vmem:[%s4686_s15 + $0x158] sm:$0xff] }
  0x56   : > { %v581_v37 = vpack.c.bf16 %v451_v2, %v451_v2  ;;  %v4198_v38 = vcombine.low %v609_v18, %v625_v19  ;;  %v4200_v39 = vcombine.low %v610_v20, %v626_v21  ;;  %v4231_v40 = vcombine.high %v641_v30, %v657_v31  ;;  %v645_v18 = vld [vmem:[%s4686_s15 + $0x150] sm:$0xff] }
  0x57   : > { %v469_v32 = vcombine.high %v461_v28, %v461_v28  ;;  %v470_v36 = vcombine.high %v468_v29, %v468_v29  ;;  %v4233_v41 = vcombine.high %v642_v34, %v658_v35  ;;  %v583_v59 = vpack.c.bf16 %v461_v28, %v461_v28  ;;  %v661_v19 = vld [vmem:[%s4686_s15 + $0x1d0] sm:$0xff] }
  0x58   : > { %1020 = vmatmul.mubr.bf16.vlgmr.msra.gmra.mrb[0].mxu0 %v571_v44  ;;  %1060 = vmatmul.mubr.bf16.vlgmr.msra.gmra.mrb[0].mxu1 %v573_v48  ;;  %v391_v44 = vld [vmem:[%s4684_s14 + $0x20] sm:$0xff]  ;;  %v628_v48 = vld [vmem:[%s4686_s15 + $0xc8] sm:$0xff]  ;;  %v4235_v2 = vcombine.high %v643_v56, %v659_v57 }
  0x59   : > { %1068 = vmatpush1.bf16.xpose.msra.mxu0 %v4190_v49  ;;  %1108 = vmatpush1.bf16.xpose.msra.mxu1 %v4192_v50  ;;  %v584_v42 = vpack.c.bf16 %v469_v32, %v469_v32  ;;  %v586_v43 = vpack.c.bf16 %v470_v36, %v470_v36  ;;  %v471_v49 = vcombine.high %v391_v44, %v391_v44  ;;  %v616_v36 = vld [vmem:[%s4686_s15 + $0x68] sm:$0xff] }
  0x5a   : > { %1069 = vmatprep.subr.bf16.mxu0 %v4223_v51  ;;  %1109 = vmatprep.subr.bf16.mxu1 %v4225_v52  ;;  %v4230_v50 = vcombine.low %v641_v30, %v657_v31  ;;  %v4232_v51 = vcombine.low %v642_v34, %v658_v35  ;;  %v4203_v52 = vcombine.high %v611_v45, %v627_v46  ;;  %v615_v34 = vld [vmem:[%s4686_s15 + $0x60] sm:$0xff] }
  0x5b   : > { %1099 = vmatprep.mubr.bf16.mxu0 %v576_v53  ;;  %1139 = vmatprep.mubr.bf16.mxu1 %v578_v54  ;;  %v4205_v53 = vcombine.high %v612_v47, %v628_v48  ;;  %v478_v54 = vrot.slane %v391_v44, %v4698_v22  ;;  %v485_v55 = vrot.slane %v471_v49, %v4698_v22  ;;  %v631_v35 = vld [vmem:[%s4686_s15 + $0xe0] sm:$0xff]  ;;  %v648_v49 = vld [vmem:[%s4686_s15 + $0x168] sm:$0xff] }
  0x5c   : > { %v4204_v1 = vcombine.low %v612_v47, %v628_v48 }
  0x5d   : > { %v486_v58 = vcombine.high %v478_v54, %v478_v54  ;;  %v587_v21 = vpack.c.bf16 %v478_v54, %v478_v54 }
  0x5f   : > { %v588_v4 = vpack.c.bf16 %v486_v58, %v486_v58 }
  0x61   : > { %1070 = vmatpush1.bf16.xpose.msra.mxu0 %v4222_v61  ;;  %1110 = vmatpush1.bf16.xpose.msra.mxu1 %v4224_v62  ;;  %v660_v61 = vld [vmem:[%s4686_s15 + $0x1c8] sm:$0xff]  ;;  %v487_v62 = vcombine.high %v485_v55, %v485_v55 }
  0x62   : > { %1147 = vmatprep.subr.bf16.mxu0 %v4195_v63  ;;  %1187 = vmatprep.subr.bf16.mxu1 %v4197_v0  ;;  %v585_v63 = vpack.c.bf16 %v468_v29, %v468_v29  ;;  %v4202_v0 = vcombine.low %v611_v45, %v627_v46  ;;  %v4237_v3 = vcombine.high %v644_v60, %v660_v61  ;;  %v647_v45 = vld [vmem:[%s4686_s15 + $0x160] sm:$0xff] }
  0x63   : > { %v590_v5 = vpack.c.bf16 %v487_v62, %v487_v62  ;;  %v4239_v29 = vcombine.high %v645_v18, %v661_v19  ;;  %v663_v46 = vld [vmem:[%s4686_s15 + $0x1e0] sm:$0xff]  ;;  %v618_v62 = vld [vmem:[%s4686_s15 + $0x78] sm:$0xff] }
  0x68   : > { %1100 = vmatmul.mubr.bf16.vlgmr.msra.gmra.mrb[4].mxu0 %v575_v6  ;;  %1140 = vmatmul.mubr.bf16.vlgmr.msra.gmra.mrb[4].mxu1 %v577_v10  ;;  %v392_v6 = vld [vmem:[%s4684_s14 + $0x28] sm:$0xff]  ;;  %v630_v10 = vld [vmem:[%s4686_s15 + $0xd8] sm:$0xff] }
  0x69   : > { %1148 = vmatpush1.bf16.xpose.msra.mxu0 %v4194_v11  ;;  %1188 = vmatpush1.bf16.xpose.msra.mxu1 %v4196_v12  ;;  %v488_v11 = vcombine.high %v392_v6, %v392_v6  ;;  %v4234_v12 = vcombine.low %v643_v56, %v659_v57  ;;  %v4208_v28 = vcombine.low %v614_v9, %v630_v10 }
  0x6a   : > { %1149 = vmatprep.subr.bf16.mxu0 %v4227_v13  ;;  %1189 = vmatprep.subr.bf16.mxu1 %v4229_v14  ;;  %v4236_v13 = vcombine.low %v644_v60, %v660_v61  ;;  %v4207_v14 = vcombine.high %v613_v7, %v629_v8  ;;  %v617_v60 = vld [vmem:[%s4686_s15 + $0x70] sm:$0xff] }
  0x6b   : > { %1179 = vmatprep.mubr.bf16.mxu0 %v580_v15  ;;  %1219 = vmatprep.mubr.bf16.mxu1 %v582_v16  ;;  %v4209_v15 = vcombine.high %v614_v9, %v630_v10  ;;  %v495_v16 = vrot.slane %v392_v6, %v4698_v22  ;;  %v502_v17 = vrot.slane %v488_v11, %v4698_v22  ;;  %v633_v61 = vld [vmem:[%s4686_s15 + $0xf0] sm:$0xff]  ;;  %v650_v11 = vld [vmem:[%s4686_s15 + $0x178] sm:$0xff] }
  0x6d   : > { %v503_v20 = vcombine.high %v495_v16, %v495_v16  ;;  %v591_v48 = vpack.c.bf16 %v495_v16, %v495_v16 }
  0x6f   : > { %v592_v31 = vpack.c.bf16 %v503_v20, %v503_v20 }
  0x71   : > { %1150 = vmatpush1.bf16.xpose.msra.mxu0 %v4226_v24  ;;  %1190 = vmatpush1.bf16.xpose.msra.mxu1 %v4228_v25  ;;  %v662_v24 = vld [vmem:[%s4686_s15 + $0x1d8] sm:$0xff]  ;;  %v504_v25 = vcombine.high %v502_v17, %v502_v17 }
  0x72   : > { %1227 = vmatprep.subr.bf16.mxu0 %v4199_v26  ;;  %1267 = vmatprep.subr.bf16.mxu1 %v4201_v27  ;;  %v589_v26 = vpack.c.bf16 %v485_v55, %v485_v55  ;;  %v4206_v27 = vcombine.low %v613_v7, %v629_v8  ;;  %v4241_v30 = vcombine.high %v646_v23, %v662_v24  ;;  %v649_v7 = vld [vmem:[%s4686_s15 + $0x170] sm:$0xff] }
  0x73   : > { %v594_v32 = vpack.c.bf16 %v504_v25, %v504_v25  ;;  %v4243_v55 = vcombine.high %v647_v45, %v663_v46  ;;  %v665_v8 = vld [vmem:[%s4686_s15 + $0x1f0] sm:$0xff] }
  0x78   : > { %1180 = vmatmul.mubr.bf16.vlgmr.msra.gmra.mrb[8].mxu0 %v579_v33  ;;  %1220 = vmatmul.mubr.bf16.vlgmr.msra.gmra.mrb[8].mxu1 %v581_v37  ;;  %v393_v33 = vld [vmem:[%s4684_s14 + $0x30] sm:$0xff] }
  0x79   : > { %1228 = vmatpush1.bf16.xpose.msra.mxu0 %v4198_v38  ;;  %1268 = vmatpush1.bf16.xpose.msra.mxu1 %v4200_v39  ;;  %v632_v37 = vld [vmem:[%s4686_s15 + $0xe8] sm:$0xff]  ;;  %v505_v38 = vcombine.high %v393_v33, %v393_v33  ;;  %v4238_v39 = vcombine.low %v645_v18, %v661_v19 }
  0x7a   : > { %1229 = vmatprep.subr.bf16.mxu0 %v4231_v40  ;;  %1269 = vmatprep.subr.bf16.mxu1 %v4233_v41  ;;  %v4240_v40 = vcombine.low %v646_v23, %v662_v24  ;;  %v4211_v41 = vcombine.high %v615_v34, %v631_v35  ;;  %v4212_v54 = vcombine.low %v616_v36, %v632_v37 }
  0x7b   : > { %1259 = vmatprep.mubr.bf16.mxu0 %v584_v42  ;;  %1299 = vmatprep.mubr.bf16.mxu1 %v586_v43  ;;  %v4213_v42 = vcombine.high %v616_v36, %v632_v37  ;;  %v512_v43 = vrot.slane %v393_v33, %v4698_v22  ;;  %v519_v44 = vrot.slane %v505_v38, %v4698_v22 }
  0x7d   : > { %v520_v47 = vcombine.high %v512_v43, %v512_v43  ;;  %v595_v10 = vpack.c.bf16 %v512_v43, %v512_v43 }
  0x7f   : > { %v596_v57 = vpack.c.bf16 %v520_v47, %v520_v47 }
  0x81   : > { %1230 = vmatpush1.bf16.xpose.msra.mxu0 %v4230_v50  ;;  %1270 = vmatpush1.bf16.xpose.msra.mxu1 %v4232_v51  ;;  %v664_v50 = vld [vmem:[%s4686_s15 + $0x1e8] sm:$0xff]  ;;  %v521_v51 = vcombine.high %v519_v44, %v519_v44 }
  0x82   : > { %1307 = vmatprep.subr.bf16.mxu0 %v4203_v52  ;;  %1347 = vmatprep.subr.bf16.mxu1 %v4205_v53  ;;  %v593_v52 = vpack.c.bf16 %v502_v17, %v502_v17  ;;  %v4210_v53 = vcombine.low %v615_v34, %v631_v35  ;;  %v4245_v56 = vcombine.high %v648_v49, %v664_v50 }
  0x83   : > { %v598_v58 = vpack.c.bf16 %v521_v51, %v521_v51  ;;  %v4247_v17 = vcombine.high %v649_v7, %v665_v8 }
  0x88   : > { %1260 = vmatmul.mubr.bf16.vlgmr.msra.gmra.mrb[12].mxu0 %v583_v59  ;;  %1300 = vmatmul.mubr.bf16.vlgmr.msra.gmra.mrb[12].mxu1 %v585_v63  ;;  %v394_v59 = vld [vmem:[%s4684_s14 + $0x38] sm:$0xff] }
  0x89   : > { %1308 = vmatpush1.bf16.xpose.msra.mxu0 %v4202_v0  ;;  %1348 = vmatpush1.bf16.xpose.msra.mxu1 %v4204_v1  ;;  %v634_v63 = vld [vmem:[%s4686_s15 + $0xf8] sm:$0xff]  ;;  %v522_v0 = vcombine.high %v394_v59, %v394_v59  ;;  %v4242_v1 = vcombine.low %v647_v45, %v663_v46 }
  0x8a   : > { %1309 = vmatprep.subr.bf16.mxu0 %v4235_v2  ;;  %1349 = vmatprep.subr.bf16.mxu1 %v4237_v3  ;;  %v4244_v2 = vcombine.low %v648_v49, %v664_v50  ;;  %v4215_v3 = vcombine.high %v617_v60, %v633_v61  ;;  %v4216_v16 = vcombine.low %v618_v62, %v634_v63 }
  0x8b   : > { %1339 = vmatprep.mubr.bf16.mxu0 %v588_v4  ;;  %1379 = vmatprep.mubr.bf16.mxu1 %v590_v5  ;;  %v4217_v4 = vcombine.high %v618_v62, %v634_v63  ;;  %v529_v5 = vrot.slane %v394_v59, %v4698_v22  ;;  %v536_v6 = vrot.slane %v522_v0, %v4698_v22 }
  0x8d   : > { %v537_v9 = vcombine.high %v529_v5, %v529_v5  ;;  %v599_v24 = vpack.c.bf16 %v529_v5, %v529_v5  ;;  %v601_v25 = vpack.c.bf16 %v536_v6, %v536_v6 }
  0x8f   : > { %v600_v19 = vpack.c.bf16 %v537_v9, %v537_v9 }
  0x91   : > { %1310 = vmatpush1.bf16.xpose.msra.mxu0 %v4234_v12  ;;  %1350 = vmatpush1.bf16.xpose.msra.mxu1 %v4236_v13  ;;  %v666_v12 = vld [vmem:[%s4686_s15 + $0x1f8] sm:$0xff]  ;;  %v538_v13 = vcombine.high %v536_v6, %v536_v6 }
  0x92   : > { %1387 = vmatprep.subr.bf16.mxu0 %v4207_v14  ;;  %1427 = vmatprep.subr.bf16.mxu1 %v4209_v15  ;;  %v597_v14 = vpack.c.bf16 %v519_v44, %v519_v44  ;;  %v4214_v15 = vcombine.low %v617_v60, %v633_v61  ;;  %v4249_v18 = vcombine.high %v650_v11, %v666_v12 }
  0x93   : > { %v602_v20 = vpack.c.bf16 %v538_v13, %v538_v13  ;;  %v4248_v23 = vcombine.low %v650_v11, %v666_v12 }
  0x98   : > { %1340 = vmatmul.mubr.bf16.vlgmr.msra.gmra.mrb[16].mxu0 %v587_v21  ;;  %1380 = vmatmul.mubr.bf16.vlgmr.msra.gmra.mrb[16].mxu1 %v589_v26  ;;  %v4246_v21 = vcombine.low %v649_v7, %v665_v8 }
  0x99   : > { %1388 = vmatpush1.bf16.xpose.msra.mxu0 %v4206_v27  ;;  %1428 = vmatpush1.bf16.xpose.msra.mxu1 %v4208_v28 }
  0x9a   : > { %1389 = vmatprep.subr.bf16.mxu0 %v4239_v29  ;;  %1429 = vmatprep.subr.bf16.mxu1 %v4241_v30 }
  0x9b   : > { %1419 = vmatprep.mubr.bf16.mxu0 %v592_v31  ;;  %1459 = vmatprep.mubr.bf16.mxu1 %v594_v32 }
  0xa1   : > { %1390 = vmatpush1.bf16.xpose.msra.mxu0 %v4238_v39  ;;  %1430 = vmatpush1.bf16.xpose.msra.mxu1 %v4240_v40 }
  0xa2   : > { %1467 = vmatprep.subr.bf16.mxu0 %v4211_v41  ;;  %1507 = vmatprep.subr.bf16.mxu1 %v4213_v42 }
  0xa8   : > { %1420 = vmatmul.mubr.bf16.vlgmr.msra.gmra.mrb[20].mxu0 %v591_v48  ;;  %1460 = vmatmul.mubr.bf16.vlgmr.msra.gmra.mrb[20].mxu1 %v593_v52 }
  0xa9   : > { %1468 = vmatpush1.bf16.xpose.msra.mxu0 %v4210_v53  ;;  %1508 = vmatpush1.bf16.xpose.msra.mxu1 %v4212_v54 }
  0xaa   : > { %1469 = vmatprep.subr.bf16.mxu0 %v4243_v55  ;;  %1509 = vmatprep.subr.bf16.mxu1 %v4245_v56 }
  0xab   : > { %1499 = vmatprep.mubr.bf16.mxu0 %v596_v57  ;;  %1539 = vmatprep.mubr.bf16.mxu1 %v598_v58 }
  0xb1   : > { %1470 = vmatpush1.bf16.xpose.msra.mxu0 %v4242_v1  ;;  %1510 = vmatpush1.bf16.xpose.msra.mxu1 %v4244_v2 }
  0xb2   : > { %1547 = vmatprep.subr.bf16.mxu0 %v4215_v3  ;;  %1587 = vmatprep.subr.bf16.mxu1 %v4217_v4 }
  0xb8   : > { %1500 = vmatmul.mubr.bf16.vlgmr.msra.gmra.mrb[24].mxu0 %v595_v10  ;;  %1540 = vmatmul.mubr.bf16.vlgmr.msra.gmra.mrb[24].mxu1 %v597_v14 }
  0xb9   : > { %1548 = vmatpush1.bf16.xpose.msra.mxu0 %v4214_v15  ;;  %1588 = vmatpush1.bf16.xpose.msra.mxu1 %v4216_v16 }
  0xba   : > { %1549 = vmatprep.subr.bf16.mxu0 %v4247_v17  ;;  %1589 = vmatprep.subr.bf16.mxu1 %v4249_v18 }
  0xbb   : > { %1579 = vmatprep.mubr.bf16.mxu0 %v600_v19  ;;  %1619 = vmatprep.mubr.bf16.mxu1 %v602_v20 }
  0xc1   : > { %1550 = vmatpush1.bf16.xpose.msra.mxu0 %v4246_v21  ;;  %1590 = vmatpush1.bf16.xpose.msra.mxu1 %v4248_v23 }
  0xc8   : > { %1580 = vmatmul.mubr.bf16.vlgmr.msra.gmra.mrb[28].mxu0 %v599_v24  ;;  %1620 = vmatmul.mubr.bf16.vlgmr.msra.gmra.mrb[28].mxu1 %v601_v25 }
 0x12b   : > { %v1021_v26 = vpop.f32.mrb[0].mxu0  ;;  %v1061_v27 = vpop.f32.mrb[0].mxu1 }
 0x12c   : > { %v1023_v28 = vpop.f32.mrb[1].mxu0  ;;  %v1062_v29 = vadd.f32 %v1061_v27, %v1021_v26  ;;  %v1063_v30 = vpop.f32.mrb[1].mxu1 }
 0x12d   : > { %v1024_v31 = vpop.f32.mrb[2].mxu0  ;;  %v1064_v32 = vpop.f32.mrb[2].mxu1 }
 0x12e   : > { %v1025_v33 = vpop.f32.mrb[3].mxu0  ;;  %v1065_v34 = vpop.f32.mrb[3].mxu1 }
 0x13b   : > { %v1101_v35 = vpop.f32.mrb[4].mxu0  ;;  %v1141_v37 = vpop.f32.mrb[4].mxu1 }
 0x13c   : > { %v1102_v36 = vadd.f32 %v1101_v35, %v1062_v29  ;;  %v1103_v38 = vpop.f32.mrb[5].mxu0  ;;  %v1143_v39 = vpop.f32.mrb[5].mxu1 }
 0x13d   : > { %v1104_v40 = vpop.f32.mrb[6].mxu0  ;;  %v1144_v42 = vpop.f32.mrb[6].mxu1 }
 0x13e   : > { %v1142_v41 = vadd.f32 %v1141_v37, %v1102_v36  ;;  %v1105_v43 = vpop.f32.mrb[7].mxu0  ;;  %v1145_v44 = vpop.f32.mrb[7].mxu1  ;;  %v386_v36 = vld [vmem:[#allocation2] sm:$0x3] }
 0x13f   : > { %v1661_v44 = vld [vmem:[%s5406_s3] sm:$0xff] (!%p4250_p10) }
 0x14b   : > { %v1181_v45 = vpop.f32.mrb[8].mxu0  ;;  %v1221_v47 = vpop.f32.mrb[8].mxu1 }
 0x14c   : > { %v1182_v46 = vadd.f32 %v1181_v45, %v1142_v41  ;;  %v1183_v48 = vpop.f32.mrb[9].mxu0  ;;  %v1223_v49 = vpop.f32.mrb[9].mxu1  ;;  %v1693_v45 = vld [vmem:[%s5406_s3 + $0x100] sm:$0xff] (!%p4250_p10) }
 0x14d   : > { %v1184_v50 = vpop.f32.mrb[10].mxu0  ;;  %v1224_v52 = vpop.f32.mrb[10].mxu1  ;;  %v1694_v48 = vld [vmem:[%s5406_s3 + $0x108] sm:$0xff] (!%p4250_p10)  ;;  %v4252_v49 = vcombine.low (!%p4250_p10), %v1661_v44, %v1693_v45 }
 0x14e   : > { %v1222_v51 = vadd.f32 %v1221_v47, %v1182_v46  ;;  %v1185_v53 = vpop.f32.mrb[11].mxu0  ;;  %v1225_v54 = vpop.f32.mrb[11].mxu1  ;;  %v1662_v46 = vld [vmem:[%s5406_s3 + $0x8] sm:$0xff] (!%p4250_p10)  ;;  %v4253_v47 = vcombine.high (!%p4250_p10), %v1661_v44, %v1693_v45  ;;  %v1725_v50 = vld [vmem:[%s5406_s3 + $0x200] sm:$0xff] (!%p4250_p10)  ;;  %v4478_v52 = vmov (!%p4250_p10), 0   ;;  %v1764_v44 = vld [vmem:[%s5406_s3 + $0x338] sm:$0xff] (!%p4250_p10) }
 0x14f   : > { %2465 = vmatprep.mubr.bf16.mxu0 (!%p4250_p10), %v4478_v52  ;;  %2506 = vmatprep.mubr.bf16.mxu1 (!%p4250_p10), %v4478_v52  ;;  %v4255_v53 = vcombine.high (!%p4250_p10), %v1662_v46, %v1694_v48  ;;  %v4254_v54 = vcombine.low (!%p4250_p10), %v1662_v46, %v1694_v48 }
 0x150   : > { %2433 = vmatprep.subr.bf16.mxu0 (!%p4250_p10), %v4253_v47 }
 0x151   : > { %2474 = vmatprep.subr.bf16.mxu1 (!%p4250_p10), %v4255_v53  ;;  %2434 = vmatpush1.bf16.msra.mxu0 (!%p4250_p10), %v4252_v49  ;;  %v1669_v49 = vld [vmem:[%s5406_s3 + $0x40] sm:$0xff] (!%p4250_p10)  ;;  %v1702_v53 = vld [vmem:[%s5406_s3 + $0x148] sm:$0xff] (!%p4250_p10) }
 0x152   : > { %2475 = vmatpush1.bf16.msra.mxu1 (!%p4250_p10), %v4254_v54 }
 0x15b   : > { %v1261_v55 = vpop.f32.mrb[12].mxu0  ;;  %v1301_v57 = vpop.f32.mrb[12].mxu1 }
 0x15c   : > { %v1262_v56 = vadd.f32 %v1261_v55, %v1222_v51  ;;  %v1263_v58 = vpop.f32.mrb[13].mxu0  ;;  %v1303_v59 = vpop.f32.mrb[13].mxu1  ;;  %v1757_v51 = vld [vmem:[%s5406_s3 + $0x300] sm:$0xff] (!%p4250_p10) }
 0x15d   : > { %v1264_v60 = vpop.f32.mrb[14].mxu0  ;;  %v1304_v62 = vpop.f32.mrb[14].mxu1  ;;  %v4317_v55 = vcombine.high (!%p4250_p10), %v1725_v50, %v1757_v51  ;;  %v1663_v58 = vld [vmem:[%s5406_s3 + $0x10] sm:$0xff] (!%p4250_p10) }
 0x15e   : > { %v1302_v61 = vadd.f32 %v1301_v57, %v1262_v56  ;;  %v1265_v63 = vpop.f32.mrb[15].mxu0  ;;  %v1305_v0 = vpop.f32.mrb[15].mxu1  ;;  %v1726_v56 = vld [vmem:[%s5406_s3 + $0x208] sm:$0xff] (!%p4250_p10)  ;;  %v1695_v60 = vld [vmem:[%s5406_s3 + $0x110] sm:$0xff] (!%p4250_p10)  ;;  %v1696_v62 = vld [vmem:[%s5406_s3 + $0x118] sm:$0xff] (!%p4250_p10) }
 0x15f   : > { %v1758_v57 = vld [vmem:[%s5406_s3 + $0x308] sm:$0xff] (!%p4250_p10)  ;;  %v4316_v63 = vcombine.low (!%p4250_p10), %v1725_v50, %v1757_v51  ;;  %2435 = vmatprep.subr.bf16.mxu0 (!%p4250_p10), %v4317_v55  ;;  %v1701_v50 = vld [vmem:[%s5406_s3 + $0x140] sm:$0xff] (!%p4250_p10) }
 0x160   : > { %v4319_v59 = vcombine.high (!%p4250_p10), %v1726_v56, %v1758_v57  ;;  %v1670_v51 = vld [vmem:[%s5406_s3 + $0x48] sm:$0xff] (!%p4250_p10) }
 0x161   : > { %2436 = vmatpush1.bf16.msra.mxu0 (!%p4250_p10), %v4316_v63  ;;  %v4270_v63 = vcombine.low (!%p4250_p10), %v1670_v51, %v1702_v53 }
 0x162   : > { %2476 = vmatprep.subr.bf16.mxu1 (!%p4250_p10), %v4319_v59  ;;  %v1765_v59 = vld [vmem:[%s5406_s3 + $0x340] sm:$0xff] (!%p4250_p10) }
 0x16b   : > { %v1341_v1 = vpop.f32.mrb[16].mxu0  ;;  %v1381_v3 = vpop.f32.mrb[16].mxu1 }
 0x16c   : > { %v1342_v2 = vadd.f32 %v1341_v1, %v1302_v61  ;;  %v1343_v4 = vpop.f32.mrb[17].mxu0  ;;  %v1383_v5 = vpop.f32.mrb[17].mxu1  ;;  %v1664_v61 = vld [vmem:[%s5406_s3 + $0x18] sm:$0xff] (!%p4250_p10)  ;;  %v4251_v1 = vld [vmem:[%s5405_s2] ss:$0 sm:$0xff] (!%p4250_p10) }
 0x16d   : > { %v1344_v6 = vpop.f32.mrb[18].mxu0  ;;  %v1384_v8 = vpop.f32.mrb[18].mxu1  ;;  %v4259_v5 = vcombine.high (!%p4250_p10), %v1664_v61, %v1696_v62 }
 0x16e   : > { %v1382_v7 = vadd.f32 %v1381_v3, %v1342_v2  ;;  %v1345_v9 = vpop.f32.mrb[19].mxu0  ;;  %v1385_v10 = vpop.f32.mrb[19].mxu1  ;;  %v4318_v2 = vcombine.low (!%p4250_p10), %v1726_v56, %v1758_v57  ;;  %v4257_v3 = vcombine.high (!%p4250_p10), %v1663_v58, %v1695_v60  ;;  %v1727_v6 = vld [vmem:[%s5406_s3 + $0x210] sm:$0xff] (!%p4250_p10)  ;;  %v1728_v8 = vld [vmem:[%s5406_s3 + $0x218] sm:$0xff] (!%p4250_p10)  ;;  %v4269_v56 = vcombine.high (!%p4250_p10), %v1669_v49, %v1701_v50 }
 0x16f   : > { %v1760_v9 = vld [vmem:[%s5406_s3 + $0x318] sm:$0xff] (!%p4250_p10)  ;;  %v4271_v57 = vcombine.high (!%p4250_p10), %v1670_v51, %v1702_v53  ;;  %v1677_v53 = vld [vmem:[%s5406_s3 + $0x80] sm:$0xff] (!%p4250_p10) }
 0x170   : > { %2477 = vmatpush1.bf16.msra.mxu1 (!%p4250_p10), %v4318_v2  ;;  %2515 = vmatprep.subr.bf16.mxu0 (!%p4250_p10), %v4257_v3  ;;  %v1671_v2 = vld [vmem:[%s5406_s3 + $0x50] sm:$0xff] (!%p4250_p10) }
 0x171   : > { %2556 = vmatprep.subr.bf16.mxu1 (!%p4250_p10), %v4259_v5  ;;  %v1703_v3 = vld [vmem:[%s5406_s3 + $0x150] sm:$0xff] (!%p4250_p10)  ;;  %v1704_v5 = vld [vmem:[%s5406_s3 + $0x158] sm:$0xff] (!%p4250_p10) }
 0x17b   : > { %v1421_v11 = vpop.f32.mrb[20].mxu0  ;;  %v1461_v13 = vpop.f32.mrb[20].mxu1 }
 0x17c   : > { %v1422_v12 = vadd.f32 %v1421_v11, %v1382_v7  ;;  %v1423_v14 = vpop.f32.mrb[21].mxu0  ;;  %v1463_v15 = vpop.f32.mrb[21].mxu1  ;;  %v1759_v7 = vld [vmem:[%s5406_s3 + $0x310] sm:$0xff] (!%p4250_p10)  ;;  %v4256_v11 = vcombine.low (!%p4250_p10), %v1663_v58, %v1695_v60  ;;  %v1733_v58 = vld [vmem:[%s5406_s3 + $0x240] sm:$0xff] (!%p4250_p10)  ;;  %v1734_v60 = vld [vmem:[%s5406_s3 + $0x248] sm:$0xff] (!%p4250_p10) }
 0x17d   : > { %v1424_v16 = vpop.f32.mrb[22].mxu0  ;;  %v1464_v18 = vpop.f32.mrb[22].mxu1  ;;  %v4321_v14 = vcombine.high (!%p4250_p10), %v1727_v6, %v1759_v7  ;;  %v4323_v15 = vcombine.high (!%p4250_p10), %v1728_v8, %v1760_v9 }
 0x17e   : > { %v1462_v17 = vadd.f32 %v1461_v13, %v1422_v12  ;;  %v1425_v19 = vpop.f32.mrb[23].mxu0  ;;  %v1465_v20 = vpop.f32.mrb[23].mxu1  ;;  %v4258_v12 = vcombine.low (!%p4250_p10), %v1664_v61, %v1696_v62  ;;  %v1665_v16 = vld [vmem:[%s5406_s3 + $0x20] sm:$0xff] (!%p4250_p10)  ;;  %v1666_v18 = vld [vmem:[%s5406_s3 + $0x28] sm:$0xff] (!%p4250_p10)  ;;  %v4268_v62 = vcombine.low (!%p4250_p10), %v1669_v49, %v1701_v50 }
 0x17f   : > { %v1698_v19 = vld [vmem:[%s5406_s3 + $0x128] sm:$0xff] (!%p4250_p10)  ;;  %v4320_v20 = vcombine.low (!%p4250_p10), %v1727_v6, %v1759_v7  ;;  %v4332_v6 = vcombine.low (!%p4250_p10), %v1733_v58, %v1765_v59 }
 0x180   : > { %v1766_v61 = vld [vmem:[%s5406_s3 + $0x348] sm:$0xff] (!%p4250_p10) }
 0x181   : > { %v4334_v7 = vcombine.low (!%p4250_p10), %v1734_v60, %v1766_v61 }
 0x18b   : > { %v1501_v21 = vpop.f32.mrb[24].mxu0  ;;  %v1541_v24 = vpop.f32.mrb[24].mxu1 }
 0x18c   : > { %v1502_v23 = vadd.f32 %v1501_v21, %v1462_v17  ;;  %v1503_v25 = vpop.f32.mrb[25].mxu0  ;;  %v1543_v26 = vpop.f32.mrb[25].mxu1  ;;  %v1697_v17 = vld [vmem:[%s5406_s3 + $0x120] sm:$0xff] (!%p4250_p10)  ;;  %v4322_v21 = vcombine.low (!%p4250_p10), %v1728_v8, %v1760_v9  ;;  %v4273_v8 = vcombine.high (!%p4250_p10), %v1671_v2, %v1703_v3 }
 0x18d   : > { %v1504_v27 = vpop.f32.mrb[26].mxu0  ;;  %v1544_v29 = vpop.f32.mrb[26].mxu1  ;;  %v1729_v25 = vld [vmem:[%s5406_s3 + $0x220] sm:$0xff] (!%p4250_p10) }
 0x18e   : > { %v1542_v28 = vadd.f32 %v1541_v24, %v1502_v23  ;;  %v1505_v30 = vpop.f32.mrb[27].mxu0  ;;  %v1545_v31 = vpop.f32.mrb[27].mxu1  ;;  %v4261_v23 = vcombine.high (!%p4250_p10), %v1665_v16, %v1697_v17  ;;  %v4263_v24 = vcombine.high (!%p4250_p10), %v1666_v18, %v1698_v19  ;;  %v1761_v26 = vld [vmem:[%s5406_s3 + $0x320] sm:$0xff] (!%p4250_p10)  ;;  %v1730_v27 = vld [vmem:[%s5406_s3 + $0x228] sm:$0xff] (!%p4250_p10)  ;;  %v4260_v29 = vcombine.low (!%p4250_p10), %v1665_v16, %v1697_v17 }
 0x18f   : > { %v4262_v30 = vcombine.low (!%p4250_p10), %v1666_v18, %v1698_v19  ;;  %v4325_v31 = vcombine.high (!%p4250_p10), %v1729_v25, %v1761_v26  ;;  %v1673_v19 = vld [vmem:[%s5406_s3 + $0x60] sm:$0xff] (!%p4250_p10) }
 0x19b   : > { %v1581_v32 = vpop.f32.mrb[28].mxu0  ;;  %v1621_v34 = vpop.f32.mrb[28].mxu1 }
 0x19c   : > { %v1582_v33 = vadd.f32 %v1581_v32, %v1542_v28  ;;  %v1583_v35 = vpop.f32.mrb[29].mxu0  ;;  %v1623_v37 = vpop.f32.mrb[29].mxu1  ;;  %1633 = sbr.rel (%p4250_p10) target bundleno = 813 (0x32d), region = 71  ;;  %v1762_v28 = vld [vmem:[%s5406_s3 + $0x328] sm:$0xff] (!%p4250_p10) }
 0x19d   : > { %v1584_v38 = vpop.f32.mrb[30].mxu0  ;;  %v1624_v40 = vpop.f32.mrb[30].mxu1  ;;  %v4327_v32 = vcombine.high (!%p4250_p10), %v1730_v27, %v1762_v28  ;;  %v1668_v35 = vld [vmem:[%s5406_s3 + $0x38] sm:$0xff] (!%p4250_p10)  ;;  %v4324_v37 = vcombine.low (!%p4250_p10), %v1729_v25, %v1761_v26 }
 0x19e   : > { %v1622_v39 = vadd.f32 %v1621_v34, %v1582_v33  ;;  %v1585_v41 = vpop.f32.mrb[31].mxu0  ;;  %v1625_v42 = vpop.f32.mrb[31].mxu1  ;;  %v1667_v33 = vld [vmem:[%s5406_s3 + $0x30] sm:$0xff] (!%p4250_p10)  ;;  %v4326_v38 = vcombine.low (!%p4250_p10), %v1730_v27, %v1762_v28  ;;  %v1737_v28 = vld [vmem:[%s5406_s3 + $0x260] sm:$0xff] (!%p4250_p10) }
 0x19f   : > { %v1699_v34 = vld [vmem:[%s5406_s3 + $0x130] sm:$0xff] (!%p4250_p10) }
 0x1a0   : > { %v1627_v43 = vadd.f32 %v1622_v39, %v386_v36  ;;  %v1700_v36 = vld [vmem:[%s5406_s3 + $0x138] sm:$0xff] (!%p4250_p10)  ;;  %v4265_v39 = vcombine.high (!%p4250_p10), %v1667_v33, %v1699_v34  ;;  %v1731_v41 = vld [vmem:[%s5406_s3 + $0x230] sm:$0xff] (!%p4250_p10)  ;;  %v4264_v45 = vcombine.low (!%p4250_p10), %v1667_v33, %v1699_v34 }
 0x1a1   : > { %v4267_v40 = vcombine.high (!%p4250_p10), %v1668_v35, %v1700_v36  ;;  %v1763_v42 = vld [vmem:[%s5406_s3 + $0x330] sm:$0xff] (!%p4250_p10)  ;;  %v4266_v46 = vcombine.low (!%p4250_p10), %v1668_v35, %v1700_v36 }
 0x1a2   : > { %1629 = vst.msk [vmem:[#allocation2] sm:$0x3] %vm1628_vm1, %v1627_v43  ;;  %v1732_v43 = vld [vmem:[%s5406_s3 + $0x238] sm:$0xff] (!%p4250_p10)  ;;  %v4329_v47 = vcombine.high (!%p4250_p10), %v1731_v41, %v1763_v42  ;;  %v4328_v54 = vcombine.low (!%p4250_p10), %v1731_v41, %v1763_v42  ;;  %v1675_v36 = vld [vmem:[%s5406_s3 + $0x70] sm:$0xff] (!%p4250_p10) }
 0x1a3   : > { %v4331_v48 = vcombine.high %v1732_v43, %v1764_v44  ;;  %v4330_v55 = vcombine.low %v1732_v43, %v1764_v44  ;;  %v1739_v44 = vld [vmem:[%s5406_s3 + $0x270] sm:$0xff] }
 0x1a9   : > { %v1650_v0 = vld [vmem:[#allocation2] sm:$0x3] }
 0x1aa   : > { %v1658_v4 = vadd.f32 %v4251_v1, %v1650_v0  ;;  %v4333_v0 = vcombine.high %v1733_v58, %v1765_v59  ;;  %v4335_v1 = vcombine.high %v1734_v60, %v1766_v61  ;;  %v1741_v61 = vld [vmem:[%s5406_s3 + $0x280] sm:$0xff] }
 0x1ac   : > { %4450 = vtanh.f32 %v1658_v4  ;;  %v1672_v4 = vld [vmem:[%s5406_s3 + $0x58] sm:$0xff] }
 0x1ad   : > { %v4275_v9 = vcombine.high %v1672_v4, %v1704_v5  ;;  %v4274_v16 = vcombine.low %v1672_v4, %v1704_v5  ;;  %v1679_v5 = vld [vmem:[%s5406_s3 + $0x90] sm:$0xff] }
 0x1b6   : > { %v4451_v10 = vpop.eup %4450 }
 0x1b7   : > { %v4833_v13 = vpack.c.bf16 %v4451_v10, %v4451_v10  ;;  %v1735_v10 = vld [vmem:[%s5406_s3 + $0x250] sm:$0xff] }
 0x1b9   : > { %4380 = vmatmul.mubr.msk.bf16.vlgmr.msra.gmra.mrb[0].mxu0 %vm2429_vm2, %v4833_v13  ;;  %4381 = vmatmul.mubr.msk.bf16.vlgmr.msra.gmra.mrb[0].mxu1 %vm2429_vm2, %v4833_v13 }
 0x1ba   : > { %2516 = vmatpush1.bf16.msra.mxu0 %v4256_v11  ;;  %2557 = vmatpush1.bf16.msra.mxu1 %v4258_v12  ;;  %v1767_v11 = vld [vmem:[%s5406_s3 + $0x350] sm:$0xff]  ;;  %v1736_v12 = vld [vmem:[%s5406_s3 + $0x258] sm:$0xff] }
 0x1bb   : > { %2517 = vmatprep.subr.bf16.mxu0 %v4321_v14  ;;  %2558 = vmatprep.subr.bf16.mxu1 %v4323_v15  ;;  %v1768_v14 = vld [vmem:[%s5406_s3 + $0x358] sm:$0xff]  ;;  %v4272_v15 = vcombine.low %v1671_v2, %v1703_v3  ;;  %v4337_v17 = vcombine.high %v1735_v10, %v1767_v11 }
 0x1bc   : > { %2547 = vmatprep.mubr.bf16.mxu0 %v4478_v52  ;;  %2588 = vmatprep.mubr.bf16.mxu1 %v4478_v52  ;;  %v4339_v18 = vcombine.high %v1736_v12, %v1768_v14  ;;  %v4338_v25 = vcombine.low %v1736_v12, %v1768_v14  ;;  %v1743_v14 = vld [vmem:[%s5406_s3 + $0x290] sm:$0xff] }
 0x1be   : > { %2518 = vmatpush1.bf16.msra.mxu0 %v4320_v20  ;;  %2559 = vmatpush1.bf16.msra.mxu1 %v4322_v21  ;;  %v1705_v20 = vld [vmem:[%s5406_s3 + $0x160] sm:$0xff]  ;;  %v1674_v21 = vld [vmem:[%s5406_s3 + $0x68] sm:$0xff] }
 0x1bf   : > { %2597 = vmatprep.subr.bf16.mxu0 %v4261_v23  ;;  %2638 = vmatprep.subr.bf16.mxu1 %v4263_v24  ;;  %v1706_v23 = vld [vmem:[%s5406_s3 + $0x168] sm:$0xff]  ;;  %v4336_v24 = vcombine.low %v1735_v10, %v1767_v11  ;;  %v4277_v26 = vcombine.high %v1673_v19, %v1705_v20 }
 0x1c0   : > { %v4279_v27 = vcombine.high %v1674_v21, %v1706_v23  ;;  %v4278_v33 = vcombine.low %v1674_v21, %v1706_v23  ;;  %v1681_v23 = vld [vmem:[%s5406_s3 + $0xa0] sm:$0xff] }
 0x1c1   : > { %4382 = vmatmul.mubr.msk.bf16.vlgmr.msra.gmra.mrb[4].mxu0 %vm2429_vm2, %v4833_v13  ;;  %4383 = vmatmul.mubr.msk.bf16.vlgmr.msra.gmra.mrb[4].mxu1 %vm2429_vm2, %v4833_v13 }
 0x1c2   : > { %2598 = vmatpush1.bf16.msra.mxu0 %v4260_v29  ;;  %2639 = vmatpush1.bf16.msra.mxu1 %v4262_v30  ;;  %v1769_v29 = vld [vmem:[%s5406_s3 + $0x360] sm:$0xff]  ;;  %v1738_v30 = vld [vmem:[%s5406_s3 + $0x268] sm:$0xff] }
 0x1c3   : > { %2599 = vmatprep.subr.bf16.mxu0 %v4325_v31  ;;  %2640 = vmatprep.subr.bf16.mxu1 %v4327_v32  ;;  %v1770_v31 = vld [vmem:[%s5406_s3 + $0x368] sm:$0xff]  ;;  %v4276_v32 = vcombine.low %v1673_v19, %v1705_v20  ;;  %v4341_v34 = vcombine.high %v1737_v28, %v1769_v29 }
 0x1c4   : > { %2629 = vmatprep.mubr.bf16.mxu0 %v4478_v52  ;;  %2670 = vmatprep.mubr.bf16.mxu1 %v4478_v52  ;;  %v4343_v35 = vcombine.high %v1738_v30, %v1770_v31  ;;  %v4342_v41 = vcombine.low %v1738_v30, %v1770_v31  ;;  %v1745_v31 = vld [vmem:[%s5406_s3 + $0x2a0] sm:$0xff] }
 0x1c6   : > { %2600 = vmatpush1.bf16.msra.mxu0 %v4324_v37  ;;  %2641 = vmatpush1.bf16.msra.mxu1 %v4326_v38  ;;  %v1707_v37 = vld [vmem:[%s5406_s3 + $0x170] sm:$0xff]  ;;  %v1676_v38 = vld [vmem:[%s5406_s3 + $0x78] sm:$0xff] }
 0x1c7   : > { %2679 = vmatprep.subr.bf16.mxu0 %v4265_v39  ;;  %2720 = vmatprep.subr.bf16.mxu1 %v4267_v40  ;;  %v1708_v39 = vld [vmem:[%s5406_s3 + $0x178] sm:$0xff]  ;;  %v4340_v40 = vcombine.low %v1737_v28, %v1769_v29  ;;  %v4281_v42 = vcombine.high %v1675_v36, %v1707_v37 }
 0x1c8   : > { %v4283_v43 = vcombine.high %v1676_v38, %v1708_v39  ;;  %v4282_v49 = vcombine.low %v1676_v38, %v1708_v39  ;;  %v1683_v39 = vld [vmem:[%s5406_s3 + $0xb0] sm:$0xff] }
 0x1c9   : > { %4384 = vmatmul.mubr.msk.bf16.vlgmr.msra.gmra.mrb[8].mxu0 %vm2429_vm2, %v4833_v13  ;;  %4385 = vmatmul.mubr.msk.bf16.vlgmr.msra.gmra.mrb[8].mxu1 %vm2429_vm2, %v4833_v13 }
 0x1ca   : > { %2680 = vmatpush1.bf16.msra.mxu0 %v4264_v45  ;;  %2721 = vmatpush1.bf16.msra.mxu1 %v4266_v46  ;;  %v1771_v45 = vld [vmem:[%s5406_s3 + $0x370] sm:$0xff]  ;;  %v1740_v46 = vld [vmem:[%s5406_s3 + $0x278] sm:$0xff] }
 0x1cb   : > { %2681 = vmatprep.subr.bf16.mxu0 %v4329_v47  ;;  %2722 = vmatprep.subr.bf16.mxu1 %v4331_v48  ;;  %v1772_v47 = vld [vmem:[%s5406_s3 + $0x378] sm:$0xff]  ;;  %v4280_v48 = vcombine.low %v1675_v36, %v1707_v37  ;;  %v4345_v50 = vcombine.high %v1739_v44, %v1771_v45 }
 0x1cc   : > { %2711 = vmatprep.mubr.bf16.mxu0 %v4478_v52  ;;  %2752 = vmatprep.mubr.bf16.mxu1 %v4478_v52  ;;  %v4347_v51 = vcombine.high %v1740_v46, %v1772_v47  ;;  %v4346_v58 = vcombine.low %v1740_v46, %v1772_v47  ;;  %v1747_v47 = vld [vmem:[%s5406_s3 + $0x2b0] sm:$0xff] }
 0x1ce   : > { %2682 = vmatpush1.bf16.msra.mxu0 %v4328_v54  ;;  %2723 = vmatpush1.bf16.msra.mxu1 %v4330_v55  ;;  %v1709_v54 = vld [vmem:[%s5406_s3 + $0x180] sm:$0xff]  ;;  %v1678_v55 = vld [vmem:[%s5406_s3 + $0x88] sm:$0xff] }
 0x1cf   : > { %2761 = vmatprep.subr.bf16.mxu0 %v4269_v56  ;;  %2802 = vmatprep.subr.bf16.mxu1 %v4271_v57  ;;  %v1710_v56 = vld [vmem:[%s5406_s3 + $0x188] sm:$0xff]  ;;  %v4344_v57 = vcombine.low %v1739_v44, %v1771_v45  ;;  %v4285_v59 = vcombine.high %v1677_v53, %v1709_v54 }
 0x1d0   : > { %v4287_v60 = vcombine.high %v1678_v55, %v1710_v56  ;;  %v4286_v2 = vcombine.low %v1678_v55, %v1710_v56  ;;  %v1685_v56 = vld [vmem:[%s5406_s3 + $0xc0] sm:$0xff] }
 0x1d1   : > { %4386 = vmatmul.mubr.msk.bf16.vlgmr.msra.gmra.mrb[12].mxu0 %vm2429_vm2, %v4833_v13  ;;  %4387 = vmatmul.mubr.msk.bf16.vlgmr.msra.gmra.mrb[12].mxu1 %vm2429_vm2, %v4833_v13 }
 0x1d2   : > { %2762 = vmatpush1.bf16.msra.mxu0 %v4268_v62  ;;  %2803 = vmatpush1.bf16.msra.mxu1 %v4270_v63  ;;  %v1773_v62 = vld [vmem:[%s5406_s3 + $0x380] sm:$0xff]  ;;  %v1742_v63 = vld [vmem:[%s5406_s3 + $0x288] sm:$0xff] }
 0x1d3   : > { %2763 = vmatprep.subr.bf16.mxu0 %v4333_v0  ;;  %2804 = vmatprep.subr.bf16.mxu1 %v4335_v1  ;;  %v1774_v0 = vld [vmem:[%s5406_s3 + $0x388] sm:$0xff]  ;;  %v4284_v1 = vcombine.low %v1677_v53, %v1709_v54  ;;  %v4349_v3 = vcombine.high %v1741_v61, %v1773_v62 }
 0x1d4   : > { %2793 = vmatprep.mubr.bf16.mxu0 %v4478_v52  ;;  %2834 = vmatprep.mubr.bf16.mxu1 %v4478_v52  ;;  %v4351_v4 = vcombine.high %v1742_v63, %v1774_v0  ;;  %v4350_v10 = vcombine.low %v1742_v63, %v1774_v0  ;;  %v1749_v0 = vld [vmem:[%s5406_s3 + $0x2c0] sm:$0xff] }
 0x1d6   : > { %2764 = vmatpush1.bf16.msra.mxu0 %v4332_v6  ;;  %2805 = vmatpush1.bf16.msra.mxu1 %v4334_v7  ;;  %v1711_v6 = vld [vmem:[%s5406_s3 + $0x190] sm:$0xff]  ;;  %v1680_v7 = vld [vmem:[%s5406_s3 + $0x98] sm:$0xff] }
 0x1d7   : > { %2843 = vmatprep.subr.bf16.mxu0 %v4273_v8  ;;  %2884 = vmatprep.subr.bf16.mxu1 %v4275_v9  ;;  %v1712_v8 = vld [vmem:[%s5406_s3 + $0x198] sm:$0xff]  ;;  %v4348_v9 = vcombine.low %v1741_v61, %v1773_v62  ;;  %v4289_v11 = vcombine.high %v1679_v5, %v1711_v6 }
 0x1d8   : > { %v4291_v12 = vcombine.high %v1680_v7, %v1712_v8  ;;  %v4290_v19 = vcombine.low %v1680_v7, %v1712_v8  ;;  %v1687_v8 = vld [vmem:[%s5406_s3 + $0xd0] sm:$0xff] }
 0x1d9   : > { %4388 = vmatmul.mubr.msk.bf16.vlgmr.msra.gmra.mrb[16].mxu0 %vm2429_vm2, %v4833_v13  ;;  %4389 = vmatmul.mubr.msk.bf16.vlgmr.msra.gmra.mrb[16].mxu1 %vm2429_vm2, %v4833_v13 }
 0x1da   : > { %2844 = vmatpush1.bf16.msra.mxu0 %v4272_v15  ;;  %2885 = vmatpush1.bf16.msra.mxu1 %v4274_v16  ;;  %v1775_v15 = vld [vmem:[%s5406_s3 + $0x390] sm:$0xff]  ;;  %v1744_v16 = vld [vmem:[%s5406_s3 + $0x298] sm:$0xff] }
 0x1db   : > { %2845 = vmatprep.subr.bf16.mxu0 %v4337_v17  ;;  %2886 = vmatprep.subr.bf16.mxu1 %v4339_v18  ;;  %v1776_v17 = vld [vmem:[%s5406_s3 + $0x398] sm:$0xff]  ;;  %v4288_v18 = vcombine.low %v1679_v5, %v1711_v6  ;;  %v4353_v20 = vcombine.high %v1743_v14, %v1775_v15 }
 0x1dc   : > { %2875 = vmatprep.mubr.bf16.mxu0 %v4478_v52  ;;  %2916 = vmatprep.mubr.bf16.mxu1 %v4478_v52  ;;  %v4355_v21 = vcombine.high %v1744_v16, %v1776_v17  ;;  %v4354_v28 = vcombine.low %v1744_v16, %v1776_v17  ;;  %v1751_v17 = vld [vmem:[%s5406_s3 + $0x2d0] sm:$0xff] }
 0x1de   : > { %2846 = vmatpush1.bf16.msra.mxu0 %v4336_v24  ;;  %2887 = vmatpush1.bf16.msra.mxu1 %v4338_v25  ;;  %v1713_v24 = vld [vmem:[%s5406_s3 + $0x1a0] sm:$0xff]  ;;  %v1682_v25 = vld [vmem:[%s5406_s3 + $0xa8] sm:$0xff] }
 0x1df   : > { %2925 = vmatprep.subr.bf16.mxu0 %v4277_v26  ;;  %2966 = vmatprep.subr.bf16.mxu1 %v4279_v27  ;;  %v1714_v26 = vld [vmem:[%s5406_s3 + $0x1a8] sm:$0xff]  ;;  %v4352_v27 = vcombine.low %v1743_v14, %v1775_v15  ;;  %v4293_v29 = vcombine.high %v1681_v23, %v1713_v24 }
 0x1e0   : > { %v4295_v30 = vcombine.high %v1682_v25, %v1714_v26  ;;  %v4294_v36 = vcombine.low %v1682_v25, %v1714_v26  ;;  %v1689_v26 = vld [vmem:[%s5406_s3 + $0xe0] sm:$0xff] }
 0x1e1   : > { %4390 = vmatmul.mubr.msk.bf16.vlgmr.msra.gmra.mrb[20].mxu0 %vm2429_vm2, %v4833_v13  ;;  %4391 = vmatmul.mubr.msk.bf16.vlgmr.msra.gmra.mrb[20].mxu1 %vm2429_vm2, %v4833_v13 }
 0x1e2   : > { %2926 = vmatpush1.bf16.msra.mxu0 %v4276_v32  ;;  %2967 = vmatpush1.bf16.msra.mxu1 %v4278_v33  ;;  %v1777_v32 = vld [vmem:[%s5406_s3 + $0x3a0] sm:$0xff]  ;;  %v1746_v33 = vld [vmem:[%s5406_s3 + $0x2a8] sm:$0xff] }
 0x1e3   : > { %2927 = vmatprep.subr.bf16.mxu0 %v4341_v34  ;;  %2968 = vmatprep.subr.bf16.mxu1 %v4343_v35  ;;  %v1778_v34 = vld [vmem:[%s5406_s3 + $0x3a8] sm:$0xff]  ;;  %v4292_v35 = vcombine.low %v1681_v23, %v1713_v24  ;;  %v4357_v37 = vcombine.high %v1745_v31, %v1777_v32 }
 0x1e4   : > { %2957 = vmatprep.mubr.bf16.mxu0 %v4478_v52  ;;  %2998 = vmatprep.mubr.bf16.mxu1 %v4478_v52  ;;  %v4359_v38 = vcombine.high %v1746_v33, %v1778_v34  ;;  %v4358_v44 = vcombine.low %v1746_v33, %v1778_v34  ;;  %v1753_v34 = vld [vmem:[%s5406_s3 + $0x2e0] sm:$0xff] }
 0x1e6   : > { %2928 = vmatpush1.bf16.msra.mxu0 %v4340_v40  ;;  %2969 = vmatpush1.bf16.msra.mxu1 %v4342_v41  ;;  %v1715_v40 = vld [vmem:[%s5406_s3 + $0x1b0] sm:$0xff]  ;;  %v1684_v41 = vld [vmem:[%s5406_s3 + $0xb8] sm:$0xff] }
 0x1e7   : > { %3007 = vmatprep.subr.bf16.mxu0 %v4281_v42  ;;  %3048 = vmatprep.subr.bf16.mxu1 %v4283_v43  ;;  %v1716_v42 = vld [vmem:[%s5406_s3 + $0x1b8] sm:$0xff]  ;;  %v4356_v43 = vcombine.low %v1745_v31, %v1777_v32  ;;  %v4297_v45 = vcombine.high %v1683_v39, %v1715_v40 }
 0x1e8   : > { %v4299_v46 = vcombine.high %v1684_v41, %v1716_v42  ;;  %v4298_v53 = vcombine.low %v1684_v41, %v1716_v42  ;;  %v1691_v42 = vld [vmem:[%s5406_s3 + $0xf0] sm:$0xff] }
 0x1e9   : > { %4392 = vmatmul.mubr.msk.bf16.vlgmr.msra.gmra.mrb[24].mxu0 %vm2429_vm2, %v4833_v13  ;;  %4393 = vmatmul.mubr.msk.bf16.vlgmr.msra.gmra.mrb[24].mxu1 %vm2429_vm2, %v4833_v13 }
 0x1ea   : > { %3008 = vmatpush1.bf16.msra.mxu0 %v4280_v48  ;;  %3049 = vmatpush1.bf16.msra.mxu1 %v4282_v49  ;;  %v1779_v48 = vld [vmem:[%s5406_s3 + $0x3b0] sm:$0xff]  ;;  %v1748_v49 = vld [vmem:[%s5406_s3 + $0x2b8] sm:$0xff] }
 0x1eb   : > { %3009 = vmatprep.subr.bf16.mxu0 %v4345_v50  ;;  %3050 = vmatprep.subr.bf16.mxu1 %v4347_v51  ;;  %v1780_v50 = vld [vmem:[%s5406_s3 + $0x3b8] sm:$0xff]  ;;  %v4296_v51 = vcombine.low %v1683_v39, %v1715_v40  ;;  %v4361_v54 = vcombine.high %v1747_v47, %v1779_v48 }
 0x1ec   : > { %3039 = vmatprep.mubr.bf16.mxu0 %v4478_v52  ;;  %3080 = vmatprep.mubr.bf16.mxu1 %v4478_v52  ;;  %v4363_v55 = vcombine.high %v1748_v49, %v1780_v50  ;;  %v4362_v61 = vcombine.low %v1748_v49, %v1780_v50  ;;  %v1755_v50 = vld [vmem:[%s5406_s3 + $0x2f0] sm:$0xff] }
 0x1ee   : > { %3010 = vmatpush1.bf16.msra.mxu0 %v4344_v57  ;;  %3051 = vmatpush1.bf16.msra.mxu1 %v4346_v58  ;;  %v1717_v57 = vld [vmem:[%s5406_s3 + $0x1c0] sm:$0xff]  ;;  %v1686_v58 = vld [vmem:[%s5406_s3 + $0xc8] sm:$0xff] }
 0x1ef   : > { %3089 = vmatprep.subr.bf16.mxu0 %v4285_v59  ;;  %3130 = vmatprep.subr.bf16.mxu1 %v4287_v60  ;;  %v1718_v59 = vld [vmem:[%s5406_s3 + $0x1c8] sm:$0xff]  ;;  %v4360_v60 = vcombine.low %v1747_v47, %v1779_v48  ;;  %v4301_v62 = vcombine.high %v1685_v56, %v1717_v57 }
 0x1f0   : > { %v4303_v63 = vcombine.high %v1686_v58, %v1718_v59  ;;  %v4302_v5 = vcombine.low %v1686_v58, %v1718_v59 }
 0x1f1   : > { %4394 = vmatmul.mubr.msk.bf16.vlgmr.msra.gmra.mrb[28].mxu0 %vm2429_vm2, %v4833_v13  ;;  %4395 = vmatmul.mubr.msk.bf16.vlgmr.msra.gmra.mrb[28].mxu1 %vm2429_vm2, %v4833_v13 }
 0x1f2   : > { %3090 = vmatpush1.bf16.msra.mxu0 %v4284_v1  ;;  %3131 = vmatpush1.bf16.msra.mxu1 %v4286_v2  ;;  %v1781_v1 = vld [vmem:[%s5406_s3 + $0x3c0] sm:$0xff]  ;;  %v1750_v2 = vld [vmem:[%s5406_s3 + $0x2c8] sm:$0xff] }
 0x1f3   : > { %3091 = vmatprep.subr.bf16.mxu0 %v4349_v3  ;;  %3132 = vmatprep.subr.bf16.mxu1 %v4351_v4  ;;  %v1782_v3 = vld [vmem:[%s5406_s3 + $0x3c8] sm:$0xff]  ;;  %v4300_v4 = vcombine.low %v1685_v56, %v1717_v57  ;;  %v4365_v6 = vcombine.high %v1749_v0, %v1781_v1 }
 0x1f4   : > { %3121 = vmatprep.mubr.bf16.mxu0 %v4478_v52  ;;  %3162 = vmatprep.mubr.bf16.mxu1 %v4478_v52  ;;  %v4367_v7 = vcombine.high %v1750_v2, %v1782_v3  ;;  %v4366_v14 = vcombine.low %v1750_v2, %v1782_v3 }
 0x1f6   : > { %3092 = vmatpush1.bf16.msra.mxu0 %v4348_v9  ;;  %3133 = vmatpush1.bf16.msra.mxu1 %v4350_v10  ;;  %v1719_v9 = vld [vmem:[%s5406_s3 + $0x1d0] sm:$0xff]  ;;  %v1688_v10 = vld [vmem:[%s5406_s3 + $0xd8] sm:$0xff] }
 0x1f7   : > { %3171 = vmatprep.subr.bf16.mxu0 %v4289_v11  ;;  %3212 = vmatprep.subr.bf16.mxu1 %v4291_v12  ;;  %v1720_v11 = vld [vmem:[%s5406_s3 + $0x1d8] sm:$0xff]  ;;  %v4364_v12 = vcombine.low %v1749_v0, %v1781_v1  ;;  %v4305_v15 = vcombine.high %v1687_v8, %v1719_v9 }
 0x1f8   : > { %v4307_v16 = vcombine.high %v1688_v10, %v1720_v11  ;;  %v4306_v23 = vcombine.low %v1688_v10, %v1720_v11 }
 0x1f9   : > { %4396 = vmatmul.mubr.msk.bf16.vlgmr.msra.gmra.mrb[32].mxu0 %vm2429_vm2, %v4833_v13  ;;  %4397 = vmatmul.mubr.msk.bf16.vlgmr.msra.gmra.mrb[32].mxu1 %vm2429_vm2, %v4833_v13 }
 0x1fa   : > { %3172 = vmatpush1.bf16.msra.mxu0 %v4288_v18  ;;  %3213 = vmatpush1.bf16.msra.mxu1 %v4290_v19  ;;  %v1783_v18 = vld [vmem:[%s5406_s3 + $0x3d0] sm:$0xff]  ;;  %v1752_v19 = vld [vmem:[%s5406_s3 + $0x2d8] sm:$0xff] }
 0x1fb   : > { %3173 = vmatprep.subr.bf16.mxu0 %v4353_v20  ;;  %3214 = vmatprep.subr.bf16.mxu1 %v4355_v21  ;;  %v1784_v20 = vld [vmem:[%s5406_s3 + $0x3d8] sm:$0xff]  ;;  %v4304_v21 = vcombine.low %v1687_v8, %v1719_v9  ;;  %v4369_v24 = vcombine.high %v1751_v17, %v1783_v18  ;;  %v1634_v8 = vld [vmem:[%s5407_s4] sm:$0xff] }
 0x1fc   : > { %3203 = vmatprep.mubr.bf16.mxu0 %v4478_v52  ;;  %3244 = vmatprep.mubr.bf16.mxu1 %v4478_v52  ;;  %v4371_v25 = vcombine.high %v1752_v19, %v1784_v20  ;;  %v4370_v31 = vcombine.low %v1752_v19, %v1784_v20 }
 0x1fe   : > { %3174 = vmatpush1.bf16.msra.mxu0 %v4352_v27  ;;  %3215 = vmatpush1.bf16.msra.mxu1 %v4354_v28  ;;  %v1721_v27 = vld [vmem:[%s5406_s3 + $0x1e0] sm:$0xff]  ;;  %v1690_v28 = vld [vmem:[%s5406_s3 + $0xe8] sm:$0xff] }
 0x1ff   : > { %3253 = vmatprep.subr.bf16.mxu0 %v4293_v29  ;;  %3294 = vmatprep.subr.bf16.mxu1 %v4295_v30  ;;  %v1722_v29 = vld [vmem:[%s5406_s3 + $0x1e8] sm:$0xff]  ;;  %v4368_v30 = vcombine.low %v1751_v17, %v1783_v18  ;;  %v4309_v32 = vcombine.high %v1689_v26, %v1721_v27 }
 0x200   : > { %v4311_v33 = vcombine.high %v1690_v28, %v1722_v29  ;;  %v4310_v39 = vcombine.low %v1690_v28, %v1722_v29 }
 0x201   : > { %4398 = vmatmul.mubr.msk.bf16.vlgmr.msra.gmra.mrb[36].mxu0 %vm2429_vm2, %v4833_v13  ;;  %4399 = vmatmul.mubr.msk.bf16.vlgmr.msra.gmra.mrb[36].mxu1 %vm2429_vm2, %v4833_v13 }
 0x202   : > { %3254 = vmatpush1.bf16.msra.mxu0 %v4292_v35  ;;  %3295 = vmatpush1.bf16.msra.mxu1 %v4294_v36  ;;  %v1785_v35 = vld [vmem:[%s5406_s3 + $0x3e0] sm:$0xff]  ;;  %v1754_v36 = vld [vmem:[%s5406_s3 + $0x2e8] sm:$0xff] }
 0x203   : > { %3255 = vmatprep.subr.bf16.mxu0 %v4357_v37  ;;  %3296 = vmatprep.subr.bf16.mxu1 %v4359_v38  ;;  %v1786_v37 = vld [vmem:[%s5406_s3 + $0x3e8] sm:$0xff]  ;;  %v4308_v38 = vcombine.low %v1689_v26, %v1721_v27  ;;  %v4373_v40 = vcombine.high %v1753_v34, %v1785_v35 }
 0x204   : > { %3285 = vmatprep.mubr.bf16.mxu0 %v4478_v52  ;;  %3326 = vmatprep.mubr.bf16.mxu1 %v4478_v52  ;;  %v4375_v41 = vcombine.high %v1754_v36, %v1786_v37  ;;  %v4374_v47 = vcombine.low %v1754_v36, %v1786_v37 }
 0x206   : > { %3256 = vmatpush1.bf16.msra.mxu0 %v4356_v43  ;;  %3297 = vmatpush1.bf16.msra.mxu1 %v4358_v44  ;;  %v1723_v43 = vld [vmem:[%s5406_s3 + $0x1f0] sm:$0xff]  ;;  %v1692_v44 = vld [vmem:[%s5406_s3 + $0xf8] sm:$0xff] }
 0x207   : > { %3335 = vmatprep.subr.bf16.mxu0 %v4297_v45  ;;  %3376 = vmatprep.subr.bf16.mxu1 %v4299_v46  ;;  %v1724_v45 = vld [vmem:[%s5406_s3 + $0x1f8] sm:$0xff]  ;;  %v4372_v46 = vcombine.low %v1753_v34, %v1785_v35  ;;  %v4313_v48 = vcombine.high %v1691_v42, %v1723_v43 }
 0x208   : > { %v4315_v49 = vcombine.high %v1692_v44, %v1724_v45  ;;  %v4314_v56 = vcombine.low %v1692_v44, %v1724_v45 }
 0x209   : > { %4400 = vmatmul.mubr.msk.bf16.vlgmr.msra.gmra.mrb[40].mxu0 %vm2429_vm2, %v4833_v13  ;;  %4401 = vmatmul.mubr.msk.bf16.vlgmr.msra.gmra.mrb[40].mxu1 %vm2429_vm2, %v4833_v13 }
 0x20a   : > { %3336 = vmatpush1.bf16.msra.mxu0 %v4296_v51  ;;  %3377 = vmatpush1.bf16.msra.mxu1 %v4298_v53  ;;  %v1787_v51 = vld [vmem:[%s5406_s3 + $0x3f0] sm:$0xff]  ;;  %v1756_v53 = vld [vmem:[%s5406_s3 + $0x2f8] sm:$0xff] }
 0x20b   : > { %3337 = vmatprep.subr.bf16.mxu0 %v4361_v54  ;;  %3378 = vmatprep.subr.bf16.mxu1 %v4363_v55  ;;  %v1788_v54 = vld [vmem:[%s5406_s3 + $0x3f8] sm:$0xff]  ;;  %v4312_v55 = vcombine.low %v1691_v42, %v1723_v43  ;;  %v4377_v57 = vcombine.high %v1755_v50, %v1787_v51  ;;  %v4376_v59 = vcombine.low %v1755_v50, %v1787_v51 }
 0x20c   : > { %3367 = vmatprep.mubr.bf16.mxu0 %v4478_v52  ;;  %3408 = vmatprep.mubr.bf16.mxu1 %v4478_v52  ;;  %v4379_v58 = vcombine.high %v1756_v53, %v1788_v54 }
 0x20e   : > { %3338 = vmatpush1.bf16.msra.mxu0 %v4360_v60  ;;  %3379 = vmatpush1.bf16.msra.mxu1 %v4362_v61  ;;  %v4378_v60 = vcombine.low %v1756_v53, %v1788_v54 }
 0x20f   : > { %3417 = vmatprep.subr.bf16.mxu0 %v4301_v62  ;;  %3458 = vmatprep.subr.bf16.mxu1 %v4303_v63 }
 0x211   : > { %4402 = vmatmul.mubr.msk.bf16.vlgmr.msra.gmra.mrb[44].mxu0 %vm2429_vm2, %v4833_v13  ;;  %4403 = vmatmul.mubr.msk.bf16.vlgmr.msra.gmra.mrb[44].mxu1 %vm2429_vm2, %v4833_v13 }
 0x212   : > { %3418 = vmatpush1.bf16.msra.mxu0 %v4300_v4  ;;  %3459 = vmatpush1.bf16.msra.mxu1 %v4302_v5 }
 0x213   : > { %3419 = vmatprep.subr.bf16.mxu0 %v4365_v6  ;;  %3460 = vmatprep.subr.bf16.mxu1 %v4367_v7 }
 0x214   : > { %3449 = vmatprep.mubr.bf16.mxu0 %v4478_v52  ;;  %3490 = vmatprep.mubr.bf16.mxu1 %v4478_v52 }
 0x216   : > { %3420 = vmatpush1.bf16.msra.mxu0 %v4364_v12  ;;  %3461 = vmatpush1.bf16.msra.mxu1 %v4366_v14 }
 0x217   : > { %3499 = vmatprep.subr.bf16.mxu0 %v4305_v15  ;;  %3540 = vmatprep.subr.bf16.mxu1 %v4307_v16 }
 0x219   : > { %4404 = vmatmul.mubr.msk.bf16.vlgmr.msra.gmra.mrb[48].mxu0 %vm2429_vm2, %v4833_v13  ;;  %4405 = vmatmul.mubr.msk.bf16.vlgmr.msra.gmra.mrb[48].mxu1 %vm2429_vm2, %v4833_v13 }
 0x21a   : > { %3500 = vmatpush1.bf16.msra.mxu0 %v4304_v21  ;;  %3541 = vmatpush1.bf16.msra.mxu1 %v4306_v23 }
 0x21b   : > { %3501 = vmatprep.subr.bf16.mxu0 %v4369_v24  ;;  %3542 = vmatprep.subr.bf16.mxu1 %v4371_v25 }
 0x21c   : > { %3531 = vmatprep.mubr.bf16.mxu0 %v4478_v52  ;;  %3572 = vmatprep.mubr.bf16.mxu1 %v4478_v52 }
 0x21e   : > { %3502 = vmatpush1.bf16.msra.mxu0 %v4368_v30  ;;  %3543 = vmatpush1.bf16.msra.mxu1 %v4370_v31 }
 0x21f   : > { %3581 = vmatprep.subr.bf16.mxu0 %v4309_v32  ;;  %3622 = vmatprep.subr.bf16.mxu1 %v4311_v33 }
 0x221   : > { %4406 = vmatmul.mubr.msk.bf16.vlgmr.msra.gmra.mrb[52].mxu0 %vm2429_vm2, %v4833_v13  ;;  %4407 = vmatmul.mubr.msk.bf16.vlgmr.msra.gmra.mrb[52].mxu1 %vm2429_vm2, %v4833_v13 }
 0x222   : > { %3582 = vmatpush1.bf16.msra.mxu0 %v4308_v38  ;;  %3623 = vmatpush1.bf16.msra.mxu1 %v4310_v39 }
 0x223   : > { %3583 = vmatprep.subr.bf16.mxu0 %v4373_v40  ;;  %3624 = vmatprep.subr.bf16.mxu1 %v4375_v41 }
 0x224   : > { %3613 = vmatprep.mubr.bf16.mxu0 %v4478_v52  ;;  %3654 = vmatprep.mubr.bf16.mxu1 %v4478_v52 }
 0x226   : > { %3584 = vmatpush1.bf16.msra.mxu0 %v4372_v46  ;;  %3625 = vmatpush1.bf16.msra.mxu1 %v4374_v47 }
 0x227   : > { %3663 = vmatprep.subr.bf16.mxu0 %v4313_v48  ;;  %3704 = vmatprep.subr.bf16.mxu1 %v4315_v49 }
 0x229   : > { %4408 = vmatmul.mubr.msk.bf16.vlgmr.msra.gmra.mrb[56].mxu0 %vm2429_vm2, %v4833_v13  ;;  %4409 = vmatmul.mubr.msk.bf16.vlgmr.msra.gmra.mrb[56].mxu1 %vm2429_vm2, %v4833_v13 }
 0x22a   : > { %3664 = vmatpush1.bf16.msra.mxu0 %v4312_v55  ;;  %3705 = vmatpush1.bf16.msra.mxu1 %v4314_v56 }
 0x22b   : > { %3665 = vmatprep.subr.bf16.mxu0 %v4377_v57  ;;  %3706 = vmatprep.subr.bf16.mxu1 %v4379_v58 }
 0x22c   : > { %3695 = vmatprep.mubr.bf16.mxu0 %v4478_v52  ;;  %3736 = vmatprep.mubr.bf16.mxu1 %v4478_v52 }
 0x22e   : > { %3666 = vmatpush1.bf16.msra.mxu0 %v4376_v59  ;;  %3707 = vmatpush1.bf16.msra.mxu1 %v4378_v60 }
 0x231   : > { %4410 = vmatmul.mubr.msk.bf16.vlgmr.msra.gmra.mrb[60].mxu0 %vm2429_vm2, %v4833_v13  ;;  %4411 = vmatmul.mubr.msk.bf16.vlgmr.msra.gmra.mrb[60].mxu1 %vm2429_vm2, %v4833_v13 }
 0x28c   : > { %v2467_v61 = vpop.f32.mrb[0].mxu0  ;;  %v2508_v62 = vpop.f32.mrb[0].mxu1 }
 0x28d   : > { %v2469_v63 = vpop.f32.mrb[1].mxu0  ;;  %v2510_v0 = vpop.f32.mrb[1].mxu1 }
 0x28e   : > { %v3809_v1 = vcombine.low %v2467_v61, %v2469_v63  ;;  %v3810_v2 = vcombine.low %v2508_v62, %v2510_v0  ;;  %v2471_v3 = vpop.f32.mrb[2].mxu0  ;;  %v2512_v4 = vpop.f32.mrb[2].mxu1 }
 0x28f   : > { %v2472_v5 = vpop.f32.mrb[3].mxu0  ;;  %v2513_v6 = vpop.f32.mrb[3].mxu1 }
 0x290   : > { %v3817_v52 = vrot.slane %v3809_v1, %v4698_v22  ;;  %v3824_v7 = vrot.slane %v3810_v2, %v4698_v22 }
 0x292   : > { %v3825_v9 = vcombine.low %v3817_v52, %v3824_v7 }
 0x294   : > { %v4097_v13 = vadd.f32 %v3825_v9, %v1634_v8  ;;  %v2549_v10 = vpop.f32.mrb[4].mxu0  ;;  %v2590_v11 = vpop.f32.mrb[4].mxu1 }
 0x295   : > { %v2551_v12 = vpop.f32.mrb[5].mxu0  ;;  %v2592_v14 = vpop.f32.mrb[5].mxu1 }
 0x296   : > { %4113 = vst [vmem:[%s5408_s5] sm:$0xff] %v4097_v13  ;;  %v3826_v15 = vcombine.low %v2549_v10, %v2551_v12  ;;  %v3827_v16 = vcombine.low %v2590_v11, %v2592_v14  ;;  %v2553_v17 = vpop.f32.mrb[6].mxu0  ;;  %v2594_v18 = vpop.f32.mrb[6].mxu1 }
 0x297   : > { %v2554_v19 = vpop.f32.mrb[7].mxu0  ;;  %v2595_v20 = vpop.f32.mrb[7].mxu1 }
 0x298   : > { %v3834_v21 = vrot.slane %v3826_v15, %v4698_v22  ;;  %v3841_v23 = vrot.slane %v3827_v16, %v4698_v22 }
 0x29a   : > { %v3842_v25 = vcombine.low %v3834_v21, %v3841_v23 }
 0x29c   : > { %v2631_v27 = vpop.f32.mrb[8].mxu0  ;;  %v2672_v28 = vpop.f32.mrb[8].mxu1 }
 0x29d   : > { %v1635_v24 = vld [vmem:[%s5407_s4 + $0x8] sm:$0xff]  ;;  %v2633_v29 = vpop.f32.mrb[9].mxu0  ;;  %v2674_v30 = vpop.f32.mrb[9].mxu1 }
 0x29e   : > { %v4098_v26 = vadd.f32 %v3842_v25, %v1635_v24  ;;  %v3843_v31 = vcombine.low %v2631_v27, %v2633_v29  ;;  %v3844_v32 = vcombine.low %v2672_v28, %v2674_v30  ;;  %v2635_v33 = vpop.f32.mrb[10].mxu0  ;;  %v2676_v34 = vpop.f32.mrb[10].mxu1 }
 0x29f   : > { %v2636_v35 = vpop.f32.mrb[11].mxu0  ;;  %v2677_v36 = vpop.f32.mrb[11].mxu1 }
 0x2a0   : > { %4114 = vst [vmem:[%s5408_s5 + $0x8] sm:$0xff] %v4098_v26  ;;  %v3851_v37 = vrot.slane %v3843_v31, %v4698_v22  ;;  %v3858_v38 = vrot.slane %v3844_v32, %v4698_v22 }
 0x2a2   : > { %v3859_v40 = vcombine.low %v3851_v37, %v3858_v38 }
 0x2a4   : > { %v2713_v42 = vpop.f32.mrb[12].mxu0  ;;  %v2754_v43 = vpop.f32.mrb[12].mxu1 }
 0x2a5   : > { %v2715_v44 = vpop.f32.mrb[13].mxu0  ;;  %v2756_v45 = vpop.f32.mrb[13].mxu1 }
 0x2a6   : > { %v3860_v46 = vcombine.low %v2713_v42, %v2715_v44  ;;  %v3861_v47 = vcombine.low %v2754_v43, %v2756_v45  ;;  %v2717_v48 = vpop.f32.mrb[14].mxu0  ;;  %v2758_v49 = vpop.f32.mrb[14].mxu1 }
 0x2a7   : > { %v1636_v39 = vld [vmem:[%s5407_s4 + $0x10] sm:$0xff]  ;;  %v2718_v50 = vpop.f32.mrb[15].mxu0  ;;  %v2759_v51 = vpop.f32.mrb[15].mxu1 }
 0x2a8   : > { %v4099_v41 = vadd.f32 %v3859_v40, %v1636_v39  ;;  %v3868_v53 = vrot.slane %v3860_v46, %v4698_v22  ;;  %v3875_v54 = vrot.slane %v3861_v47, %v4698_v22 }
 0x2aa   : > { %4115 = vst [vmem:[%s5408_s5 + $0x10] sm:$0xff] %v4099_v41  ;;  %v3876_v56 = vcombine.low %v3868_v53, %v3875_v54 }
 0x2ac   : > { %v2795_v58 = vpop.f32.mrb[16].mxu0  ;;  %v2836_v59 = vpop.f32.mrb[16].mxu1 }
 0x2ad   : > { %v2797_v60 = vpop.f32.mrb[17].mxu0  ;;  %v2838_v61 = vpop.f32.mrb[17].mxu1 }
 0x2ae   : > { %v3877_v62 = vcombine.low %v2795_v58, %v2797_v60  ;;  %v3878_v63 = vcombine.low %v2836_v59, %v2838_v61  ;;  %v2799_v0 = vpop.f32.mrb[18].mxu0  ;;  %v2840_v1 = vpop.f32.mrb[18].mxu1 }
 0x2af   : > { %v2800_v2 = vpop.f32.mrb[19].mxu0  ;;  %v2841_v3 = vpop.f32.mrb[19].mxu1 }
 0x2b0   : > { %v3885_v4 = vrot.slane %v3877_v62, %v4698_v22  ;;  %v3892_v5 = vrot.slane %v3878_v63, %v4698_v22 }
 0x2b1   : > { %v1637_v55 = vld [vmem:[%s5407_s4 + $0x18] sm:$0xff] }
 0x2b2   : > { %v4100_v57 = vadd.f32 %v3876_v56, %v1637_v55  ;;  %v3893_v52 = vcombine.low %v3885_v4, %v3892_v5 }
 0x2b4   : > { %4116 = vst [vmem:[%s5408_s5 + $0x18] sm:$0xff] %v4100_v57  ;;  %v2877_v8 = vpop.f32.mrb[20].mxu0  ;;  %v2918_v9 = vpop.f32.mrb[20].mxu1 }
 0x2b5   : > { %v2879_v13 = vpop.f32.mrb[21].mxu0  ;;  %v2920_v10 = vpop.f32.mrb[21].mxu1 }
 0x2b6   : > { %v3894_v11 = vcombine.low %v2877_v8, %v2879_v13  ;;  %v3895_v12 = vcombine.low %v2918_v9, %v2920_v10  ;;  %v2881_v14 = vpop.f32.mrb[22].mxu0  ;;  %v2922_v15 = vpop.f32.mrb[22].mxu1 }
 0x2b7   : > { %v2882_v16 = vpop.f32.mrb[23].mxu0  ;;  %v2923_v17 = vpop.f32.mrb[23].mxu1 }
 0x2b8   : > { %v3902_v18 = vrot.slane %v3894_v11, %v4698_v22  ;;  %v3909_v19 = vrot.slane %v3895_v12, %v4698_v22 }
 0x2ba   : > { %v3910_v21 = vcombine.low %v3902_v18, %v3909_v19 }
 0x2bb   : > { %v1638_v6 = vld [vmem:[%s5407_s4 + $0x20] sm:$0xff] }
 0x2bc   : > { %v4101_v7 = vadd.f32 %v3893_v52, %v1638_v6  ;;  %v2959_v24 = vpop.f32.mrb[24].mxu0  ;;  %v3000_v25 = vpop.f32.mrb[24].mxu1 }
 0x2bd   : > { %v2961_v26 = vpop.f32.mrb[25].mxu0  ;;  %v3002_v27 = vpop.f32.mrb[25].mxu1 }
 0x2be   : > { %4117 = vst [vmem:[%s5408_s5 + $0x20] sm:$0xff] %v4101_v7  ;;  %v3911_v28 = vcombine.low %v2959_v24, %v2961_v26  ;;  %v3912_v29 = vcombine.low %v3000_v25, %v3002_v27  ;;  %v2963_v30 = vpop.f32.mrb[26].mxu0  ;;  %v3004_v31 = vpop.f32.mrb[26].mxu1 }
 0x2bf   : > { %v2964_v32 = vpop.f32.mrb[27].mxu0  ;;  %v3005_v33 = vpop.f32.mrb[27].mxu1 }
 0x2c0   : > { %v3919_v34 = vrot.slane %v3911_v28, %v4698_v22  ;;  %v3926_v35 = vrot.slane %v3912_v29, %v4698_v22 }
 0x2c2   : > { %v3927_v37 = vcombine.low %v3919_v34, %v3926_v35 }
 0x2c4   : > { %v3041_v39 = vpop.f32.mrb[28].mxu0  ;;  %v3082_v40 = vpop.f32.mrb[28].mxu1 }
 0x2c5   : > { %v1639_v20 = vld [vmem:[%s5407_s4 + $0x28] sm:$0xff]  ;;  %v3043_v41 = vpop.f32.mrb[29].mxu0  ;;  %v3084_v42 = vpop.f32.mrb[29].mxu1 }
 0x2c6   : > { %v4102_v23 = vadd.f32 %v3910_v21, %v1639_v20  ;;  %v3928_v43 = vcombine.low %v3041_v39, %v3043_v41  ;;  %v3929_v44 = vcombine.low %v3082_v40, %v3084_v42  ;;  %v3045_v45 = vpop.f32.mrb[30].mxu0  ;;  %v3086_v46 = vpop.f32.mrb[30].mxu1 }
 0x2c7   : > { %v3046_v47 = vpop.f32.mrb[31].mxu0  ;;  %v3087_v48 = vpop.f32.mrb[31].mxu1 }
 0x2c8   : > { %4118 = vst [vmem:[%s5408_s5 + $0x28] sm:$0xff] %v4102_v23  ;;  %v3936_v49 = vrot.slane %v3928_v43, %v4698_v22  ;;  %v3943_v50 = vrot.slane %v3929_v44, %v4698_v22 }
 0x2ca   : > { %v3944_v53 = vcombine.low %v3936_v49, %v3943_v50 }
 0x2cc   : > { %v3123_v55 = vpop.f32.mrb[32].mxu0  ;;  %v3164_v56 = vpop.f32.mrb[32].mxu1 }
 0x2cd   : > { %v3125_v57 = vpop.f32.mrb[33].mxu0  ;;  %v3166_v58 = vpop.f32.mrb[33].mxu1 }
 0x2ce   : > { %v3945_v59 = vcombine.low %v3123_v55, %v3125_v57  ;;  %v3946_v60 = vcombine.low %v3164_v56, %v3166_v58  ;;  %v3127_v61 = vpop.f32.mrb[34].mxu0  ;;  %v3168_v62 = vpop.f32.mrb[34].mxu1 }
 0x2cf   : > { %v1640_v36 = vld [vmem:[%s5407_s4 + $0x30] sm:$0xff]  ;;  %v3128_v63 = vpop.f32.mrb[35].mxu0  ;;  %v3169_v0 = vpop.f32.mrb[35].mxu1 }
 0x2d0   : > { %v4103_v38 = vadd.f32 %v3927_v37, %v1640_v36  ;;  %v3953_v1 = vrot.slane %v3945_v59, %v4698_v22  ;;  %v3960_v2 = vrot.slane %v3946_v60, %v4698_v22 }
 0x2d2   : > { %4119 = vst [vmem:[%s5408_s5 + $0x30] sm:$0xff] %v4103_v38  ;;  %v3961_v4 = vcombine.low %v3953_v1, %v3960_v2 }
 0x2d4   : > { %v3205_v6 = vpop.f32.mrb[36].mxu0  ;;  %v3246_v52 = vpop.f32.mrb[36].mxu1 }
 0x2d5   : > { %v3207_v7 = vpop.f32.mrb[37].mxu0  ;;  %v3248_v8 = vpop.f32.mrb[37].mxu1 }
 0x2d6   : > { %v3962_v9 = vcombine.low %v3205_v6, %v3207_v7  ;;  %v3963_v13 = vcombine.low %v3246_v52, %v3248_v8  ;;  %v3209_v10 = vpop.f32.mrb[38].mxu0  ;;  %v3250_v11 = vpop.f32.mrb[38].mxu1 }
 0x2d7   : > { %v3210_v12 = vpop.f32.mrb[39].mxu0  ;;  %v3251_v14 = vpop.f32.mrb[39].mxu1 }
 0x2d8   : > { %v3970_v15 = vrot.slane %v3962_v9, %v4698_v22  ;;  %v3977_v16 = vrot.slane %v3963_v13, %v4698_v22 }
 0x2d9   : > { %v1641_v51 = vld [vmem:[%s5407_s4 + $0x38] sm:$0xff] }
 0x2da   : > { %v4104_v54 = vadd.f32 %v3944_v53, %v1641_v51  ;;  %v3978_v18 = vcombine.low %v3970_v15, %v3977_v16 }
 0x2dc   : > { %4120 = vst [vmem:[%s5408_s5 + $0x38] sm:$0xff] %v4104_v54  ;;  %v3287_v20 = vpop.f32.mrb[40].mxu0  ;;  %v3328_v21 = vpop.f32.mrb[40].mxu1 }
 0x2dd   : > { %v3289_v23 = vpop.f32.mrb[41].mxu0  ;;  %v3330_v24 = vpop.f32.mrb[41].mxu1 }
 0x2de   : > { %v3979_v25 = vcombine.low %v3287_v20, %v3289_v23  ;;  %v3980_v26 = vcombine.low %v3328_v21, %v3330_v24  ;;  %v3291_v27 = vpop.f32.mrb[42].mxu0  ;;  %v3332_v28 = vpop.f32.mrb[42].mxu1 }
 0x2df   : > { %v3292_v29 = vpop.f32.mrb[43].mxu0  ;;  %v3333_v30 = vpop.f32.mrb[43].mxu1 }
 0x2e0   : > { %v3987_v31 = vrot.slane %v3979_v25, %v4698_v22  ;;  %v3994_v32 = vrot.slane %v3980_v26, %v4698_v22 }
 0x2e2   : > { %v3995_v34 = vcombine.low %v3987_v31, %v3994_v32 }
 0x2e3   : > { %v1642_v3 = vld [vmem:[%s5407_s4 + $0x40] sm:$0xff] }
 0x2e4   : > { %v4105_v5 = vadd.f32 %v3961_v4, %v1642_v3  ;;  %v3369_v36 = vpop.f32.mrb[44].mxu0  ;;  %v3410_v37 = vpop.f32.mrb[44].mxu1 }
 0x2e5   : > { %v3371_v38 = vpop.f32.mrb[45].mxu0  ;;  %v3412_v39 = vpop.f32.mrb[45].mxu1 }
 0x2e6   : > { %4121 = vst [vmem:[%s5408_s5 + $0x40] sm:$0xff] %v4105_v5  ;;  %v3996_v40 = vcombine.low %v3369_v36, %v3371_v38  ;;  %v3997_v41 = vcombine.low %v3410_v37, %v3412_v39  ;;  %v3373_v42 = vpop.f32.mrb[46].mxu0  ;;  %v3414_v43 = vpop.f32.mrb[46].mxu1 }
 0x2e7   : > { %v3374_v44 = vpop.f32.mrb[47].mxu0  ;;  %v3415_v45 = vpop.f32.mrb[47].mxu1 }
 0x2e8   : > { %v4004_v46 = vrot.slane %v3996_v40, %v4698_v22  ;;  %v4011_v47 = vrot.slane %v3997_v41, %v4698_v22 }
 0x2ea   : > { %v4012_v49 = vcombine.low %v4004_v46, %v4011_v47 }
 0x2ec   : > { %v3451_v51 = vpop.f32.mrb[48].mxu0  ;;  %v3492_v53 = vpop.f32.mrb[48].mxu1 }
 0x2ed   : > { %v1643_v17 = vld [vmem:[%s5407_s4 + $0x48] sm:$0xff]  ;;  %v3453_v54 = vpop.f32.mrb[49].mxu0  ;;  %v3494_v55 = vpop.f32.mrb[49].mxu1 }
 0x2ee   : > { %v4106_v19 = vadd.f32 %v3978_v18, %v1643_v17  ;;  %v4013_v56 = vcombine.low %v3451_v51, %v3453_v54  ;;  %v4014_v57 = vcombine.low %v3492_v53, %v3494_v55  ;;  %v3455_v58 = vpop.f32.mrb[50].mxu0  ;;  %v3496_v59 = vpop.f32.mrb[50].mxu1 }
 0x2ef   : > { %v3456_v60 = vpop.f32.mrb[51].mxu0  ;;  %v3497_v61 = vpop.f32.mrb[51].mxu1 }
 0x2f0   : > { %4122 = vst [vmem:[%s5408_s5 + $0x48] sm:$0xff] %v4106_v19  ;;  %v4021_v62 = vrot.slane %v4013_v56, %v4698_v22  ;;  %v4028_v63 = vrot.slane %v4014_v57, %v4698_v22 }
 0x2f2   : > { %v4029_v1 = vcombine.low %v4021_v62, %v4028_v63 }
 0x2f4   : > { %v3533_v3 = vpop.f32.mrb[52].mxu0  ;;  %v3574_v4 = vpop.f32.mrb[52].mxu1 }
 0x2f5   : > { %v3535_v5 = vpop.f32.mrb[53].mxu0  ;;  %v3576_v6 = vpop.f32.mrb[53].mxu1 }
 0x2f6   : > { %v4030_v52 = vcombine.low %v3533_v3, %v3535_v5  ;;  %v4031_v7 = vcombine.low %v3574_v4, %v3576_v6  ;;  %v3537_v8 = vpop.f32.mrb[54].mxu0  ;;  %v3578_v9 = vpop.f32.mrb[54].mxu1 }
 0x2f7   : > { %v1644_v33 = vld [vmem:[%s5407_s4 + $0x50] sm:$0xff]  ;;  %v3538_v13 = vpop.f32.mrb[55].mxu0  ;;  %v3579_v10 = vpop.f32.mrb[55].mxu1 }
 0x2f8   : > { %v4107_v35 = vadd.f32 %v3995_v34, %v1644_v33  ;;  %v4038_v11 = vrot.slane %v4030_v52, %v4698_v22  ;;  %v4045_v12 = vrot.slane %v4031_v7, %v4698_v22 }
 0x2fa   : > { %4123 = vst [vmem:[%s5408_s5 + $0x50] sm:$0xff] %v4107_v35  ;;  %v4046_v15 = vcombine.low %v4038_v11, %v4045_v12 }
 0x2fc   : > { %v3615_v17 = vpop.f32.mrb[56].mxu0  ;;  %v3656_v18 = vpop.f32.mrb[56].mxu1 }
 0x2fd   : > { %v3617_v19 = vpop.f32.mrb[57].mxu0  ;;  %v3658_v20 = vpop.f32.mrb[57].mxu1 }
 0x2fe   : > { %v4047_v21 = vcombine.low %v3615_v17, %v3617_v19  ;;  %v4048_v23 = vcombine.low %v3656_v18, %v3658_v20  ;;  %v3619_v24 = vpop.f32.mrb[58].mxu0  ;;  %v3660_v25 = vpop.f32.mrb[58].mxu1 }
 0x2ff   : > { %v3620_v26 = vpop.f32.mrb[59].mxu0  ;;  %v3661_v27 = vpop.f32.mrb[59].mxu1 }
 0x300   : > { %v4055_v28 = vrot.slane %v4047_v21, %v4698_v22  ;;  %v4062_v29 = vrot.slane %v4048_v23, %v4698_v22 }
 0x301   : > { %v1645_v48 = vld [vmem:[%s5407_s4 + $0x58] sm:$0xff] }
 0x302   : > { %v4108_v50 = vadd.f32 %v4012_v49, %v1645_v48  ;;  %v4063_v31 = vcombine.low %v4055_v28, %v4062_v29 }
 0x304   : > { %4124 = vst [vmem:[%s5408_s5 + $0x58] sm:$0xff] %v4108_v50  ;;  %v3697_v33 = vpop.f32.mrb[60].mxu0  ;;  %v3738_v34 = vpop.f32.mrb[60].mxu1 }
 0x305   : > { %v3699_v35 = vpop.f32.mrb[61].mxu0  ;;  %v3740_v36 = vpop.f32.mrb[61].mxu1 }
 0x306   : > { %v4064_v37 = vcombine.low %v3697_v33, %v3699_v35  ;;  %v4065_v38 = vcombine.low %v3738_v34, %v3740_v36  ;;  %v3701_v39 = vpop.f32.mrb[62].mxu0  ;;  %v3742_v40 = vpop.f32.mrb[62].mxu1 }
 0x307   : > { %v3702_v41 = vpop.f32.mrb[63].mxu0  ;;  %v3743_v42 = vpop.f32.mrb[63].mxu1 }
 0x308   : > { %v4072_v43 = vrot.slane %v4064_v37, %v4698_v22  ;;  %v4079_v44 = vrot.slane %v4065_v38, %v4698_v22 }
 0x30a   : > { %v4080_v46 = vcombine.low %v4072_v43, %v4079_v44 }
 0x30b   : > { %v1646_v0 = vld [vmem:[%s5407_s4 + $0x60] sm:$0xff] }
 0x30c   : > { %v4109_v2 = vadd.f32 %v4029_v1, %v1646_v0 }
 0x30e   : > { %4125 = vst [vmem:[%s5408_s5 + $0x60] sm:$0xff] %v4109_v2 }
 0x315   : > { %v1647_v14 = vld [vmem:[%s5407_s4 + $0x68] sm:$0xff] }
 0x316   : > { %v4110_v16 = vadd.f32 %v4046_v15, %v1647_v14 }
 0x318   : > { %4126 = vst [vmem:[%s5408_s5 + $0x68] sm:$0xff] %v4110_v16 }
 0x31f   : > { %v1648_v30 = vld [vmem:[%s5407_s4 + $0x70] sm:$0xff] }
 0x320   : > { %v4111_v32 = vadd.f32 %v4063_v31, %v1648_v30 }
 0x322   : > { %4127 = vst [vmem:[%s5408_s5 + $0x70] sm:$0xff] %v4111_v32 }
 0x329   : > { %v1649_v45 = vld [vmem:[%s5407_s4 + $0x78] sm:$0xff] }
 0x32a   : > { %v4112_v47 = vadd.f32 %v4080_v46, %v1649_v45 }
 0x32c   : > { %4128 = vst [vmem:[%s5408_s5 + $0x78] sm:$0xff] %v4112_v47 }
 0x32d PF: > { %p12_p11 = scmp.ge.s32.totalorder %s4528_s22, 6   ;;  %s5409_s18 = smov %s4470_s19 }
 0x32e   : > { %s5410_s19 = smov %s4537_s25  ;;  %s5411_s20 = smov %s4528_s22 }
 0x32f   :  { %14 = sbr.rel (!%p12_p11) target bundleno = 2 (0x2), region = 105 }

</bundles_post_ra>
